<compile_context>
chip_gen: v7x
topology: tpu7x:2x2x1
jax: 0.10.0
libtpu: 0.0.40
codegen_flags: <defaults>
</compile_context>

<pallas_src>
import functools

import jax
import jax.numpy as jnp
import numpy as np
from jax.experimental import pallas as pl
from jax.experimental.pallas import tpu as pltpu

LANE = 128  # TPU lane width.


def _round_up(x, m):
    return ((x + m - 1) // m) * m


def _block_diag(w, pack):
    """block_diag(w, w, ..., w) [pack copies] without scipy deps."""
    if pack == 1:
        return w
    a, b = w.shape
    out = jnp.zeros((pack, a, pack, b), w.dtype)
    idx = jnp.arange(pack)
    out = out.at[idx, :, idx, :].set(w)
    return out.reshape(pack * a, pack * b)


def siren_kernel(x_ref, w_in_ref, b_in_ref, w_h_ref, b_h_ref, w_out_ref,
                 b_out_ref, o_ref, *, num_hidden_layers):
    """Whole SIREN MLP for one tile of (packed) input rows, entirely in VMEM.

    omega_0 is already folded into the sine-layer weights/biases, so each sine
    layer is simply sin(x @ W' + b').

    x_ref:     (tile_rows, pack*data_dim)   compute dtype (bf16 or f32)
    w_in_ref:  (pack*data_dim, Hh)          compute dtype
    b_in_ref:  (1, Hh)                      f32
    w_h_ref:   (L, Hh, Hh)                  compute dtype
    b_h_ref:   (L, 1, Hh)                   f32
    w_out_ref: (Hh, pack*out_channels)      compute dtype
    b_out_ref: (1, pack*out_channels)       f32
    o_ref:     (tile_rows, pack*out_channels) f32
    """
    cdt = w_in_ref.dtype

    # Input sine layer: MXU matmul with f32 accumulation; bias + sin in f32.
    h = jnp.dot(x_ref[...], w_in_ref[...], preferred_element_type=jnp.float32)
    h = jnp.sin(h + b_in_ref[...])

    # Hidden sine layers (static unroll; L = num_layers - 2).
    for l in range(num_hidden_layers):
        h = jnp.dot(h.astype(cdt), w_h_ref[l],
                    preferred_element_type=jnp.float32)
        h = jnp.sin(h + b_h_ref[l])

    # Output linear (no activation, no omega scaling).
    out = jnp.dot(h.astype(cdt), w_out_ref[...],
                  preferred_element_type=jnp.float32)
    o_ref[...] = (out + b_out_ref[...]).astype(o_ref.dtype)


def prepare_siren_params(params, *, omega_0, compute_dtype=jnp.bfloat16):
    """Fold omega_0 into the sine layers, pack `pack` coordinates per row via
    block-diagonal weights, zero-pad the hidden width to a lane multiple, and
    cast matmul operands to `compute_dtype`.

    All transforms are exact rewrites of the original forward pass:
      * block-diagonal weights == independent per-coordinate computation,
      * zero pad-bias + zero pad-rows/cols keep padded channels at sin(0)=0.
    """
    w_in, b_in, w_h, b_h, w_out, b_out = params
    d, H = w_in.shape
    L = w_h.shape[0]
    O = w_out.shape[1]

    # Row-packing factor: several coordinates share one 128-lane row.
    pack = LANE // H if (d == H and LANE % H == 0) else 1

    def btile(b):  # (1, n) -> (1, pack*n)
        return b if pack == 1 else jnp.tile(b, (1, pack))

    # Fold omega_0 into the sine layers, then pack.
    w_in_p = _block_diag(omega_0 * w_in, pack)                # (pack*d, pack*H)
    b_in_p = btile(omega_0 * b_in)                            # (1, pack*H)
    w_h_p = jnp.stack([_block_diag(omega_0 * w_h[l], pack) for l in range(L)])
    b_h_p = jnp.stack([btile(omega_0 * b_h[l]) for l in range(L)])
    w_out_p = _block_diag(w_out, pack)                        # (pack*H, pack*O)
    b_out_p = btile(b_out)                                    # (1, pack*O)

    # Zero-pad the hidden width up to a full lane multiple if needed.
    Hh = max(LANE, _round_up(pack * H, LANE))
    ph = Hh - pack * H
    if ph:
        w_in_p = jnp.pad(w_in_p, ((0, 0), (0, ph)))
        b_in_p = jnp.pad(b_in_p, ((0, 0), (0, ph)))
        w_h_p = jnp.pad(w_h_p, ((0, 0), (0, ph), (0, ph)))
        b_h_p = jnp.pad(b_h_p, ((0, 0), (0, 0), (0, ph)))
        w_out_p = jnp.pad(w_out_p, ((0, ph), (0, 0)))

    return dict(
        w_in=w_in_p.astype(compute_dtype),
        b_in=b_in_p.astype(jnp.float32),
        w_h=w_h_p.astype(compute_dtype),
        b_h=b_h_p.astype(jnp.float32),
        w_out=w_out_p.astype(compute_dtype),
        b_out=b_out_p.astype(jnp.float32),
        pack=pack, data_dim=d, out_channels=O)


def siren_forward(x, prepared, *, tile_n=2048, vmem_limit_bytes=None):
    """Pallas-call wrapper: grid over row tiles of x; weights resident in VMEM."""
    pack = prepared["pack"]
    d = prepared["data_dim"]
    O = prepared["out_channels"]
    w_in, b_in = prepared["w_in"], prepared["b_in"]
    w_h, b_h = prepared["w_h"], prepared["b_h"]
    w_out, b_out = prepared["w_out"], prepared["b_out"]

    N, d_in = x.shape
    assert d_in == d
    assert tile_n % (8 * pack) == 0

    # Cast coordinates to the matmul compute dtype (halves HBM reads when
    # bf16) and pad the row count up to a multiple of tile_n.
    x = x.astype(w_in.dtype)
    n_pad = (-N) % tile_n
    if n_pad:
        x = jnp.pad(x, ((0, n_pad), (0, 0)))
    Np = N + n_pad

    # Free contiguous reshape: `pack` consecutive coordinates share one row so
    # all 128 lanes carry real data.
    rows = Np // pack
    tile_rows = tile_n // pack
    xp = x.reshape(rows, pack * d)

    Opk = w_out.shape[1]          # pack * out_channels
    L = w_h.shape[0]

    kernel = functools.partial(siren_kernel, num_hidden_layers=L)

    def resident(shape):
        # Whole array in VMEM, same (zero) block index at every grid step, so
        # it stays resident across the row loop.
        return pl.BlockSpec(shape, lambda i, _n=len(shape): (0,) * _n)

    out = pl.pallas_call(
        kernel,
        out_shape=jax.ShapeDtypeStruct((rows, Opk), jnp.float32),
        grid_spec=pltpu.PrefetchScalarGridSpec(
            num_scalar_prefetch=0,
            grid=(rows // tile_rows,),
            in_specs=[
                pl.BlockSpec((tile_rows, pack * d), lambda i: (i, 0)),  # x tile
                resident(w_in.shape),
                resident(b_in.shape),
                resident(w_h.shape),
                resident(b_h.shape),
                resident(w_out.shape),
                resident(b_out.shape),
            ],
            out_specs=pl.BlockSpec((tile_rows, Opk), lambda i: (i, 0)),
        ),
        compiler_params=pltpu.CompilerParams(
            dimension_semantics=("parallel",),
            vmem_limit_bytes=vmem_limit_bytes),
    )(xp, w_in, b_in, w_h, b_h, w_out, b_out)

    # Free reshapes back to the module's (N, out_channels).
    return out.reshape(Np, O)[:N]


def siren_reference(x, params, *, omega_0):
    """Pure-JAX forward from the ORIGINAL (unpacked, unfolded) parameters —
    i.e. the PyTorch module's forward pass verbatim."""
    w_in, b_in, w_h, b_h, w_out, b_out = params
    hp = jax.lax.Precision.HIGHEST
    h = jnp.sin(omega_0 * (jnp.dot(x, w_in, precision=hp) + b_in))
    for l in range(w_h.shape[0]):
        h = jnp.sin(omega_0 * (jnp.dot(h, w_h[l], precision=hp) + b_h[l]))
    return jnp.dot(h, w_out, precision=hp) + b_out


def siren_reference_prepared(x, prepared):
    """Pure-JAX forward using the same packed / folded / cast params as the
    kernel (used for the bf16 fast path, same quantization of the weights)."""
    pack = prepared["pack"]
    d = prepared["data_dim"]
    O = prepared["out_channels"]
    w_in, b_in = prepared["w_in"], prepared["b_in"]
    w_h, b_h = prepared["w_h"], prepared["b_h"]
    w_out, b_out = prepared["w_out"], prepared["b_out"]
    cdt = w_in.dtype

    N = x.shape[0]
    n_pad = (-N) % pack
    xp = jnp.pad(x, ((0, n_pad), (0, 0))).astype(cdt).reshape(-1, pack * d)
    h = jnp.sin(jnp.dot(xp, w_in, preferred_element_type=jnp.float32) + b_in)
    for l in range(w_h.shape[0]):
        h = jnp.sin(jnp.dot(h.astype(cdt), w_h[l],
                            preferred_element_type=jnp.float32) + b_h[l])
    out = jnp.dot(h.astype(cdt), w_out,
                  preferred_element_type=jnp.float32) + b_out
    return out.reshape(N + n_pad, O)[:N]


def init_siren_params(key, *, data_dim, num_hidden, num_layers, out_channels,
                      omega_0, use_bias=True):
    """Deterministic SIREN-style init (shapes / distributions match the
    PyTorch module; exact torch RNG streams are not reproduced)."""
    assert num_layers >= 3 and data_dim == num_hidden
    num_hidden_layers = num_layers - 2
    ks = jax.random.split(key, 4)

    # Input layer: torch default Linear init, uniform(-1/sqrt(in), 1/sqrt(in)).
    s_in = 1.0 / np.sqrt(data_dim)
    w_in = jax.random.uniform(ks[0], (data_dim, num_hidden), jnp.float32, -s_in, s_in)
    b_in = jax.random.uniform(ks[1], (1, num_hidden), jnp.float32, -s_in, s_in)

    # Hidden layers: uniform(-sqrt(6/in)/omega_0, +sqrt(6/in)/omega_0);
    # bias_init_type='zero' branch -> constant(val=w_std).
    s_h = np.sqrt(6.0 / data_dim) / omega_0
    w_h = jax.random.uniform(ks[2], (num_hidden_layers, num_hidden, num_hidden),
                             jnp.float32, -s_h, s_h)
    b_h = jnp.full((num_hidden_layers, 1, num_hidden), s_h, jnp.float32)

    # Output layer: kaiming_uniform(nonlinearity='linear') weight, zero bias.
    s_out = np.sqrt(3.0 / num_hidden)
    w_out = jax.random.uniform(ks[3], (num_hidden, out_channels), jnp.float32,
                               -s_out, s_out)
    b_out = jnp.zeros((1, out_channels), jnp.float32)

    if not use_bias:
        b_in = jnp.zeros_like(b_in)
        b_h = jnp.zeros_like(b_h)
        b_out = jnp.zeros_like(b_out)
    return (w_in, b_in, w_h, b_h, w_out, b_out)


if __name__ == "__main__":
    # Module-consistent small config: data_dim == num_hidden (required by the
    # module's forward), num_layers=4 -> 2 hidden sine layers, 3 output chans.
    data_dim = 32
    num_hidden = 32
    num_layers = 4
    out_channels = 3
    omega_0 = 30.0
    N = 1024          # coordinate rows
    tile_n = 512      # -> grid of 2 row tiles; packed tile is (128, 128)

    key = jax.random.PRNGKey(0)
    k_x, k_p = jax.random.split(key)
    x = jax.random.uniform(k_x, (N, data_dim), jnp.float32, -1.0, 1.0)
    params = init_siren_params(
        k_p, data_dim=data_dim, num_hidden=num_hidden, num_layers=num_layers,
        out_channels=out_channels, omega_0=omega_0, use_bias=True)

    # --- full-precision path: validates the rewrite (omega folding + packing)
    #     against the original module forward pass ---
    prep_f32 = prepare_siren_params(params, omega_0=omega_0,
                                    compute_dtype=jnp.float32)
    out_f32 = jax.block_until_ready(siren_forward(x, prep_f32, tile_n=tile_n))
    ref_f32 = jax.block_until_ready(siren_reference(x, params, omega_0=omega_0))
    np.testing.assert_allclose(np.asarray(out_f32), np.asarray(ref_f32),
                               rtol=1e-4, atol=1e-4)

    # --- fast path: bf16 matmul operands, f32 accumulation + f32 bias/sin ---
    prep_bf16 = prepare_siren_params(params, omega_0=omega_0,
                                     compute_dtype=jnp.bfloat16)
    out_bf16 = jax.block_until_ready(siren_forward(x, prep_bf16, tile_n=tile_n))
    ref_bf16 = jax.block_until_ready(siren_reference_prepared(x, prep_bf16))
    np.testing.assert_allclose(np.asarray(out_bf16), np.asarray(ref_bf16),
                               rtol=1e-2, atol=1e-2)

    print("KERNEL_OK")
</pallas_src>

<mosaic_0001>
module attributes {stable_mosaic.version = 11 : i64} {
  func.func @siren_kernel(%arg0: i32, %arg1: memref<128x128xf32, #tpu.memory_space<vmem>>, %arg2: memref<128x128xf32, #tpu.memory_space<vmem>>, %arg3: memref<1x128xf32, #tpu.memory_space<vmem>>, %arg4: memref<2x128x128xf32, #tpu.memory_space<vmem>>, %arg5: memref<2x1x128xf32, #tpu.memory_space<vmem>>, %arg6: memref<128x12xf32, #tpu.memory_space<vmem>>, %arg7: memref<1x12xf32, #tpu.memory_space<vmem>>, %arg8: memref<128x12xf32, #tpu.memory_space<vmem>>) attributes {dimension_semantics = [#tpu.dimension_semantics<parallel>], iteration_bounds = array<i64: 2>, scalar_prefetch = 0 : i64, scratch_operands = 0 : i64, tpu.core_type = #tpu.core_type<tc>, window_params = [{transform_indices = @transform_0, window_bounds = array<i64: 128, 128>}, {pipeline_mode = #tpu.pipeline_mode<synchronous>, transform_indices = @transform_1, window_bounds = array<i64: 128, 128>}, {pipeline_mode = #tpu.pipeline_mode<synchronous>, transform_indices = @transform_2, window_bounds = array<i64: 1, 128>}, {pipeline_mode = #tpu.pipeline_mode<synchronous>, transform_indices = @transform_3, window_bounds = array<i64: 2, 128, 128>}, {pipeline_mode = #tpu.pipeline_mode<synchronous>, transform_indices = @transform_4, window_bounds = array<i64: 2, 1, 128>}, {pipeline_mode = #tpu.pipeline_mode<synchronous>, transform_indices = @transform_5, window_bounds = array<i64: 128, 12>}, {pipeline_mode = #tpu.pipeline_mode<synchronous>, transform_indices = @transform_6, window_bounds = array<i64: 1, 12>}, {transform_indices = @transform_7, window_bounds = array<i64: 128, 12>}]} {
    %c0 = arith.constant 0 : index
    %c0_0 = arith.constant 0 : index
    %0 = vector.load %arg1[%c0, %c0_0] : memref<128x128xf32, #tpu.memory_space<vmem>>, vector<128x128xf32>
    %c0_1 = arith.constant 0 : index
    %c0_2 = arith.constant 0 : index
    %1 = vector.load %arg2[%c0_1, %c0_2] : memref<128x128xf32, #tpu.memory_space<vmem>>, vector<128x128xf32>
    %cst = arith.constant dense<0.000000e+00> : vector<128x128xf32>
    %2 = tpu.matmul %0, %1, %cst {dimension_numbers = #tpu.dot_dimension_numbers<[1], [0], [0], [1], [0, 0, 1, 1], [], []>} : vector<128x128xf32>, vector<128x128xf32>, vector<128x128xf32> -> vector<128x128xf32>
    %c0_3 = arith.constant 0 : index
    %c0_4 = arith.constant 0 : index
    %3 = vector.load %arg3[%c0_3, %c0_4] : memref<1x128xf32, #tpu.memory_space<vmem>>, vector<1x128xf32>
    %4 = vector.broadcast %3 : vector<1x128xf32> to vector<128x128xf32>
    %5 = arith.addf %2, %4 : vector<128x128xf32>
    %6 = math.sin %5 : vector<128x128xf32>
    %c0_5 = arith.constant 0 : index
    %c0_6 = arith.constant 0 : index
    %c0_7 = arith.constant 0 : index
    %7 = vector.load %arg4[%c0_5, %c0_6, %c0_7] : memref<2x128x128xf32, #tpu.memory_space<vmem>>, vector<1x128x128xf32>
    %8 = vector.shape_cast %7 : vector<1x128x128xf32> to vector<128x128xf32>
    %cst_8 = arith.constant dense<0.000000e+00> : vector<128x128xf32>
    %9 = tpu.matmul %6, %8, %cst_8 {dimension_numbers = #tpu.dot_dimension_numbers<[1], [0], [0], [1], [0, 0, 1, 1], [], []>} : vector<128x128xf32>, vector<128x128xf32>, vector<128x128xf32> -> vector<128x128xf32>
    %c0_9 = arith.constant 0 : index
    %c0_10 = arith.constant 0 : index
    %c0_11 = arith.constant 0 : index
    %10 = vector.load %arg5[%c0_9, %c0_10, %c0_11] : memref<2x1x128xf32, #tpu.memory_space<vmem>>, vector<1x1x128xf32>
    %11 = vector.shape_cast %10 : vector<1x1x128xf32> to vector<1x128xf32>
    %12 = vector.broadcast %11 : vector<1x128xf32> to vector<128x128xf32>
    %13 = arith.addf %9, %12 : vector<128x128xf32>
    %14 = math.sin %13 : vector<128x128xf32>
    %c1 = arith.constant 1 : index
    %c0_12 = arith.constant 0 : index
    %c0_13 = arith.constant 0 : index
    %15 = vector.load %arg4[%c1, %c0_12, %c0_13] : memref<2x128x128xf32, #tpu.memory_space<vmem>>, vector<1x128x128xf32>
    %16 = vector.shape_cast %15 : vector<1x128x128xf32> to vector<128x128xf32>
    %cst_14 = arith.constant dense<0.000000e+00> : vector<128x128xf32>
    %17 = tpu.matmul %14, %16, %cst_14 {dimension_numbers = #tpu.dot_dimension_numbers<[1], [0], [0], [1], [0, 0, 1, 1], [], []>} : vector<128x128xf32>, vector<128x128xf32>, vector<128x128xf32> -> vector<128x128xf32>
    %c1_15 = arith.constant 1 : index
    %c0_16 = arith.constant 0 : index
    %c0_17 = arith.constant 0 : index
    %18 = vector.load %arg5[%c1_15, %c0_16, %c0_17] : memref<2x1x128xf32, #tpu.memory_space<vmem>>, vector<1x1x128xf32>
    %19 = vector.shape_cast %18 : vector<1x1x128xf32> to vector<1x128xf32>
    %20 = vector.broadcast %19 : vector<1x128xf32> to vector<128x128xf32>
    %21 = arith.addf %17, %20 : vector<128x128xf32>
    %22 = math.sin %21 : vector<128x128xf32>
    %c0_18 = arith.constant 0 : index
    %c0_19 = arith.constant 0 : index
    %23 = vector.load %arg6[%c0_18, %c0_19] : memref<128x12xf32, #tpu.memory_space<vmem>>, vector<128x12xf32>
    %cst_20 = arith.constant dense<0.000000e+00> : vector<128x12xf32>
    %24 = tpu.matmul %22, %23, %cst_20 {dimension_numbers = #tpu.dot_dimension_numbers<[1], [0], [0], [1], [0, 0, 1, 1], [], []>} : vector<128x128xf32>, vector<128x12xf32>, vector<128x12xf32> -> vector<128x12xf32>
    %c0_21 = arith.constant 0 : index
    %c0_22 = arith.constant 0 : index
    %25 = vector.load %arg7[%c0_21, %c0_22] : memref<1x12xf32, #tpu.memory_space<vmem>>, vector<1x12xf32>
    %26 = vector.broadcast %25 : vector<1x12xf32> to vector<128x12xf32>
    %27 = arith.addf %24, %26 : vector<128x12xf32>
    %c0_23 = arith.constant 0 : index
    %c0_24 = arith.constant 0 : index
    %28 = vector.load %arg8[%c0_23, %c0_24] : memref<128x12xf32, #tpu.memory_space<vmem>>, vector<128x12xf32>
    tpu.vector_store %arg8[%c0_23, %c0_24], %27 {strides = array<i32>} : memref<128x12xf32, #tpu.memory_space<vmem>>, vector<128x12xf32>,
    return
  }
  func.func @transform_0(%arg0: i32) -> (i32, i32) {
    %c0_i32 = arith.constant 0 : i32
    %c0_i32_0 = arith.constant 0 : i32
    return %arg0, %c0_i32 : i32, i32
  }
  func.func @transform_1(%arg0: i32) -> (i32, i32) {
    %c0_i32 = arith.constant 0 : i32
    %c0_i32_0 = arith.constant 0 : i32
    %c0_i32_1 = arith.constant 0 : i32
    return %c0_i32, %c0_i32_0 : i32, i32
  }
  func.func @transform_2(%arg0: i32) -> (i32, i32) {
    %c0_i32 = arith.constant 0 : i32
    %c0_i32_0 = arith.constant 0 : i32
    %c0_i32_1 = arith.constant 0 : i32
    return %c0_i32, %c0_i32_0 : i32, i32
  }
  func.func @transform_3(%arg0: i32) -> (i32, i32, i32) {
    %c0_i32 = arith.constant 0 : i32
    %c0_i32_0 = arith.constant 0 : i32
    %c0_i32_1 = arith.constant 0 : i32
    %c0_i32_2 = arith.constant 0 : i32
    return %c0_i32, %c0_i32_0, %c0_i32_1 : i32, i32, i32
  }
  func.func @transform_4(%arg0: i32) -> (i32, i32, i32) {
    %c0_i32 = arith.constant 0 : i32
    %c0_i32_0 = arith.constant 0 : i32
    %c0_i32_1 = arith.constant 0 : i32
    %c0_i32_2 = arith.constant 0 : i32
    return %c0_i32, %c0_i32_0, %c0_i32_1 : i32, i32, i32
  }
  func.func @transform_5(%arg0: i32) -> (i32, i32) {
    %c0_i32 = arith.constant 0 : i32
    %c0_i32_0 = arith.constant 0 : i32
    %c0_i32_1 = arith.constant 0 : i32
    return %c0_i32, %c0_i32_0 : i32, i32
  }
  func.func @transform_6(%arg0: i32) -> (i32, i32) {
    %c0_i32 = arith.constant 0 : i32
    %c0_i32_0 = arith.constant 0 : i32
    %c0_i32_1 = arith.constant 0 : i32
    return %c0_i32, %c0_i32_0 : i32, i32
  }
  func.func @transform_7(%arg0: i32) -> (i32, i32) {
    %c0_i32 = arith.constant 0 : i32
    %c0_i32_0 = arith.constant 0 : i32
    return %arg0, %c0_i32 : i32, i32
  }
}

</mosaic_0001>

<bundles_post_ra>
// kernel: tpu_custom_call.1
= control target key start
LH: loop header
LB: loop body
LE: loop exit
PB: predicated region body
PF: predicated region fallthrough
CT: control target
= control target key end

     0   :  { %12 = vsyncpa [#allocation3], 0  ;;  %s12135_s0 = inlined_call_operand.hbm [shape: f32[256,128], index: 0, kind: input, shape index: {}]   ;;  %s12136_s1 = inlined_call_operand.vmem [shape: f32[128,128], index: 1, kind: input, shape index: {}]   ;;  %s12137_s2 = inlined_call_operand.vmem [shape: f32[1,128], index: 2, kind: input, shape index: {}]   ;;  %s12138_s3 = inlined_call_operand.hbm [shape: f32[2,128,128], index: 3, kind: input, shape index: {}]   ;;  %s12139_s4 = inlined_call_operand.vmem [shape: f32[2,1,128], index: 4, kind: input, shape index: {}]   ;;  %s12140_s5 = inlined_call_operand.vmem [shape: f32[128,12], index: 5, kind: input, shape index: {}]   ;;  %s12141_s6 = inlined_call_operand.vmem [shape: f32[1,12], index: 6, kind: input, shape index: {}]   ;;  %s12142_s7 = inlined_call_operand.vmem [shape: f32[256,12], index: 7, kind: output, shape index: {}]  }
   0x1   :  { %14 = vsyncpa [#allocation3 + $0x1], 0 }
   0x2   :  { %15 = vsyncpa [#allocation5], 0  ;;  %s7378_s24 = smov 0   ;;  %s7380_s25 = smov 0  }
   0x3   :  { %s7382_s26 = smov 0   ;;  %s7384_s27 = smov 0  }
   0x4 LB: > { %s6092_s28 = sadd.s32 4294967295, %s7326_s27   ;;  %p41_p0 = scmp.ne.s32.totalorder %s7318_s25, %s7314_s24  ;;  %s7326_s27 = sphi %s7384_s27, %s12689_s27   ;;  %s7322_s26 = sphi %s7382_s26, %s12688_s26   ;;  %s7318_s25 = sphi %s7380_s25, %s12687_s25   ;;  %s7314_s24 = sphi %s7378_s24, %s12686_s24  }
   0x5   : > { %p7400_p1 = scmp.eq.s32.totalorder %s6092_s28, 0  ;;  %p6094_p2 = scmp.ge.s32.totalorder %s7326_s27, 1 }
   0x6   : > { %p204_p3 = scmp.lt.s32.totalorder %s7326_s27, 3  ;;  %s7328_s9 = smov [#allocation4]  }
   0x7   : > { %s12317_s29 = scalar_select %p7400_p1, 1, 0 }
   0x8   : > { %p7408_p4 = por %p7400_p1, %p41_p0  ;;  %p7412_p5 = pnand %p6094_p2, %p204_p3 }
   0x9   : > { %s222_s10 = sshll.u32 %s7328_s9, 4  ;;  %s7425_s12 = sadd.s32 1, %s7326_s27   ;;  %s223_s10 = int_to_ptr.vmem [resolvable:$true] %s222_s10 }
   0xa   : > { %s12318_s30 = scalar_select %p7408_p4, 1, 0 }
   0xb   : > { %s12319_s8 = scalar_select %p7412_p5, 1, 0 }
   0xc   : > { %p6983_p6 = pneg %p7412_p5  ;;  %s28_s13 = sadd.s32 1, %s7322_s26 }
   0xd   : > { %s25_s14 = ssub.s32 %s7326_s27, %s7425_s12  ;;  %s7230_s17 = scalar_lea.hbm %s12138_s3, 4096 }
   0xe   : > { %p7420_p7 = pnand %p6983_p6, %p7400_p1  ;;  %p7231_p8 = scmp.ne.s32.totalorder %s12138_s3, %s7230_s17 }
   0xf   : > { %p7237_p12 = scmp.lt.u32.totalorder %s7230_s17, %s12138_s3 }
  0x10   : > { %p7232_p9 = pneg %p7420_p7 }
  0x12   : > { %p7233_p10 = pnand %p7232_p9, %p7231_p8 }
  0x14   : > { %p7234_p11 = pneg %p7233_p10 }
  0x16   : > { %p7239_p13 = pnand %p7237_p12, %p7234_p11 }
  0x18   : > { %7242 = shalt.err (!%p7239_p13)
}
  0x19   : > { %s7243_s22 = scalar_lea.vmem %s223_s10, 4096  ;;  %p7251_p6 = scmp.lt.s32.totalorder %s223_s10, %s223_s10 }
  0x1a   : > { %p7244_p0 = scmp.ne.s32.totalorder %s223_s10, %s7243_s22  ;;  %p7252_p1 = scmp.lt.s32.totalorder %s7243_s22, %s7243_s22 }
  0x1c   : > { %p7246_p2 = pnand %p7244_p0, %p7232_p9  ;;  %p7253_p4 = por %p7252_p1, %p7251_p6 }
  0x1e   : > { %p7247_p3 = pneg %p7246_p2 }
  0x20   : > { %p7254_p5 = pnand %p7253_p4, %p7247_p3 }
  0x22   : > { %7257 = shalt.err (!%p7254_p5)
}
  0x23   : > { %s7329_s23 = smov 128   ;;  %s7330_s24 = smov 8  }
  0x24   : > { %6986 = dma.hbm_to_vmem [thread:$0]  (!%p7420_p7), %s12138_s3, 4096, %s223_s10, [#allocation5], %s7329_s23, %s7329_s23, %s7330_s24  }
  0x25   : > { %p26_p1 = scmp.eq.s32.totalorder %s25_s14, 0  ;;  %p35_p4 = scmp.ne.s32.totalorder %s7322_s26, %s7318_s25 }
  0x26   : > { %p36_p5 = scmp.eq.s32.totalorder %s7326_s27, 0  ;;  %p6992_p8 = scmp.lt.s32.totalorder %s7326_s27, 2 }
  0x27   : > { %s7454_s16 = scalar_select %p26_p1, %s7322_s26, %s28_s13  }
  0x28   : > { %p37_p9 = por %p36_p5, %p35_p4  ;;  %s245_s17 = sand.u32 1, %s7322_s26  }
  0x29   : > { %s6097_s18 = sshll.u32 %s245_s17, 7  ;;  %s6304_s19 = sshll.u32 %s7326_s27, 11 }
  0x2a   : > { %s7461_s11 = scalar_lea.hbm %s12135_s0, %s6304_s19  ;;  %s249_s10 = scalar_lea.vmem [#allocation2], %s6097_s18 }
  0x2b   : > { %s256_s14 = sshll.u32 %s249_s10, 4  ;;  %p7465_p7 = pnand %p6992_p8, %p37_p9  ;;  %s7463_s14 = int_to_ptr.vmem [resolvable:$true] %s256_s14 }
  0x2c   : > { %s7469_s22 = scalar_lea.sflag [#allocation3], %s245_s17  ;;  %s7258_s9 = scalar_lea.hbm %s7461_s11, 2048 }
  0x2d   : > { %p7259_p10 = scmp.ne.s32.totalorder %s7461_s11, %s7258_s9  ;;  %p7260_p11 = pneg %p7465_p7 }
  0x2e   : > { %s7263_s19 = scalar_lea.hbm %s12135_s0, 4096  ;;  %p7264_p0 = scmp.lt.u32.totalorder %s7461_s11, %s12135_s0 }
  0x2f   : > { %p7261_p12 = pnand %p7260_p11, %p7259_p10  ;;  %p7265_p2 = scmp.lt.u32.totalorder %s7263_s19, %s7258_s9 }
  0x30   : > { %p7267_p6 = scmp.lt.u32.totalorder %s7258_s9, %s7461_s11 }
  0x31   : > { %p7262_p13 = pneg %p7261_p12  ;;  %p7266_p3 = por %p7265_p2, %p7264_p0 }
  0x33   : > { %p7268_p1 = por %p7267_p6, %p7266_p3 }
  0x35   : > { %p7269_p4 = pnand %p7268_p1, %p7262_p13 }
  0x37   : > { %7272 = shalt.err (!%p7269_p4)
}
  0x38   : > { %s7273_s17 = scalar_lea.vmem %s7463_s14, 2048  ;;  %s7331_s10 = smov [#allocation2]  }
  0x39   : > { %p7274_p5 = scmp.ne.s32.totalorder %s7463_s14, %s7273_s17  ;;  %s7278_s15 = sshll.u32 %s7331_s10, 4  ;;  %s7279_s15 = int_to_ptr.vmem [resolvable:$false] %s7278_s15 }
  0x3a   : > { %s7280_s18 = scalar_lea.vmem %s7279_s15, 4096  ;;  %p7281_p10 = scmp.lt.s32.totalorder %s7463_s14, %s7279_s15 }
  0x3b   : > { %p7276_p8 = pnand %p7274_p5, %p7260_p11  ;;  %p7282_p12 = scmp.lt.s32.totalorder %s7280_s18, %s7273_s17 }
  0x3d   : > { %p7277_p9 = pneg %p7276_p8  ;;  %p7283_p0 = por %p7282_p12, %p7281_p10 }
  0x3f   : > { %p7284_p2 = pnand %p7283_p0, %p7277_p9 }
  0x41   : > { %7287 = shalt.err (!%p7284_p2)
}
  0x42   : > { %6990 = dma.hbm_to_vmem [thread:$0]  (!%p7465_p7), %s7461_s11, 2048, %s7463_s14, %s7469_s22, %s7329_s23, %s7329_s23, %s7330_s24  }
  0x43   : > { %p12322_p11 = scmp.ne.s32.totalorder %s12319_s8, 0 }
  0x45   : > { %268 = sbr.rel (%p12322_p11) target bundleno = 2100 (0x834), region = 48 }
  0x4c   : > { %s270_s9 = sand.u32 1, %s7318_s25   ;;  %p12323_p13 = scmp.ne.s32.totalorder %s12318_s30, 0 }
  0x4d   : > { %s6101_s19 = sshll.u32 %s270_s9, 7  ;;  %s271_s20 = scalar_lea.sflag [#allocation3], %s270_s9 }
  0x4e   : > { %s7503_s21 = scalar_lea.vmem [#allocation2], %s6101_s19 }
  0x4f   : > { %7305 = dma.done.wait (%p12323_p13), %s271_s20, 2048  }
  0x50   : > { %7307 = vsyncadd (%p12323_p13), %s271_s20, 4294965248  ;;  %p12324_p3 = scmp.ne.s32.totalorder %s12317_s29, 0 }
  0x52   : > { %7309 = dma.done.wait (%p12324_p3), [#allocation5], 4096  }
  0x53   : > { %7311 = vsyncadd (%p12324_p3), [#allocation5], 4294963200  ;;  %v332_v0 = vld [vmem:[%s12136_s1] sm:$0xff]  ;;  %v333_v1 = vld [vmem:[%s12136_s1 + $0x8] sm:$0xff]  ;;  %s6103_s17 = sshll.u32 %s6092_s28, 4 }
  0x54   : > { %v334_v2 = vld [vmem:[%s12136_s1 + $0x10] sm:$0xff]  ;;  %v6657_v3 = vpack.c.bf16 %v333_v1, %v332_v0  ;;  %v335_v4 = vld [vmem:[%s12136_s1 + $0x18] sm:$0xff]  ;;  %v336_v6 = vld [vmem:[%s12136_s1 + $0x20] sm:$0xff]  ;;  %p311_p7 = scmp.lt.s32.totalorder %s6103_s17, 31 }
  0x55   : > { %v6661_v5 = vpack.c.bf16 %v335_v4, %v334_v2  ;;  %v337_v7 = vld [vmem:[%s12136_s1 + $0x28] sm:$0xff]  ;;  %v316_v9 = vld [vmem:[%s7503_s21] sm:$0xff]  ;;  %v338_v10 = vld [vmem:[%s12136_s1 + $0x30] sm:$0xff] }
  0x56   : > { %6658 = vmatprep.subr.bf16.mxu0 %v6657_v3  ;;  %v6665_v8 = vpack.c.bf16 %v337_v7, %v336_v6  ;;  %v339_v11 = vld [vmem:[%s12136_s1 + $0x38] sm:$0xff]  ;;  %6465 = vmatprep.mubr.f32.mxu0 %v316_v9  ;;  %v340_v13 = vld [vmem:[%s12136_s1 + $0x40] sm:$0xff]  ;;  %v341_v14 = vld [vmem:[%s12136_s1 + $0x48] sm:$0xff]  ;;  %s12691_s17 = smov (!%p311_p7, %s6103_s17), 31 }
  0x57   : > { %6660 = vmatpush3.bf16.msra.mxu0 %v6657_v3  ;;  %v6669_v12 = vpack.c.bf16 %v339_v11, %v338_v10  ;;  %v6673_v15 = vpack.c.bf16 %v341_v14, %v340_v13  ;;  %v342_v16 = vld [vmem:[%s12136_s1 + $0x50] sm:$0xff]  ;;  %v343_v17 = vld [vmem:[%s12136_s1 + $0x58] sm:$0xff]  ;;  %v344_v19 = vld [vmem:[%s12136_s1 + $0x60] sm:$0xff]  ;;  %v12162_v10 = vmov 683565275   ;;  %s6104_s10 = sshll.u32 %s12691_s17, 3 }
  0x58   : > { %6662 = vmatprep.subr.bf16.mxu0 %v6661_v5  ;;  %v6677_v18 = vpack.c.bf16 %v343_v17, %v342_v16  ;;  %v345_v20 = vld [vmem:[%s12136_s1 + $0x68] sm:$0xff]  ;;  %v346_v22 = vld [vmem:[%s12136_s1 + $0x70] sm:$0xff]  ;;  %v347_v23 = vld [vmem:[%s12136_s1 + $0x78] sm:$0xff]  ;;  %v12151_v17 = vmov 2131351028   ;;  %s12088_s20 = scalar_lea.vmem %s12142_s7, %s6104_s10 }
  0x59   : > { %v6681_v21 = vpack.c.bf16 %v345_v20, %v344_v19  ;;  %v6685_v24 = vpack.c.bf16 %v347_v23, %v346_v22  ;;  %v317_v25 = vld [vmem:[%s7503_s21 + $0x8] sm:$0xff]  ;;  %v318_v26 = vld [vmem:[%s7503_s21 + $0x10] sm:$0xff]  ;;  %v319_v27 = vld [vmem:[%s7503_s21 + $0x18] sm:$0xff]  ;;  %v12158_v20 = vmov 2102212464  }
  0x5a   : > { %v320_v28 = vld [vmem:[%s7503_s21 + $0x20] sm:$0xff]  ;;  %v321_v29 = vld [vmem:[%s7503_s21 + $0x28] sm:$0xff]  ;;  %v322_v30 = vld [vmem:[%s7503_s21 + $0x30] sm:$0xff] }
  0x5b   : > { %6664 = vmatpush3.bf16.msra.mxu0 %v6661_v5  ;;  %v323_v31 = vld [vmem:[%s7503_s21 + $0x38] sm:$0xff]  ;;  %v324_v32 = vld [vmem:[%s7503_s21 + $0x40] sm:$0xff]  ;;  %v325_v33 = vld [vmem:[%s7503_s21 + $0x48] sm:$0xff] }
  0x5c   : > { %6666 = vmatprep.subr.bf16.mxu0 %v6665_v8  ;;  %v326_v34 = vld [vmem:[%s7503_s21 + $0x50] sm:$0xff]  ;;  %v327_v35 = vld [vmem:[%s7503_s21 + $0x58] sm:$0xff]  ;;  %v328_v36 = vld [vmem:[%s7503_s21 + $0x60] sm:$0xff] }
  0x5d   : > { %v329_v37 = vld [vmem:[%s7503_s21 + $0x68] sm:$0xff]  ;;  %v330_v38 = vld [vmem:[%s7503_s21 + $0x70] sm:$0xff]  ;;  %v331_v39 = vld [vmem:[%s7503_s21 + $0x78] sm:$0xff] }
  0x5e   : > { %v7580_v40 = vld [vmem:[%s12137_s2] ss:$0 sm:$0xff] }
  0x5f   : > { %6668 = vmatpush3.bf16.msra.mxu0 %v6665_v8 }
  0x60   : > { %6670 = vmatprep.subr.bf16.mxu0 %v6669_v12 }
  0x63   : > { %6672 = vmatpush3.bf16.msra.mxu0 %v6669_v12  ;;  %v12160_v12 = vmov 2475754826  }
  0x64   : > { %6674 = vmatprep.subr.bf16.mxu0 %v6673_v15 }
  0x67   : > { %6676 = vmatpush3.bf16.msra.mxu0 %v6673_v15 }
  0x68   : > { %6678 = vmatprep.subr.bf16.mxu0 %v6677_v18 }
  0x6b   : > { %6680 = vmatpush3.bf16.msra.mxu0 %v6677_v18 }
  0x6c   : > { %6682 = vmatprep.subr.bf16.mxu0 %v6681_v21 }
  0x6f   : > { %6684 = vmatpush3.bf16.msra.mxu0 %v6681_v21 }
  0x70   : > { %6686 = vmatprep.subr.bf16.mxu0 %v6685_v24 }
  0x73   : > { %6688 = vmatpush3.bf16.msra.mxu0 %v6685_v24  ;;  %v12156_v24 = vmov 920167782  }
  0x76   : > { %6466 = vmatmul.mubr.f32.vlgmr.msra.gmra.mrb[0].mxu0 %v317_v25 }
  0x77   : > { %6468 = vmatprep.mubr.f32.mxu0 %v318_v26 }
  0x7a   : > { %6469 = vmatmul.mubr.f32.gmra.mrb[2].mxu0 %v319_v27  ;;  %v12154_v27 = vmov 1326507024  }
  0x7b   : > { %6471 = vmatprep.mubr.f32.mxu0 %v320_v28 }
  0x7e   : > { %6472 = vmatmul.mubr.f32.gmra.mrb[4].mxu0 %v321_v29 }
  0x7f   : > { %6474 = vmatprep.mubr.f32.mxu0 %v322_v30 }
  0x82   : > { %6475 = vmatmul.mubr.f32.gmra.mrb[6].mxu0 %v323_v31 }
  0x83   : > { %6477 = vmatprep.mubr.f32.mxu0 %v324_v32 }
  0x86   : > { %6478 = vmatmul.mubr.f32.gmra.mrb[8].mxu0 %v325_v33 }
  0x87   : > { %6480 = vmatprep.mubr.f32.mxu0 %v326_v34 }
  0x8a   : > { %6481 = vmatmul.mubr.f32.gmra.mrb[10].mxu0 %v327_v35 }
  0x8b   : > { %6483 = vmatprep.mubr.f32.mxu0 %v328_v36 }
  0x8e   : > { %6484 = vmatmul.mubr.f32.gmra.mrb[12].mxu0 %v329_v37 }
  0x8f   : > { %6486 = vmatprep.mubr.f32.mxu0 %v330_v38 }
  0x92   : > { %6487 = vmatmul.mubr.f32.gmra.mrb[14].mxu0 %v331_v39 }
 0x149   : > { %v6467_v41 = vpop.f32.mrb[0].mxu0 }
 0x14a   : > { %v7583_v42 = vadd.f32 %v6467_v41, %v7580_v40  ;;  %v421_v43 = vpop.f32.mrb[1].mxu0 }
 0x14b   : > { %v7586_v44 = vadd.f32 %v7580_v40, %v421_v43 }
 0x14c   : > { %v12150_v45 = vand.u32 2147483647, %v7583_v42  ;;  %v607_v46 = vand.u32 2139095040, %v7583_v42 }
 0x14d   : > { %v6470_v47 = vpop.f32.mrb[2].mxu0  ;;  %v503_v51 = vand.u32 2139095040, %v7586_v44 }
 0x14e   : > { %v608_v48 = vshrl.u32 %v607_v46, 23  ;;  %v7591_v49 = vadd.f32 %v6470_v47, %v7580_v40  ;;  %v431_v50 = vpop.f32.mrb[3].mxu0  ;;  %v611_v53 = vand.u32 8388607, %v12150_v45 }
 0x14f   : > { %v7598_v55 = vadd.f32 %v7580_v40, %v431_v50  ;;  %v504_v59 = vshrl.u32 %v503_v51, 23 }
 0x150   : > { %12325 = vst [vmem:[#allocation8_spill] sm:$0xff] %v7591_v49  ;;  %v6110_v52 = vadd.s32 4294967169, %v608_v48  ;;  %v815_v54 = vand.u32 2139095040, %v7591_v49  ;;  %v612_v60 = vor.u32 8388608, %v611_v53  ;;  %v12148_v61 = vand.u32 2147483647, %v7591_v49 }
 0x151   : > { %v7600_v56 = vpop.f32.mrb[4].mxu0  ;;  %v711_v0 = vand.u32 2139095040, %v7598_v55  ;;  %v6106_v4 = vadd.s32 4294967169, %v504_v59 }
 0x152   : > { %v614_v57 = vadd.s32 1, %v6110_v52  ;;  %v7602_v58 = vpop.f32.mrb[5].mxu0  ;;  %v816_v62 = vshrl.u32 %v815_v54, 23  ;;  %v7610_v6 = vshll.u32 %v612_v60, 8  ;;  %v819_v8 = vand.u32 8388607, %v12148_v61 }
 0x153   : > { %v712_v14 = vshrl.u32 %v711_v0, 23 }
 0x154   : > { %vm615_vm0 = vcmp.gt.s32.totalorder %v614_v57, 0  ;;  %v6118_v7 = vadd.s32 4294967169, %v816_v62  ;;  %v820_v48 = vor.u32 8388608, %v819_v8 }
 0x155   : > { %v616_v63 = vsel %vm615_vm0, %v614_v57, 0  ;;  %v7606_v1 = vpop.f32.mrb[6].mxu0  ;;  %v6114_v38 = vadd.s32 4294967169, %v712_v14 }
 0x156   : > { %v618_v2 = vand.u32 31, %v616_v63  ;;  %v7608_v3 = vpop.f32.mrb[7].mxu0  ;;  %v617_v9 = vshrl.u32 %v616_v63, 5  ;;  %v822_v32 = vadd.s32 1, %v6118_v7  ;;  %v12149_v7 = vand.u32 2147483647, %v7598_v55 }
 0x157   : > { %v718_v62 = vadd.s32 1, %v6114_v38 }
 0x158   : > { %v619_v5 = vsub.s32 32, %v618_v2  ;;  %v621_v11 = vshll.u32 %v12162_v10, %v618_v2  ;;  %v624_v13 = vshll.u32 %v12160_v12, %v618_v2  ;;  %v627_v19 = vshll.u32 %v12151_v17, %v618_v2 }
 0x159   : > { %v7616_v15 = vpop.f32.mrb[8].mxu0  ;;  %v630_v23 = vshll.u32 %v12158_v20, %v618_v2  ;;  %v633_v26 = vshll.u32 %v12156_v24, %v618_v2  ;;  %vm636_vm1 = vcmp.lt.s32.totalorder %v617_v9, 1  ;;  %vm639_vm2 = vcmp.lt.s32.totalorder %v617_v9, 4 }
 0x15a   : > { %v622_v16 = vshrl.u32 %v12160_v12, %v619_v5  ;;  %v625_v18 = vshrl.u32 %v12151_v17, %v619_v5  ;;  %v628_v21 = vshrl.u32 %v12158_v20, %v619_v5  ;;  %v7622_v22 = vpop.f32.mrb[9].mxu0  ;;  %v631_v25 = vshrl.u32 %v12156_v24, %v619_v5 }
 0x15b   : > { %v634_v28 = vshrl.u32 %v12154_v27, %v619_v5  ;;  %v620_v39 = vshrl.u32 %v12162_v10, %v619_v5  ;;  %vm638_vm3 = vcmp.lt.s32.totalorder %v617_v9, 3  ;;  %vm637_vm4 = vcmp.lt.s32.totalorder %v617_v9, 2 }
 0x15c   : > { %v623_v29 = vor.u32 %v622_v16, %v621_v11  ;;  %v626_v30 = vor.u32 %v625_v18, %v624_v13  ;;  %v629_v31 = vor.u32 %v628_v21, %v627_v19  ;;  %v632_v33 = vor.u32 %v631_v25, %v630_v23 }
 0x15d   : > { %v635_v34 = vor.u32 %v634_v28, %v633_v26  ;;  %vm823_vm5 = vcmp.gt.s32.totalorder %v822_v32, 0  ;;  %v7638_v2 = vadd.s32 1, %v6106_v4  ;;  %vm719_vm6 = vcmp.gt.s32.totalorder %v718_v62, 0 }
 0x15e   : > { %v641_v35 = vsel %vm639_vm2, %v629_v31, 2102212464  ;;  %v644_v36 = vsel %vm636_vm1, %v623_v29, %v626_v30  ;;  %v648_v37 = vsel %vm636_vm1, %v626_v30, %v629_v31  ;;  %v645_v41 = vsel %vm639_vm2, %v632_v33, 920167782 }
 0x15f   : > { %v649_v43 = vsel %vm639_vm2, %v635_v34, 1326507024  ;;  %v646_v46 = vsel %vm638_vm3, %v629_v31, %v645_v41  ;;  %v640_v50 = vsel %vm636_vm1, %v620_v39, %v623_v29  ;;  %v642_v51 = vsel %vm638_vm3, %v626_v30, %v641_v35 }
 0x160   : > { %v650_v47 = vsel %vm638_vm3, %v632_v33, %v649_v43  ;;  %v647_v52 = vsel %vm637_vm4, %v644_v36, %v646_v46  ;;  %v643_v63 = vsel %vm637_vm4, %v640_v50, %v642_v51  ;;  %v824_v0 = vsel %vm823_vm5, %v822_v32, 0  ;;  %v7658_v32 = vpop.f32.mrb[10].mxu0 }
 0x161   : > { %v651_v53 = vsel %vm637_vm4, %v648_v37, %v650_v47  ;;  %v7634_v59 = vmul.u32.u64.low %v7610_v6, %v647_v52  ;;  %v7635_v60 = vmul.u32.u64.high %v7610_v6, %v647_v52, %v7634_v59  ;;  %v826_v5 = vand.u32 31, %v824_v0 }
 0x162   : > { %v7630_v54 = vmul.u32.u64.low %v7610_v6, %v651_v53  ;;  %v7631_v57 = vmul.u32.u64.high %v7610_v6, %v651_v53, %v7630_v54  ;;  %v825_v9 = vshrl.u32 %v824_v0, 5  ;;  %v7644_v11 = vshll.u32 %v820_v48, 8 }
 0x163   : > { %v662_v8 = vadd.s32 1, %v7635_v60  ;;  %v659_v13 = vmul.u32 %v7610_v6, %v643_v63  ;;  %v827_v14 = vsub.s32 32, %v826_v5  ;;  %v829_v16 = vshll.u32 %v12162_v10, %v826_v5 }
 0x164   : > { %vm661_vm7 = vc.u32 %v7631_v57, %v7634_v59  ;;  %v720_v18 = vsel %vm719_vm6, %v718_v62, 0  ;;  %v832_v19 = vshll.u32 %v12160_v12, %v826_v5  ;;  %v835_v21 = vshll.u32 %v12151_v17, %v826_v5 }
 0x165   : > { %v663_v4 = vsel %vm661_vm7, %v662_v8, %v7635_v60  ;;  %v838_v23 = vshll.u32 %v12158_v20, %v826_v5  ;;  %v830_v26 = vshrl.u32 %v12160_v12, %v827_v14  ;;  %v833_v28 = vshrl.u32 %v12151_v17, %v827_v14 }
 0x166   : > { %v664_v25 = vadd.s32 %v663_v4, %v659_v13  ;;  %v841_v29 = vshll.u32 %v12156_v24, %v826_v5  ;;  %v836_v6 = vshrl.u32 %v12158_v20, %v827_v14  ;;  %v839_v30 = vshrl.u32 %v12156_v24, %v827_v14 }
 0x167   : > { %v842_v31 = vshrl.u32 %v12154_v27, %v827_v14  ;;  %vm844_vm8 = vcmp.lt.s32.totalorder %v825_v9, 1  ;;  %v828_v34 = vshrl.u32 %v12162_v10, %v827_v14  ;;  %v831_v35 = vor.u32 %v830_v26, %v829_v16 }
 0x168   : > { %v665_v33 = vadd.s32 536870912, %v664_v25  ;;  %v834_v36 = vor.u32 %v833_v28, %v832_v19  ;;  %v837_v37 = vor.u32 %v836_v6, %v835_v21  ;;  %v840_v38 = vor.u32 %v839_v30, %v838_v23 }
 0x169   : > { %v843_v39 = vor.u32 %v842_v31, %v841_v29  ;;  %vm845_vm9 = vcmp.lt.s32.totalorder %v825_v9, 2  ;;  %vm846_vm10 = vcmp.lt.s32.totalorder %v825_v9, 3  ;;  %vm847_vm11 = vcmp.lt.s32.totalorder %v825_v9, 4 }
 0x16a   : > { %v7661_v41 = vshrl.u32 %v665_v33, 30  ;;  %v852_v43 = vsel %vm844_vm8, %v831_v35, %v834_v36  ;;  %v849_v46 = vsel %vm847_vm11, %v837_v37, 2102212464  ;;  %v853_v47 = vsel %vm847_vm11, %v840_v38, 920167782 }
 0x16b   : > { %v856_v48 = vsel %vm844_vm8, %v834_v36, %v837_v37  ;;  %v857_v50 = vsel %vm847_vm11, %v843_v39, 1326507024  ;;  %v848_v52 = vsel %vm844_vm8, %v828_v34, %v831_v35  ;;  %v854_v53 = vsel %vm846_vm10, %v837_v37, %v853_v47 }
 0x16c   : > { %12326 = vst [vmem:[#allocation9_spill] sm:$0xff] %v7661_v41  ;;  %v667_v51 = vshll.u32 %v7661_v41, 30  ;;  %v858_v54 = vsel %vm846_vm10, %v840_v38, %v857_v50  ;;  %v850_v60 = vsel %vm846_vm10, %v834_v36, %v849_v46  ;;  %v855_v62 = vsel %vm845_vm9, %v852_v43, %v854_v53 }
 0x16d   : > { %v859_v63 = vsel %vm845_vm9, %v856_v48, %v858_v54  ;;  %v722_v0 = vand.u32 31, %v720_v18  ;;  %v715_v14 = vand.u32 8388607, %v12149_v7  ;;  %v7682_v19 = vshrl.u32 %v720_v18, 5 }
 0x16e   : > { %v7669_v5 = vsub.s32 %v664_v25, %v667_v51  ;;  %v7672_v8 = vmul.u32.u64.low %v7644_v11, %v859_v63  ;;  %v7673_v13 = vmul.u32.u64.high %v7644_v11, %v859_v63, %v7672_v8  ;;  %v851_v25 = vsel %vm845_vm9, %v848_v52, %v850_v60 }
 0x16f   : > { %v7678_v16 = vmul.u32.u64.low %v7644_v11, %v855_v62  ;;  %v7679_v4 = vmul.u32.u64.high %v7644_v11, %v855_v62, %v7678_v16  ;;  %v723_v21 = vsub.s32 32, %v722_v0  ;;  %v725_v26 = vshll.u32 %v12162_v10, %v722_v0 }
 0x170   : > { %v670_v23 = vsub.s32 0, %v7669_v5  ;;  %v728_v28 = vshll.u32 %v12160_v12, %v722_v0  ;;  %v731_v30 = vshll.u32 %v12151_v17, %v722_v0  ;;  %v734_v9 = vshll.u32 %v12158_v20, %v722_v0 }
 0x171   : > { %v726_v29 = vshrl.u32 %v12160_v12, %v723_v21  ;;  %v729_v6 = vshrl.u32 %v12151_v17, %v723_v21  ;;  %v732_v31 = vshrl.u32 %v12158_v20, %v723_v21  ;;  %vm869_vm12 = vc.u32 %v7673_v13, %v7678_v16 }
 0x172   : > { %v6111_v18 = vmin.u32 %v670_v23, %v7669_v5  ;;  %v735_v33 = vshrl.u32 %v12156_v24, %v723_v21  ;;  %v867_v34 = vmul.u32 %v7644_v11, %v851_v25  ;;  %v870_v35 = vadd.s32 1, %v7679_v4 }
 0x173   : > { %v727_v36 = vor.u32 %v726_v29, %v725_v26  ;;  %v730_v37 = vor.u32 %v729_v6, %v728_v28  ;;  %v733_v39 = vor.u32 %v732_v31, %v731_v30  ;;  %v738_v46 = vshrl.u32 %v12154_v27, %v723_v21  ;;  %v7726_v26 = vpop.f32.mrb[11].mxu0 }
 0x174   : > { %v672_v38 = vclz %v6111_v18  ;;  %v736_v43 = vor.u32 %v735_v33, %v734_v9  ;;  %v871_v47 = vsel %vm869_vm12, %v870_v35, %v7679_v4  ;;  %v716_v48 = vor.u32 8388608, %v715_v14 }
 0x175   : > { %v737_v50 = vshll.u32 %v12156_v24, %v722_v0  ;;  %vm511_vm13 = vcmp.gt.s32.totalorder %v7638_v2, 0  ;;  %v872_v51 = vadd.s32 %v871_v47, %v867_v34  ;;  %vm740_vm14 = vcmp.lt.s32.totalorder %v7682_v19, 1 }
 0x176   : > { %vm743_vm15 = vcmp.lt.s32.totalorder %v7682_v19, 4  ;;  %vm742_vm0 = vcmp.lt.s32.totalorder %v7682_v19, 3  ;;  %v748_v52 = vsel %vm740_vm14, %v727_v36, %v730_v37  ;;  %v6112_v54 = vadd.s32 4294967294, %v672_v38 }
 0x177   : > { %v739_v11 = vor.u32 %v738_v46, %v737_v50  ;;  %v749_v53 = vsel %vm743_vm15, %v736_v43, 920167782  ;;  %v873_v60 = vadd.s32 536870912, %v872_v51  ;;  %vm741_vm1 = vcmp.lt.s32.totalorder %v7682_v19, 2 }
 0x178   : > { %v750_v62 = vsel %vm742_vm0, %v733_v39, %v749_v53  ;;  %v512_v63 = vsel %vm511_vm13, %v7638_v2, 0  ;;  %v756_v8 = vshll.u32 %v716_v48, 8  ;;  %v7718_v14 = vadd.f32 %v7600_v56, %v7580_v40 }
 0x179   : > { %v751_v0 = vsel %vm741_vm1, %v748_v52, %v750_v62  ;;  %v7720_v4 = vshrl.u32 %v873_v60, 30  ;;  %v745_v23 = vsel %vm743_vm15, %v733_v39, 2102212464  ;;  %v752_v25 = vsel %vm740_vm14, %v730_v37, %v733_v39 }
 0x17a   : > { %12327 = vst [vmem:[#allocation10_spill] sm:$0xff] %v7718_v14  ;;  %v724_v2 = vshrl.u32 %v12162_v10, %v723_v21  ;;  %v753_v28 = vsel %vm743_vm15, %v739_v11, 1326507024  ;;  %v7731_v29 = vmul.u32.u64.low %v756_v8, %v751_v0  ;;  %v7732_v6 = vmul.u32.u64.high %v756_v8, %v751_v0, %v7731_v29 }
 0x17b   : > { %12328 = vst [vmem:[#allocation11_spill] sm:$0xff] %v7720_v4  ;;  %vm6113_vm2 = vcmp.lt.s32.totalorder %v6112_v54, 0  ;;  %v7735_v56 = vand.u32 31, %v512_v63  ;;  %v875_v30 = vshll.u32 %v7720_v4, 30  ;;  %v754_v31 = vsel %vm742_vm0, %v736_v43, %v753_v28 }
 0x17c   : > { %v744_v18 = vsel %vm740_vm14, %v724_v2, %v727_v36  ;;  %v746_v21 = vsel %vm742_vm0, %v730_v37, %v745_v23  ;;  %v755_v9 = vsel %vm741_vm1, %v752_v25, %v754_v31  ;;  %v1023_v33 = vand.u32 2139095040, %v7718_v14 }
 0x17d   : > { %12329 = vst [vmem:[#allocation12_spill] sm:$0xff] %v7735_v56  ;;  %v7747_v34 = vsub.s32 %v872_v51, %v875_v30  ;;  %v7749_v35 = vsel %vm6113_vm2, 0, %v6112_v54  ;;  %v7751_v38 = vmul.u32.u64.low %v756_v8, %v755_v9  ;;  %v7752_v39 = vmul.u32.u64.high %v756_v8, %v755_v9, %v7751_v38 }
 0x17e   : > { %v1024_v46 = vshrl.u32 %v1023_v33, 23  ;;  %v7755_v43 = vsub.s32 32, %v7735_v56  ;;  %v747_v37 = vsel %vm741_vm1, %v744_v18, %v746_v21  ;;  %v766_v47 = vadd.s32 1, %v7732_v6 }
 0x17f   : > { %v878_v36 = vsub.s32 0, %v7747_v34  ;;  %v7763_v50 = vadd.f32 %v7580_v40, %v7602_v58  ;;  %v680_v51 = vsub.s32 4294967266, %v7749_v35  ;;  %v12147_v52 = vand.u32 2147483647, %v7718_v14 }
 0x180   : > { %12330 = vst [vmem:[#allocation13_spill] sm:$0xff] %v7755_v43  ;;  %v6126_v48 = vadd.s32 4294967169, %v1024_v46  ;;  %v763_v53 = vmul.u32 %v756_v8, %v747_v37  ;;  %vm765_vm3 = vc.u32 %v7752_v39, %v7731_v29  ;;  %v526_v19 = vshll.u32 %v12158_v20, %v7735_v56 }
 0x181   : > { %12331 = vst [vmem:[#allocation14_spill] sm:$0xff] %v7763_v50  ;;  %v6119_v11 = vmin.u32 %v878_v36, %v7747_v34  ;;  %v527_v60 = vshrl.u32 %v12156_v24, %v7755_v43  ;;  %v767_v58 = vsel %vm765_vm3, %v766_v47, %v7732_v6  ;;  %v7777_v0 = vshrl.u32 %v12154_v27, %v7755_v43 }
 0x182   : > { %v1030_v54 = vadd.s32 1, %v6126_v48  ;;  %v768_v23 = vadd.s32 %v767_v58, %v763_v53  ;;  %v919_v8 = vand.u32 2139095040, %v7763_v50  ;;  %v676_v25 = vsub.s32 32, %v7749_v35 }
 0x183   : > { %v880_v62 = vclz %v6119_v11  ;;  %v7781_v2 = vadd.s32 127, %v680_v51  ;;  %v1027_v28 = vand.u32 8388607, %v12147_v52  ;;  %v7787_v31 = vshll.u32 %v12156_v24, %v7735_v56 }
 0x184   : > { %vm1031_vm4 = vcmp.gt.s32.totalorder %v1030_v54, 0  ;;  %v769_v6 = vadd.s32 536870912, %v768_v23  ;;  %v660_v21 = vadd.s32 %v7634_v59, %v7631_v57  ;;  %v7791_v9 = vshrl.u32 %v512_v63, 5 }
 0x185   : > { %v1032_v30 = vsel %vm1031_vm4, %v1030_v54, 0  ;;  %v7793_v33 = vor.u32 %v527_v60, %v526_v19  ;;  %v6120_v38 = vadd.s32 4294967294, %v880_v62  ;;  %v920_v47 = vshrl.u32 %v919_v8, 23 }
 0x186   : > { %v1034_v18 = vand.u32 31, %v1032_v30  ;;  %v7797_v36 = vshrl.u32 %v769_v6, 30  ;;  %v678_v48 = vshrl.u32 %v660_v21, %v676_v25  ;;  %v682_v51 = vshll.u32 %v7781_v2, 23 }
 0x187   : > { %v1028_v11 = vor.u32 8388608, %v1027_v28  ;;  %v12153_v53 = vand.u32 2147483647, %v7763_v50  ;;  %vm6121_vm5 = vcmp.lt.s32.totalorder %v6120_v38, 0  ;;  %v1033_v8 = vshrl.u32 %v1032_v30, 5 }
 0x188   : > { %12332 = vst [vmem:[#allocation15_spill] sm:$0xff] %v7797_v36  ;;  %v1035_v37 = vsub.s32 32, %v1034_v18  ;;  %v771_v57 = vshll.u32 %v7797_v36, 30  ;;  %v1037_v59 = vshll.u32 %v12162_v10, %v1034_v18  ;;  %v1040_v19 = vshll.u32 %v12160_v12, %v1034_v18 }
 0x189   : > { %v1043_v60 = vshll.u32 %v12151_v17, %v1034_v18  ;;  %v6122_v2 = vadd.s32 4294967169, %v920_v47  ;;  %v1046_v21 = vshll.u32 %v12158_v20, %v1034_v18  ;;  %v7812_v61 = vsel %vm6121_vm5, 0, %v6120_v38 }
 0x18a   : > { %v1038_v63 = vshrl.u32 %v12160_v12, %v1035_v37  ;;  %v1041_v54 = vshrl.u32 %v12151_v17, %v1035_v37  ;;  %v1044_v62 = vshrl.u32 %v12158_v20, %v1035_v37  ;;  %v7808_v58 = vsub.s32 %v768_v23, %v771_v57  ;;  %v7817_v17 = vpop.f32.mrb[12].mxu0 }
 0x18b   : > { %v1047_v52 = vshrl.u32 %v12156_v24, %v1035_v37  ;;  %v1049_v45 = vshll.u32 %v12156_v24, %v1034_v18  ;;  %v1050_v46 = vshrl.u32 %v12154_v27, %v1035_v37  ;;  %v1068_v30 = vshll.u32 %v1028_v11, 8  ;;  %v7868_v36 = vpop.f32.mrb[13].mxu0 }
 0x18c   : > { %v1039_v25 = vor.u32 %v1038_v63, %v1037_v59  ;;  %v1042_v28 = vor.u32 %v1041_v54, %v1040_v19  ;;  %v1045_v6 = vor.u32 %v1044_v62, %v1043_v60  ;;  %v774_v7 = vsub.s32 0, %v7808_v58 }
 0x18d   : > { %v1048_v23 = vor.u32 %v1047_v52, %v1046_v21  ;;  %v923_v47 = vand.u32 8388607, %v12153_v53  ;;  %v7823_v57 = vadd.f32 %v7606_v1, %v7580_v40  ;;  %v1051_v59 = vor.u32 %v1050_v46, %v1049_v45 }
 0x18e   : > { %v6115_v38 = vmin.u32 %v774_v7, %v7808_v58  ;;  %vm1052_vm6 = vcmp.lt.s32.totalorder %v1033_v8, 1  ;;  %vm1055_vm7 = vcmp.lt.s32.totalorder %v1033_v8, 4  ;;  %v888_v18 = vsub.s32 4294967266, %v7812_v61 }
 0x18f   : > { %12333 = vst [vmem:[#allocation16_spill] sm:$0xff] %v7823_v57  ;;  %v1057_v63 = vsel %vm1055_vm7, %v1045_v6, 2102212464  ;;  %v1060_v54 = vsel %vm1052_vm6, %v1039_v25, %v1042_v28  ;;  %v926_v19 = vadd.s32 1, %v6122_v2  ;;  %v1036_v52 = vshrl.u32 %v12162_v10, %v1035_v37 }
 0x190   : > { %vm1054_vm8 = vcmp.lt.s32.totalorder %v1033_v8, 3  ;;  %v1061_v11 = vsel %vm1055_vm7, %v1048_v23, 920167782  ;;  %v1064_v60 = vsel %vm1052_vm6, %v1042_v28, %v1045_v6  ;;  %v776_v62 = vclz %v6115_v38 }
 0x191   : > { %vm1053_vm9 = vcmp.lt.s32.totalorder %v1033_v8, 2  ;;  %v1062_v21 = vsel %vm1054_vm8, %v1045_v6, %v1061_v11  ;;  %v1065_v1 = vsel %vm1055_vm7, %v1051_v59, 1326507024  ;;  %v1056_v53 = vsel %vm1052_vm6, %v1036_v52, %v1039_v25 }
 0x192   : > { %v1058_v27 = vsel %vm1054_vm8, %v1042_v28, %v1057_v63  ;;  %v1063_v7 = vsel %vm1053_vm9, %v1060_v54, %v1062_v21  ;;  %v1066_v45 = vsel %vm1054_vm8, %v1048_v23, %v1065_v1  ;;  %v924_v12 = vor.u32 8388608, %v923_v47 }
 0x193   : > { %v1067_v46 = vsel %vm1053_vm9, %v1064_v60, %v1066_v45  ;;  %v7828_v24 = vmul.u32.u64.low %v1068_v30, %v1063_v7  ;;  %v7829_v20 = vmul.u32.u64.high %v1068_v30, %v1063_v7, %v7828_v24  ;;  %v677_v37 = vshll.u32 %v7669_v5, %v7749_v35 }
 0x194   : > { %v7834_v2 = vmul.u32.u64.low %v1068_v30, %v1067_v46  ;;  %v7835_v10 = vmul.u32.u64.high %v1068_v30, %v1067_v46, %v7834_v2  ;;  %vm927_vm10 = vcmp.gt.s32.totalorder %v926_v19, 0  ;;  %v889_v8 = vadd.s32 127, %v888_v18 }
 0x195   : > { %v6116_v6 = vadd.s32 4294967294, %v776_v62  ;;  %v1059_v38 = vsel %vm1053_vm9, %v1056_v53, %v1058_v27  ;;  %v928_v25 = vsel %vm927_vm10, %v926_v19, 0  ;;  %v7837_v28 = vor.u32 %v678_v48, %v677_v37 }
 0x196   : > { %v7839_v23 = vor.u32 4788187, %v682_v51  ;;  %v868_v59 = vadd.s32 %v7678_v16, %v7673_v13  ;;  %v1231_v47 = vand.u32 2139095040, %v7823_v57  ;;  %v1078_v63 = vadd.s32 1, %v7829_v20 }
 0x197   : > { %v930_v5 = vand.u32 31, %v928_v25  ;;  %v7845_v35 = vshll.u32 %v924_v12, 8  ;;  %v884_v18 = vsub.s32 32, %v7812_v61  ;;  %v885_v27 = vshll.u32 %v7747_v34, %v7812_v61 }
 0x198   : > { %v1075_v48 = vmul.u32 %v1068_v30, %v1059_v38  ;;  %vm1077_vm11 = vc.u32 %v7835_v10, %v7828_v24  ;;  %v890_v51 = vshll.u32 %v889_v8, 23  ;;  %vm6117_vm12 = vcmp.lt.s32.totalorder %v6116_v6, 0 }
 0x199   : > { %v1079_v13 = vsel %vm1077_vm11, %v1078_v63, %v7829_v20  ;;  %v931_v16 = vsub.s32 32, %v930_v5  ;;  %v12334_v19 = vmov 683565275   ;;  %v12335_v52 = vmov 2475754826  }
 0x19a   : > { %v1080_v53 = vadd.s32 %v1079_v13, %v1075_v48  ;;  %v933_v12 = vshll.u32 %v12334_v19, %v930_v5  ;;  %v936_v11 = vshll.u32 %v12335_v52, %v930_v5  ;;  %v1232_v60 = vshrl.u32 %v1231_v47, 23 }
 0x19b   : > { %v934_v62 = vshrl.u32 %v12335_v52, %v931_v16  ;;  %v12336_v21 = vmov 2131351028   ;;  %v12337_v34 = vmov 2102212464   ;;  %v7860_v7 = vsel %vm6117_vm12, 0, %v6116_v6 }
 0x19c   : > { %v937_v1 = vshrl.u32 %v12336_v21, %v931_v16  ;;  %v939_v61 = vshll.u32 %v12336_v21, %v930_v5  ;;  %v940_v30 = vshrl.u32 %v12337_v34, %v931_v16  ;;  %v1081_v45 = vadd.s32 536870912, %v1080_v53 }
 0x19d   : > { %v929_v46 = vshrl.u32 %v928_v25, 5  ;;  %v942_v20 = vshll.u32 %v12337_v34, %v930_v5  ;;  %v935_v37 = vor.u32 %v934_v62, %v933_v12  ;;  %v12338_v38 = vmov 920167782  }
 0x19e   : > { %v938_v2 = vor.u32 %v937_v1, %v936_v11  ;;  %v941_v8 = vor.u32 %v940_v30, %v939_v61  ;;  %v943_v63 = vshrl.u32 %v12338_v38, %v931_v16  ;;  %v886_v47 = vshrl.u32 %v868_v59, %v884_v18 }
 0x19f   : > { %v7864_v48 = vshrl.u32 %v1081_v45, 30  ;;  %v945_v13 = vshll.u32 %v12338_v38, %v930_v5  ;;  %v12340_v54 = vmov 1326507024   ;;  %v891_v6 = vor.u32 4788187, %v890_v51 }
 0x1a0   : > { %v946_v4 = vshrl.u32 %v12340_v54, %v931_v16  ;;  %v784_v41 = vsub.s32 4294967266, %v7860_v7  ;;  %v944_v25 = vor.u32 %v943_v63, %v942_v20  ;;  %v6134_v43 = vadd.s32 4294967169, %v1232_v60 }
 0x1a1   : > { %12339 = vst [vmem:[#allocation17_spill] sm:$0xff] %v7864_v48  ;;  %v1083_v12 = vshll.u32 %v7864_v48, 30  ;;  %vm948_vm13 = vcmp.lt.s32.totalorder %v929_v46, 1  ;;  %vm951_vm14 = vcmp.lt.s32.totalorder %v929_v46, 4  ;;  %vm950_vm15 = vcmp.lt.s32.totalorder %v929_v46, 3 }
 0x1a2   : > { %v947_v11 = vor.u32 %v946_v4, %v945_v13  ;;  %v953_v59 = vsel %vm951_vm14, %v941_v8, 2102212464  ;;  %v956_v18 = vsel %vm948_vm13, %v935_v37, %v938_v2  ;;  %v957_v62 = vsel %vm951_vm14, %v944_v25, 920167782 }
 0x1a3   : > { %v7872_v1 = vsub.s32 %v1080_v53, %v1083_v12  ;;  %v932_v5 = vshrl.u32 %v12334_v19, %v931_v16  ;;  %vm949_vm0 = vcmp.lt.s32.totalorder %v929_v46, 2  ;;  %v958_v61 = vsel %vm950_vm15, %v941_v8, %v957_v62 }
 0x1a4   : > { %v780_v51 = vsub.s32 32, %v7860_v7  ;;  %v959_v30 = vsel %vm949_vm0, %v956_v18, %v958_v61  ;;  %v960_v60 = vsel %vm948_vm13, %v938_v2, %v941_v8  ;;  %v961_v45 = vsel %vm951_vm14, %v947_v11, 1326507024 }
 0x1a5   : > { %v1086_v4 = vsub.s32 0, %v7872_v1  ;;  %v952_v20 = vsel %vm948_vm13, %v932_v5, %v935_v37  ;;  %v954_v63 = vsel %vm950_vm15, %v938_v2, %v953_v59  ;;  %v962_v13 = vsel %vm950_vm15, %v944_v25, %v961_v45 }
 0x1a6   : > { %v785_v48 = vadd.s32 127, %v784_v41  ;;  %v963_v56 = vsel %vm949_vm0, %v960_v60, %v962_v13  ;;  %v7880_v53 = vmul.u32.u64.low %v7845_v35, %v959_v30  ;;  %v7881_v12 = vmul.u32.u64.high %v7845_v35, %v959_v30, %v7880_v53 }
 0x1a7   : > { %v6127_v16 = vmin.u32 %v1086_v4, %v7872_v1  ;;  %v7886_v62 = vmul.u32.u64.low %v7845_v35, %v963_v56  ;;  %v7887_v18 = vmul.u32.u64.high %v7845_v35, %v963_v56, %v7886_v62  ;;  %v1238_v8 = vadd.s32 1, %v6134_v43 }
 0x1a8   : > { %vm535_vm1 = vcmp.lt.s32.totalorder %v7791_v9, 4  ;;  %v887_v37 = vor.u32 %v886_v47, %v885_v27  ;;  %v764_v41 = vadd.s32 %v7731_v29, %v7752_v39  ;;  %v955_v2 = vsel %vm949_vm0, %v952_v20, %v954_v63 }
 0x1a9   : > { %v684_v25 = vand.u32 2147483647, %v7839_v23  ;;  %v892_v11 = vand.u32 2147483647, %v891_v6  ;;  %v1088_v59 = vclz %v6127_v16  ;;  %vm1239_vm2 = vcmp.gt.s32.totalorder %v1238_v8, 0 }
 0x1aa   : > { %v782_v5 = vshrl.u32 %v764_v41, %v780_v51  ;;  %v786_v61 = vshll.u32 %v785_v48, 23  ;;  %v974_v30 = vadd.s32 1, %v7881_v12  ;;  %v1240_v56 = vsel %vm1239_vm2, %v1238_v8, 0 }
 0x1ab   : > { %v686_v43 = vcvt.s32.f32 %v7837_v28  ;;  %v971_v60 = vmul.u32 %v7845_v35, %v955_v2  ;;  %vm973_vm3 = vc.u32 %v7887_v18, %v7880_v53  ;;  %v12341_v29 = vand.u32 2147483647, %v7823_v57 }
 0x1ac   : > { %v894_v27 = vcvt.s32.f32 %v887_v37  ;;  %v781_v23 = vshll.u32 %v7808_v58, %v7860_v7  ;;  %v975_v46 = vsel %vm973_vm3, %v974_v30, %v7881_v12  ;;  %v1242_v47 = vand.u32 31, %v1240_v56 }
 0x1ad   : > { %v1235_v39 = vand.u32 8388607, %v12341_v29  ;;  %v7904_v48 = vmul.f32 %v686_v43, %v684_v25  ;;  %v7909_v28 = vsel %vm535_vm1, %v7793_v33, 920167782  ;;  %v6128_v35 = vadd.s32 4294967294, %v1088_v59 }
 0x1ae   : > { %v976_v6 = vadd.s32 %v975_v46, %v971_v60  ;;  %v7911_v51 = vmul.f32 %v894_v27, %v892_v11  ;;  %v7913_v45 = vor.u32 %v782_v5, %v781_v23  ;;  %v7915_v4 = vor.u32 4788187, %v786_v61  ;;  %v7939_v23 = vpop.f32.mrb[14].mxu0 }
 0x1af   : > { %v1243_v20 = vsub.s32 32, %v1242_v47  ;;  %v1236_v7 = vor.u32 8388608, %v1235_v39  ;;  %v1241_v63 = vshrl.u32 %v1240_v56, 5  ;;  %v7919_v13 = vadd.f32 %v7580_v40, %v7608_v3 }
 0x1b0   : > { %v977_v58 = vadd.s32 536870912, %v976_v6  ;;  %v1245_v12 = vshll.u32 %v12334_v19, %v1242_v47  ;;  %v1248_v62 = vshll.u32 %v12335_v52, %v1242_v47  ;;  %vm6129_vm4 = vcmp.lt.s32.totalorder %v6128_v35, 0 }
 0x1b1   : > { %v1246_v16 = vshrl.u32 %v12335_v52, %v1243_v20  ;;  %v1249_v8 = vshrl.u32 %v12336_v21, %v1243_v20  ;;  %v1251_v41 = vshll.u32 %v12336_v21, %v1242_v47  ;;  %v1252_v2 = vshrl.u32 %v12337_v34, %v1243_v20 }
 0x1b2   : > { %v7925_v37 = vshrl.u32 %v977_v58, 30  ;;  %v1254_v3 = vshll.u32 %v12337_v34, %v1242_v47  ;;  %v1255_v59 = vshrl.u32 %v12338_v38, %v1243_v20  ;;  %v1276_v30 = vshll.u32 %v1236_v7, 8 }
 0x1b3   : > { %v1247_v25 = vor.u32 %v1246_v16, %v1245_v12  ;;  %v1250_v11 = vor.u32 %v1249_v8, %v1248_v62  ;;  %v1253_v61 = vor.u32 %v1252_v2, %v1251_v41  ;;  %v1127_v56 = vand.u32 2139095040, %v7919_v13 }
 0x1b4   : > { %12342 = vst [vmem:[#allocation18_spill] sm:$0xff] %v7925_v37  ;;  %v979_v5 = vshll.u32 %v7925_v37, 30  ;;  %v7933_v43 = vsel %vm6129_vm4, 0, %v6128_v35  ;;  %v1256_v60 = vor.u32 %v1255_v59, %v1254_v3  ;;  %v1257_v29 = vshll.u32 %v12338_v38, %v1242_v47 }
 0x1b5   : > { %v1258_v39 = vshrl.u32 %v12340_v54, %v1243_v20  ;;  %vm1260_vm5 = vcmp.lt.s32.totalorder %v1241_v63, 1  ;;  %vm1261_vm6 = vcmp.lt.s32.totalorder %v1241_v63, 2  ;;  %vm1263_vm7 = vcmp.lt.s32.totalorder %v1241_v63, 4 }
 0x1b6   : > { %v7937_v27 = vsub.s32 %v976_v6, %v979_v5  ;;  %v1244_v46 = vshrl.u32 %v12334_v19, %v1243_v20  ;;  %v1265_v7 = vsel %vm1263_vm7, %v1253_v61, 2102212464  ;;  %v1268_v12 = vsel %vm1260_vm5, %v1247_v25, %v1250_v11 }
 0x1b7   : > { %v1259_v58 = vor.u32 %v1258_v39, %v1257_v29  ;;  %v1096_v35 = vsub.s32 4294967266, %v7933_v43  ;;  %vm1262_vm8 = vcmp.lt.s32.totalorder %v1241_v63, 3  ;;  %v1269_v47 = vsel %vm1263_vm7, %v1256_v60, 920167782 }
 0x1b8   : > { %v982_v16 = vsub.s32 0, %v7937_v27  ;;  %v1264_v62 = vsel %vm1260_vm5, %v1244_v46, %v1247_v25  ;;  %v1270_v8 = vsel %vm1262_vm8, %v1253_v61, %v1269_v47  ;;  %v1272_v6 = vsel %vm1260_vm5, %v1250_v11, %v1253_v61 }
 0x1b9   : > { %v1273_v41 = vsel %vm1263_vm7, %v1259_v58, 1326507024  ;;  %vm606_vm9 = vcmp.lt.s32.totalorder %v7583_v42, 0  ;;  %vm814_vm10 = vcmp.lt.s32.totalorder %v7591_v49, 0  ;;  %v1266_v20 = vsel %vm1262_vm8, %v1250_v11, %v1265_v7 }
 0x1ba   : > { %v6123_v2 = vmin.u32 %v982_v16, %v7937_v27  ;;  %v1271_v3 = vsel %vm1261_vm6, %v1268_v12, %v1270_v8  ;;  %v1274_v59 = vsel %vm1262_vm8, %v1256_v60, %v1273_v41  ;;  %v7955_v25 = vadd.f32 %v7616_v15, %v7580_v40 }
 0x1bb   : > { %v1275_v5 = vsel %vm1261_vm6, %v1272_v6, %v1274_v59  ;;  %v7949_v29 = vmul.u32.u64.low %v1276_v30, %v1271_v3  ;;  %v7950_v39 = vmul.u32.u64.high %v1276_v30, %v1271_v3, %v7949_v29  ;;  %v688_v61 = vxor.u32 2147483648, %v7904_v48 }
 0x1bc   : > { %12343 = vst [vmem:[#allocation19_spill] sm:$0xff] %v7955_v25  ;;  %v984_v46 = vclz %v6123_v2  ;;  %v7958_v58 = vmul.u32.u64.low %v1276_v30, %v1275_v5  ;;  %v7959_v47 = vmul.u32.u64.high %v1276_v30, %v1275_v5, %v7958_v58  ;;  %v896_v11 = vxor.u32 2147483648, %v7911_v51 }
 0x1bd   : > { %v788_v60 = vand.u32 2147483647, %v7915_v4  ;;  %v1267_v7 = vsel %vm1261_vm6, %v1264_v62, %v1266_v20  ;;  %v1128_v12 = vshrl.u32 %v1127_v56, 23  ;;  %v1092_v16 = vsub.s32 32, %v7933_v43 }
 0x1be   : > { %v1097_v8 = vadd.s32 127, %v1096_v35  ;;  %v6124_v6 = vadd.s32 4294967294, %v984_v46  ;;  %v12176_v15 = vand.u32 2147483647, %v7919_v13  ;;  %v790_v41 = vcvt.s32.f32 %v7913_v45 }
 0x1bf   : > { %v1286_v2 = vadd.s32 1, %v7950_v39  ;;  %v6130_v3 = vadd.s32 4294967169, %v1128_v12  ;;  %v1439_v59 = vand.u32 2139095040, %v7955_v25  ;;  %v12344_v5 = vor.u32 %v7777_v0, %v7787_v31 }
 0x1c0   : > { %v1076_v63 = vadd.s32 %v7828_v24, %v7835_v10  ;;  %v1283_v56 = vmul.u32 %v1276_v30, %v1267_v7  ;;  %vm1285_vm11 = vc.u32 %v7959_v47, %v7949_v29  ;;  %v7980_v45 = vmul.f32 %v790_v41, %v788_v60 }
 0x1c1   : > { %v7974_v4 = vsel %vm535_vm1, %v12344_v5, 1326507024  ;;  %vm6125_vm12 = vcmp.lt.s32.totalorder %v6124_v6, 0  ;;  %v1287_v35 = vsel %vm1285_vm11, %v1286_v2, %v7950_v39  ;;  %v1134_v62 = vadd.s32 1, %v6130_v3 }
 0x1c2   : > { %v1094_v20 = vshrl.u32 %v1076_v63, %v1092_v16  ;;  %v1098_v46 = vshll.u32 %v1097_v8, 23  ;;  %v1288_v0 = vadd.s32 %v1287_v35, %v1283_v56  ;;  %v1131_v31 = vand.u32 8388607, %v12176_v15 }
 0x1c3   : > { %v7988_v10 = vsel %vm606_vm9, %v688_v61, %v7904_v48  ;;  %v7993_v24 = vsel %vm814_vm10, %v896_v11, %v7911_v51  ;;  %vm1135_vm13 = vcmp.gt.s32.totalorder %v1134_v62, 0  ;;  %v1440_v30 = vshrl.u32 %v1439_v59, 23 }
 0x1c4   : > { %12345 = vst [vmem:[#allocation20_spill] sm:$0xff] %v7988_v10  ;;  %12346 = vst [vmem:[#allocation21_spill] sm:$0xff] %v7993_v24  ;;  %v1093_v39 = vshll.u32 %v7872_v1, %v7933_v43  ;;  %v7997_v58 = vsel %vm6125_vm12, 0, %v6124_v6  ;;  %v1289_v60 = vadd.s32 536870912, %v1288_v0  ;;  %v1136_v7 = vsel %vm1135_vm13, %v1134_v62, 0 }
 0x1c5   : > { %v8002_v48 = vadd.s32 %v7880_v53, %v7887_v18  ;;  %v1138_v61 = vand.u32 31, %v1136_v7  ;;  %v8006_v51 = vadd.f32 %v7580_v40, %v7622_v22  ;;  %v8010_v16 = vor.u32 4788187, %v1098_v46  ;;  %v8019_v22 = vpop.f32.mrb[15].mxu0 }
 0x1c6   : > { %v8008_v11 = vor.u32 %v1094_v20, %v1093_v39  ;;  %v8012_v1 = vshrl.u32 %v1289_v60, 30  ;;  %v1132_v43 = vor.u32 8388608, %v1131_v31  ;;  %v992_v8 = vsub.s32 4294967266, %v7997_v58 }
 0x1c7   : > { %v1139_v6 = vsub.s32 32, %v1138_v61  ;;  %v12181_v41 = vand.u32 2147483647, %v7955_v25  ;;  %v6142_v2 = vadd.s32 4294967169, %v1440_v30  ;;  %v1137_v18 = vshrl.u32 %v1136_v7, 5 }
 0x1c8   : > { %12347 = vst [vmem:[#allocation22_spill] sm:$0xff] %v8012_v1  ;;  %v1291_v53 = vshll.u32 %v8012_v1, 30  ;;  %v1141_v3 = vshll.u32 %v12334_v19, %v1138_v61  ;;  %v1144_v40 = vshll.u32 %v12335_v52, %v1138_v61  ;;  %v1147_v63 = vshll.u32 %v12336_v21, %v1138_v61 }
 0x1c9   : > { %v1142_v59 = vshrl.u32 %v12335_v52, %v1139_v6  ;;  %v1145_v5 = vshrl.u32 %v12336_v21, %v1139_v6  ;;  %v1148_v56 = vshrl.u32 %v12337_v34, %v1139_v6  ;;  %v1150_v62 = vshll.u32 %v12337_v34, %v1138_v61 }
 0x1ca   : > { %v8025_v35 = vsub.s32 %v1288_v0, %v1291_v53  ;;  %v1151_v20 = vshrl.u32 %v12338_v38, %v1139_v6  ;;  %v1153_v46 = vshll.u32 %v12338_v38, %v1138_v61  ;;  %v1154_v60 = vshrl.u32 %v12340_v54, %v1139_v6 }
 0x1cb   : > { %v1143_v31 = vor.u32 %v1142_v59, %v1141_v3  ;;  %v1146_v30 = vor.u32 %v1145_v5, %v1144_v40  ;;  %v1149_v39 = vor.u32 %v1148_v56, %v1147_v63  ;;  %v1172_v12 = vshll.u32 %v1132_v43, 8 }
 0x1cc   : > { %v1294_v7 = vsub.s32 0, %v8025_v35  ;;  %v1152_v15 = vor.u32 %v1151_v20, %v1150_v62  ;;  %v8034_v1 = vand.u32 8388607, %v12181_v41  ;;  %v993_v0 = vadd.s32 127, %v992_v8 }
 0x1cd   : > { %v1155_v53 = vor.u32 %v1154_v60, %v1153_v46  ;;  %vm1159_vm14 = vcmp.lt.s32.totalorder %v1137_v18, 4  ;;  %v1446_v37 = vadd.s32 1, %v6142_v2  ;;  %v1140_v61 = vshrl.u32 %v12334_v19, %v1139_v6 }
 0x1ce   : > { %v6135_v24 = vmin.u32 %v1294_v7, %v8025_v35  ;;  %vm1156_vm15 = vcmp.lt.s32.totalorder %v1137_v18, 1  ;;  %v1161_v3 = vsel %vm1159_vm14, %v1149_v39, 2102212464  ;;  %vm1157_vm0 = vcmp.lt.s32.totalorder %v1137_v18, 2 }
 0x1cf   : > { %vm1158_vm2 = vcmp.lt.s32.totalorder %v1137_v18, 3  ;;  %v1164_v40 = vsel %vm1156_vm15, %v1143_v31, %v1146_v30  ;;  %v1165_v43 = vsel %vm1159_vm14, %v1152_v15, 920167782  ;;  %v1160_v5 = vsel %vm1156_vm15, %v1140_v61, %v1143_v31 }
 0x1d0   : > { %v1296_v59 = vclz %v6135_v24  ;;  %v1166_v63 = vsel %vm1158_vm2, %v1149_v39, %v1165_v43  ;;  %v1168_v56 = vsel %vm1156_vm15, %v1146_v30, %v1149_v39  ;;  %v1162_v8 = vsel %vm1158_vm2, %v1146_v30, %v1161_v3 }
 0x1d1   : > { %v1167_v62 = vsel %vm1157_vm0, %v1164_v40, %v1166_v63  ;;  %v1169_v2 = vsel %vm1159_vm14, %v1155_v53, 1326507024  ;;  %vm1447_vm3 = vcmp.gt.s32.totalorder %v1446_v37, 0  ;;  %v988_v6 = vsub.s32 32, %v7997_v58 }
 0x1d2   : > { %v1170_v20 = vsel %vm1158_vm2, %v1152_v15, %v1169_v2  ;;  %v8043_v46 = vmul.u32.u64.low %v1172_v12, %v1167_v62  ;;  %v8044_v60 = vmul.u32.u64.high %v1172_v12, %v1167_v62, %v8043_v46  ;;  %v994_v7 = vshll.u32 %v993_v0, 23 }
 0x1d3   : > { %v6136_v41 = vadd.s32 4294967294, %v1296_v59  ;;  %v1171_v24 = vsel %vm1157_vm0, %v1168_v56, %v1170_v20  ;;  %v1448_v31 = vsel %vm1447_vm3, %v1446_v37, 0  ;;  %v1163_v39 = vsel %vm1157_vm0, %v1160_v5, %v1162_v8 }
 0x1d4   : > { %v8049_v30 = vmul.u32.u64.low %v1172_v12, %v1171_v24  ;;  %v8050_v61 = vmul.u32.u64.high %v1172_v12, %v1171_v24, %v8049_v30  ;;  %v1335_v53 = vand.u32 2139095040, %v8006_v51  ;;  %v1450_v40 = vand.u32 31, %v1448_v31 }
 0x1d5   : > { %v989_v0 = vshll.u32 %v7937_v27, %v7997_v58  ;;  %v990_v59 = vshrl.u32 %v8002_v48, %v988_v6  ;;  %v1182_v37 = vadd.s32 1, %v8044_v60  ;;  %v1444_v18 = vor.u32 8388608, %v8034_v1 }
 0x1d6   : > { %v995_v5 = vor.u32 4788187, %v994_v7  ;;  %vm6137_vm4 = vcmp.lt.s32.totalorder %v6136_v41, 0  ;;  %v1179_v63 = vmul.u32 %v1172_v12, %v1163_v39  ;;  %v1451_v56 = vsub.s32 32, %v1450_v40 }
 0x1d7   : > { %vm1181_vm5 = vc.u32 %v8050_v61, %v8043_v46  ;;  %v1449_v8 = vshrl.u32 %v1448_v31, 5  ;;  %v1453_v62 = vshll.u32 %v12334_v19, %v1450_v40  ;;  %v1336_v2 = vshrl.u32 %v1335_v53, 23 }
 0x1d8   : > { %v1183_v20 = vsel %vm1181_vm5, %v1182_v37, %v8044_v60  ;;  %v1454_v27 = vshrl.u32 %v12335_v52, %v1451_v56  ;;  %v1456_v58 = vshll.u32 %v12335_v52, %v1450_v40  ;;  %v1457_v48 = vshrl.u32 %v12336_v21, %v1451_v56 }
 0x1d9   : > { %v8068_v1 = vsel %vm6137_vm4, 0, %v6136_v41  ;;  %v1184_v6 = vadd.s32 %v1183_v20, %v1179_v63  ;;  %v1459_v12 = vshll.u32 %v12336_v21, %v1450_v40  ;;  %v1460_v7 = vshrl.u32 %v12337_v34, %v1451_v56 }
 0x1da   : > { %v1455_v24 = vor.u32 %v1454_v27, %v1453_v62  ;;  %v1458_v31 = vor.u32 %v1457_v48, %v1456_v58  ;;  %v1462_v39 = vshll.u32 %v12337_v34, %v1450_v40  ;;  %v1463_v30 = vshrl.u32 %v12338_v38, %v1451_v56 }
 0x1db   : > { %v991_v60 = vor.u32 %v990_v59, %v989_v0  ;;  %v1185_v53 = vadd.s32 536870912, %v1184_v6  ;;  %v1461_v37 = vor.u32 %v1460_v7, %v1459_v12  ;;  %v1484_v43 = vshll.u32 %v1444_v18, 8 }
 0x1dc   : > { %v996_v15 = vand.u32 2147483647, %v995_v5  ;;  %v1464_v3 = vor.u32 %v1463_v30, %v1462_v39  ;;  %v1465_v41 = vshll.u32 %v12338_v38, %v1450_v40  ;;  %v1466_v63 = vshrl.u32 %v12340_v54, %v1451_v56 }
 0x1dd   : > { %v1304_v20 = vsub.s32 4294967266, %v8068_v1  ;;  %v8077_v49 = vshrl.u32 %v1185_v53, 30  ;;  %vm1468_vm6 = vcmp.lt.s32.totalorder %v1449_v8, 1  ;;  %v6138_v62 = vadd.s32 4294967169, %v1336_v2 }
 0x1de   : > { %v1452_v27 = vshrl.u32 %v12334_v19, %v1451_v56  ;;  %v1467_v58 = vor.u32 %v1466_v63, %v1465_v41  ;;  %vm1471_vm7 = vcmp.lt.s32.totalorder %v1449_v8, 4  ;;  %v1476_v0 = vsel %vm1468_vm6, %v1455_v24, %v1458_v31 }
 0x1df   : > { %12348 = vst [vmem:[#allocation23_spill] sm:$0xff] %v8077_v49  ;;  %v1187_v59 = vshll.u32 %v8077_v49, 30  ;;  %vm1470_vm8 = vcmp.lt.s32.totalorder %v1449_v8, 3  ;;  %v1473_v18 = vsel %vm1471_vm7, %v1461_v37, 2102212464  ;;  %vm1469_vm11 = vcmp.lt.s32.totalorder %v1449_v8, 2 }
 0x1e0   : > { %v1477_v5 = vsel %vm1471_vm7, %v1464_v3, 920167782  ;;  %v1480_v48 = vsel %vm1468_vm6, %v1458_v31, %v1461_v37  ;;  %v1481_v12 = vsel %vm1471_vm7, %v1467_v58, 1326507024  ;;  %v1305_v7 = vadd.s32 127, %v1304_v20 }
 0x1e1   : > { %v1478_v40 = vsel %vm1470_vm8, %v1461_v37, %v1477_v5  ;;  %v8083_v39 = vsub.s32 %v1184_v6, %v1187_v59  ;;  %v1472_v2 = vsel %vm1468_vm6, %v1452_v27, %v1455_v24  ;;  %v1474_v30 = vsel %vm1470_vm8, %v1458_v31, %v1473_v18 }
 0x1e2   : > { %v1479_v56 = vsel %vm1469_vm11, %v1476_v0, %v1478_v40  ;;  %v1482_v53 = vsel %vm1470_vm8, %v1464_v3, %v1481_v12  ;;  %v998_v49 = vcvt.s32.f32 %v991_v60  ;;  %v1342_v37 = vadd.s32 1, %v6138_v62  ;;  %v8113_v12 = vld [vmem:[%s12137_s2] ss:$0 sm:$0xff] }
 0x1e3   : > { %v8087_v41 = vmul.u32.u64.low %v1484_v43, %v1479_v56  ;;  %v8088_v63 = vmul.u32.u64.high %v1484_v43, %v1479_v56, %v8087_v41  ;;  %v1190_v10 = vsub.s32 0, %v8083_v39  ;;  %v1483_v5 = vsel %vm1469_vm11, %v1480_v48, %v1482_v53 }
 0x1e4   : > { %v12349_v20 = vand.u32 2147483647, %v8010_v16  ;;  %v12350_v6 = vcvt.s32.f32 %v8008_v11  ;;  %v8099_v24 = vmul.u32.u64.low %v1484_v43, %v1483_v5  ;;  %v8100_v27 = vmul.u32.u64.high %v1484_v43, %v1483_v5, %v8099_v24 }
 0x1e5   : > { %v12351_v3 = vand.u32 2147483647, %v8006_v51  ;;  %v8104_v0 = vmul.f32 %v998_v49, %v996_v15  ;;  %v6131_v60 = vmin.u32 %v1190_v10, %v8083_v39  ;;  %v1475_v59 = vsel %vm1469_vm11, %v1472_v2, %v1474_v30 }
 0x1e6   : > { %v8097_v58 = vmul.f32 %v12350_v6, %v12349_v20  ;;  %vm1343_vm12 = vcmp.gt.s32.totalorder %v1342_v37, 0  ;;  %v1300_v62 = vsub.s32 32, %v8068_v1  ;;  %v1306_v16 = vshll.u32 %v1305_v7, 23 }
 0x1e7   : > { %v1339_v31 = vand.u32 8388607, %v12351_v3  ;;  %v1494_v11 = vadd.s32 1, %v8088_v63  ;;  %v1344_v18 = vsel %vm1343_vm12, %v1342_v37, 0  ;;  %v1192_v40 = vclz %v6131_v60 }
 0x1e8   : > { %v1346_v48 = vand.u32 31, %v1344_v18  ;;  %v8117_v49 = vadd.f32 %v8113_v12, %v7658_v32  ;;  %v8121_v10 = vadd.f32 %v8113_v12, %v7726_v26  ;;  %v1284_v8 = vadd.s32 %v7949_v29, %v7959_v47 }
 0x1e9   : > { %v1491_v7 = vmul.u32 %v1484_v43, %v1475_v59  ;;  %vm1493_vm13 = vc.u32 %v8100_v27, %v8087_v41  ;;  %v1340_v30 = vor.u32 8388608, %v1339_v31  ;;  %v8130_v5 = vor.u32 4788187, %v1306_v16 }
 0x1ea   : > { %v1495_v56 = vsel %vm1493_vm13, %v1494_v11, %v8088_v63  ;;  %v1347_v32 = vsub.s32 32, %v1346_v48  ;;  %v1302_v53 = vshrl.u32 %v1284_v8, %v1300_v62  ;;  %v6132_v26 = vadd.s32 4294967294, %v1192_v40 }
 0x1eb   : > { %v1496_v37 = vadd.s32 %v1495_v56, %v1491_v7  ;;  %v1349_v20 = vshll.u32 %v12334_v19, %v1346_v48  ;;  %v1352_v29 = vshll.u32 %v12335_v52, %v1346_v48  ;;  %v1355_v24 = vshll.u32 %v12336_v21, %v1346_v48 }
 0x1ec   : > { %v1350_v6 = vshrl.u32 %v12335_v52, %v1347_v32  ;;  %v1353_v47 = vshrl.u32 %v12336_v21, %v1347_v32  ;;  %v1356_v63 = vshrl.u32 %v12337_v34, %v1347_v32  ;;  %v1359_v3 = vshrl.u32 %v12338_v38, %v1347_v32 }
 0x1ed   : > { %v1497_v43 = vadd.s32 536870912, %v1496_v37  ;;  %v1301_v31 = vshll.u32 %v8025_v35, %v8068_v1  ;;  %v1345_v60 = vshrl.u32 %v1344_v18, 5  ;;  %v1358_v59 = vshll.u32 %v12337_v34, %v1346_v48 }
 0x1ee   : > { %v1647_v62 = vand.u32 2139095040, %v8117_v49  ;;  %v1351_v11 = vor.u32 %v1350_v6, %v1349_v20  ;;  %v1354_v40 = vor.u32 %v1353_v47, %v1352_v29  ;;  %v1357_v8 = vor.u32 %v1356_v63, %v1355_v24 }
 0x1ef   : > { %v8143_v16 = vshrl.u32 %v1497_v43, 30  ;;  %vm710_vm14 = vcmp.lt.s32.totalorder %v7598_v55, 0  ;;  %v1360_v7 = vor.u32 %v1359_v3, %v1358_v59  ;;  %v1361_v56 = vshll.u32 %v12338_v38, %v1346_v48 }
 0x1f0   : > { %v1362_v2 = vshrl.u32 %v12340_v54, %v1347_v32  ;;  %v1380_v15 = vshll.u32 %v1340_v30, 8  ;;  %vm1022_vm15 = vcmp.lt.s32.totalorder %v7718_v14, 0  ;;  %v1303_v35 = vor.u32 %v1302_v53, %v1301_v31 }
 0x1f1   : > { %12352 = vst [vmem:[#allocation24_spill] sm:$0xff] %v8143_v16  ;;  %v1308_v1 = vand.u32 2147483647, %v8130_v5  ;;  %vm6133_vm0 = vcmp.lt.s32.totalorder %v6132_v26, 0  ;;  %v1499_v18 = vshll.u32 %v8143_v16, 30  ;;  %vm918_vm2 = vcmp.lt.s32.totalorder %v7763_v50, 0 }
 0x1f2   : > { %v1363_v20 = vor.u32 %v1362_v2, %v1361_v56  ;;  %vm1364_vm3 = vcmp.lt.s32.totalorder %v1345_v60, 1  ;;  %vm1367_vm4 = vcmp.lt.s32.totalorder %v1345_v60, 4  ;;  %v1648_v47 = vshrl.u32 %v1647_v62, 23 }
 0x1f3   : > { %v8153_v29 = vsub.s32 %v1496_v37, %v1499_v18  ;;  %v1369_v48 = vsel %vm1367_vm4, %v1357_v8, 2102212464  ;;  %v1372_v30 = vsel %vm1364_vm3, %v1351_v11, %v1354_v40  ;;  %v8156_v43 = vsel %vm6133_vm0, 0, %v6132_v26 }
 0x1f4   : > { %v1348_v53 = vshrl.u32 %v12334_v19, %v1347_v32  ;;  %vm1366_vm5 = vcmp.lt.s32.totalorder %v1345_v60, 3  ;;  %v1373_v5 = vsel %vm1367_vm4, %v1360_v7, 920167782  ;;  %vm1365_vm6 = vcmp.lt.s32.totalorder %v1345_v60, 2 }
 0x1f5   : > { %v1502_v24 = vsub.s32 0, %v8153_v29  ;;  %v1374_v2 = vsel %vm1366_vm5, %v1357_v8, %v1373_v5  ;;  %v1376_v63 = vsel %vm1364_vm3, %v1354_v40, %v1357_v8  ;;  %v1370_v31 = vsel %vm1366_vm5, %v1354_v40, %v1369_v48 }
 0x1f6   : > { %v1368_v3 = vsel %vm1364_vm3, %v1348_v53, %v1351_v11  ;;  %v1375_v37 = vsel %vm1365_vm6, %v1372_v30, %v1374_v2  ;;  %v1377_v59 = vsel %vm1367_vm4, %v1363_v20, 1326507024  ;;  %v1310_v32 = vcvt.s32.f32 %v1303_v35 }
 0x1f7   : > { %v6143_v62 = vmin.u32 %v1502_v24, %v8153_v29  ;;  %v1378_v26 = vsel %vm1366_vm5, %v1360_v7, %v1377_v59  ;;  %v8164_v56 = vmul.u32.u64.low %v1380_v15, %v1375_v37  ;;  %v8165_v18 = vmul.u32.u64.high %v1380_v15, %v1375_v37, %v8164_v56 }
 0x1f8   : > { %v1200_v6 = vsub.s32 4294967266, %v8156_v43  ;;  %v1379_v16 = vsel %vm1365_vm6, %v1376_v63, %v1378_v26  ;;  %v6150_v5 = vadd.s32 4294967169, %v1648_v47  ;;  %v12353_v11 = vxor.u32 2147483648, %v7980_v45 }
 0x1f9   : > { %v1504_v8 = vclz %v6143_v62  ;;  %v8177_v20 = vmul.u32.u64.low %v1380_v15, %v1379_v16  ;;  %v8178_v7 = vmul.u32.u64.high %v1380_v15, %v1379_v16, %v8177_v20  ;;  %v12354_v48 = vxor.u32 2147483648, %v8097_v58 }
 0x1fa   : > { %v8175_v40 = vsel %vm710_vm14, %v12353_v11, %v7980_v45  ;;  %v8187_v30 = vmul.f32 %v1310_v32, %v1308_v1  ;;  %v1371_v47 = vsel %vm1365_vm6, %v1368_v3, %v1370_v31  ;;  %v1654_v53 = vadd.s32 1, %v6150_v5 }
 0x1fb   : > { %v8185_v35 = vsel %vm1022_vm15, %v12354_v48, %v8097_v58  ;;  %v12356_v45 = vxor.u32 2147483648, %v8104_v0  ;;  %v6144_v16 = vadd.s32 4294967294, %v1504_v8  ;;  %v1390_v2 = vadd.s32 1, %v8165_v18 }
 0x1fc   : > { %12355 = vst [vmem:[#allocation25_spill] sm:$0xff] %v8185_v35  ;;  %v12358_v63 = vand.u32 2147483647, %v8117_v49  ;;  %v1196_v58 = vsub.s32 32, %v8156_v43  ;;  %v1201_v1 = vadd.s32 127, %v1200_v6  ;;  %vm1655_vm7 = vcmp.gt.s32.totalorder %v1654_v53, 0 }
 0x1fd   : > { %v8195_v24 = vsel %vm918_vm2, %v12356_v45, %v8104_v0  ;;  %v1543_v60 = vand.u32 2139095040, %v8121_v10  ;;  %v1180_v3 = vadd.s32 %v8043_v46, %v8050_v61  ;;  %v1387_v31 = vmul.u32 %v1380_v15, %v1371_v47 }
 0x1fe   : > { %12357 = vst [vmem:[#allocation26_spill] sm:$0xff] %v8195_v24  ;;  %v1651_v37 = vand.u32 8388607, %v12358_v63  ;;  %vm1389_vm8 = vc.u32 %v8178_v7, %v8164_v56  ;;  %v1656_v0 = vsel %vm1655_vm7, %v1654_v53, 0  ;;  %vm6145_vm11 = vcmp.lt.s32.totalorder %v6144_v16, 0 }
 0x1ff   : > { %v1391_v62 = vsel %vm1389_vm8, %v1390_v2, %v8165_v18  ;;  %v1658_v26 = vand.u32 31, %v1656_v0  ;;  %v1197_v6 = vshll.u32 %v8083_v39, %v8156_v43  ;;  %v1198_v8 = vshrl.u32 %v1180_v3, %v1196_v58 }
 0x200   : > { %v1392_v32 = vadd.s32 %v1391_v62, %v1387_v31  ;;  %v1652_v5 = vor.u32 8388608, %v1651_v37  ;;  %v1202_v46 = vshll.u32 %v1201_v1, 23  ;;  %v1544_v15 = vshrl.u32 %v1543_v60, 23 }
 0x201   : > { %v1659_v61 = vsub.s32 32, %v1658_v26  ;;  %v8211_v20 = vsel %vm6145_vm11, 0, %v6144_v16  ;;  %v1661_v47 = vshll.u32 %v12334_v19, %v1658_v26  ;;  %v1664_v53 = vshll.u32 %v12335_v52, %v1658_v26 }
 0x202   : > { %v1393_v48 = vadd.s32 536870912, %v1392_v32  ;;  %v1667_v39 = vshll.u32 %v12336_v21, %v1658_v26  ;;  %v1657_v63 = vshrl.u32 %v1656_v0, 5  ;;  %v1670_v37 = vshll.u32 %v12337_v34, %v1658_v26 }
 0x203   : > { %v1662_v18 = vshrl.u32 %v12335_v52, %v1659_v61  ;;  %v1665_v45 = vshrl.u32 %v12336_v21, %v1659_v61  ;;  %v1668_v43 = vshrl.u32 %v12337_v34, %v1659_v61  ;;  %v1671_v16 = vshrl.u32 %v12338_v38, %v1659_v61 }
 0x204   : > { %v8219_v2 = vshrl.u32 %v1393_v48, 30  ;;  %v1199_v58 = vor.u32 %v1198_v8, %v1197_v6  ;;  %v1203_v31 = vor.u32 4788187, %v1202_v46  ;;  %v1692_v11 = vshll.u32 %v1652_v5, 8 }
 0x205   : > { %v1663_v1 = vor.u32 %v1662_v18, %v1661_v47  ;;  %v1666_v60 = vor.u32 %v1665_v45, %v1664_v53  ;;  %v1669_v3 = vor.u32 %v1668_v43, %v1667_v39  ;;  %v1672_v59 = vor.u32 %v1671_v16, %v1670_v37 }
 0x206   : > { %12359 = vst [vmem:[#allocation27_spill] sm:$0xff] %v8219_v2  ;;  %v1395_v62 = vshll.u32 %v8219_v2, 30  ;;  %v1508_v35 = vsub.s32 32, %v8211_v20  ;;  %v1673_v14 = vshll.u32 %v12338_v38, %v1658_v26  ;;  %v1674_v48 = vshrl.u32 %v12340_v54, %v1659_v61 }
 0x207   : > { %v6146_v0 = vadd.s32 4294967169, %v1544_v15  ;;  %vm1676_vm12 = vcmp.lt.s32.totalorder %v1657_v63, 1  ;;  %vm1678_vm13 = vcmp.lt.s32.totalorder %v1657_v63, 3  ;;  %vm1679_vm0 = vcmp.lt.s32.totalorder %v1657_v63, 4 }
 0x208   : > { %v8227_v24 = vsub.s32 %v1392_v32, %v1395_v62  ;;  %v1675_v6 = vor.u32 %v1674_v48, %v1673_v14  ;;  %v1681_v8 = vsel %vm1679_vm0, %v1669_v3, 2102212464  ;;  %v1684_v46 = vsel %vm1676_vm12, %v1663_v1, %v1666_v60 }
 0x209   : > { %v1685_v47 = vsel %vm1679_vm0, %v1672_v59, 920167782  ;;  %v1660_v5 = vshrl.u32 %v12334_v19, %v1659_v61  ;;  %vm1677_vm3 = vcmp.lt.s32.totalorder %v1657_v63, 2  ;;  %v1512_v18 = vsub.s32 4294967266, %v8211_v20 }
 0x20a   : > { %v1398_v53 = vsub.s32 0, %v8227_v24  ;;  %v1686_v26 = vsel %vm1678_vm13, %v1669_v3, %v1685_v47  ;;  %v1688_v15 = vsel %vm1676_vm12, %v1666_v60, %v1669_v3  ;;  %v1689_v45 = vsel %vm1679_vm0, %v1675_v6, 1326507024 }
 0x20b   : > { %v1687_v32 = vsel %vm1677_vm3, %v1684_v46, %v1686_v26  ;;  %v1680_v39 = vsel %vm1676_vm12, %v1660_v5, %v1663_v1  ;;  %v1682_v43 = vsel %vm1678_vm13, %v1666_v60, %v1681_v8  ;;  %v1690_v37 = vsel %vm1678_vm13, %v1672_v59, %v1689_v45 }
 0x20c   : > { %v6139_v14 = vmin.u32 %v1398_v53, %v8227_v24  ;;  %v1691_v61 = vsel %vm1677_vm3, %v1688_v15, %v1690_v37  ;;  %v8241_v16 = vmul.u32.u64.low %v1692_v11, %v1687_v32  ;;  %v8242_v62 = vmul.u32.u64.high %v1692_v11, %v1687_v32, %v8241_v16 }
 0x20d   : > { %v1550_v48 = vadd.s32 1, %v6146_v0  ;;  %v1204_v47 = vand.u32 2147483647, %v1203_v31  ;;  %v8245_v26 = vmul.u32.u64.low %v1692_v11, %v1691_v61  ;;  %v8246_v3 = vmul.u32.u64.high %v1692_v11, %v1691_v61, %v8245_v26 }
 0x20e   : > { %v1400_v46 = vclz %v6139_v14  ;;  %v1492_v6 = vadd.s32 %v8087_v41, %v8100_v27  ;;  %v1683_v1 = vsel %vm1677_vm3, %v1680_v39, %v1682_v43  ;;  %v12360_v60 = vand.u32 2147483647, %v8121_v10 }
 0x20f   : > { %vm1551_vm4 = vcmp.gt.s32.totalorder %v1550_v48, 0  ;;  %v1206_v8 = vcvt.s32.f32 %v1199_v58  ;;  %v8255_v0 = vadd.f32 %v8113_v12, %v7817_v17  ;;  %v1513_v32 = vadd.s32 127, %v1512_v18 }
 0x210   : > { %v1547_v59 = vand.u32 8388607, %v12360_v60  ;;  %v6140_v53 = vadd.s32 4294967294, %v1400_v46  ;;  %v1552_v5 = vsel %vm1551_vm4, %v1550_v48, 0  ;;  %v1510_v31 = vshrl.u32 %v1492_v6, %v1508_v35 }
 0x211   : > { %v1702_v15 = vadd.s32 1, %v8242_v62  ;;  %v1554_v45 = vand.u32 31, %v1552_v5  ;;  %v8258_v14 = vmul.f32 %v1206_v8, %v1204_v47  ;;  %v1699_v41 = vmul.u32 %v1692_v11, %v1683_v1 }
 0x212   : > { %vm6141_vm5 = vcmp.lt.s32.totalorder %v6140_v53, 0  ;;  %vm1701_vm6 = vc.u32 %v8246_v3, %v8241_v16  ;;  %v1509_v27 = vshll.u32 %v8153_v29, %v8211_v20  ;;  %v1548_v58 = vor.u32 8388608, %v1547_v59 }
 0x213   : > { %v1703_v63 = vsel %vm1701_vm6, %v1702_v15, %v8242_v62  ;;  %v1555_v17 = vsub.s32 32, %v1554_v45  ;;  %v1388_v35 = vadd.s32 %v8164_v56, %v8178_v7  ;;  %v8267_v18 = vsel %vm6141_vm5, 0, %v6140_v53 }
 0x214   : > { %v1704_v39 = vadd.s32 %v1703_v63, %v1699_v41  ;;  %v8270_v37 = vor.u32 %v1510_v31, %v1509_v27  ;;  %v1514_v11 = vshll.u32 %v1513_v32, 23  ;;  %v1553_v20 = vshrl.u32 %v1552_v5, 5 }
 0x215   : > { %v1558_v61 = vshrl.u32 %v12335_v52, %v1555_v17  ;;  %v1561_v48 = vshrl.u32 %v12336_v21, %v1555_v17  ;;  %v1557_v62 = vshll.u32 %v12334_v19, %v1554_v45  ;;  %v1855_v47 = vand.u32 2139095040, %v8255_v0 }
 0x216   : > { %v1705_v29 = vadd.s32 536870912, %v1704_v39  ;;  %v1404_v56 = vsub.s32 32, %v8267_v18  ;;  %v1560_v7 = vshll.u32 %v12335_v52, %v1554_v45  ;;  %v1563_v46 = vshll.u32 %v12336_v21, %v1554_v45 }
 0x217   : > { %v1564_v26 = vshrl.u32 %v12337_v34, %v1555_v17  ;;  %v1559_v1 = vor.u32 %v1558_v61, %v1557_v62  ;;  %v1566_v60 = vshll.u32 %v12337_v34, %v1554_v45  ;;  %v1567_v59 = vshrl.u32 %v12338_v38, %v1555_v17 }
 0x218   : > { %v8280_v6 = vshrl.u32 %v1705_v29, 30  ;;  %v1562_v8 = vor.u32 %v1561_v48, %v1560_v7  ;;  %v1569_v5 = vshll.u32 %v12338_v38, %v1554_v45  ;;  %v1570_v31 = vshrl.u32 %v12340_v54, %v1555_v17 }
 0x219   : > { %v1565_v53 = vor.u32 %v1564_v26, %v1563_v46  ;;  %v1515_v32 = vor.u32 4788187, %v1514_v11  ;;  %v1568_v41 = vor.u32 %v1567_v59, %v1566_v60  ;;  %v1588_v27 = vshll.u32 %v1548_v58, 8 }
 0x21a   : > { %12361 = vst [vmem:[#allocation28_spill] sm:$0xff] %v8280_v6  ;;  %v1707_v15 = vshll.u32 %v8280_v6, 30  ;;  %v1408_v63 = vsub.s32 4294967266, %v8267_v18  ;;  %v1556_v29 = vshrl.u32 %v12334_v19, %v1555_v17  ;;  %v1571_v61 = vor.u32 %v1570_v31, %v1569_v5 }
 0x21b   : > { %v1856_v62 = vshrl.u32 %v1855_v47, 23  ;;  %v1406_v43 = vshrl.u32 %v1388_v35, %v1404_v56  ;;  %vm1572_vm7 = vcmp.lt.s32.totalorder %v1553_v20, 1  ;;  %vm1575_vm8 = vcmp.lt.s32.totalorder %v1553_v20, 4 }
 0x21c   : > { %v8289_v2 = vsub.s32 %v1704_v39, %v1707_v15  ;;  %vm1574_vm11 = vcmp.lt.s32.totalorder %v1553_v20, 3  ;;  %v1577_v45 = vsel %vm1575_vm8, %v1565_v53, 2102212464  ;;  %v1580_v48 = vsel %vm1572_vm7, %v1559_v1, %v1562_v8 }
 0x21d   : > { %v1581_v7 = vsel %vm1575_vm8, %v1568_v41, 920167782  ;;  %vm1573_vm12 = vcmp.lt.s32.totalorder %v1553_v20, 2  ;;  %v1584_v58 = vsel %vm1572_vm7, %v1562_v8, %v1565_v53  ;;  %v1409_v26 = vadd.s32 127, %v1408_v63 }
 0x21e   : > { %v1710_v11 = vsub.s32 0, %v8289_v2  ;;  %v1582_v46 = vsel %vm1574_vm11, %v1565_v53, %v1581_v7  ;;  %v1585_v17 = vsel %vm1575_vm8, %v1571_v61, 1326507024  ;;  %v6158_v59 = vadd.s32 4294967169, %v1856_v62 }
 0x21f   : > { %v1583_v60 = vsel %vm1573_vm12, %v1580_v48, %v1582_v46  ;;  %v1576_v39 = vsel %vm1572_vm7, %v1556_v29, %v1559_v1  ;;  %v1578_v47 = vsel %vm1574_vm11, %v1562_v8, %v1577_v45  ;;  %v1586_v56 = vsel %vm1574_vm11, %v1568_v41, %v1585_v17 }
 0x220   : > { %v6151_v35 = vmin.u32 %v1710_v11, %v8289_v2  ;;  %v1587_v5 = vsel %vm1573_vm12, %v1584_v58, %v1586_v56  ;;  %v8295_v31 = vmul.u32.u64.low %v1588_v27, %v1583_v60  ;;  %v8296_v15 = vmul.u32.u64.high %v1588_v27, %v1583_v60, %v8295_v31 }
 0x221   : > { %v1862_v6 = vadd.s32 1, %v6158_v59  ;;  %v8299_v7 = vmul.u32.u64.low %v1588_v27, %v1587_v5  ;;  %v8300_v53 = vmul.u32.u64.high %v1588_v27, %v1587_v5, %v8299_v7  ;;  %v8304_v63 = vadd.f32 %v8113_v12, %v7868_v36 }
 0x222   : > { %v1712_v50 = vclz %v6151_v35  ;;  %v1516_v61 = vand.u32 2147483647, %v1515_v32  ;;  %v1405_v1 = vshll.u32 %v8227_v24, %v8267_v18  ;;  %v1579_v8 = vsel %vm1573_vm12, %v1576_v39, %v1578_v47 }
 0x223   : > { %vm1863_vm13 = vcmp.gt.s32.totalorder %v1862_v6, 0  ;;  %v1518_v41 = vcvt.s32.f32 %v8270_v37  ;;  %v12362_v62 = vand.u32 2147483647, %v8255_v0  ;;  %v1410_v46 = vshll.u32 %v1409_v26, 23 }
 0x224   : > { %v6152_v29 = vadd.s32 4294967294, %v1712_v50  ;;  %v1864_v48 = vsel %vm1863_vm13, %v1862_v6, 0  ;;  %v8312_v11 = vor.u32 %v1406_v43, %v1405_v1  ;;  %v1598_v36 = vadd.s32 1, %v8296_v15 }
 0x225   : > { %v1859_v45 = vand.u32 8388607, %v12362_v62  ;;  %v1866_v58 = vand.u32 31, %v1864_v48  ;;  %v1595_v24 = vmul.u32 %v1588_v27, %v1579_v8  ;;  %vm1597_vm3 = vc.u32 %v8300_v53, %v8295_v31 }
 0x226   : > { %vm6153_vm0 = vcmp.lt.s32.totalorder %v6152_v29, 0  ;;  %v8318_v18 = vmul.f32 %v1518_v41, %v1516_v61  ;;  %v1599_v50 = vsel %vm1597_vm3, %v1598_v36, %v8296_v15  ;;  %v1700_v43 = vadd.s32 %v8241_v16, %v8246_v3 }
 0x227   : > { %v1867_v37 = vsub.s32 32, %v1866_v58  ;;  %v8324_v6 = vsel %vm6153_vm0, 0, %v6152_v29  ;;  %v1600_v26 = vadd.s32 %v1599_v50, %v1595_v24  ;;  %v1860_v60 = vor.u32 8388608, %v1859_v45 }
 0x228   : > { %v1411_v17 = vor.u32 4788187, %v1410_v46  ;;  %v1414_v27 = vcvt.s32.f32 %v8312_v11  ;;  %v1865_v47 = vshrl.u32 %v1864_v48, 5  ;;  %v1869_v56 = vshll.u32 %v12334_v19, %v1866_v58 }
 0x229   : > { %v1870_v59 = vshrl.u32 %v12335_v52, %v1867_v37  ;;  %v1873_v35 = vshrl.u32 %v12336_v21, %v1867_v37  ;;  %v1601_v39 = vadd.s32 536870912, %v1600_v26  ;;  %v1751_v5 = vand.u32 2139095040, %v8304_v63 }
 0x22a   : > { %v1716_v15 = vsub.s32 32, %v8324_v6  ;;  %v1872_v16 = vshll.u32 %v12335_v52, %v1866_v58  ;;  %v1875_v3 = vshll.u32 %v12336_v21, %v1866_v58  ;;  %v1876_v7 = vshrl.u32 %v12337_v34, %v1867_v37 }
 0x22b   : > { %v8335_v61 = vshrl.u32 %v1601_v39, 30  ;;  %v1871_v1 = vor.u32 %v1870_v59, %v1869_v56  ;;  %v1878_v8 = vshll.u32 %v12337_v34, %v1866_v58  ;;  %v1879_v41 = vshrl.u32 %v12338_v38, %v1867_v37 }
 0x22c   : > { %v1874_v29 = vor.u32 %v1873_v35, %v1872_v16  ;;  %v1877_v62 = vor.u32 %v1876_v7, %v1875_v3  ;;  %v1881_v45 = vshll.u32 %v12338_v38, %v1866_v58  ;;  %v1882_v48 = vshrl.u32 %v12340_v54, %v1867_v37 }
 0x22d   : > { %12363 = vst [vmem:[#allocation29_spill] sm:$0xff] %v8335_v61  ;;  %v1412_v11 = vand.u32 2147483647, %v1411_v17  ;;  %v1603_v46 = vshll.u32 %v8335_v61, 30  ;;  %v1880_v36 = vor.u32 %v1879_v41, %v1878_v8  ;;  %v1900_v24 = vshll.u32 %v1860_v60, 8 }
 0x22e   : > { %vm1230_vm4 = vcmp.lt.s32.totalorder %v7823_v57, 0  ;;  %v1720_v50 = vsub.s32 4294967266, %v8324_v6  ;;  %v1868_v59 = vshrl.u32 %v12334_v19, %v1867_v37  ;;  %v1883_v39 = vor.u32 %v1882_v48, %v1881_v45 }
 0x22f   : > { %v1752_v56 = vshrl.u32 %v1751_v5, 23  ;;  %v1718_v32 = vshrl.u32 %v1700_v43, %v1716_v15  ;;  %v8345_v35 = vsub.s32 %v1600_v26, %v1603_v46  ;;  %vm1884_vm5 = vcmp.lt.s32.totalorder %v1865_v47, 1 }
 0x230   : > { %vm1887_vm6 = vcmp.lt.s32.totalorder %v1865_v47, 4  ;;  %vm1126_vm7 = vcmp.lt.s32.totalorder %v7919_v13, 0  ;;  %vm1886_vm8 = vcmp.lt.s32.totalorder %v1865_v47, 3  ;;  %v1892_v17 = vsel %vm1884_vm5, %v1871_v1, %v1874_v29 }
 0x231   : > { %v1889_v58 = vsel %vm1887_vm6, %v1877_v62, 2102212464  ;;  %v1893_v60 = vsel %vm1887_vm6, %v1880_v36, 920167782  ;;  %vm1438_vm11 = vcmp.lt.s32.totalorder %v7955_v25, 0  ;;  %v1606_v16 = vsub.s32 0, %v8345_v35 }
 0x232   : > { %vm1885_vm12 = vcmp.lt.s32.totalorder %v1865_v47, 2  ;;  %v1894_v37 = vsel %vm1886_vm8, %v1877_v62, %v1893_v60  ;;  %v1896_v43 = vsel %vm1884_vm5, %v1874_v29, %v1877_v62  ;;  %v1721_v26 = vadd.s32 127, %v1720_v50  ;;  %v2166_v25 = vld [vmem:[#allocation4 + $0x10] sm:$0xff] }
 0x233   : > { %v1895_v5 = vsel %vm1885_vm12, %v1892_v17, %v1894_v37  ;;  %v1897_v15 = vsel %vm1887_vm6, %v1883_v39, 1326507024  ;;  %v6154_v3 = vadd.s32 4294967169, %v1752_v56  ;;  %v6147_v7 = vmin.u32 %v1606_v16, %v8345_v35 }
 0x234   : > { %v1888_v8 = vsel %vm1884_vm5, %v1868_v59, %v1871_v1  ;;  %v1890_v41 = vsel %vm1886_vm8, %v1874_v29, %v1889_v58  ;;  %v1898_v45 = vsel %vm1886_vm8, %v1880_v36, %v1897_v15  ;;  %v1520_v50 = vxor.u32 2147483648, %v8318_v18 }
 0x235   : > { %v1899_v48 = vsel %vm1885_vm12, %v1896_v43, %v1898_v45  ;;  %v8359_v46 = vmul.u32.u64.low %v1900_v24, %v1895_v5  ;;  %v8360_v20 = vmul.u32.u64.high %v1900_v24, %v1895_v5, %v8359_v46  ;;  %v1758_v62 = vadd.s32 1, %v6154_v3 }
 0x236   : > { %v1608_v17 = vclz %v6147_v7  ;;  %v8364_v39 = vmul.u32.u64.low %v1900_v24, %v1899_v48  ;;  %v8365_v56 = vmul.u32.u64.high %v1900_v24, %v1899_v48, %v8364_v39  ;;  %v8367_v60 = vmul.f32 %v1414_v27, %v1412_v11 }
 0x237   : > { %v1717_v1 = vshll.u32 %v8289_v2, %v8324_v6  ;;  %v1891_v29 = vsel %vm1885_vm12, %v1888_v8, %v1890_v41  ;;  %vm1759_vm13 = vcmp.gt.s32.totalorder %v1758_v62, 0  ;;  %v12364_v36 = vxor.u32 2147483648, %v8187_v30 }
 0x238   : > { %v6148_v58 = vadd.s32 4294967294, %v1608_v17  ;;  %v12366_v16 = vand.u32 2147483647, %v8304_v63  ;;  %v1760_v43 = vsel %vm1759_vm13, %v1758_v62, 0  ;;  %v1722_v11 = vshll.u32 %v1721_v26, 23 }
 0x239   : > { %v8377_v59 = vsel %vm1230_vm4, %v12364_v36, %v8187_v30  ;;  %v8381_v27 = vor.u32 %v1718_v32, %v1717_v1  ;;  %v1910_v2 = vadd.s32 1, %v8360_v20  ;;  %v1762_v6 = vand.u32 31, %v1760_v43 }
 0x23a   : > { %12365 = vst [vmem:[#allocation30_spill] sm:$0xff] %v8377_v59  ;;  %v1755_v37 = vand.u32 8388607, %v12366_v16  ;;  %v12367_v47 = vxor.u32 2147483648, %v8258_v14  ;;  %v1907_v30 = vmul.u32 %v1900_v24, %v1891_v29  ;;  %vm1909_vm0 = vc.u32 %v8365_v56, %v8359_v46  ;;  %v2167_v59 = vld [vmem:[#allocation4 + $0x18] sm:$0xff] }
 0x23b   : > { %v8395_v15 = vadd.f32 %v8113_v12, %v7939_v23  ;;  %v8400_v32 = vsel %vm1438_vm11, %v1520_v50, %v8318_v18  ;;  %v1911_v3 = vsel %vm1909_vm0, %v1910_v2, %v8360_v20  ;;  %v1763_v7 = vsub.s32 32, %v1762_v6 }
 0x23c   : > { %v8389_v5 = vsel %vm1126_vm7, %v12367_v47, %v8258_v14  ;;  %12369 = vst [vmem:[#allocation32_spill] sm:$0xff] %v8400_v32  ;;  %v8406_v14 = vadd.s32 %v8295_v31, %v8300_v53  ;;  %vm6149_vm3 = vcmp.lt.s32.totalorder %v6148_v58, 0  ;;  %v1912_v24 = vadd.s32 %v1911_v3, %v1907_v30 }
 0x23d   : > { %12368 = vst [vmem:[#allocation31_spill] sm:$0xff] %v8389_v5  ;;  %v1756_v8 = vor.u32 8388608, %v1755_v37  ;;  %v1723_v41 = vor.u32 4788187, %v1722_v11  ;;  %v1726_v23 = vcvt.s32.f32 %v8381_v27  ;;  %v1766_v45 = vshrl.u32 %v12335_v52, %v1763_v7 }
 0x23e   : > { %v1769_v18 = vshrl.u32 %v12336_v21, %v1763_v7  ;;  %v1913_v48 = vadd.s32 536870912, %v1912_v24  ;;  %v1761_v62 = vshrl.u32 %v1760_v43, 5  ;;  %v1765_v50 = vshll.u32 %v12334_v19, %v1762_v6 }
 0x23f   : > { %v2063_v20 = vand.u32 2139095040, %v8395_v15  ;;  %v8413_v17 = vsel %vm6149_vm3, 0, %v6148_v58  ;;  %v1768_v31 = vshll.u32 %v12335_v52, %v1762_v6  ;;  %v1771_v53 = vshll.u32 %v12336_v21, %v1762_v6 }
 0x240   : > { %v1772_v39 = vshrl.u32 %v12337_v34, %v1763_v7  ;;  %v8418_v1 = vshrl.u32 %v1913_v48, 30  ;;  %v1767_v29 = vor.u32 %v1766_v45, %v1765_v50  ;;  %v1774_v36 = vshll.u32 %v12337_v34, %v1762_v6  ;;  %v2164_v45 = vld [vmem:[#allocation4] sm:$0xff] }
 0x241   : > { %v1775_v16 = vshrl.u32 %v12338_v38, %v1763_v7  ;;  %v1770_v37 = vor.u32 %v1769_v18, %v1768_v31  ;;  %v1777_v27 = vshll.u32 %v12338_v38, %v1762_v6  ;;  %v1778_v58 = vshrl.u32 %v12340_v54, %v1763_v7 }
 0x242   : > { %12370 = vst [vmem:[#allocation33_spill] sm:$0xff] %v8418_v1  ;;  %v1773_v43 = vor.u32 %v1772_v39, %v1771_v53  ;;  %v1724_v11 = vand.u32 2147483647, %v1723_v41  ;;  %v1915_v2 = vshll.u32 %v8418_v1, 30  ;;  %v8425_v30 = vshll.u32 %v1756_v8, 8 }
 0x243   : > { %v1776_v47 = vor.u32 %v1775_v16, %v1774_v36  ;;  %v1612_v3 = vsub.s32 32, %v8413_v17  ;;  %v1779_v48 = vor.u32 %v1778_v58, %v1777_v27  ;;  %v2064_v50 = vshrl.u32 %v2063_v20, 23 }
 0x244   : > { %v8429_v26 = vsub.s32 %v1912_v24, %v1915_v2  ;;  %v1764_v18 = vshrl.u32 %v12334_v19, %v1763_v7  ;;  %vm1780_vm5 = vcmp.lt.s32.totalorder %v1761_v62, 1  ;;  %vm1783_vm6 = vcmp.lt.s32.totalorder %v1761_v62, 4 }
 0x245   : > { %vm1782_vm8 = vcmp.lt.s32.totalorder %v1761_v62, 3  ;;  %v1785_v6 = vsel %vm1783_vm6, %v1773_v43, 2102212464  ;;  %v1788_v41 = vsel %vm1780_vm5, %v1767_v29, %v1770_v37  ;;  %v1789_v31 = vsel %vm1783_vm6, %v1776_v47, 920167782 }
 0x246   : > { %v1918_v53 = vsub.s32 0, %v8429_v26  ;;  %vm1781_vm12 = vcmp.lt.s32.totalorder %v1761_v62, 2  ;;  %v1790_v8 = vsel %vm1782_vm8, %v1773_v43, %v1789_v31  ;;  %v1792_v39 = vsel %vm1780_vm5, %v1770_v37, %v1773_v43  ;;  %v2165_v31 = vld [vmem:[#allocation4 + $0x8] sm:$0xff] }
 0x247   : > { %v1616_v36 = vsub.s32 4294967266, %v8413_v17  ;;  %v1791_v16 = vsel %vm1781_vm12, %v1788_v41, %v1790_v8  ;;  %v1793_v20 = vsel %vm1783_vm6, %v1779_v48, 1326507024  ;;  %v6166_v24 = vadd.s32 4294967169, %v2064_v50 }
 0x248   : > { %v6159_v27 = vmin.u32 %v1918_v53, %v8429_v26  ;;  %v1784_v7 = vsel %vm1780_vm5, %v1764_v18, %v1767_v29  ;;  %v1786_v58 = vsel %vm1782_vm8, %v1770_v37, %v1785_v6  ;;  %v1794_v2 = vsel %vm1782_vm8, %v1776_v47, %v1793_v20 }
 0x249   : > { %v1795_v1 = vsel %vm1781_vm12, %v1792_v39, %v1794_v2  ;;  %v8438_v61 = vmul.u32.u64.low %v8425_v30, %v1791_v16  ;;  %v8439_v32 = vmul.u32.u64.high %v8425_v30, %v1791_v16, %v8438_v61  ;;  %v2070_v43 = vadd.s32 1, %v6166_v24 }
 0x24a   : > { %v1920_v41 = vclz %v6159_v27  ;;  %v8443_v48 = vmul.u32.u64.low %v8425_v30, %v1795_v1  ;;  %v8444_v50 = vmul.u32.u64.high %v8425_v30, %v1795_v1, %v8443_v48  ;;  %v8448_v29 = vadd.f32 %v8113_v12, %v8019_v22 }
 0x24b   : > { %v8450_v37 = vmul.f32 %v1726_v23, %v1724_v11  ;;  %v1614_v47 = vshrl.u32 %v8406_v14, %v1612_v3  ;;  %v1787_v18 = vsel %vm1781_vm12, %v1784_v7, %v1786_v58  ;;  %vm2071_vm13 = vcmp.gt.s32.totalorder %v2070_v43, 0 }
 0x24c   : > { %12371 = vst [vmem:[#allocation34_spill] sm:$0xff] %v8448_v29  ;;  %v6160_v6 = vadd.s32 4294967294, %v1920_v41  ;;  %v2072_v53 = vsel %vm2071_vm13, %v2070_v43, 0  ;;  %v6689_v8 = vpack.c.bf16 %v2165_v31, %v2164_v45  ;;  %v6693_v39 = vpack.c.bf16 %v2167_v59, %v2166_v25  ;;  %v2170_v25 = vld [vmem:[#allocation4 + $0x30] sm:$0xff] }
 0x24d   : > { %v8454_v16 = vadd.s32 127, %v1616_v36  ;;  %v1806_v1 = vadd.s32 1, %v8439_v32  ;;  %v12372_v20 = vand.u32 2147483647, %v8395_v15  ;;  %v2074_v22 = vand.u32 31, %v2072_v53 }
 0x24e   : > { %v1613_v12 = vshll.u32 %v8345_v35, %v8413_v17  ;;  %vm6161_vm0 = vcmp.lt.s32.totalorder %v6160_v6, 0  ;;  %v1803_v14 = vmul.u32 %v8425_v30, %v1787_v18  ;;  %vm1805_vm3 = vc.u32 %v8444_v50, %v8438_v61  ;;  %6690 = vmatprep.subr.bf16.mxu1 %v6689_v8 }
 0x24f   : > { %v2067_v24 = vand.u32 8388607, %v12372_v20  ;;  %v1807_v59 = vsel %vm1805_vm3, %v1806_v1, %v8439_v32  ;;  %v2075_v23 = vsub.s32 32, %v2074_v22  ;;  %v12202_v62 = vand.u32 2147483647, %v8448_v29  ;;  %6692 = vmatpush3.bf16.msra.mxu1 %v6689_v8 }
 0x250   : > { %v8467_v11 = vor.u32 %v1614_v47, %v1613_v12  ;;  %v8471_v35 = vadd.s32 %v8359_v46, %v8365_v56  ;;  %v8473_v17 = vsel %vm6161_vm0, 0, %v6160_v6  ;;  %v1808_v30 = vadd.s32 %v1807_v59, %v1803_v14  ;;  %6694 = vmatprep.subr.bf16.mxu1 %v6693_v39 }
 0x251   : > { %v1618_v3 = vshll.u32 %v8454_v16, 23  ;;  %v2068_v45 = vor.u32 8388608, %v2067_v24  ;;  %v2078_v36 = vshrl.u32 %v12335_v52, %v2075_v23  ;;  %v2081_v32 = vshrl.u32 %v12336_v21, %v2075_v23 }
 0x252   : > { %v1809_v27 = vadd.s32 536870912, %v1808_v30  ;;  %v2073_v7 = vshrl.u32 %v2072_v53, 5  ;;  %v2077_v58 = vshll.u32 %v12334_v19, %v2074_v22  ;;  %v1959_v2 = vand.u32 2139095040, %v8448_v29 }
 0x253   : > { %v1928_v46 = vsub.s32 4294967266, %v8473_v17  ;;  %v2080_v56 = vshll.u32 %v12335_v52, %v2074_v22  ;;  %v2083_v43 = vshll.u32 %v12336_v21, %v2074_v22  ;;  %v2084_v31 = vshrl.u32 %v12337_v34, %v2075_v23  ;;  %6696 = vmatpush3.bf16.msra.mxu1 %v6693_v39 }
 0x254   : > { %v8484_v41 = vshrl.u32 %v1809_v27, 30  ;;  %v2079_v48 = vor.u32 %v2078_v36, %v2077_v58  ;;  %v2086_v47 = vshll.u32 %v12337_v34, %v2074_v22  ;;  %v2087_v18 = vshrl.u32 %v12338_v38, %v2075_v23 }
 0x255   : > { %v2082_v6 = vor.u32 %v2081_v32, %v2080_v56  ;;  %v2085_v53 = vor.u32 %v2084_v31, %v2083_v43  ;;  %v2089_v8 = vshll.u32 %v12338_v38, %v2074_v22  ;;  %v2090_v16 = vshrl.u32 %v12340_v54, %v2075_v23 }
 0x256   : > { %12373 = vst [vmem:[#allocation35_spill] sm:$0xff] %v8484_v41  ;;  %v1811_v1 = vshll.u32 %v8484_v41, 30  ;;  %v2088_v20 = vor.u32 %v2087_v18, %v2086_v47  ;;  %v8491_v24 = vshll.u32 %v2068_v45, 8  ;;  %v8495_v39 = vand.u32 8388607, %v12202_v62  ;;  %v2169_v62 = vld [vmem:[#allocation4 + $0x28] sm:$0xff] }
 0x257   : > { %v1924_v12 = vsub.s32 32, %v8473_v17  ;;  %v1929_v14 = vadd.s32 127, %v1928_v46  ;;  %v2091_v59 = vor.u32 %v2090_v16, %v2089_v8  ;;  %v1960_v36 = vshrl.u32 %v1959_v2, 23  ;;  %v2171_v41 = vld [vmem:[#allocation4 + $0x38] sm:$0xff] }
 0x258   : > { %v8498_v32 = vsub.s32 %v1808_v30, %v1811_v1  ;;  %v2076_v22 = vshrl.u32 %v12334_v19, %v2075_v23  ;;  %vm2092_vm5 = vcmp.lt.s32.totalorder %v2073_v7, 1  ;;  %vm2095_vm6 = vcmp.lt.s32.totalorder %v2073_v7, 4  ;;  %v2168_v23 = vld [vmem:[#allocation4 + $0x20] sm:$0xff] }
 0x259   : > { %vm2094_vm8 = vcmp.lt.s32.totalorder %v2073_v7, 3  ;;  %v2097_v27 = vsel %vm2095_vm6, %v2085_v53, 2102212464  ;;  %v2100_v45 = vsel %vm2092_vm5, %v2079_v48, %v2082_v6  ;;  %v2101_v58 = vsel %vm2095_vm6, %v2088_v20, 920167782 }
 0x25a   : > { %v1814_v56 = vsub.s32 0, %v8498_v32  ;;  %vm2093_vm12 = vcmp.lt.s32.totalorder %v2073_v7, 2  ;;  %v2102_v43 = vsel %vm2094_vm8, %v2085_v53, %v2101_v58  ;;  %v2104_v46 = vsel %vm2092_vm5, %v2082_v6, %v2085_v53 }
 0x25b   : > { %v1930_v31 = vshll.u32 %v1929_v14, 23  ;;  %v2103_v30 = vsel %vm2093_vm12, %v2100_v45, %v2102_v43  ;;  %v2105_v2 = vsel %vm2095_vm6, %v2091_v59, 1326507024  ;;  %v6162_v47 = vadd.s32 4294967169, %v1960_v36 }
 0x25c   : > { %v6155_v18 = vmin.u32 %v1814_v56, %v8498_v32  ;;  %v2096_v8 = vsel %vm2092_vm5, %v2076_v22, %v2079_v48  ;;  %v2098_v16 = vsel %vm2094_vm8, %v2082_v6, %v2097_v27  ;;  %v2106_v1 = vsel %vm2094_vm8, %v2088_v20, %v2105_v2  ;;  %v2172_v2 = vld [vmem:[#allocation4 + $0x40] sm:$0xff] }
 0x25d   : > { %v2107_v58 = vsel %vm2093_vm12, %v2104_v46, %v2106_v1  ;;  %v8512_v53 = vmul.u32.u64.low %v8491_v24, %v2103_v30  ;;  %v8513_v14 = vmul.u32.u64.high %v8491_v24, %v2103_v30, %v8512_v53  ;;  %v1966_v59 = vadd.s32 1, %v6162_v47  ;;  %v2173_v47 = vld [vmem:[#allocation4 + $0x48] sm:$0xff] }
 0x25e   : > { %v8516_v36 = vor.u32 4788187, %v1618_v3  ;;  %v1816_v45 = vclz %v6155_v18  ;;  %v8519_v48 = vmul.u32.u64.low %v8491_v24, %v2107_v58  ;;  %v8520_v22 = vmul.u32.u64.high %v8491_v24, %v2107_v58, %v8519_v48 }
 0x25f   : > { %v2099_v6 = vsel %vm2093_vm12, %v2096_v8, %v2098_v16  ;;  %vm1967_vm13 = vcmp.gt.s32.totalorder %v1966_v59, 0  ;;  %v6697_v20 = vpack.c.bf16 %v2169_v62, %v2168_v23  ;;  %v6701_v27 = vpack.c.bf16 %v2171_v41, %v2170_v25 }
 0x260   : > { %v1926_v43 = vshrl.u32 %v8471_v35, %v1924_v12  ;;  %v6156_v46 = vadd.s32 4294967294, %v1816_v45  ;;  %v1968_v30 = vsel %vm1967_vm13, %v1966_v59, 0  ;;  %v8525_v3 = vor.u32 4788187, %v1930_v31  ;;  %v2175_v31 = vld [vmem:[#allocation4 + $0x58] sm:$0xff] }
 0x261   : > { %v2118_v18 = vadd.s32 1, %v8513_v14  ;;  %v1964_v1 = vor.u32 8388608, %v8495_v39  ;;  %v1970_v58 = vand.u32 31, %v1968_v30  ;;  %6698 = vmatprep.subr.bf16.mxu1 %v6697_v20  ;;  %v1925_v62 = vshll.u32 %v8429_v26, %v8473_v17  ;;  %v2174_v39 = vld [vmem:[#allocation4 + $0x50] sm:$0xff] }
 0x262   : > { %vm6157_vm0 = vcmp.lt.s32.totalorder %v6156_v46, 0  ;;  %v2115_v25 = vmul.u32 %v8491_v24, %v2099_v6  ;;  %vm2117_vm3 = vc.u32 %v8520_v22, %v8512_v53  ;;  %6700 = vmatpush3.bf16.msra.mxu1 %v6697_v20  ;;  %v6705_v12 = vpack.c.bf16 %v2173_v47, %v2172_v2  ;;  %v2177_v47 = vld [vmem:[#allocation4 + $0x68] sm:$0xff] }
 0x263   : > { %v2119_v7 = vsel %vm2117_vm3, %v2118_v18, %v8513_v14  ;;  %v1971_v41 = vsub.s32 32, %v1970_v58  ;;  %6702 = vmatprep.subr.bf16.mxu1 %v6701_v27  ;;  %v8536_v23 = vor.u32 %v1926_v43, %v1925_v62  ;;  %v1804_v26 = vadd.s32 %v8438_v61, %v8444_v50  ;;  %v2176_v43 = vld [vmem:[#allocation4 + $0x60] sm:$0xff]  ;;  %v2178_v18 = vld [vmem:[#allocation4 + $0x70] sm:$0xff] }
 0x264   : > { %v8540_v17 = vsel %vm6157_vm0, 0, %v6156_v46  ;;  %v2120_v24 = vadd.s32 %v2119_v7, %v2115_v25  ;;  %v8545_v14 = vshll.u32 %v1964_v1, 8  ;;  %v8547_v48 = vshrl.u32 %v1968_v30, 5  ;;  %v2179_v1 = vld [vmem:[#allocation4 + $0x78] sm:$0xff] }
 0x265   : > { %v1974_v16 = vshrl.u32 %v12335_v52, %v1971_v41  ;;  %v1977_v59 = vshrl.u32 %v12336_v21, %v1971_v41  ;;  %v1973_v6 = vshll.u32 %v12334_v19, %v1970_v58  ;;  %v6709_v20 = vpack.c.bf16 %v2175_v31, %v2174_v39 }
 0x266   : > { %v2121_v45 = vadd.s32 536870912, %v2120_v24  ;;  %6704 = vmatpush3.bf16.msra.mxu1 %v6701_v27  ;;  %v1820_v61 = vsub.s32 32, %v8540_v17  ;;  %v1976_v50 = vshll.u32 %v12335_v52, %v1970_v58  ;;  %v1979_v46 = vshll.u32 %v12336_v21, %v1970_v58 }
 0x267   : > { %v1980_v2 = vshrl.u32 %v12337_v34, %v1971_v41  ;;  %6706 = vmatprep.subr.bf16.mxu1 %v6705_v12  ;;  %v1975_v30 = vor.u32 %v1974_v16, %v1973_v6  ;;  %v1982_v25 = vshll.u32 %v12337_v34, %v1970_v58  ;;  %v1983_v27 = vshrl.u32 %v12338_v38, %v1971_v41 }
 0x268   : > { %v8554_v62 = vshrl.u32 %v2121_v45, 30  ;;  %v1978_v7 = vor.u32 %v1977_v59, %v1976_v50  ;;  %v1985_v31 = vshll.u32 %v12338_v38, %v1970_v58  ;;  %v1986_v8 = vshrl.u32 %v12340_v54, %v1971_v41 }
 0x269   : > { %v1981_v39 = vor.u32 %v1980_v2, %v1979_v46  ;;  %v1984_v35 = vor.u32 %v1983_v27, %v1982_v25  ;;  %v6713_v57 = vpack.c.bf16 %v2177_v47, %v2176_v43  ;;  %v6717_v5 = vpack.c.bf16 %v2179_v1, %v2178_v18 }
 0x26a   : > { %v2123_v56 = vshll.u32 %v8554_v62, 30  ;;  %6708 = vmatpush3.bf16.msra.mxu1 %v6705_v12  ;;  %v1824_v45 = vsub.s32 4294967266, %v8540_v17  ;;  %v1972_v16 = vshrl.u32 %v12334_v19, %v1971_v41  ;;  %v1987_v6 = vor.u32 %v1986_v8, %v1985_v31 }
 0x26b   : > { %6710 = vmatprep.subr.bf16.mxu1 %v6709_v20  ;;  %v500_v29 = vand.u32 2147483647, %v7586_v44  ;;  %v1822_v59 = vshrl.u32 %v1804_v26, %v1820_v61  ;;  %vm1988_vm5 = vcmp.lt.s32.totalorder %v8547_v48, 1  ;;  %vm1991_vm6 = vcmp.lt.s32.totalorder %v8547_v48, 4 }
 0x26c   : > { %v8564_v50 = vsub.s32 %v2120_v24, %v2123_v56  ;;  %vm1990_vm8 = vcmp.lt.s32.totalorder %v8547_v48, 3  ;;  %v1993_v58 = vsel %vm1991_vm6, %v1981_v39, 2102212464  ;;  %v1996_v12 = vsel %vm1988_vm5, %v1975_v30, %v1978_v7 }
 0x26d   : > { %v1997_v43 = vsel %vm1991_vm6, %v1984_v35, 920167782  ;;  %vm1989_vm12 = vcmp.lt.s32.totalorder %v8547_v48, 2  ;;  %v2000_v56 = vsel %vm1988_vm5, %v1978_v7, %v1981_v39  ;;  %v1821_v24 = vshll.u32 %v8498_v32, %v8540_v17 }
 0x26e   : > { %v2126_v41 = vsub.s32 0, %v8564_v50  ;;  %v1998_v26 = vsel %vm1990_vm8, %v1981_v39, %v1997_v43  ;;  %6712 = vmatpush3.bf16.msra.mxu1 %v6709_v20  ;;  %v1825_v8 = vadd.s32 127, %v1824_v45  ;;  %v2001_v46 = vsel %vm1991_vm6, %v1987_v6, 1326507024  ;;  %v12375_v45 = vld [vmem:[#allocation13_spill] sm:$0xff] }
 0x26f   : > { %v1999_v61 = vsel %vm1989_vm12, %v1996_v12, %v1998_v26  ;;  %6714 = vmatprep.subr.bf16.mxu1 %v6713_v57  ;;  %v1992_v47 = vsel %vm1988_vm5, %v1972_v16, %v1975_v30  ;;  %v1994_v18 = vsel %vm1990_vm8, %v1978_v7, %v1993_v58  ;;  %v2002_v20 = vsel %vm1990_vm8, %v1984_v35, %v2001_v46 }
 0x270   : > { %v6167_v2 = vmin.u32 %v2126_v41, %v8564_v50  ;;  %v2116_v32 = vadd.s32 %v8512_v53, %v8520_v22  ;;  %v2003_v17 = vsel %vm1989_vm12, %v2000_v56, %v2002_v20  ;;  %v8597_v27 = vor.u32 %v1822_v59, %v1821_v24  ;;  %v12374_v22 = vld [vmem:[#allocation12_spill] sm:$0xff] }
 0x271   : > { %v8593_v1 = vmul.u32.u64.low %v8545_v14, %v1999_v61  ;;  %v8594_v25 = vmul.u32.u64.high %v8545_v14, %v1999_v61, %v8593_v1  ;;  %v8600_v39 = vmul.u32.u64.low %v8545_v14, %v2003_v17  ;;  %v8601_v7 = vmul.u32.u64.high %v8545_v14, %v2003_v17, %v8600_v39 }
 0x272   : > { %v2128_v30 = vclz %v6167_v2  ;;  %6716 = vmatpush3.bf16.msra.mxu1 %v6713_v57  ;;  %v1826_v35 = vshll.u32 %v1825_v8, 23  ;;  %v1995_v53 = vsel %vm1989_vm12, %v1992_v47, %v1994_v18  ;;  %v517_v31 = vshll.u32 %v12334_v19, %v12374_v22 }
 0x273   : > { %6718 = vmatprep.subr.bf16.mxu1 %v6717_v5  ;;  %v518_v16 = vshrl.u32 %v12335_v52, %v12375_v45  ;;  %v507_v59 = vand.u32 8388607, %v500_v29  ;;  %v520_v58 = vshll.u32 %v12335_v52, %v12374_v22  ;;  %v521_v57 = vshrl.u32 %v12336_v21, %v12375_v45 }
 0x274   : > { %v6168_v6 = vadd.s32 4294967294, %v2128_v30  ;;  %v2014_v48 = vadd.s32 1, %v8594_v25  ;;  %v523_v43 = vshll.u32 %v12336_v21, %v12374_v22  ;;  %v524_v41 = vshrl.u32 %v12337_v34, %v12375_v45 }
 0x275   : > { %v519_v12 = vor.u32 %v518_v16, %v517_v31  ;;  %v2011_v26 = vmul.u32 %v8545_v14, %v1995_v53  ;;  %vm2013_vm0 = vc.u32 %v8601_v7, %v8593_v1  ;;  %v522_v56 = vor.u32 %v521_v57, %v520_v58 }
 0x276   : > { %vm6169_vm13 = vcmp.lt.s32.totalorder %v6168_v6, 0  ;;  %6720 = vmatpush3.bf16.msra.mxu1 %v6717_v5  ;;  %v1827_v24 = vor.u32 4788187, %v1826_v35  ;;  %v2015_v61 = vsel %vm2013_vm0, %v2014_v48, %v8594_v25  ;;  %v525_v46 = vor.u32 %v524_v41, %v523_v43 }
 0x277   : > { %v2131_v8 = vsel %vm6169_vm13, 0, %v6168_v6  ;;  %v2016_v18 = vadd.s32 %v2015_v61, %v2011_v26  ;;  %vm532_vm3 = vcmp.lt.s32.totalorder %v7791_v9, 1  ;;  %v508_v20 = vor.u32 8388608, %v507_v59 }
 0x278   : > { %v2132_v2 = vsub.s32 32, %v2131_v8  ;;  %v2136_v47 = vsub.s32 4294967266, %v2131_v8  ;;  %v516_v17 = vshrl.u32 %v12334_v19, %v12375_v45  ;;  %vm533_vm5 = vcmp.lt.s32.totalorder %v7791_v9, 2 }
 0x279   : > { %v540_v5 = vsel %vm532_vm3, %v519_v12, %v522_v56  ;;  %v2017_v39 = vadd.s32 536870912, %v2016_v18  ;;  %vm534_vm6 = vcmp.lt.s32.totalorder %v7791_v9, 3  ;;  %v537_v25 = vsel %vm535_vm1, %v525_v46, 2102212464 }
 0x27a   : > { %v2134_v14 = vshrl.u32 %v2116_v32, %v2132_v2  ;;  %v2137_v30 = vadd.s32 127, %v2136_v47  ;;  %v542_v35 = vsel %vm534_vm6, %v525_v46, %v7909_v28  ;;  %v544_v53 = vsel %vm532_vm3, %v522_v56, %v525_v46 }
 0x27b   : > { %v546_v22 = vsel %vm534_vm6, %v7793_v33, %v7974_v4  ;;  %v2133_v32 = vshll.u32 %v8564_v50, %v2131_v8  ;;  %v8643_v45 = vshrl.u32 %v2017_v39, 30  ;;  %v543_v16 = vsel %vm533_vm5, %v540_v5, %v542_v35 }
 0x27c   : > { %v2138_v31 = vshll.u32 %v2137_v30, 23  ;;  %v1828_v6 = vand.u32 2147483647, %v1827_v24  ;;  %v536_v28 = vsel %vm532_vm3, %v516_v17, %v519_v12  ;;  %v547_v59 = vsel %vm533_vm5, %v544_v53, %v546_v22 }
 0x27d   : > { %v548_v58 = vshll.u32 %v508_v20, 8  ;;  %vm1334_vm1 = vcmp.lt.s32.totalorder %v8006_v51, 0  ;;  %vm12212_vm8 = vcmp.lt.s32.totalorder %v8117_v49, 0  ;;  %v2135_v33 = vor.u32 %v2134_v14, %v2133_v32  ;;  %v12382_v20 = vld [vmem:[#allocation20_spill] sm:$0xff] }
 0x27e   : > { %v2139_v4 = vor.u32 4788187, %v2138_v31  ;;  %v2019_v50 = vshll.u32 %v8643_v45, 30  ;;  %v538_v57 = vsel %vm534_vm6, %v522_v56, %v537_v25  ;;  %v1934_v26 = vcvt.s32.f32 %v8536_v23  ;;  %v12387_v31 = vld [vmem:[#allocation15_spill] sm:$0xff] }
 0x27f   : > { %v8656_v48 = vmul.u32.u64.low %v548_v58, %v547_v59  ;;  %v8657_v43 = vmul.u32.u64.high %v548_v58, %v547_v59, %v8656_v48  ;;  %v8659_v41 = vmul.u32.u64.low %v548_v58, %v543_v16  ;;  %v8660_v12 = vmul.u32.u64.high %v548_v58, %v543_v16, %v8659_v41 }
 0x280   : > { %v1830_v24 = vcvt.s32.f32 %v8597_v27  ;;  %v8665_v8 = vsub.s32 %v2016_v18, %v2019_v50  ;;  %v12376_v61 = vand.u32 2147483647, %v7583_v42  ;;  %vm12213_vm13 = vcmp.lt.s32.totalorder %v8121_v10, 0  ;;  %v12381_v27 = vld [vmem:[#allocation9_spill] sm:$0xff] }
 0x281   : > { %v12379_v56 = vand.u32 2147483647, %v8516_v36  ;;  %v12380_v2 = vcvt.s32.f32 %v8467_v11  ;;  %vm12210_vm0 = vcmp.lt.s32.totalorder %v8255_v0, 0  ;;  %v539_v23 = vsel %vm533_vm5, %v536_v28, %v538_v57 }
 0x282   : > { %vm8669_vm12 = vcmp.le.f32.partialorder %v12376_v61, 0.7853982  ;;  %v690_v18 = vsub.s32 4, %v12381_v27  ;;  %v12383_v5 = vand.u32 2147483647, %v8525_v3  ;;  %v1831_v30 = vmul.f32 %v1830_v24, %v1828_v6 }
 0x283   : > { %v1623_v47 = vmul.f32 %v12380_v2, %v12379_v56  ;;  %v692_v17 = vsel %vm8669_vm12, %v7583_v42, %v12382_v20  ;;  %v2142_v36 = vcvt.s32.f32 %v2135_v33  ;;  %v2022_v11 = vsub.s32 0, %v8665_v8 }
 0x284   : > { %v1935_v14 = vmul.f32 %v1934_v26, %v12383_v5  ;;  %v2140_v39 = vand.u32 2147483647, %v2139_v4  ;;  %vm557_vm3 = vc.u32 %v8657_v43, %v8659_v41  ;;  %v558_v9 = vadd.s32 1, %v8660_v12 }
 0x285   : > { %7035 = vcosq.f32 %v692_v17  ;;  %v6163_v25 = vmin.u32 %v2022_v11, %v8665_v8  ;;  %v555_v35 = vmul.u32 %v548_v58, %v539_v23  ;;  %v12384_v53 = vand.u32 2147483647, %v7598_v55 }
 0x286   : > { %7037 = vsinq.f32 %v692_v17  ;;  %v559_v22 = vsel %vm557_vm3, %v558_v9, %v8660_v12  ;;  %v691_v32 = vsel %vm606_vm9, %v690_v18, %v12381_v27  ;;  %v794_v16 = vsub.s32 4, %v12387_v31 }
 0x287   : > { %vm8695_vm5 = vcmp.le.f32.partialorder %v12384_v53, 0.7853982  ;;  %v1624_v28 = vxor.u32 2147483648, %v1623_v47  ;;  %v1936_v59 = vxor.u32 2147483648, %v1935_v14  ;;  %v2024_v58 = vclz %v6163_v25 }
 0x288   : > { %v796_v6 = vsel %vm8695_vm5, %v7598_v55, %v8175_v40  ;;  %v560_v33 = vadd.s32 %v559_v22, %v555_v35  ;;  %v12388_v4 = vxor.u32 2147483648, %v8367_v60  ;;  %v12389_v57 = vxor.u32 2147483648, %v8450_v37  ;;  %v12393_v22 = vld [vmem:[#allocation8_spill] sm:$0xff] }
 0x289   : > { %vm12211_vm9 = vcmp.lt.s32.totalorder %v8304_v63, 0  ;;  %v2143_v40 = vmul.f32 %v2142_v36, %v2140_v39  ;;  %v6164_v12 = vadd.s32 4294967294, %v2024_v58  ;;  %v693_v24 = vsel %vm8669_vm12, 0, %v691_v32  ;;  %v12392_v39 = vld [vmem:[#allocation11_spill] sm:$0xff] }
 0x28a   : > { %v8713_v50 = vsel %vm1334_vm1, %v12388_v4, %v8367_v60  ;;  %v8720_v48 = vsel %vm12212_vm8, %v12389_v57, %v8450_v37  ;;  %v561_v26 = vadd.s32 536870912, %v560_v33  ;;  %7039 = vcosq.f32 %v796_v6 }
 0x28b   : > { %v1832_v61 = vxor.u32 2147483648, %v1831_v30  ;;  %vm12209_vm6 = vcmp.lt.s32.totalorder %v8395_v15, 0  ;;  %v795_v60 = vsel %vm710_vm14, %v794_v16, %v12387_v31  ;;  %7041 = vsinq.f32 %v796_v6  ;;  %v12397_v6 = vld [vmem:[#allocation21_spill] sm:$0xff] }
 0x28c   : > { %v8731_v37 = vsel %vm12213_vm13, %v1624_v28, %v1623_v47  ;;  %v8735_v56 = vsel %vm12210_vm0, %v1936_v59, %v1935_v14  ;;  %vm6165_vm3 = vcmp.lt.s32.totalorder %v6164_v12, 0  ;;  %v562_v46 = vshrl.u32 %v561_v26, 30 }
 0x28d   : > { %v2144_v2 = vxor.u32 2147483648, %v2143_v40  ;;  %v2027_v23 = vsel %vm6165_vm3, 0, %v6164_v12  ;;  %vm8739_vm12 = vcmp.le.f32.partialorder %v500_v29, 0.7853982  ;;  %v697_v18 = vadd.s32 3, %v693_v24 }
 0x28e   : > { %v2028_v20 = vsub.s32 32, %v2027_v23  ;;  %v2032_v17 = vsub.s32 4294967266, %v2027_v23  ;;  %v563_v5 = vshll.u32 %v562_v46, 30  ;;  %v797_v47 = vsel %vm8695_vm5, 0, %v795_v60 }
 0x28f   : > { %v7036_v36 = vpop.eup %7035  ;;  %v8747_v14 = vsel %vm12211_vm9, %v1832_v61, %v1831_v30  ;;  %vm502_vm14 = vcmp.lt.s32.totalorder %v7586_v44, 0  ;;  %v586_v11 = vsub.s32 4, %v562_v46  ;;  %v898_v29 = vsub.s32 4, %v12392_v39 }
 0x290   : > { %v7038_v9 = vpop.eup %7037  ;;  %v2012_v25 = vadd.s32 %v8593_v1, %v8601_v7  ;;  %v2033_v35 = vadd.s32 127, %v2032_v17  ;;  %v8753_v53 = vsub.s32 %v560_v33, %v563_v5  ;;  %v12394_v3 = vand.u32 2147483647, %v12393_v22 }
 0x291   : > { %v587_v30 = vsel %vm502_vm14, %v586_v11, %v562_v46  ;;  %v698_v31 = vand.u32 3, %v697_v18  ;;  %v801_v16 = vadd.s32 3, %v797_v47  ;;  %v8769_v1 = vsel %vm12209_vm6, %v2144_v2, %v2143_v40  ;;  %v12398_v11 = vld [vmem:[#allocation14_spill] sm:$0xff] }
 0x292   : > { %vm8757_vm5 = vcmp.le.f32.partialorder %v12394_v3, 0.7853982  ;;  %v2030_v7 = vshrl.u32 %v2012_v25, %v2028_v20  ;;  %v556_v59 = vadd.s32 %v8659_v41, %v8657_v43  ;;  %v566_v58 = vsub.s32 0, %v8753_v53 }
 0x293   : > { %v900_v28 = vsel %vm8757_vm5, %v12393_v22, %v12397_v6  ;;  %v2034_v33 = vshll.u32 %v2033_v35, 23  ;;  %v701_v4 = vxor.u32 2147483648, %v7038_v9  ;;  %v704_v57 = vxor.u32 2147483648, %v7036_v36  ;;  %v12402_v35 = vld [vmem:[#allocation18_spill] sm:$0xff] }
 0x294   : > { %v899_v12 = vsel %vm814_vm10, %v898_v29, %v12392_v39  ;;  %v7040_v26 = vpop.eup %7039  ;;  %v2029_v24 = vshll.u32 %v8665_v8, %v2027_v23  ;;  %v6107_v61 = vmin.u32 %v566_v58, %v8753_v53  ;;  %v589_v40 = vsel %vm8739_vm12, 0, %v587_v30  ;;  %v12403_v6 = vld [vmem:[#allocation26_spill] sm:$0xff] }
 0x295   : > { %vm696_vm3 = vweird.f32 %v7583_v42  ;;  %7043 = vsinq.f32 %v900_v28  ;;  %v7042_v43 = vpop.eup %7041  ;;  %vm699_vm6 = vcmp.lt.s32.totalorder %v698_v31, 2  ;;  %vm700_vm0 = vcmp.eq.s32.totalorder %v698_v31, 0  ;;  %v12404_v42 = vld [vmem:[#allocation10_spill] sm:$0xff] }
 0x296   : > { %v802_v41 = vand.u32 3, %v801_v16  ;;  %7045 = vcosq.f32 %v900_v28  ;;  %v2031_v60 = vor.u32 %v2030_v7, %v2029_v24  ;;  %v568_v46 = vclz %v6107_v61 }
 0x297   : > { %vm703_vm9 = vcmp.eq.s32.totalorder %v698_v31, 2  ;;  %v901_v2 = vsel %vm8757_vm5, 0, %v899_v12  ;;  %v2035_v8 = vor.u32 4788187, %v2034_v33  ;;  %v593_v23 = vadd.s32 3, %v589_v40 }
 0x298   : > { %v702_v18 = vsel %vm700_vm0, %v7036_v36, %v701_v4  ;;  %v705_v20 = vsel %vm703_vm9, %v704_v57, %v7038_v9  ;;  %v6108_v17 = vadd.s32 4294967294, %v568_v46  ;;  %v805_v5 = vxor.u32 2147483648, %v7042_v43 }
 0x299   : > { %v808_v47 = vxor.u32 2147483648, %v7040_v26  ;;  %v12399_v39 = vand.u32 2147483647, %v12398_v11  ;;  %vm803_vm8 = vcmp.lt.s32.totalorder %v802_v41, 2  ;;  %vm804_vm13 = vcmp.eq.s32.totalorder %v802_v41, 0 }
 0x29a   : > { %v905_v25 = vadd.s32 3, %v901_v2  ;;  %v1002_v3 = vsub.s32 4, %v12402_v35  ;;  %v2038_v32 = vcvt.s32.f32 %v2031_v60  ;;  %vm6109_vm5 = vcmp.lt.s32.totalorder %v6108_v17, 0 }
 0x29b   : > { %vm8786_vm10 = vcmp.le.f32.partialorder %v12399_v39, 0.7853982  ;;  %v706_v30 = vsel %vm699_vm6, %v702_v18, %v705_v20  ;;  %vm807_vm0 = vcmp.eq.s32.totalorder %v802_v41, 2  ;;  %v2036_v36 = vand.u32 2147483647, %v2035_v8 }
 0x29c   : > { %v571_v9 = vsel %vm6109_vm5, 0, %v6108_v17  ;;  %v8792_v16 = vand.u32 3, %v593_v23  ;;  %v1004_v28 = vsel %vm8786_vm10, %v12398_v11, %v12403_v6  ;;  %v806_v33 = vsel %vm804_vm13, %v7040_v26, %v805_v5  ;;  %v12408_v23 = vld [vmem:[#allocation17_spill] sm:$0xff] }
 0x29d   : > { %v572_v7 = vsub.s32 32, %v571_v9  ;;  %v576_v58 = vsub.s32 4294967266, %v571_v9  ;;  %v809_v4 = vsel %vm807_vm0, %v808_v47, %v7042_v43  ;;  %v8800_v57 = vsel %vm696_vm3, nan, %v706_v30  ;;  %v12413_v30 = vld [vmem:[#allocation23_spill] sm:$0xff] }
 0x29e   : > { %v906_v31 = vand.u32 3, %v905_v25  ;;  %v1003_v12 = vsel %vm918_vm2, %v1002_v3, %v12402_v35  ;;  %7047 = vcosq.f32 %v1004_v28  ;;  %v573_v61 = vshll.u32 %v8753_v53, %v571_v9  ;;  %v12414_v9 = vld [vmem:[#allocation34_spill] sm:$0xff] }
 0x29f   : > { %v7044_v24 = vpop.eup %7043  ;;  %v574_v40 = vshrl.u32 %v556_v59, %v572_v7  ;;  %v577_v60 = vadd.s32 127, %v576_v58  ;;  %7049 = vsinq.f32 %v1004_v28  ;;  %v8806_v2 = vmul.f32 %v2038_v32, %v2036_v36  ;;  %v12409_v59 = vld [vmem:[#allocation25_spill] sm:$0xff]  ;;  %v12415_v58 = vld [vmem:[#allocation31_spill] sm:$0xff] }
 0x2a0   : > { %v7046_v46 = vpop.eup %7045  ;;  %v810_v26 = vsel %vm803_vm8, %v806_v33, %v809_v4  ;;  %v12405_v43 = vand.u32 2147483647, %v12404_v42  ;;  %v1106_v18 = vsub.s32 4, %v12408_v23  ;;  %v1005_v53 = vsel %vm8786_vm10, 0, %v1003_v12  ;;  %v12416_v12 = vld [vmem:[#allocation16_spill] sm:$0xff] }
 0x2a1   : > { %v575_v20 = vor.u32 %v574_v40, %v573_v61  ;;  %v578_v17 = vshll.u32 %v577_v60, 23  ;;  %vm907_vm2 = vcmp.lt.s32.totalorder %v906_v31, 2  ;;  %vm908_vm8 = vcmp.eq.s32.totalorder %v906_v31, 0  ;;  %v12420_v60 = vld [vmem:[#allocation22_spill] sm:$0xff] }
 0x2a2   : > { %vm8811_vm13 = vcmp.le.f32.partialorder %v12405_v43, 0.7853982  ;;  %v909_v41 = vxor.u32 2147483648, %v7044_v24  ;;  %vm911_vm9 = vcmp.eq.s32.totalorder %v906_v31, 2  ;;  %v1107_v47 = vsel %vm1022_vm15, %v1106_v18, %v12408_v23  ;;  %v12421_v18 = vld [vmem:[#allocation30_spill] sm:$0xff] }
 0x2a3   : > { %v1108_v5 = vsel %vm8811_vm13, %v12404_v42, %v12409_v59  ;;  %v579_v39 = vor.u32 4788187, %v578_v17  ;;  %v912_v25 = vxor.u32 2147483648, %v7046_v46  ;;  %v1109_v35 = vsel %vm8811_vm13, 0, %v1107_v47 }
 0x2a4   : > { %7051 = vcosq.f32 %v1108_v5  ;;  %vm800_vm6 = vweird.f32 %v7598_v55  ;;  %v1009_v29 = vadd.s32 3, %v1005_v53  ;;  %v12410_v3 = vand.u32 2147483647, %v7919_v13 }
 0x2a5   : > { %7053 = vsinq.f32 %v1108_v5  ;;  %v1210_v36 = vsub.s32 4, %v12413_v30  ;;  %vm1958_vm15 = vcmp.lt.s32.totalorder %v12414_v9, 0  ;;  %v580_v6 = vand.u32 2147483647, %v579_v39 }
 0x2a6   : > { %vm8830_vm3 = vcmp.le.f32.partialorder %v12410_v3, 0.7853982  ;;  %v582_v28 = vcvt.s32.f32 %v575_v20  ;;  %vm904_vm10 = vweird.f32 %v12393_v22  ;;  %v1113_v7 = vadd.s32 3, %v1109_v35  ;;  %v12425_v22 = vld [vmem:[#allocation27_spill] sm:$0xff] }
 0x2a7   : > { %v1212_v33 = vsel %vm8830_vm3, %v7919_v13, %v12415_v58  ;;  %v1211_v4 = vsel %vm1126_vm7, %v1210_v36, %v12413_v30  ;;  %v12417_v61 = vand.u32 2147483647, %v12416_v12  ;;  %v1314_v43 = vsub.s32 4, %v12420_v60 }
 0x2a8   : > { %7055 = vcosq.f32 %v1212_v33  ;;  %v583_v8 = vmul.f32 %v582_v28, %v580_v6  ;;  %v1213_v23 = vsel %vm8830_vm3, 0, %v1211_v4  ;;  %v7048_v17 = vpop.eup %7047  ;;  %v910_v53 = vsel %vm908_vm8, %v7046_v46, %v909_v41 }
 0x2a9   : > { %vm8846_vm5 = vcmp.le.f32.partialorder %v12417_v61, 0.7853982  ;;  %7057 = vsinq.f32 %v1212_v33  ;;  %v913_v59 = vsel %vm911_vm9, %v912_v25, %v7044_v24  ;;  %v1010_v5 = vand.u32 3, %v1009_v29  ;;  %v7050_v39 = vpop.eup %7049 }
 0x2aa   : > { %v1316_v20 = vsel %vm8846_vm5, %v12416_v12, %v12421_v18  ;;  %v1217_v47 = vadd.s32 3, %v1213_v23  ;;  %v584_v35 = vxor.u32 2147483648, %v583_v8  ;;  %v1016_v3 = vxor.u32 2147483648, %v7048_v17 }
 0x2ab   : > { %v1315_v32 = vsel %vm1230_vm4, %v1314_v43, %v12420_v60  ;;  %7059 = vcosq.f32 %v1316_v20  ;;  %v2040_v30 = vxor.u32 2147483648, %v8806_v2  ;;  %v1013_v36 = vxor.u32 2147483648, %v7050_v39 }
 0x2ac   : > { %v1317_v6 = vsel %vm8846_vm5, 0, %v1315_v32  ;;  %7061 = vsinq.f32 %v1316_v20  ;;  %v585_v24 = vsel %vm502_vm14, %v584_v35, %v583_v8  ;;  %v914_v46 = vsel %vm907_vm2, %v910_v53, %v913_v59 }
 0x2ad   : > { %v8868_v41 = vand.u32 3, %v1113_v7  ;;  %v1321_v25 = vadd.s32 3, %v1317_v6  ;;  %v588_v29 = vsel %vm8739_vm12, %v7586_v44, %v585_v24  ;;  %vm1012_vm4 = vcmp.eq.s32.totalorder %v1010_v5, 0  ;;  %v12431_v24 = vld [vmem:[#allocation32_spill] sm:$0xff] }
 0x2ae   : > { %vm1015_vm7 = vcmp.eq.s32.totalorder %v1010_v5, 2  ;;  %v8873_v28 = vand.u32 3, %v1217_v47  ;;  %v7052_v58 = vpop.eup %7051  ;;  %7063 = vcosq.f32 %v588_v29  ;;  %v8877_v33 = vsel %vm800_vm6, nan, %v810_v26  ;;  %v12426_v47 = vld [vmem:[#allocation19_spill] sm:$0xff] }
 0x2af   : > { %v1014_v4 = vsel %vm1012_vm4, %v7048_v17, %v1013_v36  ;;  %v1017_v31 = vsel %vm1015_vm7, %v1016_v3, %v7050_v39  ;;  %v7054_v61 = vpop.eup %7053  ;;  %v8882_v7 = vsel %vm1958_vm15, %v2040_v30, %v8806_v2  ;;  %7065 = vsinq.f32 %v588_v29  ;;  %v12430_v3 = vld [vmem:[#allocation24_spill] sm:$0xff] }
 0x2b0   : > { %v8886_v27 = vsel %vm904_vm10, nan, %v914_v46  ;;  %vm1011_vm12 = vcmp.lt.s32.totalorder %v1010_v5, 2  ;;  %vm1008_vm14 = vweird.f32 %v12398_v11  ;;  %vm1116_vm0 = vcmp.eq.s32.totalorder %v8868_v41, 0 }
 0x2b1   : > { %vm1119_vm13 = vcmp.eq.s32.totalorder %v8868_v41, 2  ;;  %v1322_v55 = vand.u32 3, %v1321_v25  ;;  %v12422_v26 = vand.u32 2147483647, %v8006_v51  ;;  %v1018_v60 = vsel %vm1011_vm12, %v1014_v4, %v1017_v31 }
 0x2b2   : > { %v7056_v2 = vpop.eup %7055  ;;  %vm1115_vm8 = vcmp.lt.s32.totalorder %v8868_v41, 2  ;;  %vm1220_vm9 = vcmp.eq.s32.totalorder %v8873_v28, 0  ;;  %v1418_v43 = vsub.s32 4, %v12425_v22  ;;  %vm599_vm6 = vcmp.eq.s32.totalorder %v8792_v16, 2 }
 0x2b3   : > { %vm8893_vm2 = vcmp.le.f32.partialorder %v12422_v26, 0.7853982  ;;  %v7058_v23 = vpop.eup %7057  ;;  %v1117_v18 = vxor.u32 2147483648, %v7054_v61  ;;  %v1120_v20 = vxor.u32 2147483648, %v7052_v58  ;;  %vm1223_vm3 = vcmp.eq.s32.totalorder %v8873_v28, 2 }
 0x2b4   : > { %v1420_v8 = vsel %vm8893_vm2, %v8006_v51, %v8713_v50  ;;  %vm596_vm10 = vcmp.eq.s32.totalorder %v8792_v16, 0  ;;  %v1221_v17 = vxor.u32 2147483648, %v7058_v23  ;;  %v1224_v53 = vxor.u32 2147483648, %v7056_v2 }
 0x2b5   : > { %7067 = vcosq.f32 %v1420_v8  ;;  %v1419_v59 = vsel %vm1334_vm1, %v1418_v43, %v12425_v22  ;;  %v7060_v5 = vpop.eup %7059  ;;  %vm595_vm5 = vcmp.lt.s32.totalorder %v8792_v16, 2  ;;  %vm1324_vm4 = vcmp.eq.s32.totalorder %v1322_v55, 0 }
 0x2b6   : > { %7069 = vsinq.f32 %v1420_v8  ;;  %v1421_v50 = vsel %vm8893_vm2, 0, %v1419_v59  ;;  %v12427_v39 = vand.u32 2147483647, %v12426_v47  ;;  %v1522_v32 = vsub.s32 4, %v12430_v3  ;;  %v7062_v30 = vpop.eup %7061 }
 0x2b7   : > { %vm592_vm12 = vweird.f32 %v7586_v44  ;;  %vm1327_vm1 = vcmp.eq.s32.totalorder %v1322_v55, 2  ;;  %v1328_v36 = vxor.u32 2147483648, %v7060_v5  ;;  %v1425_v6 = vadd.s32 3, %v1421_v50 }
 0x2b8   : > { %vm8915_vm7 = vcmp.le.f32.partialorder %v12427_v39, 0.7853982  ;;  %v1121_v25 = vsel %vm1119_vm13, %v1120_v20, %v7054_v61  ;;  %v1325_v29 = vxor.u32 2147483648, %v7062_v30  ;;  %v1523_v4 = vsel %vm1438_vm11, %v1522_v32, %v12430_v3  ;;  %v7064_v43 = vpop.eup %7063  ;;  %v12432_v39 = vld [vmem:[#allocation29_spill] sm:$0xff] }
 0x2b9   : > { %v1524_v46 = vsel %vm8915_vm7, %v12426_v47, %v12431_v24  ;;  %v1118_v31 = vsel %vm1116_vm0, %v7052_v58, %v1117_v18  ;;  %v1222_v26 = vsel %vm1220_vm9, %v7056_v2, %v1221_v17  ;;  %v1225_v40 = vsel %vm1223_vm3, %v1224_v53, %v7058_v23  ;;  %v7066_v58 = vpop.eup %7065 }
 0x2ba   : > { %7071 = vcosq.f32 %v1524_v46  ;;  %v1329_v22 = vsel %vm1327_vm1, %v1328_v36, %v7062_v30  ;;  %vm1112_vm2 = vweird.f32 %v12404_v42  ;;  %vm1216_vm13 = vweird.f32 %v7919_v13 }
 0x2bb   : > { %v1326_v61 = vsel %vm1324_vm4, %v7060_v5, %v1325_v29  ;;  %v1426_v8 = vand.u32 3, %v1425_v6  ;;  %v1525_v20 = vsel %vm8915_vm7, 0, %v1523_v4  ;;  %7073 = vsinq.f32 %v1524_v46 }
 0x2bc   : > { %v600_v18 = vxor.u32 2147483648, %v7064_v43  ;;  %v1019_v2 = vsel %vm1008_vm14, nan, %v1018_v60  ;;  %vm1219_vm11 = vcmp.lt.s32.totalorder %v8873_v28, 2  ;;  %vm1320_vm0 = vweird.f32 %v12416_v12 }
 0x2bd   : > { %v597_v23 = vxor.u32 2147483648, %v7066_v58  ;;  %v1122_v17 = vsel %vm1115_vm8, %v1118_v31, %v1121_v25  ;;  %v1226_v53 = vsel %vm1219_vm11, %v1222_v26, %v1225_v40  ;;  %vm1323_vm9 = vcmp.lt.s32.totalorder %v1322_v55, 2  ;;  %v12440_v26 = vld [vmem:[#allocation28_spill] sm:$0xff] }
 0x2be   : > { %v601_v59 = vsel %vm599_vm6, %v600_v18, %v7066_v58  ;;  %v1330_v5 = vsel %vm1323_vm9, %v1326_v61, %v1329_v22  ;;  %v1529_v50 = vadd.s32 3, %v1525_v20  ;;  %v1626_v35 = vsub.s32 4, %v12432_v39 }
 0x2bf   : > { %v7068_v3 = vpop.eup %7067  ;;  %v598_v11 = vsel %vm596_vm10, %v7064_v43, %v597_v23  ;;  %vm1428_vm14 = vcmp.eq.s32.totalorder %v1426_v8, 0  ;;  %vm1431_vm3 = vcmp.eq.s32.totalorder %v1426_v8, 2  ;;  %v12433_v28 = vand.u32 2147483647, %v8121_v10  ;;  %v12445_v23 = vld [vmem:[#allocation35_spill] sm:$0xff] }
 0x2c0   : > { %v7070_v55 = vpop.eup %7069  ;;  %v602_v60 = vsel %vm595_vm5, %v598_v11, %v601_v59  ;;  %v1432_v32 = vxor.u32 2147483648, %v7068_v3  ;;  %vm12436_vm8 = vcmp.lt.s32.totalorder %v8121_v10, 0  ;;  %vm1424_vm6 = vweird.f32 %v8006_v51 }
 0x2c1   : > { %vm8954_vm4 = vcmp.le.f32.partialorder %v12433_v28, 0.7853982  ;;  %v1627_v30 = vsel %vm12436_vm8, %v1626_v35, %v12432_v39  ;;  %v603_v6 = vsel %vm592_vm12, nan, %v602_v60  ;;  %v1429_v24 = vxor.u32 2147483648, %v7070_v55 }
 0x2c2   : > { %v1628_v36 = vsel %vm8954_vm4, %v8121_v10, %v8731_v37  ;;  %v1629_v16 = vsel %vm8954_vm4, 0, %v1627_v30  ;;  %6521 = vmatprep.mubr.f32.mxu1 %v603_v6  ;;  %v1433_v46 = vsel %vm1431_vm3, %v1432_v32, %v7070_v55  ;;  %v1530_v25 = vand.u32 3, %v1529_v50 }
 0x2c3   : > { %7075 = vcosq.f32 %v1628_v36  ;;  %v12437_v29 = vand.u32 2147483647, %v8117_v49  ;;  %6522 = vmatmul.mubr.f32.vlgmr.msra.gmra.mrb[0].mxu1 %v8800_v57  ;;  %v1430_v44 = vsel %vm1428_vm14, %v7068_v3, %v1429_v24  ;;  %v1633_v31 = vadd.s32 3, %v1629_v16  ;;  %v12450_v3 = vld [vmem:[#allocation33_spill] sm:$0xff] }
 0x2c4   : > { %7077 = vsinq.f32 %v1628_v36  ;;  %v7072_v37 = vpop.eup %7071  ;;  %v1730_v40 = vsub.s32 4, %v12440_v26  ;;  %6524 = vmatprep.mubr.f32.mxu1 %v8877_v33  ;;  %v1123_v43 = vsel %vm1112_vm2, nan, %v1122_v17  ;;  %v1227_v61 = vsel %vm1216_vm13, nan, %v1226_v53 }
 0x2c5   : > { %vm8974_vm10 = vcmp.le.f32.partialorder %v12437_v29, 0.7853982  ;;  %vm1427_vm5 = vcmp.lt.s32.totalorder %v1426_v8, 2  ;;  %v7074_v57 = vpop.eup %7073  ;;  %v1331_v20 = vsel %vm1320_vm0, nan, %v1330_v5  ;;  %v1536_v58 = vxor.u32 2147483648, %v7072_v37 }
 0x2c6   : > { %v1732_v22 = vsel %vm8974_vm10, %v8117_v49, %v8720_v48  ;;  %vm12441_vm7 = vcmp.lt.s32.totalorder %v8117_v49, 0  ;;  %v1434_v48 = vsel %vm1427_vm5, %v1430_v44, %v1433_v46  ;;  %vm1531_vm12 = vcmp.lt.s32.totalorder %v1530_v25, 2 }
 0x2c7   : > { %7079 = vcosq.f32 %v1732_v22  ;;  %v1731_v18 = vsel %vm12441_vm7, %v1730_v40, %v12440_v26  ;;  %v1533_v33 = vxor.u32 2147483648, %v7074_v57  ;;  %v12442_v42 = vand.u32 2147483647, %v8304_v63  ;;  %6525 = vmatmul.mubr.f32.gmra.mrb[2].mxu1 %v8886_v27 }
 0x2c8   : > { %7081 = vsinq.f32 %v1732_v22  ;;  %v1634_v8 = vand.u32 3, %v1633_v31  ;;  %v1733_v12 = vsel %vm8974_vm10, 0, %v1731_v18  ;;  %v1834_v17 = vsub.s32 4, %v12445_v23  ;;  %6527 = vmatprep.mubr.f32.mxu1 %v1019_v2 }
 0x2c9   : > { %vm8997_vm1 = vcmp.le.f32.partialorder %v12442_v42, 0.7853982  ;;  %vm1532_vm2 = vcmp.eq.s32.totalorder %v1530_v25, 0  ;;  %vm1535_vm13 = vcmp.eq.s32.totalorder %v1530_v25, 2  ;;  %vm1632_vm11 = vweird.f32 %v8121_v10 }
 0x2ca   : > { %v1836_v53 = vsel %vm8997_vm1, %v8304_v63, %v8747_v14  ;;  %v1737_v59 = vadd.s32 3, %v1733_v12  ;;  %vm1528_vm0 = vweird.f32 %v12426_v47  ;;  %v1534_v27 = vsel %vm1532_vm2, %v7072_v37, %v1533_v33 }
 0x2cb   : > { %7083 = vcosq.f32 %v1836_v53  ;;  %v1537_v5 = vsel %vm1535_vm13, %v1536_v58, %v7074_v57  ;;  %vm12446_vm9 = vcmp.lt.s32.totalorder %v8304_v63, 0  ;;  %v1435_v39 = vsel %vm1424_vm6, nan, %v1434_v48  ;;  %6528 = vmatmul.mubr.f32.gmra.mrb[4].mxu1 %v1123_v43 }
 0x2cc   : > { %v1835_v50 = vsel %vm12446_vm9, %v1834_v17, %v12445_v23  ;;  %7085 = vsinq.f32 %v1836_v53  ;;  %v12447_v2 = vand.u32 2147483647, %v8255_v0  ;;  %v1938_v11 = vsub.s32 4, %v12450_v3  ;;  %6530 = vmatprep.mubr.f32.mxu1 %v1227_v61 }
 0x2cd   : > { %v1837_v14 = vsel %vm8997_vm1, 0, %v1835_v50  ;;  %v7076_v28 = vpop.eup %7075  ;;  %vm1635_vm3 = vcmp.lt.s32.totalorder %v1634_v8, 2  ;;  %vm1636_vm4 = vcmp.eq.s32.totalorder %v1634_v8, 0  ;;  %v1738_v41 = vand.u32 3, %v1737_v59 }
 0x2ce   : > { %vm9020_vm14 = vcmp.le.f32.partialorder %v12447_v2, 0.7853982  ;;  %v7078_v55 = vpop.eup %7077  ;;  %v1538_v60 = vsel %vm1531_vm12, %v1534_v27, %v1537_v5  ;;  %vm1639_vm8 = vcmp.eq.s32.totalorder %v1634_v8, 2  ;;  %v1640_v32 = vxor.u32 2147483648, %v7076_v28 }
 0x2cf   : > { %v1940_v51 = vsel %vm9020_vm14, %v8255_v0, %v8735_v56  ;;  %vm1736_vm6 = vweird.f32 %v8117_v49  ;;  %v1841_v30 = vadd.s32 3, %v1837_v14  ;;  %v1637_v36 = vxor.u32 2147483648, %v7078_v55  ;;  %6531 = vmatmul.mubr.f32.gmra.mrb[6].mxu1 %v1331_v20 }
 0x2d0   : > { %vm12451_vm10 = vcmp.lt.s32.totalorder %v8255_v0, 0  ;;  %7087 = vcosq.f32 %v1940_v51  ;;  %v12452_v24 = vand.u32 2147483647, %v12414_v9  ;;  %v1641_v46 = vsel %vm1639_vm8, %v1640_v32, %v7078_v55  ;;  %6533 = vmatprep.mubr.f32.mxu1 %v1435_v39 }
 0x2d1   : > { %v1939_v6 = vsel %vm12451_vm10, %v1938_v11, %v12450_v3  ;;  %v7080_v56 = vpop.eup %7079  ;;  %7089 = vsinq.f32 %v1940_v51  ;;  %v2042_v29 = vsub.s32 4, %v8643_v45  ;;  %v1638_v37 = vsel %vm1636_vm4, %v7076_v28, %v1637_v36 }
 0x2d2   : > { %vm9036_vm5 = vcmp.le.f32.partialorder %v12452_v24, 0.7853982  ;;  %v1941_v25 = vsel %vm9020_vm14, 0, %v1939_v6  ;;  %v7082_v4 = vpop.eup %7081  ;;  %vm1740_vm7 = vcmp.eq.s32.totalorder %v1738_v41, 0  ;;  %vm1743_vm12 = vcmp.eq.s32.totalorder %v1738_v41, 2 }
 0x2d3   : > { %v1744_v44 = vxor.u32 2147483648, %v7080_v56  ;;  %v1642_v31 = vsel %vm1635_vm3, %v1638_v37, %v1641_v46  ;;  %v1741_v26 = vxor.u32 2147483648, %v7082_v4  ;;  %v1842_v40 = vand.u32 3, %v1841_v30 }
 0x2d4   : > { %v1945_v22 = vadd.s32 3, %v1941_v25  ;;  %v1643_v43 = vsel %vm1632_vm11, nan, %v1642_v31  ;;  %v2043_v57 = vsel %vm1958_vm15, %v2042_v29, %v8643_v45  ;;  %v2044_v20 = vsel %vm9036_vm5, %v12414_v9, %v8882_v7 }
 0x2d5   : > { %v1745_v61 = vsel %vm1743_vm12, %v1744_v44, %v7082_v4  ;;  %v7084_v58 = vpop.eup %7083  ;;  %v1539_v18 = vsel %vm1528_vm0, nan, %v1538_v60  ;;  %vm1739_vm1 = vcmp.lt.s32.totalorder %v1738_v41, 2  ;;  %v1742_v48 = vsel %vm1740_vm7, %v7080_v56, %v1741_v26 }
 0x2d6   : > { %7091 = vcosq.f32 %v2044_v20  ;;  %v7086_v33 = vpop.eup %7085  ;;  %6534 = vmatmul.mubr.f32.gmra.mrb[8].mxu1 %v1539_v18  ;;  %v1746_v10 = vsel %vm1739_vm1, %v1742_v48, %v1745_v61  ;;  %v1848_v42 = vxor.u32 2147483648, %v7084_v58  ;;  %v2045_v13 = vsel %vm9036_vm5, 0, %v2043_v57 }
 0x2d7   : > { %7093 = vsinq.f32 %v2044_v20  ;;  %6536 = vmatprep.mubr.f32.mxu1 %v1643_v43  ;;  %vm1843_vm15 = vcmp.lt.s32.totalorder %v1842_v40, 2  ;;  %vm1844_vm2 = vcmp.eq.s32.totalorder %v1842_v40, 0  ;;  %v1845_v45 = vxor.u32 2147483648, %v7086_v33 }
 0x2d8   : > { %vm1847_vm13 = vcmp.eq.s32.totalorder %v1842_v40, 2  ;;  %v1747_v7 = vsel %vm1736_vm6, nan, %v1746_v10  ;;  %v1946_v8 = vand.u32 3, %v1945_v22  ;;  %v12455_v12 = vand.u32 2147483647, %v8395_v15 }
 0x2d9   : > { %v1849_v47 = vsel %vm1847_vm13, %v1848_v42, %v7086_v33  ;;  %v1846_v17 = vsel %vm1844_vm2, %v7084_v58, %v1845_v45  ;;  %v2049_v53 = vadd.s32 3, %v2045_v13  ;;  %v2146_v59 = vsub.s32 4, %v8554_v62 }
 0x2da   : > { %vm9062_vm11 = vcmp.le.f32.partialorder %v12455_v12, 0.7853982  ;;  %v7088_v5 = vpop.eup %7087  ;;  %6537 = vmatmul.mubr.f32.gmra.mrb[10].mxu1 %v1747_v7  ;;  %vm1840_vm0 = vweird.f32 %v8304_v63  ;;  %v1850_v49 = vsel %vm1843_vm15, %v1846_v17, %v1849_v47  ;;  %vm12458_vm9 = vcmp.lt.s32.totalorder %v8395_v15, 0 }
 0x2db   : > { %v2148_v27 = vsel %vm9062_vm11, %v8395_v15, %v8769_v1  ;;  %v7090_v50 = vpop.eup %7089  ;;  %v1851_v39 = vsel %vm1840_vm0, nan, %v1850_v49  ;;  %v1952_v14 = vxor.u32 2147483648, %v7088_v5  ;;  %v2147_v2 = vsel %vm12458_vm9, %v2146_v59, %v8554_v62 }
 0x2dc   : > { %7095 = vcosq.f32 %v2148_v27  ;;  %6539 = vmatprep.mubr.f32.mxu1 %v1851_v39  ;;  %v1949_v35 = vxor.u32 2147483648, %v7090_v50  ;;  %vm1951_vm14 = vcmp.eq.s32.totalorder %v1946_v8, 2  ;;  %vm1948_vm3 = vcmp.eq.s32.totalorder %v1946_v8, 0 }
 0x2dd   : > { %7097 = vsinq.f32 %v2148_v27  ;;  %v1953_v3 = vsel %vm1951_vm14, %v1952_v14, %v7090_v50  ;;  %v2050_v1 = vand.u32 3, %v2049_v53  ;;  %v2149_v11 = vsel %vm9062_vm11, 0, %v2147_v2 }
 0x2de   : > { %vm1947_vm4 = vcmp.lt.s32.totalorder %v1946_v8, 2  ;;  %v1950_v63 = vsel %vm1948_vm3, %v7088_v5, %v1949_v35  ;;  %v2153_v28 = vadd.s32 3, %v2149_v11  ;;  %vm1944_vm8 = vweird.f32 %v8255_v0 }
 0x2df   : > { %v1954_v51 = vsel %vm1947_vm4, %v1950_v63, %v1953_v3  ;;  %vm2055_vm6 = vcmp.eq.s32.totalorder %v2050_v1, 2  ;;  %vm2052_vm10 = vcmp.eq.s32.totalorder %v2050_v1, 0  ;;  %vm2051_vm5 = vcmp.lt.s32.totalorder %v2050_v1, 2 }
 0x2e0   : > { %v7092_v41 = vpop.eup %7091  ;;  %v1955_v60 = vsel %vm1944_vm8, nan, %v1954_v51  ;;  %v2154_v36 = vand.u32 3, %v2153_v28  ;;  %vm2048_vm7 = vweird.f32 %v12414_v9  ;;  %vm2152_vm2 = vweird.f32 %v8395_v15  ;;  %v9083_v9 = vld [vmem:[%s12139_s4] ss:$0 sm:$0xff] }
 0x2e1   : > { %v7094_v55 = vpop.eup %7093  ;;  %v2056_v62 = vxor.u32 2147483648, %v7092_v41  ;;  %6540 = vmatmul.mubr.f32.gmra.mrb[12].mxu1 %v1955_v60 }
 0x2e2   : > { %v2053_v32 = vxor.u32 2147483648, %v7094_v55  ;;  %vm2159_vm12 = vcmp.eq.s32.totalorder %v2154_v36, 2  ;;  %vm2156_vm1 = vcmp.eq.s32.totalorder %v2154_v36, 0  ;;  %vm2155_vm15 = vcmp.lt.s32.totalorder %v2154_v36, 2 }
 0x2e3   : > { %v2057_v30 = vsel %vm2055_vm6, %v2056_v62, %v7094_v55 }
 0x2e4   : > { %v2054_v6 = vsel %vm2052_vm10, %v7092_v41, %v2053_v32 }
 0x2e5   : > { %v2058_v16 = vsel %vm2051_vm5, %v2054_v6, %v2057_v30 }
 0x2e6   : > { %v7096_v24 = vpop.eup %7095  ;;  %v2059_v46 = vsel %vm2048_vm7, nan, %v2058_v16 }
 0x2e7   : > { %v7098_v56 = vpop.eup %7097  ;;  %v2160_v25 = vxor.u32 2147483648, %v7096_v24  ;;  %6542 = vmatprep.mubr.f32.mxu1 %v2059_v46 }
 0x2e8   : > { %v2157_v0 = vxor.u32 2147483648, %v7098_v56 }
 0x2e9   : > { %v2161_v29 = vsel %vm2159_vm12, %v2160_v25, %v7098_v56 }
 0x2ea   : > { %v2158_v4 = vsel %vm2156_vm1, %v7096_v24, %v2157_v0 }
 0x2eb   : > { %v2162_v37 = vsel %vm2155_vm15, %v2158_v4, %v2161_v29 }
 0x2ec   : > { %v2163_v44 = vsel %vm2152_vm2, nan, %v2162_v37 }
 0x2ed   : > { %6543 = vmatmul.mubr.f32.gmra.mrb[14].mxu1 %v2163_v44 }
 0x396   : > { %v6523_v31 = vpop.f32.mrb[0].mxu1 }
 0x397   : > { %v9086_v26 = vadd.f32 %v6523_v31, %v9083_v9  ;;  %v2253_v40 = vpop.f32.mrb[1].mxu1 }
 0x398   : > { %v9089_v22 = vadd.f32 %v9083_v9, %v2253_v40 }
 0x399   : > { %12459 = vst [vmem:[#allocation12_spill] sm:$0xff] %v9086_v26  ;;  %v2436_v43 = vand.u32 2147483647, %v9086_v26  ;;  %v2439_v15 = vand.u32 2139095040, %v9086_v26 }
 0x39a   : > { %v12217_v61 = vand.u32 2147483647, %v9089_v22  ;;  %v2335_v57 = vand.u32 2139095040, %v9089_v22  ;;  %v6526_v20 = vpop.f32.mrb[2].mxu1 }
 0x39b   : > { %v2440_v58 = vshrl.u32 %v2439_v15, 23  ;;  %v2443_v18 = vand.u32 8388607, %v2436_v43  ;;  %v9098_v48 = vadd.f32 %v6526_v20, %v9083_v9  ;;  %v2263_v33 = vpop.f32.mrb[3].mxu1 }
 0x39c   : > { %v2336_v10 = vshrl.u32 %v2335_v57, 23  ;;  %v2339_v42 = vand.u32 8388607, %v12217_v61  ;;  %v9113_v49 = vadd.f32 %v9083_v9, %v2263_v33 }
 0x39d   : > { %v6175_v13 = vadd.s32 4294967169, %v2440_v58  ;;  %v12214_v45 = vand.u32 2147483647, %v9098_v48  ;;  %v2444_v7 = vor.u32 8388608, %v2443_v18  ;;  %v2647_v8 = vand.u32 2139095040, %v9098_v48 }
 0x39e   : > { %v6171_v47 = vadd.s32 4294967169, %v2336_v10  ;;  %v9104_v12 = vpop.f32.mrb[4].mxu1  ;;  %v2340_v17 = vor.u32 8388608, %v2339_v42  ;;  %v2543_v55 = vand.u32 2139095040, %v9113_v49 }
 0x39f   : > { %v2446_v23 = vadd.s32 1, %v6175_v13  ;;  %v9106_v53 = vpop.f32.mrb[5].mxu1  ;;  %v2648_v27 = vshrl.u32 %v2647_v8, 23  ;;  %v9110_v5 = vand.u32 8388607, %v12214_v45  ;;  %v9115_v39 = vshll.u32 %v2444_v7, 8 }
 0x3a0   : > { %v2342_v59 = vadd.s32 1, %v6171_v47  ;;  %v9119_v11 = vshll.u32 %v2340_v17, 8 }
 0x3a1   : > { %vm2447_vm13 = vcmp.gt.s32.totalorder %v2446_v23, 0  ;;  %v6183_v14 = vadd.s32 4294967169, %v2648_v27  ;;  %v2652_v51 = vor.u32 8388608, %v9110_v5 }
 0x3a2   : > { %v2448_v50 = vsel %vm2447_vm13, %v2446_v23, 0  ;;  %vm2343_vm11 = vcmp.gt.s32.totalorder %v2342_v59, 0  ;;  %v9117_v2 = vpop.f32.mrb[6].mxu1 }
 0x3a3   : > { %v2449_v35 = vshrl.u32 %v2448_v50, 5  ;;  %v2450_v3 = vand.u32 31, %v2448_v50  ;;  %v2344_v1 = vsel %vm2343_vm11, %v2342_v59, 0  ;;  %v9121_v63 = vpop.f32.mrb[7].mxu1  ;;  %v9129_v30 = vadd.s32 1, %v6183_v14 }
 0x3a4   : > { %v9123_v28 = vshrl.u32 %v2344_v1, 5  ;;  %v2346_v41 = vand.u32 31, %v2344_v1 }
 0x3a5   : > { %v2451_v60 = vsub.s32 32, %v2450_v3  ;;  %v2453_v62 = vshll.u32 %v12334_v19, %v2450_v3  ;;  %v2456_v32 = vshll.u32 %v12335_v52, %v2450_v3  ;;  %v2459_v36 = vshll.u32 %v12336_v21, %v2450_v3 }
 0x3a6   : > { %v2462_v6 = vshll.u32 %v12337_v34, %v2450_v3  ;;  %v2465_v24 = vshll.u32 %v12338_v38, %v2450_v3  ;;  %vm2468_vm0 = vcmp.lt.s32.totalorder %v2449_v35, 1  ;;  %vm2469_vm9 = vcmp.lt.s32.totalorder %v2449_v35, 2 }
 0x3a7   : > { %v2454_v56 = vshrl.u32 %v12335_v52, %v2451_v60  ;;  %v2457_v46 = vshrl.u32 %v12336_v21, %v2451_v60  ;;  %v2460_v25 = vshrl.u32 %v12337_v34, %v2451_v60  ;;  %v2452_v0 = vshrl.u32 %v12334_v19, %v2451_v60 }
 0x3a8   : > { %v2463_v29 = vshrl.u32 %v12338_v38, %v2451_v60  ;;  %v2466_v4 = vshrl.u32 %v12340_v54, %v2451_v60  ;;  %vm2470_vm14 = vcmp.lt.s32.totalorder %v2449_v35, 3  ;;  %v2347_v40 = vsub.s32 32, %v2346_v41 }
 0x3a9   : > { %v9134_v16 = vpop.f32.mrb[8].mxu1  ;;  %v2455_v37 = vor.u32 %v2454_v56, %v2453_v62  ;;  %v2458_v44 = vor.u32 %v2457_v46, %v2456_v32  ;;  %v2461_v31 = vor.u32 %v2460_v25, %v2459_v36  ;;  %vm2471_vm3 = vcmp.lt.s32.totalorder %v2449_v35, 4 }
 0x3aa   : > { %v2464_v15 = vor.u32 %v2463_v29, %v2462_v6  ;;  %v2467_v57 = vor.u32 %v2466_v4, %v2465_v24  ;;  %v2349_v20 = vshll.u32 %v12334_v19, %v2346_v41  ;;  %v2352_v47 = vshll.u32 %v12335_v52, %v2346_v41  ;;  %v9171_v29 = vpop.f32.mrb[9].mxu1 }
 0x3ab   : > { %v2472_v58 = vsel %vm2468_vm0, %v2452_v0, %v2455_v37  ;;  %v2473_v18 = vsel %vm2471_vm3, %v2461_v31, 2102212464  ;;  %v2476_v33 = vsel %vm2468_vm0, %v2455_v37, %v2458_v44  ;;  %v2480_v10 = vsel %vm2468_vm0, %v2458_v44, %v2461_v31 }
 0x3ac   : > { %v2474_v42 = vsel %vm2470_vm14, %v2458_v44, %v2473_v18  ;;  %v2477_v13 = vsel %vm2471_vm3, %v2464_v15, 920167782  ;;  %v2481_v7 = vsel %vm2471_vm3, %v2467_v57, 1326507024  ;;  %v2348_v17 = vshrl.u32 %v12334_v19, %v2347_v40 }
 0x3ad   : > { %v2478_v8 = vsel %vm2470_vm14, %v2461_v31, %v2477_v13  ;;  %v2482_v23 = vsel %vm2470_vm14, %v2464_v15, %v2481_v7  ;;  %v2350_v59 = vshrl.u32 %v12335_v52, %v2347_v40  ;;  %v2475_v27 = vsel %vm2469_vm9, %v2472_v58, %v2474_v42 }
 0x3ae   : > { %v2479_v50 = vsel %vm2469_vm9, %v2476_v33, %v2478_v8  ;;  %v2483_v14 = vsel %vm2469_vm9, %v2480_v10, %v2482_v23  ;;  %v2353_v3 = vshrl.u32 %v12336_v21, %v2347_v40  ;;  %v2355_v24 = vshll.u32 %v12336_v21, %v2346_v41 }
 0x3af   : > { %v9157_v1 = vmul.u32.u64.low %v9115_v39, %v2483_v14  ;;  %v9158_v60 = vmul.u32.u64.high %v9115_v39, %v2483_v14, %v9157_v1  ;;  %v9161_v62 = vmul.u32.u64.low %v9115_v39, %v2479_v50  ;;  %v9162_v32 = vmul.u32.u64.high %v9115_v39, %v2479_v50, %v9161_v62 }
 0x3b0   : > { %v2351_v36 = vor.u32 %v2350_v59, %v2349_v20  ;;  %v2354_v6 = vor.u32 %v2353_v3, %v2352_v47  ;;  %v2356_v56 = vshrl.u32 %v12337_v34, %v2347_v40  ;;  %v2491_v35 = vmul.u32 %v9115_v39, %v2475_v27 }
 0x3b1   : > { %v2358_v46 = vshll.u32 %v12337_v34, %v2346_v41  ;;  %v2359_v25 = vshrl.u32 %v12338_v38, %v2347_v40  ;;  %v2362_v0 = vshrl.u32 %v12340_v54, %v2347_v40  ;;  %v2361_v37 = vshll.u32 %v12338_v38, %v2346_v41 }
 0x3b2   : > { %v2357_v4 = vor.u32 %v2356_v56, %v2355_v24  ;;  %vm2364_vm4 = vcmp.lt.s32.totalorder %v9123_v28, 1  ;;  %vm2365_vm8 = vcmp.lt.s32.totalorder %v9123_v28, 2  ;;  %vm2493_vm6 = vc.u32 %v9158_v60, %v9161_v62 }
 0x3b3   : > { %v2494_v39 = vadd.s32 1, %v9162_v32  ;;  %v2360_v44 = vor.u32 %v2359_v25, %v2358_v46  ;;  %vm2366_vm10 = vcmp.lt.s32.totalorder %v9123_v28, 3  ;;  %v2363_v31 = vor.u32 %v2362_v0, %v2361_v37 }
 0x3b4   : > { %vm2367_vm5 = vcmp.lt.s32.totalorder %v9123_v28, 4  ;;  %v2368_v40 = vsel %vm2364_vm4, %v2348_v17, %v2351_v36  ;;  %v2372_v15 = vsel %vm2364_vm4, %v2351_v36, %v2354_v6  ;;  %v2376_v58 = vsel %vm2364_vm4, %v2354_v6, %v2357_v4 }
 0x3b5   : > { %v2495_v57 = vsel %vm2493_vm6, %v2494_v39, %v9162_v32  ;;  %v2369_v41 = vsel %vm2367_vm5, %v2357_v4, 2102212464  ;;  %v2373_v20 = vsel %vm2367_vm5, %v2360_v44, 920167782  ;;  %v2377_v42 = vsel %vm2367_vm5, %v2363_v31, 1326507024 }
 0x3b6   : > { %v2496_v18 = vadd.s32 %v2495_v57, %v2491_v35  ;;  %v2370_v33 = vsel %vm2366_vm10, %v2354_v6, %v2369_v41  ;;  %v2374_v10 = vsel %vm2366_vm10, %v2357_v4, %v2373_v20  ;;  %v2378_v7 = vsel %vm2366_vm10, %v2360_v44, %v2377_v42 }
 0x3b7   : > { %v2375_v13 = vsel %vm2365_vm8, %v2372_v15, %v2374_v10  ;;  %vm2655_vm7 = vcmp.gt.s32.totalorder %v9129_v30, 0  ;;  %v2544_v47 = vshrl.u32 %v2543_v55, 23  ;;  %v2379_v23 = vsel %vm2365_vm8, %v2376_v58, %v2378_v7 }
 0x3b8   : > { %v2497_v8 = vadd.s32 536870912, %v2496_v18  ;;  %v9190_v17 = vmul.u32.u64.low %v9119_v11, %v2375_v13  ;;  %v9191_v59 = vmul.u32.u64.high %v9119_v11, %v2375_v13, %v9190_v17  ;;  %v2371_v27 = vsel %vm2365_vm8, %v2368_v40, %v2370_v33 }
 0x3b9   : > { %v9197_v50 = vmul.u32.u64.low %v9119_v11, %v2379_v23  ;;  %v9198_v14 = vmul.u32.u64.high %v9119_v11, %v2379_v23, %v9197_v50  ;;  %v2656_v3 = vsel %vm2655_vm7, %v9129_v30, 0  ;;  %v9205_v32 = vshll.u32 %v2652_v51, 8 }
 0x3ba   : > { %v9201_v1 = vshrl.u32 %v2497_v8, 30  ;;  %v2658_v55 = vand.u32 31, %v2656_v3  ;;  %v12215_v36 = vand.u32 2147483647, %v9113_v49  ;;  %v6179_v6 = vadd.s32 4294967169, %v2544_v47 }
 0x3bb   : > { %v2387_v28 = vmul.u32 %v9119_v11, %v2371_v27  ;;  %v2390_v56 = vadd.s32 1, %v9191_v59  ;;  %vm2389_vm12 = vc.u32 %v9198_v14, %v9190_v17  ;;  %v2657_v30 = vshrl.u32 %v2656_v3, 5 }
 0x3bc   : > { %v2499_v24 = vshll.u32 %v9201_v1, 30  ;;  %v2659_v35 = vsub.s32 32, %v2658_v55  ;;  %v2661_v46 = vshll.u32 %v12334_v19, %v2658_v55  ;;  %v2664_v5 = vshll.u32 %v12335_v52, %v2658_v55 }
 0x3bd   : > { %v2391_v25 = vsel %vm2389_vm12, %v2390_v56, %v9191_v59  ;;  %v2667_v4 = vshll.u32 %v12336_v21, %v2658_v55  ;;  %v2670_v44 = vshll.u32 %v12337_v34, %v2658_v55  ;;  %v2673_v57 = vshll.u32 %v12338_v38, %v2658_v55 }
 0x3be   : > { %v9215_v51 = vsub.s32 %v2496_v18, %v2499_v24  ;;  %v2662_v0 = vshrl.u32 %v12335_v52, %v2659_v35  ;;  %v2392_v11 = vadd.s32 %v2391_v25, %v2387_v28  ;;  %v2665_v37 = vshrl.u32 %v12336_v21, %v2659_v35 }
 0x3bf   : > { %v2668_v39 = vshrl.u32 %v12337_v34, %v2659_v35  ;;  %v2671_v15 = vshrl.u32 %v12338_v38, %v2659_v35  ;;  %v2674_v18 = vshrl.u32 %v12340_v54, %v2659_v35  ;;  %v2660_v10 = vshrl.u32 %v12334_v19, %v2659_v35 }
 0x3c0   : > { %v2502_v31 = vsub.s32 0, %v9215_v51  ;;  %v2663_v40 = vor.u32 %v2662_v0, %v2661_v46  ;;  %v2393_v41 = vadd.s32 536870912, %v2392_v11  ;;  %v2666_v20 = vor.u32 %v2665_v37, %v2664_v5 }
 0x3c1   : > { %v2669_v58 = vor.u32 %v2668_v39, %v2667_v4  ;;  %v2672_v42 = vor.u32 %v2671_v15, %v2670_v44  ;;  %v2550_v13 = vadd.s32 1, %v6179_v6  ;;  %v2675_v47 = vor.u32 %v2674_v18, %v2673_v57 }
 0x3c2   : > { %v6176_v33 = vmin.u32 %v2502_v31, %v9215_v51  ;;  %v9229_v7 = vshrl.u32 %v2393_v41, 30  ;;  %vm2676_vm1 = vcmp.lt.s32.totalorder %v2657_v30, 1  ;;  %vm2679_vm15 = vcmp.lt.s32.totalorder %v2657_v30, 4 }
 0x3c3   : > { %vm2677_vm2 = vcmp.lt.s32.totalorder %v2657_v30, 2  ;;  %v2681_v23 = vsel %vm2679_vm15, %v2669_v58, 2102212464  ;;  %v2684_v59 = vsel %vm2676_vm1, %v2663_v40, %v2666_v20  ;;  %vm2678_vm13 = vcmp.lt.s32.totalorder %v2657_v30, 3 }
 0x3c4   : > { %v2504_v8 = vclz %v6176_v33  ;;  %v2395_v27 = vshll.u32 %v9229_v7, 30  ;;  %v2685_v50 = vsel %vm2679_vm15, %v2672_v42, 920167782  ;;  %v2688_v3 = vsel %vm2676_vm1, %v2666_v20, %v2669_v58 }
 0x3c5   : > { %v2680_v24 = vsel %vm2676_vm1, %v2660_v10, %v2663_v40  ;;  %v2686_v28 = vsel %vm2678_vm13, %v2669_v58, %v2685_v50  ;;  %v2689_v56 = vsel %vm2679_vm15, %v2675_v47, 1326507024  ;;  %v2682_v6 = vsel %vm2678_vm13, %v2666_v20, %v2681_v23 }
 0x3c6   : > { %v6177_v55 = vadd.s32 4294967294, %v2504_v8  ;;  %v9232_v35 = vsub.s32 %v2392_v11, %v2395_v27  ;;  %v2687_v46 = vsel %vm2677_vm2, %v2684_v59, %v2686_v28  ;;  %v2690_v5 = vsel %vm2678_vm13, %v2672_v42, %v2689_v56  ;;  %v9246_v11 = vpop.f32.mrb[10].mxu1 }
 0x3c7   : > { %v2691_v25 = vsel %vm2677_vm2, %v2688_v3, %v2690_v5  ;;  %v9237_v0 = vmul.u32.u64.low %v9205_v32, %v2687_v46  ;;  %v9238_v4 = vmul.u32.u64.high %v9205_v32, %v2687_v46, %v9237_v0  ;;  %v2683_v15 = vsel %vm2677_vm2, %v2680_v24, %v2682_v6 }
 0x3c8   : > { %vm6178_vm11 = vcmp.lt.s32.totalorder %v6177_v55, 0  ;;  %v2398_v39 = vsub.s32 0, %v9232_v35  ;;  %v9243_v44 = vmul.u32.u64.low %v9205_v32, %v2691_v25  ;;  %v9244_v31 = vmul.u32.u64.high %v9205_v32, %v2691_v25, %v9243_v44 }
 0x3c9   : > { %v2507_v37 = vsel %vm6178_vm11, 0, %v6177_v55  ;;  %vm2551_vm0 = vcmp.gt.s32.totalorder %v2550_v13, 0  ;;  %v2702_v18 = vadd.s32 1, %v9238_v4  ;;  %v2547_v33 = vand.u32 8388607, %v12215_v36  ;;  %v9285_v36 = vpop.f32.mrb[11].mxu1 }
 0x3ca   : > { %v2512_v40 = vsub.s32 4294967266, %v2507_v37  ;;  %v6172_v57 = vmin.u32 %v2398_v39, %v9232_v35  ;;  %v2552_v41 = vsel %vm2551_vm0, %v2550_v13, 0  ;;  %v2508_v20 = vsub.s32 32, %v2507_v37 }
 0x3cb   : > { %v2699_v42 = vmul.u32 %v9205_v32, %v2683_v15  ;;  %vm2701_vm9 = vc.u32 %v9244_v31, %v9237_v0  ;;  %v2554_v47 = vand.u32 31, %v2552_v41  ;;  %v2492_v30 = vadd.s32 %v9161_v62, %v9158_v60 }
 0x3cc   : > { %v2513_v58 = vadd.s32 127, %v2512_v40  ;;  %v2400_v10 = vclz %v6172_v57  ;;  %v2703_v13 = vsel %vm2701_vm9, %v2702_v18, %v9238_v4  ;;  %v9261_v23 = vadd.f32 %v9104_v12, %v9083_v9 }
 0x3cd   : > { %v2704_v27 = vadd.s32 %v2703_v13, %v2699_v42  ;;  %v2555_v50 = vsub.s32 32, %v2554_v47  ;;  %v2510_v3 = vshrl.u32 %v2492_v30, %v2508_v20  ;;  %v2548_v24 = vor.u32 8388608, %v2547_v33 }
 0x3ce   : > { %v2514_v8 = vshll.u32 %v2513_v58, 23  ;;  %12460 = vst [vmem:[#allocation13_spill] sm:$0xff] %v9261_v23  ;;  %v6173_v59 = vadd.s32 4294967294, %v2400_v10  ;;  %v2509_v28 = vshll.u32 %v9215_v51, %v2507_v37  ;;  %v12216_v56 = vand.u32 2147483647, %v9261_v23 }
 0x3cf   : > { %v2705_v32 = vadd.s32 536870912, %v2704_v27  ;;  %v2855_v60 = vand.u32 2139095040, %v9261_v23  ;;  %v2553_v6 = vshrl.u32 %v2552_v41, 5  ;;  %v2558_v12 = vshrl.u32 %v12335_v52, %v2555_v50 }
 0x3d0   : > { %v2515_v55 = vor.u32 4788187, %v2514_v8  ;;  %vm6174_vm14 = vcmp.lt.s32.totalorder %v6173_v59, 0  ;;  %v2561_v46 = vshrl.u32 %v12336_v21, %v2555_v50  ;;  %v2511_v5 = vor.u32 %v2510_v3, %v2509_v28 }
 0x3d1   : > { %v9266_v62 = vshrl.u32 %v2705_v32, 30  ;;  %v2557_v25 = vshll.u32 %v12334_v19, %v2554_v47  ;;  %v2560_v4 = vshll.u32 %v12335_v52, %v2554_v47  ;;  %v2564_v39 = vshrl.u32 %v12337_v34, %v2555_v50 }
 0x3d2   : > { %v2516_v51 = vand.u32 2147483647, %v2515_v55  ;;  %v2403_v37 = vsel %vm6174_vm14, 0, %v6173_v59  ;;  %v2563_v40 = vshll.u32 %v12336_v21, %v2554_v47  ;;  %v2566_v15 = vshll.u32 %v12337_v34, %v2554_v47 }
 0x3d3   : > { %12461 = vst [vmem:[#allocation9_spill] sm:$0xff] %v9266_v62  ;;  %v2707_v44 = vshll.u32 %v9266_v62, 30  ;;  %v2567_v57 = vshrl.u32 %v12338_v38, %v2555_v50  ;;  %v2569_v41 = vshll.u32 %v12338_v38, %v2554_v47  ;;  %v2570_v20 = vshrl.u32 %v12340_v54, %v2555_v50 }
 0x3d4   : > { %v2388_v58 = vadd.s32 %v9190_v17, %v9198_v14  ;;  %v2559_v33 = vor.u32 %v2558_v12, %v2557_v25  ;;  %v2562_v10 = vor.u32 %v2561_v46, %v2560_v4  ;;  %v2518_v42 = vcvt.s32.f32 %v2511_v5 }
 0x3d5   : > { %v9281_v18 = vsub.s32 %v2704_v27, %v2707_v44  ;;  %v2565_v30 = vor.u32 %v2564_v39, %v2563_v40  ;;  %v2568_v8 = vor.u32 %v2567_v57, %v2566_v15  ;;  %v2571_v13 = vor.u32 %v2570_v20, %v2569_v41 }
 0x3d6   : > { %v2404_v59 = vsub.s32 32, %v2403_v37  ;;  %v2588_v55 = vshll.u32 %v2548_v24, 8  ;;  %v2856_v32 = vshrl.u32 %v2855_v60, 23  ;;  %v2519_v28 = vmul.f32 %v2518_v42, %v2516_v51 }
 0x3d7   : > { %v2710_v3 = vsub.s32 0, %v9281_v18  ;;  %v2408_v47 = vsub.s32 4294967266, %v2403_v37  ;;  %v2556_v45 = vshrl.u32 %v12334_v19, %v2555_v50  ;;  %vm2572_vm3 = vcmp.lt.s32.totalorder %v2553_v6, 1 }
 0x3d8   : > { %vm2574_vm4 = vcmp.lt.s32.totalorder %v2553_v6, 3  ;;  %vm2575_vm8 = vcmp.lt.s32.totalorder %v2553_v6, 4  ;;  %v2580_v14 = vsel %vm2572_vm3, %v2559_v33, %v2562_v10  ;;  %v2584_v46 = vsel %vm2572_vm3, %v2562_v10, %v2565_v30 }
 0x3d9   : > { %v6184_v17 = vmin.u32 %v2710_v3, %v9281_v18  ;;  %v2577_v27 = vsel %vm2575_vm8, %v2565_v30, 2102212464  ;;  %v2581_v12 = vsel %vm2575_vm8, %v2568_v8, 920167782  ;;  %v2585_v5 = vsel %vm2575_vm8, %v2571_v13, 1326507024 }
 0x3da   : > { %v2406_v24 = vshrl.u32 %v2388_v58, %v2404_v59  ;;  %vm2573_vm6 = vcmp.lt.s32.totalorder %v2553_v6, 2  ;;  %v2582_v25 = vsel %vm2574_vm4, %v2565_v30, %v2581_v12  ;;  %v2409_v50 = vadd.s32 127, %v2408_v47 }
 0x3db   : > { %v2712_v60 = vclz %v6184_v17  ;;  %v2583_v4 = vsel %vm2573_vm6, %v2580_v14, %v2582_v25  ;;  %v2586_v39 = vsel %vm2574_vm4, %v2568_v8, %v2585_v5  ;;  %v6191_v51 = vadd.s32 4294967169, %v2856_v32 }
 0x3dc   : > { %v2520_v44 = vxor.u32 2147483648, %v2519_v28  ;;  %v2576_v40 = vsel %vm2572_vm3, %v2556_v45, %v2559_v33  ;;  %v2578_v15 = vsel %vm2574_vm4, %v2562_v10, %v2577_v27  ;;  %v2587_v57 = vsel %vm2573_vm6, %v2584_v46, %v2586_v39 }
 0x3dd   : > { %v9296_v41 = vmul.u32.u64.low %v2588_v55, %v2587_v57  ;;  %v9297_v20 = vmul.u32.u64.high %v2588_v55, %v2587_v57, %v9296_v41  ;;  %v9299_v58 = vmul.u32.u64.low %v2588_v55, %v2583_v4  ;;  %v9300_v42 = vmul.u32.u64.high %v2588_v55, %v2583_v4, %v9299_v58 }
 0x3de   : > { %v2405_v30 = vshll.u32 %v9232_v35, %v2403_v37  ;;  %v6185_v13 = vadd.s32 4294967294, %v2712_v60  ;;  %v2862_v59 = vadd.s32 1, %v6191_v51  ;;  %vm2438_vm10 = vcmp.lt.s32.totalorder %v9086_v26, 0 }
 0x3df   : > { %v2410_v8 = vshll.u32 %v2409_v50, 23  ;;  %v2579_v45 = vsel %vm2573_vm6, %v2576_v40, %v2578_v15  ;;  %v2521_v33 = vsel %vm2438_vm10, %v2520_v44, %v2519_v28  ;;  %v2859_v3 = vand.u32 8388607, %v12216_v56 }
 0x3e0   : > { %v9308_v10 = vor.u32 %v2406_v24, %v2405_v30  ;;  %vm2863_vm5 = vcmp.gt.s32.totalorder %v2862_v59, 0  ;;  %vm2597_vm7 = vc.u32 %v9297_v20, %v9299_v58  ;;  %v2598_v35 = vadd.s32 1, %v9300_v42 }
 0x3e1   : > { %v2864_v37 = vsel %vm2863_vm5, %v2862_v59, 0  ;;  %vm9317_vm12 = vcmp.le.f32.partialorder %v2436_v43, 0.7853982  ;;  %v12462_v6 = vmov 0  ;;  %vm6186_vm1 = vcmp.lt.s32.totalorder %v6185_v13, 0 }
 0x3e2   : > { %v12463_v6 = vsel %vm9317_vm12, 4294967295, %v12462_v6  ;;  %v2595_v32 = vmul.u32 %v2588_v55, %v2579_v45  ;;  %v2866_v28 = vand.u32 31, %v2864_v37  ;;  %v9324_v47 = vsel %vm9317_vm12, %v9086_v26, %v2521_v33 }
 0x3e3   : > { %12464 = vst [vmem:[#allocation20_spill] sm:$0xff] %v12463_v6  ;;  %v9326_v17 = vor.u32 4788187, %v2410_v8  ;;  %v2700_v14 = vadd.s32 %v9237_v0, %v9244_v31  ;;  %v2599_v27 = vsel %vm2597_vm7, %v2598_v35, %v9300_v42  ;;  %v2860_v46 = vor.u32 8388608, %v2859_v3 }
 0x3e4   : > { %v2600_v12 = vadd.s32 %v2599_v27, %v2595_v32  ;;  %v2867_v5 = vsub.s32 32, %v2866_v28  ;;  %v9332_v24 = vsel %vm6186_vm1, 0, %v6185_v13  ;;  %v2865_v55 = vshrl.u32 %v2864_v37, 5 }
 0x3e5   : > { %v2869_v60 = vshll.u32 %v12334_v19, %v2866_v28  ;;  %v9337_v25 = vadd.f32 %v9083_v9, %v9106_v53  ;;  %v2872_v4 = vshll.u32 %v12335_v52, %v2866_v28  ;;  %v2875_v0 = vshll.u32 %v12336_v21, %v2866_v28 }
 0x3e6   : > { %v2601_v50 = vadd.s32 536870912, %v2600_v12  ;;  %v2878_v31 = vshll.u32 %v12337_v34, %v2866_v28  ;;  %v2870_v39 = vshrl.u32 %v12335_v52, %v2867_v5  ;;  %v2873_v51 = vshrl.u32 %v12336_v21, %v2867_v5 }
 0x3e7   : > { %12465 = vst [vmem:[#allocation15_spill] sm:$0xff] %v9337_v25  ;;  %v2876_v44 = vshrl.u32 %v12337_v34, %v2867_v5  ;;  %v2879_v40 = vshrl.u32 %v12338_v38, %v2867_v5  ;;  %v2881_v53 = vshll.u32 %v12338_v38, %v2866_v28  ;;  %v2882_v57 = vshrl.u32 %v12340_v54, %v2867_v5 }
 0x3e8   : > { %v9346_v15 = vshrl.u32 %v2601_v50, 30  ;;  %v9352_v41 = vadd.f32 %v9117_v2, %v9083_v9  ;;  %v2871_v42 = vor.u32 %v2870_v39, %v2869_v60  ;;  %v2874_v30 = vor.u32 %v2873_v51, %v2872_v4  ;;  %v9361_v60 = vpop.f32.mrb[12].mxu1 }
 0x3e9   : > { %v2877_v13 = vor.u32 %v2876_v44, %v2875_v0  ;;  %v2880_v59 = vor.u32 %v2879_v40, %v2878_v31  ;;  %v2716_v8 = vsub.s32 32, %v9332_v24  ;;  %v2720_v45 = vsub.s32 4294967266, %v9332_v24 }
 0x3ea   : > { %12466 = vst [vmem:[#allocation11_spill] sm:$0xff] %v9346_v15  ;;  %v2603_v33 = vshll.u32 %v9346_v15, 30  ;;  %v2883_v3 = vor.u32 %v2882_v57, %v2881_v53  ;;  %vm2884_vm15 = vcmp.lt.s32.totalorder %v2865_v55, 1  ;;  %vm2887_vm2 = vcmp.lt.s32.totalorder %v2865_v55, 4 }
 0x3eb   : > { %v2900_v35 = vshll.u32 %v2860_v46, 8  ;;  %v12219_v37 = vand.u32 2147483647, %v9337_v25  ;;  %v2868_v2 = vshrl.u32 %v12334_v19, %v2867_v5  ;;  %v2889_v28 = vsel %vm2887_vm2, %v2877_v13, 2102212464 }
 0x3ec   : > { %v9358_v32 = vsub.s32 %v2600_v12, %v2603_v33  ;;  %v2892_v27 = vsel %vm2884_vm15, %v2871_v42, %v2874_v30  ;;  %vm2886_vm13 = vcmp.lt.s32.totalorder %v2865_v55, 3  ;;  %v2893_v50 = vsel %vm2887_vm2, %v2880_v59, 920167782 }
 0x3ed   : > { %v2896_v4 = vsel %vm2884_vm15, %v2874_v30, %v2877_v13  ;;  %v2897_v0 = vsel %vm2887_vm2, %v2883_v3, 1326507024  ;;  %vm2885_vm11 = vcmp.lt.s32.totalorder %v2865_v55, 2  ;;  %v2888_v39 = vsel %vm2884_vm15, %v2868_v2, %v2871_v42 }
 0x3ee   : > { %v2606_v31 = vsub.s32 0, %v9358_v32  ;;  %v2894_v51 = vsel %vm2886_vm13, %v2877_v13, %v2893_v50  ;;  %v2890_v46 = vsel %vm2886_vm13, %v2874_v30, %v2889_v28  ;;  %v2898_v40 = vsel %vm2886_vm13, %v2880_v59, %v2897_v0 }
 0x3ef   : > { %v2895_v44 = vsel %vm2885_vm11, %v2892_v27, %v2894_v51  ;;  %v2751_v12 = vand.u32 2139095040, %v9337_v25  ;;  %v2899_v53 = vsel %vm2885_vm11, %v2896_v4, %v2898_v40  ;;  %v2718_v56 = vshrl.u32 %v2700_v14, %v2716_v8 }
 0x3f0   : > { %v6180_v5 = vmin.u32 %v2606_v31, %v9358_v32  ;;  %v9366_v57 = vmul.u32.u64.low %v2900_v35, %v2895_v44  ;;  %v9367_v33 = vmul.u32.u64.high %v2900_v35, %v2895_v44, %v9366_v57  ;;  %v2721_v55 = vadd.s32 127, %v2720_v45 }
 0x3f1   : > { %v9370_v61 = vmul.u32.u64.low %v2900_v35, %v2899_v53  ;;  %v9371_v3 = vmul.u32.u64.high %v2900_v35, %v2899_v53, %v9370_v61  ;;  %v2752_v43 = vshrl.u32 %v2751_v12, 23  ;;  %v2891_v13 = vsel %vm2885_vm11, %v2888_v39, %v2890_v46 }
 0x3f2   : > { %v2608_v42 = vclz %v6180_v5  ;;  %v2755_v30 = vand.u32 8388607, %v12219_v37  ;;  %7099 = vcosq.f32 %v9324_v47  ;;  %v12218_v2 = vand.u32 2147483647, %v9352_v41 }
 0x3f3   : > { %v6187_v59 = vadd.s32 4294967169, %v2752_v43  ;;  %v3063_v28 = vand.u32 2139095040, %v9352_v41  ;;  %v2412_v27 = vand.u32 2147483647, %v9326_v17  ;;  %v2717_v14 = vshll.u32 %v9281_v18, %v9332_v24 }
 0x3f4   : > { %v2910_v61 = vadd.s32 1, %v9367_v33  ;;  %v9384_v8 = vadd.f32 %v9083_v9, %v9121_v63  ;;  %v6181_v45 = vadd.s32 4294967294, %v2608_v42  ;;  %v2907_v50 = vmul.u32 %v2900_v35, %v2891_v13 }
 0x3f5   : > { %vm2909_vm0 = vc.u32 %v9371_v3, %v9366_v57  ;;  %v2758_v43 = vadd.s32 1, %v6187_v59  ;;  %v9388_v4 = vor.u32 %v2718_v56, %v2717_v14  ;;  %v2722_v0 = vshll.u32 %v2721_v55, 23  ;;  %v9421_v14 = vpop.f32.mrb[13].mxu1 }
 0x3f6   : > { %v2911_v17 = vsel %vm2909_vm0, %v2910_v61, %v9367_v33  ;;  %v2756_v31 = vor.u32 8388608, %v2755_v30  ;;  %v3064_v18 = vshrl.u32 %v3063_v28, 23  ;;  %v9393_v24 = vand.u32 8388607, %v12218_v2 }
 0x3f7   : > { %v2912_v39 = vadd.s32 %v2911_v17, %v2907_v50  ;;  %vm2759_vm9 = vcmp.gt.s32.totalorder %v2758_v43, 0  ;;  %7101 = vsinq.f32 %v9324_v47  ;;  %v12467_v9 = vcvt.s32.f32 %v9308_v10 }
 0x3f8   : > { %v2760_v35 = vsel %vm2759_vm9, %v2758_v43, 0  ;;  %v2596_v56 = vadd.s32 %v9299_v58, %v9297_v20  ;;  %vm6182_vm14 = vcmp.lt.s32.totalorder %v6181_v45, 0  ;;  %v9402_v44 = vor.u32 4788187, %v2722_v0 }
 0x3f9   : > { %v9398_v63 = vmul.f32 %v12467_v9, %v2412_v27  ;;  %v2913_v51 = vadd.s32 536870912, %v2912_v39  ;;  %v2762_v46 = vand.u32 31, %v2760_v35  ;;  %v9405_v12 = vshll.u32 %v2756_v31, 8 }
 0x3fa   : > { %v6199_v53 = vadd.s32 4294967169, %v3064_v18  ;;  %v9411_v55 = vsel %vm6182_vm14, 0, %v6181_v45  ;;  %v2761_v20 = vshrl.u32 %v2760_v35, 5  ;;  %v2959_v42 = vand.u32 2139095040, %v9384_v8 }
 0x3fb   : > { %v9408_v47 = vshrl.u32 %v2913_v51, 30  ;;  %v2763_v10 = vsub.s32 32, %v2762_v46  ;;  %v2765_v58 = vshll.u32 %v12334_v19, %v2762_v46  ;;  %v2768_v28 = vshll.u32 %v12335_v52, %v2762_v46 }
 0x3fc   : > { %v9415_v13 = vpop.eup %7099  ;;  %v2771_v61 = vshll.u32 %v12336_v21, %v2762_v46  ;;  %v2774_v50 = vshll.u32 %v12337_v34, %v2762_v46  ;;  %v2616_v0 = vsub.s32 4294967266, %v9411_v55  ;;  %v2777_v51 = vshll.u32 %v12338_v38, %v2762_v46 }
 0x3fd   : > { %12468 = vst [vmem:[#allocation8_spill] sm:$0xff] %v9408_v47  ;;  %12469 = vst [vmem:[#allocation21_spill] sm:$0xff] %v9415_v13  ;;  %v2915_v30 = vshll.u32 %v9408_v47, 30  ;;  %v2766_v59 = vshrl.u32 %v12335_v52, %v2763_v10  ;;  %v2769_v27 = vshrl.u32 %v12336_v21, %v2763_v10  ;;  %v2772_v45 = vshrl.u32 %v12337_v34, %v2763_v10 }
 0x3fe   : > { %v2775_v43 = vshrl.u32 %v12338_v38, %v2763_v10  ;;  %v2778_v2 = vshrl.u32 %v12340_v54, %v2763_v10  ;;  %v2612_v37 = vsub.s32 32, %v9411_v55  ;;  %v2764_v5 = vshrl.u32 %v12334_v19, %v2763_v10 }
 0x3ff   : > { %v9428_v17 = vsub.s32 %v2912_v39, %v2915_v30  ;;  %v2767_v31 = vor.u32 %v2766_v59, %v2765_v58  ;;  %v2770_v18 = vor.u32 %v2769_v27, %v2768_v28  ;;  %v2773_v9 = vor.u32 %v2772_v45, %v2771_v61 }
 0x400   : > { %v2776_v35 = vor.u32 %v2775_v43, %v2774_v50  ;;  %v3070_v33 = vadd.s32 1, %v6199_v53  ;;  %v2779_v62 = vor.u32 %v2778_v2, %v2777_v51  ;;  %vm2780_vm3 = vcmp.lt.s32.totalorder %v2761_v20, 1 }
 0x401   : > { %v2918_v40 = vsub.s32 0, %v9428_v17  ;;  %v9435_v47 = vpop.eup %7101  ;;  %vm2782_vm4 = vcmp.lt.s32.totalorder %v2761_v20, 3  ;;  %vm2783_vm8 = vcmp.lt.s32.totalorder %v2761_v20, 4  ;;  %v2788_v30 = vsel %vm2780_vm3, %v2767_v31, %v2770_v18 }
 0x402   : > { %12470 = vst [vmem:[#allocation14_spill] sm:$0xff] %v9435_v47  ;;  %v2785_v58 = vsel %vm2783_vm8, %v2773_v9, 2102212464  ;;  %v2789_v46 = vsel %vm2783_vm8, %v2776_v35, 920167782  ;;  %v2617_v59 = vadd.s32 127, %v2616_v0  ;;  %v2792_v27 = vsel %vm2780_vm3, %v2770_v18, %v2773_v9 }
 0x403   : > { %v6192_v39 = vmin.u32 %v2918_v40, %v9428_v17  ;;  %vm2781_vm6 = vcmp.lt.s32.totalorder %v2761_v20, 2  ;;  %v2790_v28 = vsel %vm2782_vm4, %v2773_v9, %v2789_v46  ;;  %v2784_v45 = vsel %vm2780_vm3, %v2764_v5, %v2767_v31 }
 0x404   : > { %v2791_v10 = vsel %vm2781_vm6, %v2788_v30, %v2790_v28  ;;  %v2793_v53 = vsel %vm2783_vm8, %v2779_v62, 1326507024  ;;  %v2786_v50 = vsel %vm2782_vm4, %v2770_v18, %v2785_v58  ;;  %v2614_v40 = vshrl.u32 %v2596_v56, %v2612_v37 }
 0x405   : > { %v2920_v61 = vclz %v6192_v39  ;;  %v2794_v43 = vsel %vm2782_vm4, %v2776_v35, %v2793_v53  ;;  %v9440_v2 = vmul.u32.u64.low %v9405_v12, %v2791_v10  ;;  %v9441_v51 = vmul.u32.u64.high %v9405_v12, %v2791_v10, %v9440_v2 }
 0x406   : > { %v2795_v15 = vsel %vm2781_vm6, %v2792_v27, %v2794_v43  ;;  %vm3071_vm5 = vcmp.gt.s32.totalorder %v3070_v33, 0  ;;  %v2960_v31 = vshrl.u32 %v2959_v42, 23  ;;  %v2618_v39 = vshll.u32 %v2617_v59, 23 }
 0x407   : > { %v6193_v6 = vadd.s32 4294967294, %v2920_v61  ;;  %v9446_v0 = vmul.u32.u64.low %v9405_v12, %v2795_v15  ;;  %v9447_v9 = vmul.u32.u64.high %v9405_v12, %v2795_v15, %v9446_v0  ;;  %v3072_v5 = vsel %vm3071_vm5, %v3070_v33, 0 }
 0x408   : > { %v2787_v62 = vsel %vm2781_vm6, %v2784_v45, %v2786_v50  ;;  %v3074_v18 = vand.u32 31, %v3072_v5  ;;  %v2613_v37 = vshll.u32 %v9358_v32, %v9411_v55  ;;  %v2806_v58 = vadd.s32 1, %v9441_v51 }
 0x409   : > { %vm6194_vm7 = vcmp.lt.s32.totalorder %v6193_v6, 0  ;;  %v2908_v15 = vadd.s32 %v9366_v57, %v9371_v3  ;;  %v12471_v30 = vor.u32 8388608, %v9393_v24  ;;  %v2803_v59 = vmul.u32 %v9405_v12, %v2787_v62 }
 0x40a   : > { %v9453_v56 = vsel %vm6194_vm7, 0, %v6193_v6  ;;  %v3075_v42 = vsub.s32 32, %v3074_v18  ;;  %v9463_v46 = vor.u32 %v2614_v40, %v2613_v37  ;;  %vm2805_vm1 = vc.u32 %v9447_v9, %v9440_v2 }
 0x40b   : > { %v2928_v33 = vsub.s32 4294967266, %v9453_v56  ;;  %v9461_v20 = vshll.u32 %v12471_v30, 8  ;;  %v6195_v6 = vadd.s32 4294967169, %v2960_v31  ;;  %v9468_v32 = vor.u32 4788187, %v2618_v39 }
 0x40c   : > { %v2807_v55 = vsel %vm2805_vm1, %v2806_v58, %v9441_v51  ;;  %v3073_v57 = vshrl.u32 %v3072_v5, 5  ;;  %v12472_v3 = vand.u32 2147483647, %v9384_v8  ;;  %v3077_v27 = vshll.u32 %v12334_v19, %v3074_v18 }
 0x40d   : > { %v2808_v24 = vadd.s32 %v2807_v55, %v2803_v59  ;;  %v3078_v61 = vshrl.u32 %v12335_v52, %v3075_v42  ;;  %v3081_v12 = vshrl.u32 %v12336_v21, %v3075_v42  ;;  %v2929_v45 = vadd.s32 127, %v2928_v33 }
 0x40e   : > { %v9473_v28 = vand.u32 8388607, %v12472_v3  ;;  %v3080_v10 = vshll.u32 %v12335_v52, %v3074_v18  ;;  %v3083_v53 = vshll.u32 %v12336_v21, %v3074_v18  ;;  %v3084_v50 = vshrl.u32 %v12337_v34, %v3075_v42 }
 0x40f   : > { %v2809_v43 = vadd.s32 536870912, %v2808_v24  ;;  %v3086_v51 = vshll.u32 %v12337_v34, %v3074_v18  ;;  %v3087_v40 = vshrl.u32 %v12338_v38, %v3075_v42  ;;  %v2966_v0 = vadd.s32 1, %v6195_v6 }
 0x410   : > { %v2924_v5 = vsub.s32 32, %v9453_v56  ;;  %v3079_v31 = vor.u32 %v3078_v61, %v3077_v27  ;;  %v3082_v39 = vor.u32 %v3081_v12, %v3080_v10  ;;  %v3085_v62 = vor.u32 %v3084_v50, %v3083_v53  ;;  %v9492_v53 = vpop.f32.mrb[14].mxu1 }
 0x411   : > { %v9484_v37 = vshrl.u32 %v2809_v43, 30  ;;  %v3088_v58 = vor.u32 %v3087_v40, %v3086_v51  ;;  %v3089_v33 = vshll.u32 %v12338_v38, %v3074_v18  ;;  %v3090_v30 = vshrl.u32 %v12340_v54, %v3075_v42 }
 0x412   : > { %v2930_v59 = vshll.u32 %v2929_v45, 23  ;;  %v3076_v55 = vshrl.u32 %v12334_v19, %v3075_v42  ;;  %vm3092_vm15 = vcmp.lt.s32.totalorder %v3073_v57, 1  ;;  %vm3095_vm2 = vcmp.lt.s32.totalorder %v3073_v57, 4 }
 0x413   : > { %12473 = vst [vmem:[#allocation18_spill] sm:$0xff] %v9484_v37  ;;  %v2811_v3 = vshll.u32 %v9484_v37, 30  ;;  %v3091_v6 = vor.u32 %v3090_v30, %v3089_v33  ;;  %vm3093_vm13 = vcmp.lt.s32.totalorder %v3073_v57, 2  ;;  %v3097_v27 = vsel %vm3095_vm2, %v3085_v62, 2102212464 }
 0x414   : > { %vm3094_vm11 = vcmp.lt.s32.totalorder %v3073_v57, 3  ;;  %v3096_v61 = vsel %vm3092_vm15, %v3076_v55, %v3079_v31  ;;  %v3100_v12 = vsel %vm3092_vm15, %v3079_v31, %v3082_v39  ;;  %v3101_v10 = vsel %vm3095_vm2, %v3088_v58, 920167782 }
 0x415   : > { %v9494_v18 = vsub.s32 %v2808_v24, %v2811_v3  ;;  %v3098_v45 = vsel %vm3094_vm11, %v3082_v39, %v3097_v27  ;;  %v3102_v50 = vsel %vm3094_vm11, %v3085_v62, %v3101_v10  ;;  %v3104_v42 = vsel %vm3092_vm15, %v3082_v39, %v3085_v62 }
 0x416   : > { %v2925_v43 = vshll.u32 %v9428_v17, %v9453_v56  ;;  %v2926_v51 = vshrl.u32 %v2908_v15, %v2924_v5  ;;  %v3103_v40 = vsel %vm3093_vm13, %v3100_v12, %v3102_v50  ;;  %v3105_v33 = vsel %vm3095_vm2, %v3091_v6, 1326507024 }
 0x417   : > { %v2814_v30 = vsub.s32 0, %v9494_v18  ;;  %v3106_v31 = vsel %vm3094_vm11, %v3088_v58, %v3105_v33  ;;  %v9502_v55 = vmul.u32.u64.low %v9461_v20, %v3103_v40  ;;  %v9503_v35 = vmul.u32.u64.high %v9461_v20, %v3103_v40, %v9502_v55 }
 0x418   : > { %v9506_v24 = vor.u32 4788187, %v2930_v59  ;;  %v3099_v39 = vsel %vm3093_vm13, %v3096_v61, %v3098_v45  ;;  %v3107_v62 = vsel %vm3093_vm13, %v3104_v42, %v3106_v31  ;;  %vm2967_vm0 = vcmp.gt.s32.totalorder %v2966_v0, 0  ;;  %v9520_v59 = vld [vmem:[%s12139_s4] ss:$0 sm:$0xff] }
 0x419   : > { %v6188_v17 = vmin.u32 %v2814_v30, %v9494_v18  ;;  %v9512_v56 = vmul.u32.u64.low %v9461_v20, %v3107_v62  ;;  %v9513_v15 = vmul.u32.u64.high %v9461_v20, %v3107_v62, %v9512_v56  ;;  %v2968_v5 = vsel %vm2967_vm0, %v2966_v0, 0 }
 0x41a   : > { %v2970_v6 = vand.u32 31, %v2968_v5  ;;  %v9524_v57 = vadd.f32 %v9520_v59, %v9134_v16  ;;  %v9526_v27 = vor.u32 %v2926_v51, %v2925_v43  ;;  %v2804_v61 = vadd.s32 %v9440_v2, %v9447_v9 }
 0x41b   : > { %v2816_v0 = vclz %v6188_v17  ;;  %v3118_v12 = vadd.s32 1, %v9503_v35  ;;  %v3115_v45 = vmul.u32 %v9461_v20, %v3099_v39  ;;  %v2964_v50 = vor.u32 8388608, %v9473_v28 }
 0x41c   : > { %12474 = vst [vmem:[#allocation26_spill] sm:$0xff] %v9524_v57  ;;  %v2971_v42 = vsub.s32 32, %v2970_v6  ;;  %vm3117_vm9 = vc.u32 %v9513_v15, %v9502_v55  ;;  %v2969_v16 = vshrl.u32 %v2968_v5, 5  ;;  %v2973_v43 = vshll.u32 %v12334_v19, %v2970_v6 }
 0x41d   : > { %v6189_v40 = vadd.s32 4294967294, %v2816_v0  ;;  %v3119_v51 = vsel %vm3117_vm9, %v3118_v12, %v9503_v35  ;;  %v2976_v9 = vshll.u32 %v12335_v52, %v2970_v6  ;;  %v2979_v62 = vshll.u32 %v12336_v21, %v2970_v6 }
 0x41e   : > { %v2974_v2 = vshrl.u32 %v12335_v52, %v2971_v42  ;;  %v2977_v33 = vshrl.u32 %v12336_v21, %v2971_v42  ;;  %v3120_v20 = vadd.s32 %v3119_v51, %v3115_v45  ;;  %v2980_v28 = vshrl.u32 %v12337_v34, %v2971_v42 }
 0x41f   : > { %vm6190_vm14 = vcmp.lt.s32.totalorder %v6189_v40, 0  ;;  %v2983_v30 = vshrl.u32 %v12338_v38, %v2971_v42  ;;  %v2982_v17 = vshll.u32 %v12337_v34, %v2970_v6  ;;  %v2985_v3 = vshll.u32 %v12338_v38, %v2970_v6 }
 0x420   : > { %v2819_v31 = vsel %vm6190_vm14, 0, %v6189_v40  ;;  %v2975_v39 = vor.u32 %v2974_v2, %v2973_v43  ;;  %v3121_v5 = vadd.s32 536870912, %v3120_v20  ;;  %v2978_v0 = vor.u32 %v2977_v33, %v2976_v9  ;;  %v9553_v9 = vpop.f32.mrb[15].mxu1 }
 0x421   : > { %v2820_v56 = vsub.s32 32, %v2819_v31  ;;  %v2824_v35 = vsub.s32 4294967266, %v2819_v31  ;;  %v2981_v12 = vor.u32 %v2980_v28, %v2979_v62  ;;  %v2984_v10 = vor.u32 %v2983_v30, %v2982_v17 }
 0x422   : > { %v2986_v45 = vshrl.u32 %v12340_v54, %v2971_v42  ;;  %v9547_v58 = vshrl.u32 %v3121_v5, 30  ;;  %v3004_v37 = vshll.u32 %v2964_v50, 8  ;;  %v2821_v43 = vshll.u32 %v9494_v18, %v2819_v31 }
 0x423   : > { %v2825_v51 = vadd.s32 127, %v2824_v35  ;;  %v2972_v2 = vshrl.u32 %v12334_v19, %v2971_v42  ;;  %v3271_v47 = vand.u32 2139095040, %v9524_v57  ;;  %v2822_v33 = vshrl.u32 %v2804_v61, %v2820_v56 }
 0x424   : > { %12475 = vst [vmem:[#allocation10_spill] sm:$0xff] %v9547_v58  ;;  %v2987_v13 = vor.u32 %v2986_v45, %v2985_v3  ;;  %v3123_v6 = vshll.u32 %v9547_v58, 30  ;;  %vm2988_vm3 = vcmp.lt.s32.totalorder %v2969_v16, 1  ;;  %vm2991_vm4 = vcmp.lt.s32.totalorder %v2969_v16, 4 }
 0x425   : > { %vm2989_vm8 = vcmp.lt.s32.totalorder %v2969_v16, 2  ;;  %v2993_v28 = vsel %vm2991_vm4, %v2981_v12, 2102212464  ;;  %v2996_v30 = vsel %vm2988_vm3, %v2975_v39, %v2978_v0  ;;  %v2997_v50 = vsel %vm2991_vm4, %v2984_v10, 920167782 }
 0x426   : > { %v2826_v62 = vshll.u32 %v2825_v51, 23  ;;  %v9556_v17 = vsub.s32 %v3120_v20, %v3123_v6  ;;  %vm2990_vm6 = vcmp.lt.s32.totalorder %v2969_v16, 3  ;;  %v3000_v18 = vsel %vm2988_vm3, %v2978_v0, %v2981_v12 }
 0x427   : > { %v2992_v42 = vsel %vm2988_vm3, %v2972_v2, %v2975_v39  ;;  %v2998_v3 = vsel %vm2990_vm6, %v2981_v12, %v2997_v50  ;;  %v3001_v31 = vsel %vm2991_vm4, %v2987_v13, 1326507024  ;;  %v3272_v35 = vshrl.u32 %v3271_v47, 23 }
 0x428   : > { %v3126_v5 = vsub.s32 0, %v9556_v17  ;;  %v2994_v61 = vsel %vm2990_vm6, %v2978_v0, %v2993_v28  ;;  %v2999_v56 = vsel %vm2989_vm8, %v2996_v30, %v2998_v3  ;;  %v3002_v45 = vsel %vm2990_vm6, %v2984_v10, %v3001_v31 }
 0x429   : > { %v3003_v40 = vsel %vm2989_vm8, %v3000_v18, %v3002_v45  ;;  %v9561_v58 = vmul.u32.u64.low %v3004_v37, %v2999_v56  ;;  %v9562_v26 = vmul.u32.u64.high %v3004_v37, %v2999_v56, %v9561_v58  ;;  %v6207_v20 = vadd.s32 4294967169, %v3272_v35 }
 0x42a   : > { %v2827_v51 = vor.u32 4788187, %v2826_v62  ;;  %v6200_v6 = vmin.u32 %v3126_v5, %v9556_v17  ;;  %v9566_v39 = vmul.u32.u64.low %v3004_v37, %v3003_v40  ;;  %v9567_v12 = vmul.u32.u64.high %v3004_v37, %v3003_v40, %v9566_v39 }
 0x42b   : > { %v2934_v47 = vcvt.s32.f32 %v9526_v27  ;;  %v2995_v13 = vsel %vm2989_vm8, %v2992_v42, %v2994_v61  ;;  %v12476_v0 = vand.u32 2147483647, %v9524_v57  ;;  %v3278_v2 = vadd.s32 1, %v6207_v20 }
 0x42c   : > { %v2416_v28 = vxor.u32 2147483648, %v9398_v63  ;;  %v12477_v30 = vand.u32 2147483647, %v9402_v44  ;;  %v12478_v50 = vcvt.s32.f32 %v9388_v4  ;;  %v2823_v18 = vor.u32 %v2822_v33, %v2821_v43 }
 0x42d   : > { %v3275_v10 = vand.u32 8388607, %v12476_v0  ;;  %v3128_v3 = vclz %v6200_v6  ;;  %v12479_v40 = vand.u32 2147483647, %v9468_v32  ;;  %v12480_v27 = vcvt.s32.f32 %v9463_v46 }
 0x42e   : > { %v9578_v62 = vmul.f32 %v12478_v50, %v12477_v30  ;;  %v12481_v42 = vand.u32 2147483647, %v9506_v24  ;;  %v3014_v35 = vadd.s32 1, %v9562_v26  ;;  %vm3279_vm5 = vcmp.gt.s32.totalorder %v3278_v2, 0 }
 0x42f   : > { %v9584_v16 = vmul.f32 %v12480_v27, %v12479_v40  ;;  %v2828_v44 = vand.u32 2147483647, %v2827_v51  ;;  %v6201_v5 = vadd.s32 4294967294, %v3128_v3  ;;  %v3011_v4 = vmul.u32 %v3004_v37, %v2995_v13 }
 0x430   : > { %v9588_v31 = vmul.f32 %v2934_v47, %v12481_v42  ;;  %vm3013_vm7 = vc.u32 %v9567_v12, %v9561_v58  ;;  %v3276_v32 = vor.u32 8388608, %v3275_v10  ;;  %v3280_v33 = vsel %vm3279_vm5, %v3278_v2, 0 }
 0x431   : > { %v3015_v43 = vsel %vm3013_vm7, %v3014_v35, %v9562_v26  ;;  %v9596_v46 = vadd.f32 %v9520_v59, %v9171_v29  ;;  %v2830_v24 = vcvt.s32.f32 %v2823_v18  ;;  %vm6202_vm1 = vcmp.lt.s32.totalorder %v6201_v5, 0 }
 0x432   : > { %v3016_v61 = vadd.s32 %v3015_v43, %v3011_v4  ;;  %v3282_v56 = vand.u32 31, %v3280_v33  ;;  %v2728_v45 = vxor.u32 2147483648, %v9578_v62  ;;  %v2624_v20 = vxor.u32 2147483648, %v9584_v16 }
 0x433   : > { %v2936_v37 = vxor.u32 2147483648, %v9588_v31  ;;  %v9601_v51 = vsel %vm6202_vm1, 0, %v6201_v5  ;;  %v9603_v6 = vmul.f32 %v2830_v24, %v2828_v44  ;;  %v3116_v26 = vadd.s32 %v9502_v55, %v9513_v15 }
 0x434   : > { %v3017_v39 = vadd.s32 536870912, %v3016_v61  ;;  %v9609_v29 = vadd.f32 %v9520_v59, %v9246_v11  ;;  %v9611_v47 = vshrl.u32 %v3280_v33, 5  ;;  %v3283_v13 = vsub.s32 32, %v3282_v56 }
 0x435   : > { %v9613_v0 = vshll.u32 %v3276_v32, 8  ;;  %v12235_v10 = vand.u32 2147483647, %v9596_v46  ;;  %v3136_v2 = vsub.s32 4294967266, %v9601_v51  ;;  %v3285_v50 = vshll.u32 %v12334_v19, %v3282_v56 }
 0x436   : > { %v9617_v30 = vshrl.u32 %v3017_v39, 30  ;;  %v3288_v55 = vshll.u32 %v12335_v52, %v3282_v56  ;;  %v3286_v15 = vshrl.u32 %v12335_v52, %v3283_v13  ;;  %v3289_v11 = vshrl.u32 %v12336_v21, %v3283_v13 }
 0x437   : > { %v3291_v18 = vshll.u32 %v12336_v21, %v3282_v56  ;;  %v3292_v3 = vshrl.u32 %v12337_v34, %v3283_v13  ;;  %v3294_v27 = vshll.u32 %v12337_v34, %v3282_v56  ;;  %v3295_v42 = vshrl.u32 %v12338_v38, %v3283_v13 }
 0x438   : > { %12482 = vst [vmem:[#allocation17_spill] sm:$0xff] %v9617_v30  ;;  %v3019_v40 = vshll.u32 %v9617_v30, 30  ;;  %v3167_v35 = vand.u32 2139095040, %v9596_v46  ;;  %v3287_v44 = vor.u32 %v3286_v15, %v3285_v50  ;;  %v3290_v5 = vor.u32 %v3289_v11, %v3288_v55 }
 0x439   : > { %v3293_v4 = vor.u32 %v3292_v3, %v3291_v18  ;;  %v9631_v43 = vand.u32 8388607, %v12235_v10  ;;  %vm2334_vm15 = vcmp.lt.s32.totalorder %v9089_v22, 0  ;;  %vm2646_vm2 = vcmp.lt.s32.totalorder %v9098_v48, 0 }
 0x43a   : > { %vm2542_vm13 = vcmp.lt.s32.totalorder %v9113_v49, 0  ;;  %v3132_v32 = vsub.s32 32, %v9601_v51  ;;  %v3137_v33 = vadd.s32 127, %v3136_v2  ;;  %v9637_v24 = vsub.s32 %v3016_v61, %v3019_v40 }
 0x43b   : > { %v3296_v39 = vor.u32 %v3295_v42, %v3294_v27  ;;  %vm2854_vm11 = vcmp.lt.s32.totalorder %v9261_v23, 0  ;;  %v3133_v50 = vshll.u32 %v9556_v17, %v9601_v51  ;;  %v3284_v55 = vshrl.u32 %v12334_v19, %v3283_v13 }
 0x43c   : > { %v3297_v15 = vshll.u32 %v12338_v38, %v3282_v56  ;;  %v3298_v11 = vshrl.u32 %v12340_v54, %v3283_v13  ;;  %v3022_v18 = vsub.s32 0, %v9637_v24  ;;  %vm3300_vm0 = vcmp.lt.s32.totalorder %v9611_v47, 1 }
 0x43d   : > { %vm3302_vm9 = vcmp.lt.s32.totalorder %v9611_v47, 3  ;;  %vm3303_vm14 = vcmp.lt.s32.totalorder %v9611_v47, 4  ;;  %v3308_v3 = vsel %vm3300_vm0, %v3287_v44, %v3290_v5  ;;  %v3138_v51 = vshll.u32 %v3137_v33, 23 }
 0x43e   : > { %v3299_v61 = vor.u32 %v3298_v11, %v3297_v15  ;;  %v3305_v2 = vsel %vm3303_vm14, %v3293_v4, 2102212464  ;;  %v3309_v17 = vsel %vm3303_vm14, %v3296_v39, 920167782  ;;  %v6196_v40 = vmin.u32 %v3022_v18, %v9637_v24 }
 0x43f   : > { %vm3301_vm3 = vcmp.lt.s32.totalorder %v9611_v47, 2  ;;  %v3310_v56 = vsel %vm3302_vm9, %v3293_v4, %v3309_v17  ;;  %v3134_v13 = vshrl.u32 %v3116_v26, %v3132_v32  ;;  %v3312_v42 = vsel %vm3300_vm0, %v3290_v5, %v3293_v4 }
 0x440   : > { %v3311_v27 = vsel %vm3301_vm3, %v3308_v3, %v3310_v56  ;;  %v3313_v15 = vsel %vm3303_vm14, %v3299_v61, 1326507024  ;;  %v3024_v11 = vclz %v6196_v40  ;;  %v3304_v10 = vsel %vm3300_vm0, %v3284_v55, %v3287_v44 }
 0x441   : > { %v3306_v33 = vsel %vm3302_vm9, %v3290_v5, %v3305_v2  ;;  %v3314_v18 = vsel %vm3302_vm9, %v3296_v39, %v3313_v15  ;;  %v9668_v32 = vmul.u32.u64.low %v9613_v0, %v3311_v27  ;;  %v9669_v3 = vmul.u32.u64.high %v9613_v0, %v3311_v27, %v9668_v32 }
 0x442   : > { %v3315_v26 = vsel %vm3301_vm3, %v3312_v42, %v3314_v18  ;;  %v3168_v4 = vshrl.u32 %v3167_v35, 23  ;;  %v3139_v61 = vor.u32 4788187, %v3138_v51  ;;  %v6197_v17 = vadd.s32 4294967294, %v3024_v11 }
 0x443   : > { %v9673_v40 = vmul.u32.u64.low %v9613_v0, %v3315_v26  ;;  %v9674_v44 = vmul.u32.u64.high %v9613_v0, %v3315_v26, %v9673_v40  ;;  %v9681_v5 = vsel %vm2334_vm15, %v2416_v28, %v9398_v63  ;;  %v9688_v39 = vsel %vm2646_vm2, %v2728_v45, %v9578_v62 }
 0x444   : > { %v9695_v35 = vsel %vm2542_vm13, %v2624_v20, %v9584_v16  ;;  %v6203_v55 = vadd.s32 4294967169, %v3168_v4  ;;  %v9702_v63 = vsel %vm2854_vm11, %v2936_v37, %v9588_v31  ;;  %v3135_v28 = vor.u32 %v3134_v13, %v3133_v50 }
 0x445   : > { %12483 = vst [vmem:[#allocation25_spill] sm:$0xff] %v9702_v63  ;;  %vm6198_vm4 = vcmp.lt.s32.totalorder %v6197_v17, 0  ;;  %v3307_v62 = vsel %vm3301_vm3, %v3304_v10, %v3306_v33  ;;  %v3326_v16 = vadd.s32 1, %v9669_v3  ;;  %v3140_v51 = vand.u32 2147483647, %v3139_v61 }
 0x446   : > { %v9707_v2 = vsel %vm6198_vm4, 0, %v6197_v17  ;;  %v3174_v20 = vadd.s32 1, %v6203_v55  ;;  %v3172_v56 = vor.u32 8388608, %v9631_v43  ;;  %v12236_v27 = vand.u32 2147483647, %v9609_v29 }
 0x447   : > { %v9714_v31 = vadd.f32 %v9520_v59, %v9285_v36  ;;  %v3323_v37 = vmul.u32 %v9613_v0, %v3307_v62  ;;  %vm3325_vm8 = vc.u32 %v9674_v44, %v9668_v32  ;;  %v3479_v47 = vand.u32 2139095040, %v9609_v29 }
 0x448   : > { %vm3175_vm6 = vcmp.gt.s32.totalorder %v3174_v20, 0  ;;  %v3142_v10 = vcvt.s32.f32 %v3135_v28  ;;  %v3032_v50 = vsub.s32 4294967266, %v9707_v2  ;;  %v3327_v13 = vsel %vm3325_vm8, %v3326_v16, %v9669_v3 }
 0x449   : > { %v3176_v43 = vsel %vm3175_vm6, %v3174_v20, 0  ;;  %v3012_v42 = vadd.s32 %v9561_v58, %v9567_v12  ;;  %v3328_v15 = vadd.s32 %v3327_v13, %v3323_v37  ;;  %v9726_v0 = vadd.f32 %v9520_v59, %v9361_v60 }
 0x44a   : > { %v3178_v36 = vand.u32 31, %v3176_v43  ;;  %v9728_v11 = vmul.f32 %v3142_v10, %v3140_v51  ;;  %v3028_v33 = vsub.s32 32, %v9707_v2  ;;  %v9731_v18 = vshll.u32 %v3172_v56, 8 }
 0x44b   : > { %v9735_v26 = vand.u32 8388607, %v12236_v27  ;;  %v3029_v3 = vshll.u32 %v9637_v24, %v9707_v2  ;;  %v3329_v58 = vadd.s32 536870912, %v3328_v15  ;;  %v3480_v4 = vshrl.u32 %v3479_v47, 23 }
 0x44c   : > { %v3179_v12 = vsub.s32 32, %v3178_v36  ;;  %v3033_v61 = vadd.s32 127, %v3032_v50  ;;  %v3177_v17 = vshrl.u32 %v3176_v43, 5  ;;  %v3181_v60 = vshll.u32 %v12334_v19, %v3178_v36 }
 0x44d   : > { %v3184_v40 = vshll.u32 %v12335_v52, %v3178_v36  ;;  %v9741_v55 = vshrl.u32 %v3329_v58, 30  ;;  %v3187_v16 = vshll.u32 %v12336_v21, %v3178_v36  ;;  %v3190_v24 = vshll.u32 %v12337_v34, %v3178_v36 }
 0x44e   : > { %v3182_v28 = vshrl.u32 %v12335_v52, %v3179_v12  ;;  %v3185_v62 = vshrl.u32 %v12336_v21, %v3179_v12  ;;  %v3188_v20 = vshrl.u32 %v12337_v34, %v3179_v12  ;;  %v3191_v2 = vshrl.u32 %v12338_v38, %v3179_v12 }
 0x44f   : > { %12484 = vst [vmem:[#allocation23_spill] sm:$0xff] %v9741_v55  ;;  %v3193_v51 = vshll.u32 %v12338_v38, %v3178_v36  ;;  %vm2750_vm5 = vcmp.lt.s32.totalorder %v9337_v25, 0  ;;  %v3331_v56 = vshll.u32 %v9741_v55, 30  ;;  %v3194_v10 = vshrl.u32 %v12340_v54, %v3179_v12 }
 0x450   : > { %v3183_v37 = vor.u32 %v3182_v28, %v3181_v60  ;;  %v3186_v47 = vor.u32 %v3185_v62, %v3184_v40  ;;  %v3030_v50 = vshrl.u32 %v3012_v42, %v3028_v33  ;;  %v3189_v13 = vor.u32 %v3188_v20, %v3187_v16 }
 0x451   : > { %v3192_v43 = vor.u32 %v3191_v2, %v3190_v24  ;;  %v6215_v58 = vadd.s32 4294967169, %v3480_v4  ;;  %v3034_v27 = vshll.u32 %v3033_v61, 23  ;;  %v9753_v45 = vsub.s32 %v3328_v15, %v3331_v56 }
 0x452   : > { %v3195_v30 = vor.u32 %v3194_v10, %v3193_v51  ;;  %vm3196_vm7 = vcmp.lt.s32.totalorder %v3177_v17, 1  ;;  %v3180_v63 = vshrl.u32 %v12334_v19, %v3179_v12  ;;  %vm3198_vm1 = vcmp.lt.s32.totalorder %v3177_v17, 3 }
 0x453   : > { %vm3199_vm0 = vcmp.lt.s32.totalorder %v3177_v17, 4  ;;  %v3204_v36 = vsel %vm3196_vm7, %v3183_v37, %v3186_v47  ;;  %v3334_v55 = vsub.s32 0, %v9753_v45  ;;  %v3208_v28 = vsel %vm3196_vm7, %v3186_v47, %v3189_v13 }
 0x454   : > { %v3201_v60 = vsel %vm3199_vm0, %v3189_v13, 2102212464  ;;  %v3205_v40 = vsel %vm3199_vm0, %v3192_v43, 920167782  ;;  %vm3197_vm9 = vcmp.lt.s32.totalorder %v3177_v17, 2  ;;  %v3200_v42 = vsel %vm3196_vm7, %v3180_v63, %v3183_v37 }
 0x455   : > { %v3206_v33 = vsel %vm3198_vm1, %v3189_v13, %v3205_v40  ;;  %v3209_v62 = vsel %vm3199_vm0, %v3195_v30, 1326507024  ;;  %v6208_v4 = vmin.u32 %v3334_v55, %v9753_v45  ;;  %v3202_v15 = vsel %vm3198_vm1, %v3186_v47, %v3201_v60 }
 0x456   : > { %v3207_v61 = vsel %vm3197_vm9, %v3204_v36, %v3206_v33  ;;  %v3210_v16 = vsel %vm3198_vm1, %v3192_v43, %v3209_v62  ;;  %v3375_v2 = vand.u32 2139095040, %v9714_v31  ;;  %v3486_v30 = vadd.s32 1, %v6215_v58 }
 0x457   : > { %v3211_v12 = vsel %vm3197_vm9, %v3208_v28, %v3210_v16  ;;  %v9761_v20 = vmul.u32.u64.low %v9731_v18, %v3207_v61  ;;  %v9762_v24 = vmul.u32.u64.high %v9731_v18, %v3207_v61, %v9761_v20  ;;  %v3336_v51 = vclz %v6208_v4 }
 0x458   : > { %v9767_v63 = vmul.u32.u64.low %v9731_v18, %v3211_v12  ;;  %v9768_v56 = vmul.u32.u64.high %v9731_v18, %v3211_v12, %v9767_v63  ;;  %v12485_v55 = vxor.u32 2147483648, %v9603_v6  ;;  %v3203_v10 = vsel %vm3197_vm9, %v3200_v42, %v3202_v15 }
 0x459   : > { %v3484_v13 = vor.u32 8388608, %v9735_v26  ;;  %v9780_v43 = vor.u32 %v3030_v50, %v3029_v3  ;;  %v9782_v36 = vor.u32 4788187, %v3034_v27  ;;  %v6209_v60 = vadd.s32 4294967294, %v3336_v51 }
 0x45a   : > { %v9775_v37 = vsel %vm2750_vm5, %v12485_v55, %v9603_v6  ;;  %vm3487_vm14 = vcmp.gt.s32.totalorder %v3486_v30, 0  ;;  %v3222_v58 = vadd.s32 1, %v9762_v24  ;;  %v12241_v28 = vand.u32 2147483647, %v9714_v31 }
 0x45b   : > { %12486 = vst [vmem:[#allocation34_spill] sm:$0xff] %v9775_v37  ;;  %v3488_v40 = vsel %vm3487_vm14, %v3486_v30, 0  ;;  %v3376_v33 = vshrl.u32 %v3375_v2, 23  ;;  %v3324_v6 = vadd.s32 %v9668_v32, %v9674_v44  ;;  %vm6210_vm3 = vcmp.lt.s32.totalorder %v6209_v60, 0 }
 0x45c   : > { %v3219_v17 = vmul.u32 %v9731_v18, %v3203_v10  ;;  %vm3221_vm4 = vc.u32 %v9768_v56, %v9761_v20  ;;  %v3339_v26 = vsel %vm6210_vm3, 0, %v6209_v60  ;;  %v3490_v3 = vand.u32 31, %v3488_v40 }
 0x45d   : > { %v3223_v27 = vsel %vm3221_vm4, %v3222_v58, %v9762_v24  ;;  %v9792_v50 = vshll.u32 %v3484_v13, 8  ;;  %v3036_v42 = vand.u32 2147483647, %v9782_v36  ;;  %v3038_v62 = vcvt.s32.f32 %v9780_v43 }
 0x45e   : > { %v3344_v4 = vsub.s32 4294967266, %v3339_v26  ;;  %v3224_v15 = vadd.s32 %v3223_v27, %v3219_v17  ;;  %v3340_v61 = vsub.s32 32, %v3339_v26  ;;  %v3491_v32 = vsub.s32 32, %v3490_v3 }
 0x45f   : > { %v6211_v44 = vadd.s32 4294967169, %v3376_v33  ;;  %v9798_v18 = vand.u32 8388607, %v12241_v28  ;;  %v3493_v12 = vshll.u32 %v12334_v19, %v3490_v3  ;;  %v3496_v24 = vshll.u32 %v12335_v52, %v3490_v3 }
 0x460   : > { %v3225_v16 = vadd.s32 536870912, %v3224_v15  ;;  %v3499_v2 = vshll.u32 %v12336_v21, %v3490_v3  ;;  %v3345_v51 = vadd.s32 127, %v3344_v4  ;;  %v3494_v63 = vshrl.u32 %v12335_v52, %v3491_v32 }
 0x461   : > { %v3497_v30 = vshrl.u32 %v12336_v21, %v3491_v32  ;;  %v3500_v55 = vshrl.u32 %v12337_v34, %v3491_v32  ;;  %v3489_v13 = vshrl.u32 %v3488_v40, 5  ;;  %v3502_v43 = vshll.u32 %v12337_v34, %v3490_v3 }
 0x462   : > { %v9806_v10 = vshrl.u32 %v3225_v16, 30  ;;  %v3503_v36 = vshrl.u32 %v12338_v38, %v3491_v32  ;;  %v3495_v60 = vor.u32 %v3494_v63, %v3493_v12  ;;  %v3382_v17 = vadd.s32 1, %v6211_v44 }
 0x463   : > { %v3498_v58 = vor.u32 %v3497_v30, %v3496_v24  ;;  %v3501_v33 = vor.u32 %v3500_v55, %v3499_v2  ;;  %v3341_v27 = vshll.u32 %v9753_v45, %v3339_v26  ;;  %v3342_v4 = vshrl.u32 %v3324_v6, %v3340_v61 }
 0x464   : > { %12487 = vst [vmem:[#allocation31_spill] sm:$0xff] %v9806_v10  ;;  %v3227_v28 = vshll.u32 %v9806_v10, 30  ;;  %v3504_v47 = vor.u32 %v3503_v36, %v3502_v43  ;;  %v3346_v23 = vshll.u32 %v3345_v51, 23  ;;  %v3492_v37 = vshrl.u32 %v12334_v19, %v3491_v32 }
 0x465   : > { %v3505_v16 = vshll.u32 %v12338_v38, %v3490_v3  ;;  %v3506_v40 = vshrl.u32 %v12340_v54, %v3491_v32  ;;  %vm3508_vm8 = vcmp.lt.s32.totalorder %v3489_v13, 1  ;;  %vm3510_vm6 = vcmp.lt.s32.totalorder %v3489_v13, 3 }
 0x466   : > { %v9815_v25 = vsub.s32 %v3224_v15, %v3227_v28  ;;  %vm3511_vm7 = vcmp.lt.s32.totalorder %v3489_v13, 4  ;;  %v3516_v45 = vsel %vm3508_vm8, %v3495_v60, %v3498_v58  ;;  %v3343_v26 = vor.u32 %v3342_v4, %v3341_v27 }
 0x467   : > { %v3507_v12 = vor.u32 %v3506_v40, %v3505_v16  ;;  %v3513_v44 = vsel %vm3511_vm7, %v3501_v33, 2102212464  ;;  %v3517_v6 = vsel %vm3511_vm7, %v3504_v47, 920167782  ;;  %vm3509_vm1 = vcmp.lt.s32.totalorder %v3489_v13, 2 }
 0x468   : > { %v3230_v61 = vsub.s32 0, %v9815_v25  ;;  %v3518_v24 = vsel %vm3510_vm6, %v3501_v33, %v3517_v6  ;;  %v3347_v2 = vor.u32 4788187, %v3346_v23  ;;  %v3520_v28 = vsel %vm3508_vm8, %v3498_v58, %v3501_v33 }
 0x469   : > { %v3519_v3 = vsel %vm3509_vm1, %v3516_v45, %v3518_v24  ;;  %v3521_v15 = vsel %vm3511_vm7, %v3507_v12, 1326507024  ;;  %v3512_v51 = vsel %vm3508_vm8, %v3492_v37, %v3495_v60  ;;  %v3514_v63 = vsel %vm3510_vm6, %v3498_v58, %v3513_v44 }
 0x46a   : > { %v6204_v32 = vmin.u32 %v3230_v61, %v9815_v25  ;;  %v3522_v30 = vsel %vm3510_vm6, %v3504_v47, %v3521_v15  ;;  %v9828_v43 = vmul.u32.u64.low %v9792_v50, %v3519_v3  ;;  %v9829_v36 = vmul.u32.u64.high %v9792_v50, %v3519_v3, %v9828_v43 }
 0x46b   : > { %v3523_v55 = vsel %vm3509_vm1, %v3520_v28, %v3522_v30  ;;  %vm3383_vm0 = vcmp.gt.s32.totalorder %v3382_v17, 0  ;;  %v9832_v23 = vmul.f32 %v3038_v62, %v3036_v42  ;;  %v3348_v37 = vand.u32 2147483647, %v3347_v2 }
 0x46c   : > { %v3232_v33 = vclz %v6204_v32  ;;  %v9835_v27 = vmul.u32.u64.low %v9792_v50, %v3523_v55  ;;  %v9836_v4 = vmul.u32.u64.high %v9792_v50, %v3523_v55, %v9835_v27  ;;  %v3515_v60 = vsel %vm3509_vm1, %v3512_v51, %v3514_v63 }
 0x46d   : > { %v3380_v47 = vor.u32 8388608, %v9798_v18  ;;  %v3384_v58 = vsel %vm3383_vm0, %v3382_v17, 0  ;;  %v12246_v12 = vand.u32 2147483647, %v9726_v0  ;;  %v3687_v44 = vand.u32 2139095040, %v9726_v0 }
 0x46e   : > { %v6205_v16 = vadd.s32 4294967294, %v3232_v33  ;;  %v3386_v40 = vand.u32 31, %v3384_v58  ;;  %v3350_v45 = vcvt.s32.f32 %v3343_v26  ;;  %v3220_v42 = vadd.s32 %v9761_v20, %v9768_v56 }
 0x46f   : > { %v3534_v62 = vadd.s32 1, %v9829_v36  ;;  %v9847_v6 = vadd.f32 %v9520_v59, %v9421_v14  ;;  %v3531_v18 = vmul.u32 %v9792_v50, %v3515_v60  ;;  %vm3533_vm14 = vc.u32 %v9836_v4, %v9828_v43 }
 0x470   : > { %vm6206_vm9 = vcmp.lt.s32.totalorder %v6205_v16, 0  ;;  %v3387_v13 = vsub.s32 32, %v3386_v40  ;;  %v9852_v17 = vmul.f32 %v3350_v45, %v3348_v37  ;;  %v9855_v24 = vshll.u32 %v3380_v47, 8 }
 0x471   : > { %v3235_v61 = vsel %vm6206_vm9, 0, %v6205_v16  ;;  %v3535_v26 = vsel %vm3533_vm14, %v3534_v62, %v9829_v36  ;;  %v3688_v2 = vshrl.u32 %v3687_v44, 23  ;;  %v9859_v14 = vand.u32 8388607, %v12246_v12 }
 0x472   : > { %v3240_v20 = vsub.s32 4294967266, %v3235_v61  ;;  %v3536_v56 = vadd.s32 %v3535_v26, %v3531_v18  ;;  %v3389_v50 = vshll.u32 %v12334_v19, %v3386_v40  ;;  %v3390_v3 = vshrl.u32 %v12335_v52, %v3387_v13 }
 0x473   : > { %v3392_v28 = vshll.u32 %v12335_v52, %v3386_v40  ;;  %v3393_v15 = vshrl.u32 %v12336_v21, %v3387_v13  ;;  %v3236_v32 = vsub.s32 32, %v3235_v61  ;;  %v3396_v30 = vshrl.u32 %v12337_v34, %v3387_v13 }
 0x474   : > { %v3241_v51 = vadd.s32 127, %v3240_v20  ;;  %v3537_v63 = vadd.s32 536870912, %v3536_v56  ;;  %v3385_v55 = vshrl.u32 %v3384_v58, 5  ;;  %v3395_v36 = vshll.u32 %v12336_v21, %v3386_v40 }
 0x475   : > { %v3398_v33 = vshll.u32 %v12337_v34, %v3386_v40  ;;  %v3399_v27 = vshrl.u32 %v12338_v38, %v3387_v13  ;;  %v3391_v47 = vor.u32 %v3390_v3, %v3389_v50  ;;  %v3394_v16 = vor.u32 %v3393_v15, %v3392_v28 }
 0x476   : > { %v3242_v37 = vshll.u32 %v3241_v51, 23  ;;  %v9869_v60 = vshrl.u32 %v3537_v63, 30  ;;  %vm12262_vm3 = vcmp.lt.s32.totalorder %v9352_v41, 0  ;;  %v3397_v44 = vor.u32 %v3396_v30, %v3395_v36 }
 0x477   : > { %v3400_v45 = vor.u32 %v3399_v27, %v3398_v33  ;;  %v3401_v62 = vshll.u32 %v12338_v38, %v3386_v40  ;;  %v3402_v18 = vshrl.u32 %v12340_v54, %v3387_v13  ;;  %v3237_v58 = vshll.u32 %v9815_v25, %v3235_v61 }
 0x478   : > { %12488 = vst [vmem:[#allocation16_spill] sm:$0xff] %v9869_v60  ;;  %v3238_v26 = vshrl.u32 %v3220_v42, %v3236_v32  ;;  %v3539_v20 = vshll.u32 %v9869_v60, 30  ;;  %v6223_v12 = vadd.s32 4294967169, %v3688_v2  ;;  %v3243_v10 = vor.u32 4788187, %v3242_v37 }
 0x479   : > { %v3388_v51 = vshrl.u32 %v12334_v19, %v3387_v13  ;;  %v3403_v63 = vor.u32 %v3402_v18, %v3401_v62  ;;  %vm3404_vm4 = vcmp.lt.s32.totalorder %v3385_v55, 1  ;;  %vm3406_vm8 = vcmp.lt.s32.totalorder %v3385_v55, 3 }
 0x47a   : > { %v9877_v50 = vsub.s32 %v3536_v56, %v3539_v20  ;;  %vm3407_vm6 = vcmp.lt.s32.totalorder %v3385_v55, 4  ;;  %v3412_v3 = vsel %vm3404_vm4, %v3391_v47, %v3394_v16  ;;  %v3416_v15 = vsel %vm3404_vm4, %v3394_v16, %v3397_v44 }
 0x47b   : > { %v3409_v28 = vsel %vm3407_vm6, %v3397_v44, 2102212464  ;;  %v3413_v40 = vsel %vm3407_vm6, %v3400_v45, 920167782  ;;  %v3417_v30 = vsel %vm3407_vm6, %v3403_v63, 1326507024  ;;  %v3239_v36 = vor.u32 %v3238_v26, %v3237_v58 }
 0x47c   : > { %v3542_v25 = vsub.s32 0, %v9877_v50  ;;  %vm3405_vm7 = vcmp.lt.s32.totalorder %v3385_v55, 2  ;;  %v3414_v42 = vsel %vm3406_vm8, %v3397_v44, %v3413_v40  ;;  %v3408_v61 = vsel %vm3404_vm4, %v3388_v51, %v3391_v47 }
 0x47d   : > { %v3415_v13 = vsel %vm3405_vm7, %v3412_v3, %v3414_v42  ;;  %v3418_v2 = vsel %vm3406_vm8, %v3400_v45, %v3417_v30  ;;  %v3694_v56 = vadd.s32 1, %v6223_v12  ;;  %v3244_v32 = vand.u32 2147483647, %v3243_v10 }
 0x47e   : > { %v6216_v33 = vmin.u32 %v3542_v25, %v9877_v50  ;;  %v3410_v27 = vsel %vm3406_vm8, %v3394_v16, %v3409_v28  ;;  %v3419_v37 = vsel %vm3405_vm7, %v3416_v15, %v3418_v2  ;;  %v12489_v47 = vxor.u32 2147483648, %v9728_v11 }
 0x47f   : > { %v9887_v62 = vmul.u32.u64.low %v9855_v24, %v3419_v37  ;;  %v9888_v18 = vmul.u32.u64.high %v9855_v24, %v3419_v37, %v9887_v62  ;;  %v9891_v58 = vmul.u32.u64.low %v9855_v24, %v3415_v13  ;;  %v9892_v44 = vmul.u32.u64.high %v9855_v24, %v3415_v13, %v9891_v58 }
 0x480   : > { %v9900_v10 = vsel %vm12262_vm3, %v12489_v47, %v9728_v11  ;;  %v3544_v12 = vclz %v6216_v33  ;;  %v3692_v16 = vor.u32 8388608, %v9859_v14  ;;  %vm3695_vm1 = vcmp.gt.s32.totalorder %v3694_v56, 0 }
 0x481   : > { %v3246_v26 = vcvt.s32.f32 %v3239_v36  ;;  %v3411_v20 = vsel %vm3405_vm7, %v3408_v61, %v3410_v27  ;;  %v3696_v51 = vsel %vm3695_vm1, %v3694_v56, 0  ;;  %v12249_v40 = vand.u32 2147483647, %v9847_v6 }
 0x482   : > { %v6217_v3 = vadd.s32 4294967294, %v3544_v12  ;;  %v3698_v28 = vand.u32 31, %v3696_v51  ;;  %v3532_v11 = vadd.s32 %v9828_v43, %v9836_v4  ;;  %vm3429_vm0 = vc.u32 %v9888_v18, %v9891_v58 }
 0x483   : > { %v9907_v15 = vmul.f32 %v3246_v26, %v3244_v32  ;;  %v3430_v14 = vadd.s32 1, %v9892_v44  ;;  %v3427_v55 = vmul.u32 %v9855_v24, %v3411_v20  ;;  %v9915_v36 = vshll.u32 %v3692_v16, 8 }
 0x484   : > { %vm6218_vm9 = vcmp.lt.s32.totalorder %v6217_v3, 0  ;;  %v3699_v30 = vsub.s32 32, %v3698_v28  ;;  %v3697_v61 = vshrl.u32 %v3696_v51, 5  ;;  %v3583_v13 = vand.u32 2139095040, %v9847_v6 }
 0x485   : > { %v9917_v25 = vsel %vm6218_vm9, 0, %v6217_v3  ;;  %v3431_v42 = vsel %vm3429_vm0, %v3430_v14, %v9892_v44  ;;  %v3701_v2 = vshll.u32 %v12334_v19, %v3698_v28  ;;  %v3704_v56 = vshll.u32 %v12335_v52, %v3698_v28 }
 0x486   : > { %v3552_v43 = vsub.s32 4294967266, %v9917_v25  ;;  %v3432_v4 = vadd.s32 %v3431_v42, %v3427_v55  ;;  %v3702_v32 = vshrl.u32 %v12335_v52, %v3699_v30  ;;  %v3705_v24 = vshrl.u32 %v12336_v21, %v3699_v30 }
 0x487   : > { %v3707_v33 = vshll.u32 %v12336_v21, %v3698_v28  ;;  %v3708_v27 = vshrl.u32 %v12337_v34, %v3699_v30  ;;  %v3548_v37 = vsub.s32 32, %v9917_v25  ;;  %v3710_v44 = vshll.u32 %v12337_v34, %v3698_v28 }
 0x488   : > { %v3433_v62 = vadd.s32 536870912, %v3432_v4  ;;  %v3711_v47 = vshrl.u32 %v12338_v38, %v3699_v30  ;;  %v3553_v12 = vadd.s32 127, %v3552_v43  ;;  %v3703_v16 = vor.u32 %v3702_v32, %v3701_v2 }
 0x489   : > { %v3706_v26 = vor.u32 %v3705_v24, %v3704_v56  ;;  %v3709_v20 = vor.u32 %v3708_v27, %v3707_v33  ;;  %vm2958_vm14 = vcmp.lt.s32.totalorder %v9384_v8, 0  ;;  %v9936_v14 = vand.u32 8388607, %v12249_v40 }
 0x48a   : > { %v9932_v51 = vshrl.u32 %v3433_v62, 30  ;;  %v3712_v3 = vor.u32 %v3711_v47, %v3710_v44  ;;  %v9940_v55 = vadd.f32 %v9520_v59, %v9492_v53  ;;  %vm12260_vm4 = vcmp.lt.s32.totalorder %v9524_v57, 0 }
 0x48b   : > { %v3700_v42 = vshrl.u32 %v12334_v19, %v3699_v30  ;;  %v3713_v43 = vshll.u32 %v12338_v38, %v3698_v28  ;;  %v3714_v2 = vshrl.u32 %v12340_v54, %v3699_v30  ;;  %v3584_v56 = vshrl.u32 %v3583_v13, 23 }
 0x48c   : > { %12490 = vst [vmem:[#allocation22_spill] sm:$0xff] %v9932_v51  ;;  %v3550_v32 = vshrl.u32 %v3532_v11, %v3548_v37  ;;  %v3435_v24 = vshll.u32 %v9932_v51, 30  ;;  %vm3716_vm8 = vcmp.lt.s32.totalorder %v3697_v61, 1  ;;  %vm3719_vm6 = vcmp.lt.s32.totalorder %v3697_v61, 4 }
 0x48d   : > { %v3554_v33 = vshll.u32 %v3553_v12, 23  ;;  %v3715_v27 = vor.u32 %v3714_v2, %v3713_v43  ;;  %v3721_v62 = vsel %vm3719_vm6, %v3709_v20, 2102212464  ;;  %v3724_v44 = vsel %vm3716_vm8, %v3703_v16, %v3706_v26 }
 0x48e   : > { %v9947_v53 = vsub.s32 %v3432_v4, %v3435_v24  ;;  %vm3717_vm7 = vcmp.lt.s32.totalorder %v3697_v61, 2  ;;  %vm3718_vm1 = vcmp.lt.s32.totalorder %v3697_v61, 3  ;;  %v3725_v47 = vsel %vm3719_vm6, %v3712_v3, 920167782 }
 0x48f   : > { %v3720_v40 = vsel %vm3716_vm8, %v3700_v42, %v3703_v16  ;;  %v3726_v63 = vsel %vm3718_vm1, %v3709_v20, %v3725_v47  ;;  %v3728_v28 = vsel %vm3716_vm8, %v3706_v26, %v3709_v20  ;;  %v3729_v45 = vsel %vm3719_vm6, %v3715_v27, 1326507024 }
 0x490   : > { %vm12261_vm0 = vcmp.lt.s32.totalorder %v9596_v46, 0  ;;  %v3438_v11 = vsub.s32 0, %v9947_v53  ;;  %v3722_v30 = vsel %vm3718_vm1, %v3706_v26, %v3721_v62  ;;  %v3727_v13 = vsel %vm3717_vm7, %v3724_v44, %v3726_v63 }
 0x491   : > { %v3730_v37 = vsel %vm3718_vm1, %v3712_v3, %v3729_v45  ;;  %v3549_v12 = vshll.u32 %v9877_v50, %v9917_v25  ;;  %v9956_v43 = vmul.u32.u64.low %v9915_v36, %v3727_v13  ;;  %v9957_v2 = vmul.u32.u64.high %v9915_v36, %v3727_v13, %v9956_v43 }
 0x492   : > { %v3731_v4 = vsel %vm3717_vm7, %v3728_v28, %v3730_v37  ;;  %v3555_v16 = vor.u32 4788187, %v3554_v33  ;;  %v6212_v20 = vmin.u32 %v3438_v11, %v9947_v53  ;;  %v12491_v45 = vxor.u32 2147483648, %v9832_v23 }
 0x493   : > { %v9962_v42 = vmul.u32.u64.low %v9915_v36, %v3731_v4  ;;  %v9963_v24 = vmul.u32.u64.high %v9915_v36, %v3731_v4, %v9962_v42  ;;  %v3723_v63 = vsel %vm3717_vm7, %v3720_v40, %v3722_v30  ;;  %v6219_v25 = vadd.s32 4294967169, %v3584_v56 }
 0x494   : > { %v9970_v50 = vsel %vm2958_vm14, %v12491_v45, %v9832_v23  ;;  %v12250_v26 = vand.u32 2147483647, %v9940_v55  ;;  %v12492_v3 = vxor.u32 2147483648, %v9852_v17  ;;  %v3248_v27 = vxor.u32 2147483648, %v9907_v15 }
 0x495   : > { %v3551_v62 = vor.u32 %v3550_v32, %v3549_v12  ;;  %v3440_v44 = vclz %v6212_v20  ;;  %v3742_v47 = vadd.s32 1, %v9957_v2  ;;  %v3588_v23 = vor.u32 8388608, %v9936_v14 }
 0x496   : > { %v9979_v33 = vsel %vm12260_vm4, %v12492_v3, %v9852_v17  ;;  %v3590_v61 = vadd.s32 1, %v6219_v25  ;;  %v9986_v40 = vadd.f32 %v9520_v59, %v9553_v9  ;;  %v3556_v56 = vand.u32 2147483647, %v3555_v16 }
 0x497   : > { %12493 = vst [vmem:[#allocation30_spill] sm:$0xff] %v9979_v33  ;;  %v6213_v28 = vadd.s32 4294967294, %v3440_v44  ;;  %v3739_v11 = vmul.u32 %v9915_v36, %v3723_v63  ;;  %vm3741_vm9 = vc.u32 %v9963_v24, %v9956_v43  ;;  %v3895_v32 = vand.u32 2139095040, %v9940_v55 }
 0x498   : > { %v3743_v17 = vsel %vm3741_vm9, %v3742_v47, %v9957_v2  ;;  %vm3591_vm8 = vcmp.gt.s32.totalorder %v3590_v61, 0  ;;  %v9995_v14 = vand.u32 8388607, %v12250_v26  ;;  %v3558_v30 = vcvt.s32.f32 %v3551_v62 }
 0x499   : > { %vm6214_vm6 = vcmp.lt.s32.totalorder %v6213_v28, 0  ;;  %v3744_v59 = vadd.s32 %v3743_v17, %v3739_v11  ;;  %v3592_v9 = vsel %vm3591_vm8, %v3590_v61, 0  ;;  %v10000_v36 = vsel %vm12261_vm0, %v3248_v27, %v9907_v15 }
 0x49a   : > { %v3428_v13 = vadd.s32 %v9891_v58, %v9888_v18  ;;  %v3443_v37 = vsel %vm6214_vm6, 0, %v6213_v28  ;;  %v3594_v12 = vand.u32 31, %v3592_v9  ;;  %v10004_v4 = vmul.f32 %v3558_v30, %v3556_v56 }
 0x49b   : > { %v3745_v2 = vadd.s32 536870912, %v3744_v59  ;;  %v10006_v16 = vshll.u32 %v3588_v23, 8  ;;  %v3444_v42 = vsub.s32 32, %v3443_v37  ;;  %v3896_v63 = vshrl.u32 %v3895_v32, 23 }
 0x49c   : > { %v3595_v45 = vsub.s32 32, %v3594_v12  ;;  %v3448_v3 = vsub.s32 4294967266, %v3443_v37  ;;  %v3597_v27 = vshll.u32 %v12334_v19, %v3594_v12  ;;  %v3600_v18 = vshll.u32 %v12335_v52, %v3594_v12 }
 0x49d   : > { %v10010_v15 = vshrl.u32 %v3745_v2, 30  ;;  %v3603_v44 = vshll.u32 %v12336_v21, %v3594_v12  ;;  %v3593_v61 = vshrl.u32 %v3592_v9, 5  ;;  %v3606_v56 = vshll.u32 %v12337_v34, %v3594_v12 }
 0x49e   : > { %v3598_v58 = vshrl.u32 %v12335_v52, %v3595_v45  ;;  %v3601_v62 = vshrl.u32 %v12336_v21, %v3595_v45  ;;  %v3604_v47 = vshrl.u32 %v12337_v34, %v3595_v45  ;;  %v3607_v28 = vshrl.u32 %v12338_v38, %v3595_v45 }
 0x49f   : > { %12494 = vst [vmem:[#allocation27_spill] sm:$0xff] %v10010_v15  ;;  %v3747_v23 = vshll.u32 %v10010_v15, 30  ;;  %v6231_v30 = vadd.s32 4294967169, %v3896_v63  ;;  %v3445_v2 = vshll.u32 %v9947_v53, %v3443_v37  ;;  %v3449_v26 = vadd.s32 127, %v3448_v3 }
 0x4a0   : > { %v3599_v11 = vor.u32 %v3598_v58, %v3597_v27  ;;  %v3602_v17 = vor.u32 %v3601_v62, %v3600_v18  ;;  %v3605_v32 = vor.u32 %v3604_v47, %v3603_v44  ;;  %v3608_v25 = vor.u32 %v3607_v28, %v3606_v56  ;;  %v3998_v47 = vld [vmem:[#allocation4 + $0x88] sm:$0xff]  ;;  %v3999_v28 = vld [vmem:[#allocation4 + $0x90] sm:$0xff] }
 0x4a1   : > { %v10022_v20 = vsub.s32 %v3744_v59, %v3747_v23  ;;  %v3446_v60 = vshrl.u32 %v3428_v13, %v3444_v42  ;;  %v3596_v51 = vshrl.u32 %v12334_v19, %v3595_v45  ;;  %v3609_v15 = vshll.u32 %v12338_v38, %v3594_v12 }
 0x4a2   : > { %v3610_v9 = vshrl.u32 %v12340_v54, %v3595_v45  ;;  %vm3612_vm7 = vcmp.lt.s32.totalorder %v3593_v61, 1  ;;  %vm3614_vm1 = vcmp.lt.s32.totalorder %v3593_v61, 3  ;;  %vm3615_vm9 = vcmp.lt.s32.totalorder %v3593_v61, 4 }
 0x4a3   : > { %v3750_v33 = vsub.s32 0, %v10022_v20  ;;  %v3617_v63 = vsel %vm3615_vm9, %v3605_v32, 2102212464  ;;  %v3620_v53 = vsel %vm3612_vm7, %v3599_v11, %v3602_v17  ;;  %v3621_v37 = vsel %vm3615_vm9, %v3608_v25, 920167782 }
 0x4a4   : > { %v3611_v27 = vor.u32 %v3610_v9, %v3609_v15  ;;  %v3450_v59 = vshll.u32 %v3449_v26, 23  ;;  %vm3613_vm8 = vcmp.lt.s32.totalorder %v3593_v61, 2  ;;  %v3622_v13 = vsel %vm3614_vm1, %v3605_v32, %v3621_v37  ;;  %v3997_v26 = vld [vmem:[#allocation4 + $0x80] sm:$0xff] }
 0x4a5   : > { %v6224_v3 = vmin.u32 %v3750_v33, %v10022_v20  ;;  %v10031_v42 = vor.u32 %v3446_v60, %v3445_v2  ;;  %v3623_v12 = vsel %vm3613_vm8, %v3620_v53, %v3622_v13  ;;  %v3624_v45 = vsel %vm3612_vm7, %v3602_v17, %v3605_v32  ;;  %v4000_v32 = vld [vmem:[#allocation4 + $0x98] sm:$0xff]  ;;  %v4001_v37 = vld [vmem:[#allocation4 + $0xa0] sm:$0xff] }
 0x4a6   : > { %v3625_v18 = vsel %vm3615_vm9, %v3611_v27, 1326507024  ;;  %v3616_v15 = vsel %vm3612_vm7, %v3596_v51, %v3599_v11  ;;  %v3618_v62 = vsel %vm3614_vm1, %v3602_v17, %v3617_v63  ;;  %v3902_v56 = vadd.s32 1, %v6231_v30 }
 0x4a7   : > { %v3752_v58 = vclz %v6224_v3  ;;  %v3626_v44 = vsel %vm3614_vm1, %v3608_v25, %v3625_v18  ;;  %v10040_v23 = vmul.u32.u64.low %v10006_v16, %v3623_v12  ;;  %v10041_v60 = vmul.u32.u64.high %v10006_v16, %v3623_v12, %v10040_v23 }
 0x4a8   : > { %v3627_v33 = vsel %vm3613_vm8, %v3624_v45, %v3626_v44  ;;  %v10044_v2 = vor.u32 4788187, %v3450_v59  ;;  %v3619_v25 = vsel %vm3613_vm8, %v3616_v15, %v3618_v62  ;;  %vm3903_vm6 = vcmp.gt.s32.totalorder %v3902_v56, 0  ;;  %v4002_v59 = vld [vmem:[#allocation4 + $0xa8] sm:$0xff] }
 0x4a9   : > { %v6225_v9 = vadd.s32 4294967294, %v3752_v58  ;;  %v10047_v51 = vmul.u32.u64.low %v10006_v16, %v3627_v33  ;;  %v10048_v11 = vmul.u32.u64.high %v10006_v16, %v3627_v33, %v10047_v51  ;;  %v3791_v17 = vand.u32 2139095040, %v9986_v40 }
 0x4aa   : > { %v6721_v27 = vpack.c.bf16 %v3998_v47, %v3997_v26  ;;  %v3740_v63 = vadd.s32 %v9956_v43, %v9963_v24  ;;  %v3904_v30 = vsel %vm3903_vm6, %v3902_v56, 0  ;;  %v6725_v53 = vpack.c.bf16 %v4000_v32, %v3999_v28 }
 0x4ab   : > { %vm6226_vm7 = vcmp.lt.s32.totalorder %v6225_v9, 0  ;;  %v3638_v13 = vadd.s32 1, %v10041_v60  ;;  %v3906_v12 = vand.u32 31, %v3904_v30  ;;  %v12495_v45 = vor.u32 8388608, %v9995_v14 }
 0x4ac   : > { %v3755_v3 = vsel %vm6226_vm7, 0, %v6225_v9  ;;  %6722 = vmatprep.subr.bf16.mxu0 %v6721_v27  ;;  %v3635_v43 = vmul.u32 %v10006_v16, %v3619_v25  ;;  %vm3637_vm1 = vc.u32 %v10048_v11, %v10040_v23  ;;  %v3792_v62 = vshrl.u32 %v3791_v17, 23 }
 0x4ad   : > { %v10057_v61 = vshll.u32 %v12495_v45, 8  ;;  %v3760_v15 = vsub.s32 4294967266, %v3755_v3  ;;  %6724 = vmatpush3.bf16.msra.mxu0 %v6721_v27  ;;  %v3907_v24 = vsub.s32 32, %v3906_v12  ;;  %v6729_v44 = vpack.c.bf16 %v4002_v59, %v4001_v37 }
 0x4ae   : > { %6726 = vmatprep.subr.bf16.mxu0 %v6725_v53  ;;  %v3756_v26 = vsub.s32 32, %v3755_v3  ;;  %v3639_v14 = vsel %vm3637_vm1, %v3638_v13, %v10041_v60  ;;  %v3905_v47 = vshrl.u32 %v3904_v30, 5  ;;  %v12496_v33 = vand.u32 2147483647, %v9986_v40 }
 0x4af   : > { %v3640_v28 = vadd.s32 %v3639_v14, %v3635_v43  ;;  %v3909_v32 = vshll.u32 %v12334_v19, %v3906_v12  ;;  %v3910_v16 = vshrl.u32 %v12335_v52, %v3907_v24  ;;  %v3913_v9 = vshrl.u32 %v12336_v21, %v3907_v24 }
 0x4b0   : > { %v10067_v56 = vand.u32 8388607, %v12496_v33  ;;  %v3761_v51 = vadd.s32 127, %v3760_v15  ;;  %v3912_v25 = vshll.u32 %v12335_v52, %v3906_v12  ;;  %v3915_v17 = vshll.u32 %v12336_v21, %v3906_v12 }
 0x4b1   : > { %v3916_v27 = vshrl.u32 %v12337_v34, %v3907_v24  ;;  %6728 = vmatpush3.bf16.msra.mxu0 %v6725_v53  ;;  %v3757_v60 = vshll.u32 %v10022_v20, %v3755_v3  ;;  %v3641_v30 = vadd.s32 536870912, %v3640_v28  ;;  %v3918_v37 = vshll.u32 %v12337_v34, %v3906_v12 }
 0x4b2   : > { %v3919_v59 = vshrl.u32 %v12338_v38, %v3907_v24  ;;  %6730 = vmatprep.subr.bf16.mxu0 %v6729_v44  ;;  %v3758_v13 = vshrl.u32 %v3740_v63, %v3756_v26  ;;  %v3911_v45 = vor.u32 %v3910_v16, %v3909_v32  ;;  %v3914_v43 = vor.u32 %v3913_v9, %v3912_v25 }
 0x4b3   : > { %v3917_v14 = vor.u32 %v3916_v27, %v3915_v17  ;;  %v10078_v15 = vshrl.u32 %v3641_v30, 30  ;;  %v3921_v58 = vshll.u32 %v12338_v38, %v3906_v12  ;;  %v3922_v18 = vshrl.u32 %v12340_v54, %v3907_v24  ;;  %v4004_v27 = vld [vmem:[#allocation4 + $0xb8] sm:$0xff] }
 0x4b4   : > { %v3920_v33 = vor.u32 %v3919_v59, %v3918_v37  ;;  %v3762_v53 = vshll.u32 %v3761_v51, 23  ;;  %v3908_v20 = vshrl.u32 %v12334_v19, %v3907_v24  ;;  %vm3924_vm9 = vcmp.lt.s32.totalorder %v3905_v47, 1 }
 0x4b5   : > { %vm3927_vm8 = vcmp.lt.s32.totalorder %v3905_v47, 4  ;;  %6732 = vmatpush3.bf16.msra.mxu0 %v6729_v44  ;;  %v3643_v3 = vshll.u32 %v10078_v15, 30  ;;  %v3923_v57 = vor.u32 %v3922_v18, %v3921_v58  ;;  %vm3925_vm6 = vcmp.lt.s32.totalorder %v3905_v47, 2  ;;  %v4003_v58 = vld [vmem:[#allocation4 + $0xb0] sm:$0xff] }
 0x4b6   : > { %v3929_v63 = vsel %vm3927_vm8, %v3917_v14, 2102212464  ;;  %vm3926_vm7 = vcmp.lt.s32.totalorder %v3905_v47, 3  ;;  %v3928_v26 = vsel %vm3924_vm9, %v3908_v20, %v3911_v45  ;;  %v3932_v32 = vsel %vm3924_vm9, %v3911_v45, %v3914_v43  ;;  %v4005_v45 = vld [vmem:[#allocation4 + $0xc0] sm:$0xff] }
 0x4b7   : > { %v3933_v16 = vsel %vm3927_vm8, %v3920_v33, 920167782  ;;  %v10086_v12 = vsub.s32 %v3640_v28, %v3643_v3  ;;  %v3930_v9 = vsel %vm3926_vm7, %v3914_v43, %v3929_v63  ;;  %v3936_v25 = vsel %vm3924_vm9, %v3914_v43, %v3917_v14  ;;  %v4006_v43 = vld [vmem:[#allocation4 + $0xc8] sm:$0xff] }
 0x4b8   : > { %v3934_v51 = vsel %vm3926_vm7, %v3917_v14, %v3933_v16  ;;  %v10088_v24 = vor.u32 %v3758_v13, %v3757_v60  ;;  %v10090_v17 = vor.u32 4788187, %v3762_v53  ;;  %v3937_v18 = vsel %vm3927_vm8, %v3923_v57, 1326507024 }
 0x4b9   : > { %v3935_v44 = vsel %vm3925_vm6, %v3932_v32, %v3934_v51  ;;  %v3646_v30 = vsub.s32 0, %v10086_v12  ;;  %v3938_v37 = vsel %vm3926_vm7, %v3920_v33, %v3937_v18  ;;  %v3931_v60 = vsel %vm3925_vm6, %v3928_v26, %v3930_v9  ;;  %v4007_v9 = vld [vmem:[#allocation4 + $0xd0] sm:$0xff]  ;;  %v4009_v51 = vld [vmem:[#allocation4 + $0xe0] sm:$0xff] }
 0x4ba   : > { %v10096_v59 = vmul.u32.u64.low %v10057_v61, %v3935_v44  ;;  %v10097_v28 = vmul.u32.u64.high %v10057_v61, %v3935_v44, %v10096_v59  ;;  %v3939_v13 = vsel %vm3925_vm6, %v3936_v25, %v3938_v37  ;;  %v6227_v14 = vadd.s32 4294967169, %v3792_v62 }
 0x4bb   : > { %v3796_v53 = vor.u32 8388608, %v10067_v56  ;;  %v6220_v57 = vmin.u32 %v3646_v30, %v10086_v12  ;;  %v10105_v20 = vmul.u32.u64.low %v10057_v61, %v3939_v13  ;;  %v10106_v3 = vmul.u32.u64.high %v10057_v61, %v3939_v13, %v10105_v20  ;;  %v4008_v56 = vld [vmem:[#allocation4 + $0xd8] sm:$0xff] }
 0x4bc   : > { %v6733_v33 = vpack.c.bf16 %v4004_v27, %v4003_v58  ;;  %v12497_v63 = vand.u32 2147483647, %v10044_v2  ;;  %v12498_v32 = vcvt.s32.f32 %v10031_v42  ;;  %v3636_v47 = vadd.s32 %v10040_v23, %v10048_v11  ;;  %v4010_v2 = vld [vmem:[#allocation4 + $0xe8] sm:$0xff]  ;;  %v4011_v42 = vld [vmem:[#allocation4 + $0xf0] sm:$0xff]  ;;  %v4012_v27 = vld [vmem:[#allocation4 + $0xf8] sm:$0xff] }
 0x4bd   : > { %v3798_v26 = vadd.s32 1, %v6227_v14  ;;  %v6737_v62 = vpack.c.bf16 %v4006_v43, %v4005_v45  ;;  %v3648_v18 = vclz %v6220_v57  ;;  %v3950_v58 = vadd.s32 1, %v10097_v28 }
 0x4be   : > { %v10112_v16 = vmul.f32 %v12498_v32, %v12497_v63  ;;  %6734 = vmatprep.subr.bf16.mxu0 %v6733_v33  ;;  %v3947_v30 = vmul.u32 %v10057_v61, %v3931_v60  ;;  %v10120_v23 = vshll.u32 %v3796_v53, 8  ;;  %v2418_v11 = vsub.s32 4, %v9229_v7 }
 0x4bf   : > { %vm3799_vm1 = vcmp.gt.s32.totalorder %v3798_v26, 0  ;;  %6736 = vmatpush3.bf16.msra.mxu0 %v6733_v33  ;;  %v6221_v37 = vadd.s32 4294967294, %v3648_v18  ;;  %vm3949_vm9 = vc.u32 %v10106_v3, %v10096_v59  ;;  %v6741_v43 = vpack.c.bf16 %v4008_v56, %v4007_v9 }
 0x4c0   : > { %v3800_v45 = vsel %vm3799_vm1, %v3798_v26, 0  ;;  %6738 = vmatprep.subr.bf16.mxu0 %v6737_v62  ;;  %v3951_v13 = vsel %vm3949_vm9, %v3950_v58, %v10097_v28  ;;  %v6745_v57 = vpack.c.bf16 %v4010_v2, %v4009_v51  ;;  %v10126_v20 = vpack.c.bf16 %v4012_v27, %v4011_v42 }
 0x4c1   : > { %v3802_v14 = vand.u32 31, %v3800_v45  ;;  %vm6222_vm8 = vcmp.lt.s32.totalorder %v6221_v37, 0  ;;  %v3952_v61 = vadd.s32 %v3951_v13, %v3947_v30  ;;  %v10128_v60 = vshrl.u32 %v3800_v45, 5 }
 0x4c2   : > { %v12499_v53 = vand.u32 2147483647, %v9089_v22  ;;  %v3651_v63 = vsel %vm6222_vm8, 0, %v6221_v37  ;;  %v10139_v28 = vsel %vm2334_vm15, %v2418_v11, %v9229_v7 }
 0x4c3   : > { %v3803_v32 = vsub.s32 32, %v3802_v14  ;;  %6740 = vmatpush3.bf16.msra.mxu0 %v6737_v62  ;;  %v3652_v9 = vsub.s32 32, %v3651_v63  ;;  %v3656_v56 = vsub.s32 4294967266, %v3651_v63  ;;  %v3953_v51 = vadd.s32 536870912, %v3952_v61 }
 0x4c4   : > { %vm10132_vm6 = vcmp.le.f32.partialorder %v12499_v53, 0.7853982  ;;  %v3805_v18 = vshll.u32 %v12334_v19, %v3802_v14  ;;  %6742 = vmatprep.subr.bf16.mxu0 %v6741_v43  ;;  %v3808_v62 = vshll.u32 %v12335_v52, %v3802_v14  ;;  %v3811_v7 = vshll.u32 %v12336_v21, %v3802_v14 }
 0x4c5   : > { %v2420_v26 = vsel %vm10132_vm6, %v9089_v22, %v9681_v5  ;;  %v3806_v58 = vshrl.u32 %v12335_v52, %v3803_v32  ;;  %v3809_v2 = vshrl.u32 %v12336_v21, %v3803_v32  ;;  %v3654_v42 = vshrl.u32 %v3636_v47, %v3652_v9 }
 0x4c6   : > { %v3657_v27 = vadd.s32 127, %v3656_v56  ;;  %v10150_v30 = vshrl.u32 %v3953_v51, 30  ;;  %v3812_v5 = vshrl.u32 %v12337_v34, %v3803_v32  ;;  %v3653_v11 = vshll.u32 %v10086_v12, %v3651_v63 }
 0x4c7   : > { %v3807_v37 = vor.u32 %v3806_v58, %v3805_v18  ;;  %v3814_v45 = vshll.u32 %v12337_v34, %v3802_v14  ;;  %v3815_v13 = vshrl.u32 %v12338_v38, %v3803_v32  ;;  %6744 = vmatpush3.bf16.msra.mxu0 %v6741_v43  ;;  %v3810_v25 = vor.u32 %v3809_v2, %v3808_v62 }
 0x4c8   : > { %v3658_v53 = vshll.u32 %v3657_v27, 23  ;;  %v3955_v44 = vshll.u32 %v10150_v30, 30  ;;  %v3813_v52 = vor.u32 %v3812_v5, %v3811_v7  ;;  %6746 = vmatprep.subr.bf16.mxu0 %v6745_v57  ;;  %v3817_v9 = vshll.u32 %v12338_v38, %v3802_v14 }
 0x4c9   : > { %v3816_v47 = vor.u32 %v3815_v13, %v3814_v45  ;;  %v3818_v56 = vshrl.u32 %v12340_v54, %v3803_v32  ;;  %v2421_v12 = vsel %vm10132_vm6, 0, %v10139_v28  ;;  %v3655_v63 = vor.u32 %v3654_v42, %v3653_v11 }
 0x4ca   : > { %v10162_v51 = vsub.s32 %v3952_v61, %v3955_v44  ;;  %v3804_v43 = vshrl.u32 %v12334_v19, %v3803_v32  ;;  %vm3820_vm15 = vcmp.lt.s32.totalorder %v10128_v60, 1  ;;  %v3659_v18 = vor.u32 4788187, %v3658_v53 }
 0x4cb   : > { %v3819_v58 = vor.u32 %v3818_v56, %v3817_v9  ;;  %vm3822_vm7 = vcmp.lt.s32.totalorder %v10128_v60, 3  ;;  %vm3823_vm1 = vcmp.lt.s32.totalorder %v10128_v60, 4  ;;  %6748 = vmatpush3.bf16.msra.mxu0 %v6745_v57  ;;  %v3828_v33 = vsel %vm3820_vm15, %v3807_v37, %v3810_v25 }
 0x4cc   : > { %v3958_v14 = vsub.s32 0, %v10162_v51  ;;  %v3824_v62 = vsel %vm3820_vm15, %v3804_v43, %v3807_v37  ;;  %v3825_v2 = vsel %vm3823_vm1, %v3813_v52, 2102212464  ;;  %6750 = vmatprep.subr.bf16.mxu0 %v10126_v20  ;;  %v3829_v61 = vsel %vm3823_vm1, %v3816_v47, 920167782 }
 0x4cd   : > { %v3826_v44 = vsel %vm3822_vm7, %v3810_v25, %v3825_v2  ;;  %v3832_v32 = vsel %vm3820_vm15, %v3810_v25, %v3813_v52  ;;  %v3833_v28 = vsel %vm3823_vm1, %v3819_v58, 1326507024  ;;  %v3662_v7 = vcvt.s32.f32 %v3655_v63 }
 0x4ce   : > { %v6232_v42 = vmin.u32 %v3958_v14, %v10162_v51  ;;  %vm3821_vm9 = vcmp.lt.s32.totalorder %v10128_v60, 2  ;;  %v3830_v57 = vsel %vm3822_vm7, %v3813_v52, %v3829_v61  ;;  %v3660_v27 = vand.u32 2147483647, %v3659_v18 }
 0x4cf   : > { %v3831_v5 = vsel %vm3821_vm9, %v3828_v33, %v3830_v57  ;;  %v3834_v11 = vsel %vm3822_vm7, %v3816_v47, %v3833_v28  ;;  %6752 = vmatpush3.bf16.msra.mxu0 %v10126_v20  ;;  %7103 = vcosq.f32 %v2420_v26  ;;  %v3827_v45 = vsel %vm3821_vm9, %v3824_v62, %v3826_v44  ;;  %v12505_v33 = vld [vmem:[#allocation14_spill] sm:$0xff] }
 0x4d0   : > { %v3960_v37 = vclz %v6232_v42  ;;  %v3835_v25 = vsel %vm3821_vm9, %v3832_v32, %v3834_v11  ;;  %7105 = vsinq.f32 %v2420_v26  ;;  %v3560_v52 = vxor.u32 2147483648, %v10004_v4 }
 0x4d1   : > { %v10180_v13 = vmul.u32.u64.low %v10120_v23, %v3835_v25  ;;  %v10181_v53 = vmul.u32.u64.high %v10120_v23, %v3835_v25, %v10180_v13  ;;  %v10184_v9 = vmul.u32.u64.low %v10120_v23, %v3831_v5  ;;  %v10185_v56 = vmul.u32.u64.high %v10120_v23, %v3831_v5, %v10184_v9 }
 0x4d2   : > { %v6233_v60 = vadd.s32 4294967294, %v3960_v37  ;;  %v2425_v47 = vadd.s32 3, %v2421_v12  ;;  %v2522_v20 = vsub.s32 4, %v9201_v1  ;;  %v3456_v63 = vxor.u32 2147483648, %v10112_v16  ;;  %v12504_v12 = vld [vmem:[#allocation12_spill] sm:$0xff] }
 0x4d3   : > { %v12502_v43 = vand.u32 2147483647, %v10090_v17  ;;  %v12503_v26 = vcvt.s32.f32 %v10088_v24  ;;  %v10197_v58 = vmul.f32 %v3662_v7, %v3660_v27  ;;  %v3948_v14 = vadd.s32 %v10096_v59, %v10106_v3  ;;  %v12506_v59 = vld [vmem:[#allocation21_spill] sm:$0xff] }
 0x4d4   : > { %vm6234_vm8 = vcmp.lt.s32.totalorder %v6233_v60, 0  ;;  %v3843_v62 = vmul.u32 %v10120_v23, %v3827_v45  ;;  %v2523_v2 = vsel %vm2438_vm10, %v2522_v20, %v9201_v1  ;;  %v2533_v44 = vxor.u32 2147483648, %v12505_v33  ;;  %v12507_v23 = vld [vmem:[#allocation11_spill] sm:$0xff] }
 0x4d5   : > { %v10195_v18 = vmul.f32 %v12503_v26, %v12502_v43  ;;  %v3963_v61 = vsel %vm6234_vm8, 0, %v6233_v60  ;;  %vm3845_vm6 = vc.u32 %v10181_v53, %v10184_v9  ;;  %v3846_v24 = vadd.s32 1, %v10185_v56 }
 0x4d6   : > { %v2426_v17 = vand.u32 3, %v2425_v47  ;;  %v3964_v32 = vsub.s32 32, %v3963_v61  ;;  %v3968_v28 = vsub.s32 4294967266, %v3963_v61  ;;  %vm2424_vm15 = vweird.f32 %v9089_v22 }
 0x4d7   : > { %v2536_v3 = vxor.u32 2147483648, %v12506_v59  ;;  %v2626_v7 = vsub.s32 4, %v12507_v23  ;;  %v3965_v42 = vshll.u32 %v10162_v51, %v3963_v61  ;;  %v3847_v1 = vsel %vm3845_vm6, %v3846_v24, %v10185_v56 }
 0x4d8   : > { %v2525_v27 = vsel %vm9317_vm12, 0, %v2523_v2  ;;  %v12509_v5 = vand.u32 2147483647, %v9113_v49  ;;  %vm3478_vm7 = vcmp.lt.s32.totalorder %v9609_v29, 0  ;;  %v3966_v37 = vshrl.u32 %v3948_v14, %v3964_v32 }
 0x4d9   : > { %v3969_v45 = vadd.s32 127, %v3968_v28  ;;  %v3848_v25 = vadd.s32 %v3847_v1, %v3843_v62  ;;  %vm2528_vm1 = vweird.f32 %v12504_v12  ;;  %v2529_v13 = vadd.s32 3, %v2525_v27  ;;  %v7104_v51 = vpop.eup %7103 }
 0x4da   : > { %vm10218_vm10 = vcmp.le.f32.partialorder %v12509_v5, 0.7853982  ;;  %vm3374_vm9 = vcmp.lt.s32.totalorder %v9714_v31, 0  ;;  %vm2427_vm8 = vcmp.lt.s32.totalorder %v2426_v17, 2  ;;  %vm2428_vm6 = vcmp.eq.s32.totalorder %v2426_v17, 0  ;;  %v7106_v60 = vpop.eup %7105 }
 0x4db   : > { %vm2431_vm12 = vcmp.eq.s32.totalorder %v2426_v17, 2  ;;  %v2628_v56 = vsel %vm10218_vm10, %v9113_v49, %v9695_v35  ;;  %v3970_v47 = vshll.u32 %v3969_v45, 23  ;;  %v3849_v20 = vadd.s32 536870912, %v3848_v25 }
 0x4dc   : > { %v2432_v43 = vxor.u32 2147483648, %v7104_v51  ;;  %v2627_v26 = vsel %vm2542_vm13, %v2626_v7, %v12507_v23  ;;  %v2429_v14 = vxor.u32 2147483648, %v7106_v60  ;;  %v2530_v62 = vand.u32 3, %v2529_v13 }
 0x4dd   : > { %7107 = vcosq.f32 %v2628_v56  ;;  %v12512_v2 = vand.u32 2147483647, %v9098_v48  ;;  %v3967_v24 = vor.u32 %v3966_v37, %v3965_v42  ;;  %v3971_v32 = vor.u32 4788187, %v3970_v47 }
 0x4de   : > { %v10238_v35 = vshrl.u32 %v3849_v20, 30  ;;  %v2433_v28 = vsel %vm2431_vm12, %v2432_v43, %v7106_v60  ;;  %v2430_v1 = vsel %vm2428_vm6, %v7104_v51, %v2429_v14  ;;  %vm2531_vm0 = vcmp.lt.s32.totalorder %v2530_v62, 2  ;;  %v12515_v51 = vld [vmem:[#allocation9_spill] sm:$0xff]  ;;  %v12516_v43 = vld [vmem:[#allocation15_spill] sm:$0xff] }
 0x4df   : > { %vm10234_vm4 = vcmp.le.f32.partialorder %v12512_v2, 0.7853982  ;;  %vm2532_vm3 = vcmp.eq.s32.totalorder %v2530_v62, 0  ;;  %v2629_v23 = vsel %vm10218_vm10, 0, %v2627_v26  ;;  %v2434_v57 = vsel %vm2427_vm8, %v2430_v1, %v2433_v28  ;;  %v12522_v1 = vld [vmem:[#allocation13_spill] sm:$0xff] }
 0x4e0   : > { %v3851_v7 = vshll.u32 %v10238_v35, 30  ;;  %v2534_v27 = vsel %vm2532_vm3, %v12506_v59, %v2533_v44  ;;  %vm2535_vm13 = vcmp.eq.s32.totalorder %v2530_v62, 2  ;;  %v3972_v5 = vand.u32 2147483647, %v3971_v32  ;;  %v12520_v62 = vld [vmem:[#allocation18_spill] sm:$0xff] }
 0x4e1   : > { %v2435_v42 = vsel %vm2424_vm15, nan, %v2434_v57  ;;  %v2537_v37 = vsel %vm2535_vm13, %v2536_v3, %v12505_v33  ;;  %7109 = vsinq.f32 %v2628_v56  ;;  %v2633_v11 = vadd.s32 3, %v2629_v23  ;;  %v12521_v32 = vld [vmem:[#allocation34_spill] sm:$0xff]  ;;  %v12526_v57 = vld [vmem:[#allocation8_spill] sm:$0xff] }
 0x4e2   : > { %v10249_v45 = vsub.s32 %v3848_v25, %v3851_v7  ;;  %6577 = vmatprep.mubr.f32.mxu0 %v2435_v42  ;;  %v2538_v13 = vsel %vm2531_vm0, %v2534_v27, %v2537_v37  ;;  %v2730_v60 = vsub.s32 4, %v12515_v51  ;;  %v10257_v44 = vsel %vm3478_vm7, %v3560_v52, %v10004_v4  ;;  %v12527_v37 = vld [vmem:[#allocation25_spill] sm:$0xff] }
 0x4e3   : > { %v3974_v17 = vcvt.s32.f32 %v3967_v24  ;;  %v2539_v22 = vsel %vm2528_vm1, nan, %v2538_v13  ;;  %v2732_v33 = vsel %vm10234_vm4, %v9098_v48, %v9688_v39  ;;  %v10270_v59 = vsel %vm3374_vm9, %v3456_v63, %v10112_v16 }
 0x4e4   : > { %v3854_v3 = vsub.s32 0, %v10249_v45  ;;  %6578 = vmatmul.mubr.f32.vlgmr.msra.gmra.mrb[16].mxu0 %v2539_v22  ;;  %v2731_v4 = vsel %vm2646_vm2, %v2730_v60, %v12515_v51  ;;  %7111 = vcosq.f32 %v2732_v33  ;;  %v3768_v52 = vxor.u32 2147483648, %v10195_v18 }
 0x4e5   : > { %v3664_v12 = vxor.u32 2147483648, %v10197_v58  ;;  %v10278_v39 = vmul.f32 %v3974_v17, %v3972_v5  ;;  %v2733_v25 = vsel %vm10234_vm4, 0, %v2731_v4  ;;  %v2634_v63 = vand.u32 3, %v2633_v11 }
 0x4e6   : > { %v6228_v16 = vmin.u32 %v3854_v3, %v10249_v45  ;;  %7113 = vsinq.f32 %v2732_v33  ;;  %v2737_v56 = vadd.s32 3, %v2733_v25  ;;  %v3844_v20 = vadd.s32 %v10184_v9, %v10181_v53 }
 0x4e7   : > { %v7108_v47 = vpop.eup %7107  ;;  %vm2632_vm2 = vweird.f32 %v9113_v49  ;;  %v12517_v26 = vand.u32 2147483647, %v12516_v43  ;;  %v2834_v2 = vsub.s32 4, %v12520_v62  ;;  %v12523_v23 = vand.u32 2147483647, %v12522_v1 }
 0x4e8   : > { %v3856_v61 = vclz %v6228_v16  ;;  %v2640_v24 = vxor.u32 2147483648, %v7108_v47  ;;  %v2738_v9 = vand.u32 3, %v2737_v56  ;;  %v2938_v27 = vsub.s32 4, %v12526_v57 }
 0x4e9   : > { %vm10288_vm3 = vcmp.le.f32.partialorder %v12517_v26, 0.7853982  ;;  %vm10299_vm4 = vcmp.le.f32.partialorder %v12523_v23, 0.7853982  ;;  %v2835_v7 = vsel %vm2750_vm5, %v2834_v2, %v12520_v62  ;;  %v3976_v5 = vxor.u32 2147483648, %v10278_v39 }
 0x4ea   : > { %v2836_v28 = vsel %vm10288_vm3, %v12516_v43, %v12521_v32  ;;  %v6229_v42 = vadd.s32 4294967294, %v3856_v61  ;;  %vm2635_vm0 = vcmp.lt.s32.totalorder %v2634_v63, 2  ;;  %v2940_v13 = vsel %vm10299_vm4, %v12522_v1, %v12527_v37 }
 0x4eb   : > { %7115 = vcosq.f32 %v2836_v28  ;;  %v7110_v11 = vpop.eup %7109  ;;  %vm2639_vm15 = vcmp.eq.s32.totalorder %v2634_v63, 2  ;;  %v2837_v51 = vsel %vm10288_vm3, 0, %v2835_v7  ;;  %v2939_v60 = vsel %vm2854_vm11, %v2938_v27, %v12526_v57 }
 0x4ec   : > { %7117 = vsinq.f32 %v2836_v28  ;;  %vm6230_vm5 = vcmp.lt.s32.totalorder %v6229_v42, 0  ;;  %v2637_v17 = vxor.u32 2147483648, %v7110_v11  ;;  %v2641_v22 = vsel %vm2639_vm15, %v2640_v24, %v7110_v11 }
 0x4ed   : > { %vm2736_vm10 = vweird.f32 %v9098_v48  ;;  %v2841_v33 = vadd.s32 3, %v2837_v51  ;;  %v3859_v3 = vsel %vm6230_vm5, 0, %v6229_v42  ;;  %vm2636_vm1 = vcmp.eq.s32.totalorder %v2634_v63, 0  ;;  %v12531_v42 = vld [vmem:[#allocation17_spill] sm:$0xff] }
 0x4ee   : > { %vm2743_vm8 = vcmp.eq.s32.totalorder %v2738_v9, 2  ;;  %7119 = vcosq.f32 %v2940_v13  ;;  %v7112_v4 = vpop.eup %7111  ;;  %v3860_v25 = vsub.s32 32, %v3859_v3  ;;  %v3864_v16 = vsub.s32 4294967266, %v3859_v3 }
 0x4ef   : > { %v2638_v56 = vsel %vm2636_vm1, %v7108_v47, %v2637_v17  ;;  %v2941_v26 = vsel %vm10299_vm4, 0, %v2939_v60  ;;  %v2744_v62 = vxor.u32 2147483648, %v7112_v4  ;;  %v2842_v2 = vand.u32 3, %v2841_v33 }
 0x4f0   : > { %v2642_v14 = vsel %vm2635_vm0, %v2638_v56, %v2641_v22  ;;  %7121 = vsinq.f32 %v2940_v13  ;;  %v7114_v61 = vpop.eup %7113  ;;  %v3861_v24 = vshll.u32 %v10249_v45, %v3859_v3  ;;  %v3862_v32 = vshrl.u32 %v3844_v20, %v3860_v25 }
 0x4f1   : > { %v3865_v28 = vadd.s32 127, %v3864_v16  ;;  %v2643_v23 = vsel %vm2632_vm2, nan, %v2642_v14  ;;  %vm2739_vm11 = vcmp.lt.s32.totalorder %v2738_v9, 2  ;;  %v2741_v7 = vxor.u32 2147483648, %v7114_v61  ;;  %v12535_v14 = vld [vmem:[#allocation10_spill] sm:$0xff] }
 0x4f2   : > { %6580 = vmatprep.mubr.f32.mxu0 %v2643_v23  ;;  %v2745_v47 = vsel %vm2743_vm8, %v2744_v62, %v7114_v61  ;;  %vm2840_vm6 = vweird.f32 %v12516_v43  ;;  %v2945_v63 = vadd.s32 3, %v2941_v26  ;;  %v3863_v53 = vor.u32 %v3862_v32, %v3861_v24 }
 0x4f3   : > { %v3866_v57 = vshll.u32 %v3865_v28, 23  ;;  %vm2740_vm12 = vcmp.eq.s32.totalorder %v2738_v9, 0  ;;  %v12528_v27 = vand.u32 2147483647, %v9384_v8  ;;  %vm2843_vm2 = vcmp.lt.s32.totalorder %v2842_v2, 2 }
 0x4f4   : > { %v2742_v49 = vsel %vm2740_vm12, %v7112_v4, %v2741_v7  ;;  %vm2844_vm3 = vcmp.eq.s32.totalorder %v2842_v2, 0  ;;  %v3042_v37 = vsub.s32 4, %v12531_v42  ;;  %vm3686_vm4 = vcmp.lt.s32.totalorder %v9726_v0, 0 }
 0x4f5   : > { %vm10328_vm13 = vcmp.le.f32.partialorder %v12528_v27, 0.7853982  ;;  %v7116_v20 = vpop.eup %7115  ;;  %vm3582_vm0 = vcmp.lt.s32.totalorder %v9847_v6, 0  ;;  %v3867_v13 = vor.u32 4788187, %v3866_v57  ;;  %v2746_v11 = vsel %vm2739_vm11, %v2742_v49, %v2745_v47 }
 0x4f6   : > { %v2848_v51 = vxor.u32 2147483648, %v7116_v20  ;;  %v3044_v60 = vsel %vm10328_vm13, %v9384_v8, %v9970_v50  ;;  %v7118_v17 = vpop.eup %7117  ;;  %vm3894_vm15 = vcmp.lt.s32.totalorder %v9940_v55, 0  ;;  %v3870_v22 = vcvt.s32.f32 %v3863_v53 }
 0x4f7   : > { %v2747_v33 = vsel %vm2736_vm10, nan, %v2746_v11  ;;  %vm2847_vm5 = vcmp.eq.s32.totalorder %v2842_v2, 2  ;;  %v2946_v3 = vand.u32 3, %v2945_v63  ;;  %v3868_v4 = vand.u32 2147483647, %v3867_v13  ;;  %v12540_v11 = vld [vmem:[#allocation31_spill] sm:$0xff] }
 0x4f8   : > { %6581 = vmatmul.mubr.f32.gmra.mrb[18].mxu0 %v2747_v33  ;;  %v2845_v25 = vxor.u32 2147483648, %v7118_v17  ;;  %v2849_v9 = vsel %vm2847_vm5, %v2848_v51, %v7118_v17  ;;  %v3043_v16 = vsel %vm2958_vm14, %v3042_v37, %v12531_v42  ;;  %v7120_v56 = vpop.eup %7119  ;;  %vm3790_vm1 = vcmp.lt.s32.totalorder %v9986_v40, 0 }
 0x4f9   : > { %v3045_v50 = vsel %vm10328_vm13, 0, %v3043_v16  ;;  %7123 = vcosq.f32 %v3044_v60  ;;  %v12532_v48 = vand.u32 2147483647, %v9352_v41  ;;  %v3146_v62 = vsub.s32 4, %v12535_v14 }
 0x4fa   : > { %v3871_v61 = vmul.f32 %v3870_v22, %v3868_v4  ;;  %v2846_v24 = vsel %vm2844_vm3, %v7116_v20, %v2845_v25  ;;  %v2952_v32 = vxor.u32 2147483648, %v7120_v56  ;;  %7125 = vsinq.f32 %v3044_v60  ;;  %v7122_v28 = vpop.eup %7121  ;;  %v12543_v22 = vld [vmem:[#allocation26_spill] sm:$0xff] }
 0x4fb   : > { %vm10351_vm10 = vcmp.le.f32.partialorder %v12532_v48, 0.7853982  ;;  %v2850_v23 = vsel %vm2843_vm2, %v2846_v24, %v2849_v9  ;;  %vm2951_vm14 = vcmp.eq.s32.totalorder %v2946_v3, 2  ;;  %vm12536_vm8 = vcmp.lt.s32.totalorder %v9352_v41, 0  ;;  %v12548_v9 = vld [vmem:[#allocation30_spill] sm:$0xff] }
 0x4fc   : > { %v3147_v7 = vsel %vm12536_vm8, %v3146_v62, %v12535_v14  ;;  %v3148_v47 = vsel %vm10351_vm10, %v9352_v41, %v9900_v10  ;;  %v2851_v63 = vsel %vm2840_vm6, nan, %v2850_v23  ;;  %vm2947_vm11 = vcmp.lt.s32.totalorder %v2946_v3, 2 }
 0x4fd   : > { %v2949_v53 = vxor.u32 2147483648, %v7122_v28  ;;  %v2953_v57 = vsel %vm2951_vm14, %v2952_v32, %v7122_v28  ;;  %6583 = vmatprep.mubr.f32.mxu0 %v2851_v63  ;;  %vm2948_vm12 = vcmp.eq.s32.totalorder %v2946_v3, 0  ;;  %v3049_v2 = vadd.s32 3, %v3045_v50 }
 0x4fe   : > { %v3149_v27 = vsel %vm10351_vm10, 0, %v3147_v7  ;;  %7127 = vcosq.f32 %v3148_v47  ;;  %v3872_v45 = vxor.u32 2147483648, %v3871_v61  ;;  %v10374_v10 = vsel %vm3686_vm4, %v3768_v52, %v10195_v18 }
 0x4ff   : > { %v2950_v20 = vsel %vm2948_vm12, %v7120_v56, %v2949_v53  ;;  %7129 = vsinq.f32 %v3148_v47  ;;  %v3153_v49 = vadd.s32 3, %v3149_v27  ;;  %v10381_v43 = vsel %vm3582_vm0, %v3664_v12, %v10197_v58  ;;  %v12552_v47 = vld [vmem:[#allocation22_spill] sm:$0xff] }
 0x500   : > { %vm2944_vm6 = vweird.f32 %v12522_v1  ;;  %v2954_v42 = vsel %vm2947_vm11, %v2950_v20, %v2953_v57  ;;  %v10389_v37 = vsel %vm3894_vm15, %v3976_v5, %v10278_v39  ;;  %v12537_v18 = vand.u32 2147483647, %v9596_v46  ;;  %v12541_v39 = vld [vmem:[#allocation23_spill] sm:$0xff] }
 0x501   : > { %v2955_v13 = vsel %vm2944_vm6, nan, %v2954_v42  ;;  %v3250_v58 = vsub.s32 4, %v12540_v11  ;;  %vm3048_vm2 = vweird.f32 %v9384_v8  ;;  %v3050_v12 = vand.u32 3, %v3049_v2 }
 0x502   : > { %vm10393_vm13 = vcmp.le.f32.partialorder %v12537_v18, 0.7853982  ;;  %6584 = vmatmul.mubr.f32.gmra.mrb[20].mxu0 %v2955_v13  ;;  %v3354_v5 = vsub.s32 4, %v12541_v39  ;;  %v10406_v51 = vsel %vm3790_vm1, %v3872_v45, %v3871_v61  ;;  %v3154_v60 = vand.u32 3, %v3153_v49 }
 0x503   : > { %v3252_v1 = vsel %vm10393_vm13, %v9596_v46, %v10000_v36  ;;  %vm12542_vm3 = vcmp.lt.s32.totalorder %v9596_v46, 0  ;;  %v12544_v33 = vand.u32 2147483647, %v12543_v22  ;;  %v7124_v4 = vpop.eup %7123  ;;  %vm12547_vm10 = vcmp.lt.s32.totalorder %v12543_v22, 0 }
 0x504   : > { %v3251_v17 = vsel %vm12542_vm3, %v3250_v58, %v12540_v11  ;;  %7131 = vcosq.f32 %v3252_v1  ;;  %v3355_v25 = vsel %vm12547_vm10, %v3354_v5, %v12541_v39  ;;  %v7126_v56 = vpop.eup %7125  ;;  %v3056_v50 = vxor.u32 2147483648, %v7124_v4  ;;  %v12556_v39 = vld [vmem:[#allocation16_spill] sm:$0xff] }
 0x505   : > { %vm10413_vm5 = vcmp.le.f32.partialorder %v12544_v33, 0.7853982  ;;  %v3253_v36 = vsel %vm10393_vm13, 0, %v3251_v17  ;;  %vm3152_vm14 = vweird.f32 %v9352_v41  ;;  %7133 = vsinq.f32 %v3252_v1 }
 0x506   : > { %v3356_v16 = vsel %vm10413_vm5, %v12543_v22, %v12548_v9  ;;  %v3257_v48 = vadd.s32 3, %v3253_v36  ;;  %v3357_v26 = vsel %vm10413_vm5, 0, %v3355_v25  ;;  %vm3052_vm8 = vcmp.eq.s32.totalorder %v3050_v12, 0 }
 0x507   : > { %v3053_v14 = vxor.u32 2147483648, %v7126_v56  ;;  %vm3055_vm11 = vcmp.eq.s32.totalorder %v3050_v12, 2  ;;  %7135 = vcosq.f32 %v3356_v16  ;;  %v3361_v24 = vadd.s32 3, %v3357_v26 }
 0x508   : > { %v3057_v62 = vsel %vm3055_vm11, %v3056_v50, %v7126_v56  ;;  %v3258_v61 = vand.u32 3, %v3257_v48  ;;  %7137 = vsinq.f32 %v3356_v16  ;;  %v7128_v32 = vpop.eup %7127  ;;  %vm3051_vm12 = vcmp.lt.s32.totalorder %v3050_v12, 2 }
 0x509   : > { %v3054_v28 = vsel %vm3052_vm8, %v7124_v4, %v3053_v14  ;;  %v12549_v23 = vand.u32 2147483647, %v9714_v31  ;;  %v3458_v63 = vsub.s32 4, %v12552_v47  ;;  %v7130_v53 = vpop.eup %7129  ;;  %vm3155_vm13 = vcmp.lt.s32.totalorder %v3154_v60, 2 }
 0x50a   : > { %v3058_v57 = vsel %vm3051_vm12, %v3054_v28, %v3057_v62  ;;  %v3160_v2 = vxor.u32 2147483648, %v7128_v32  ;;  %vm3156_vm3 = vcmp.eq.s32.totalorder %v3154_v60, 0  ;;  %v3157_v20 = vxor.u32 2147483648, %v7130_v53 }
 0x50b   : > { %vm10431_vm6 = vcmp.le.f32.partialorder %v12549_v23, 0.7853982  ;;  %v3059_v45 = vsel %vm3048_vm2, nan, %v3058_v57  ;;  %vm3159_vm5 = vcmp.eq.s32.totalorder %v3154_v60, 2  ;;  %vm3256_vm10 = vweird.f32 %v9596_v46 }
 0x50c   : > { %v3460_v27 = vsel %vm10431_vm6, %v9714_v31, %v10270_v59  ;;  %6586 = vmatprep.mubr.f32.mxu0 %v3059_v45  ;;  %v3161_v49 = vsel %vm3159_vm5, %v3160_v2, %v7130_v53  ;;  %vm3259_vm8 = vcmp.lt.s32.totalorder %v3258_v61, 2  ;;  %v3362_v42 = vand.u32 3, %v3361_v24 }
 0x50d   : > { %v3459_v13 = vsel %vm3374_vm9, %v3458_v63, %v12552_v47  ;;  %v3158_v18 = vsel %vm3156_vm3, %v7128_v32, %v3157_v20  ;;  %vm3260_vm11 = vcmp.eq.s32.totalorder %v3258_v61, 0  ;;  %7139 = vcosq.f32 %v3460_v27  ;;  %v12563_v20 = vld [vmem:[#allocation27_spill] sm:$0xff] }
 0x50e   : > { %v3461_v59 = vsel %vm10431_vm6, 0, %v3459_v13  ;;  %v3162_v8 = vsel %vm3155_vm13, %v3158_v18, %v3161_v49  ;;  %7141 = vsinq.f32 %v3460_v27  ;;  %v12553_v11 = vand.u32 2147483647, %v9609_v29  ;;  %v7132_v12 = vpop.eup %7131 }
 0x50f   : > { %v3465_v52 = vadd.s32 3, %v3461_v59  ;;  %v3163_v1 = vsel %vm3152_vm14, nan, %v3162_v8  ;;  %vm3263_vm9 = vcmp.eq.s32.totalorder %v3258_v61, 2  ;;  %v3562_v5 = vsub.s32 4, %v12556_v39  ;;  %v7134_v17 = vpop.eup %7133 }
 0x510   : > { %vm10451_vm2 = vcmp.le.f32.partialorder %v12553_v11, 0.7853982  ;;  %6587 = vmatmul.mubr.f32.gmra.mrb[22].mxu0 %v3163_v1  ;;  %v3264_v33 = vxor.u32 2147483648, %v7132_v12  ;;  %vm3363_vm12 = vcmp.lt.s32.totalorder %v3362_v42, 2  ;;  %vm3364_vm6 = vcmp.eq.s32.totalorder %v3362_v42, 0 }
 0x511   : > { %v3564_v60 = vsel %vm10451_vm2, %v9609_v29, %v10257_v44  ;;  %v7136_v3 = vpop.eup %7135  ;;  %v3261_v4 = vxor.u32 2147483648, %v7134_v17  ;;  %v3563_v41 = vsel %vm3478_vm7, %v3562_v5, %v12556_v39  ;;  %v3666_v36 = vsub.s32 4, %v10078_v15 }
 0x512   : > { %7143 = vcosq.f32 %v3564_v60  ;;  %v7138_v25 = vpop.eup %7137  ;;  %v3265_v9 = vsel %vm3263_vm9, %v3264_v33, %v7134_v17  ;;  %vm3367_vm14 = vcmp.eq.s32.totalorder %v3362_v42, 2  ;;  %v3368_v16 = vxor.u32 2147483648, %v7136_v3 }
 0x513   : > { %7145 = vsinq.f32 %v3564_v60  ;;  %v3466_v44 = vand.u32 3, %v3465_v52  ;;  %v3262_v56 = vsel %vm3260_vm11, %v7132_v12, %v3261_v4  ;;  %v3365_v50 = vxor.u32 2147483648, %v7138_v25 }
 0x514   : > { %v3565_v48 = vsel %vm10451_vm2, 0, %v3563_v41  ;;  %v12557_v26 = vand.u32 2147483647, %v9847_v6  ;;  %v3266_v62 = vsel %vm3259_vm8, %v3262_v56, %v3265_v9  ;;  %v3369_v24 = vsel %vm3367_vm14, %v3368_v16, %v7138_v25 }
 0x515   : > { %v3569_v32 = vadd.s32 3, %v3565_v48  ;;  %v3667_v28 = vsel %vm3582_vm0, %v3666_v36, %v10078_v15  ;;  %v3267_v23 = vsel %vm3256_vm10, nan, %v3266_v62  ;;  %v3366_v7 = vsel %vm3364_vm6, %v7136_v3, %v3365_v50 }
 0x516   : > { %vm10471_vm13 = vcmp.le.f32.partialorder %v12557_v26, 0.7853982  ;;  %6589 = vmatprep.mubr.f32.mxu0 %v3267_v23  ;;  %vm3360_vm7 = vweird.f32 %v12543_v22  ;;  %v3370_v63 = vsel %vm3363_vm12, %v3366_v7, %v3369_v24  ;;  %vm3464_vm0 = vweird.f32 %v9714_v31 }
 0x517   : > { %v3668_v47 = vsel %vm10471_vm13, %v9847_v6, %v10381_v43  ;;  %v3669_v61 = vsel %vm10471_vm13, 0, %v3667_v28  ;;  %v3570_v53 = vand.u32 3, %v3569_v32  ;;  %v7140_v15 = vpop.eup %7139  ;;  %v3371_v46 = vsel %vm3360_vm7, nan, %v3370_v63 }
 0x518   : > { %7147 = vcosq.f32 %v3668_v47  ;;  %v3673_v57 = vadd.s32 3, %v3669_v61  ;;  %v7142_v2 = vpop.eup %7141  ;;  %6590 = vmatmul.mubr.f32.gmra.mrb[24].mxu0 %v3371_v46  ;;  %vm3467_vm3 = vcmp.lt.s32.totalorder %v3466_v44, 2  ;;  %vm3468_vm5 = vcmp.eq.s32.totalorder %v3466_v44, 0 }
 0x519   : > { %7149 = vsinq.f32 %v3668_v47  ;;  %v3472_v43 = vxor.u32 2147483648, %v7140_v15  ;;  %v12560_v27 = vand.u32 2147483647, %v9726_v0  ;;  %v3469_v22 = vxor.u32 2147483648, %v7142_v2 }
 0x51a   : > { %vm3471_vm8 = vcmp.eq.s32.totalorder %v3466_v44, 2  ;;  %v3770_v49 = vsub.s32 4, %v12563_v20  ;;  %vm3571_vm11 = vcmp.lt.s32.totalorder %v3570_v53, 2  ;;  %vm3572_vm2 = vcmp.eq.s32.totalorder %v3570_v53, 0 }
 0x51b   : > { %vm10493_vm10 = vcmp.le.f32.partialorder %v12560_v27, 0.7853982  ;;  %v3473_v18 = vsel %vm3471_vm8, %v3472_v43, %v7142_v2  ;;  %v3470_v8 = vsel %vm3468_vm5, %v7140_v15, %v3469_v22  ;;  %vm3575_vm9 = vcmp.eq.s32.totalorder %v3570_v53, 2 }
 0x51c   : > { %v3772_v42 = vsel %vm10493_vm10, %v9726_v0, %v10374_v10  ;;  %v7144_v13 = vpop.eup %7143  ;;  %v3674_v11 = vand.u32 3, %v3673_v57  ;;  %v3474_v58 = vsel %vm3467_vm3, %v3470_v8, %v3473_v18  ;;  %v3771_v1 = vsel %vm3686_vm4, %v3770_v49, %v12563_v20 }
 0x51d   : > { %7151 = vcosq.f32 %v3772_v42  ;;  %v7146_v59 = vpop.eup %7145  ;;  %v3576_v52 = vxor.u32 2147483648, %v7144_v13  ;;  %v12564_v39 = vand.u32 2147483647, %v9986_v40  ;;  %v3475_v5 = vsel %vm3464_vm0, nan, %v3474_v58 }
 0x51e   : > { %v3573_v12 = vxor.u32 2147483648, %v7146_v59  ;;  %v3773_v17 = vsel %vm10493_vm10, 0, %v3771_v1  ;;  %7153 = vsinq.f32 %v3772_v42  ;;  %6592 = vmatprep.mubr.f32.mxu0 %v3475_v5  ;;  %v3874_v4 = vsub.s32 4, %v10238_v35  ;;  %v10552_v1 = vld [vmem:[%s12139_s4 + $0x1] ss:$0 sm:$0xff] }
 0x51f   : > { %vm10508_vm12 = vcmp.le.f32.partialorder %v12564_v39, 0.7853982  ;;  %v3577_v60 = vsel %vm3575_vm9, %v3576_v52, %v7146_v59  ;;  %v3777_v3 = vadd.s32 3, %v3773_v17  ;;  %vm3568_vm4 = vweird.f32 %v9609_v29 }
 0x520   : > { %v3574_v33 = vsel %vm3572_vm2, %v7144_v13, %v3573_v12  ;;  %v3876_v41 = vsel %vm10508_vm12, %v9986_v40, %v10406_v51  ;;  %v3875_v9 = vsel %vm3790_vm1, %v3874_v4, %v10238_v35  ;;  %v12567_v16 = vand.u32 2147483647, %v9940_v55 }
 0x521   : > { %v3578_v31 = vsel %vm3571_vm11, %v3574_v33, %v3577_v60  ;;  %7155 = vcosq.f32 %v3876_v41  ;;  %v3877_v29 = vsel %vm10508_vm12, 0, %v3875_v9  ;;  %v3978_v50 = vsub.s32 4, %v10150_v30 }
 0x522   : > { %v7148_v36 = vpop.eup %7147  ;;  %v3579_v25 = vsel %vm3568_vm4, nan, %v3578_v31  ;;  %7157 = vsinq.f32 %v3876_v41  ;;  %vm10529_vm6 = vcmp.le.f32.partialorder %v12567_v16, 0.7853982  ;;  %vm3676_vm1 = vcmp.eq.s32.totalorder %v3674_v11, 0 }
 0x523   : > { %v7150_v56 = vpop.eup %7149  ;;  %6593 = vmatmul.mubr.f32.gmra.mrb[26].mxu0 %v3579_v25  ;;  %v3680_v51 = vxor.u32 2147483648, %v7148_v36  ;;  %v3980_v35 = vsel %vm10529_vm6, %v9940_v55, %v10389_v37  ;;  %vm3679_vm14 = vcmp.eq.s32.totalorder %v3674_v11, 2  ;;  %v3778_v26 = vand.u32 3, %v3777_v3 }
 0x524   : > { %v3677_v48 = vxor.u32 2147483648, %v7150_v56  ;;  %v3881_v62 = vadd.s32 3, %v3877_v29  ;;  %v3979_v24 = vsel %vm3894_vm15, %v3978_v50, %v10150_v30  ;;  %7159 = vcosq.f32 %v3980_v35 }
 0x525   : > { %v3681_v14 = vsel %vm3679_vm14, %v3680_v51, %v7150_v56  ;;  %vm3675_vm13 = vcmp.lt.s32.totalorder %v3674_v11, 2  ;;  %v3981_v23 = vsel %vm10529_vm6, 0, %v3979_v24  ;;  %7161 = vsinq.f32 %v3980_v35 }
 0x526   : > { %v3678_v28 = vsel %vm3676_vm1, %v7148_v36, %v3677_v48  ;;  %vm3672_vm7 = vweird.f32 %v9847_v6  ;;  %vm3783_vm0 = vcmp.eq.s32.totalorder %v3778_v26, 2  ;;  %v3882_v63 = vand.u32 3, %v3881_v62 }
 0x527   : > { %v7152_v32 = vpop.eup %7151  ;;  %v3682_v37 = vsel %vm3675_vm13, %v3678_v28, %v3681_v14  ;;  %v3985_v53 = vadd.s32 3, %v3981_v23  ;;  %vm3780_vm15 = vcmp.eq.s32.totalorder %v3778_v26, 0  ;;  %vm3776_vm3 = vweird.f32 %v9726_v0 }
 0x528   : > { %v3784_v7 = vxor.u32 2147483648, %v7152_v32  ;;  %v3683_v47 = vsel %vm3672_vm7, nan, %v3682_v37  ;;  %v7154_v61 = vpop.eup %7153  ;;  %vm3779_vm5 = vcmp.lt.s32.totalorder %v3778_v26, 2  ;;  %vm3887_vm10 = vcmp.eq.s32.totalorder %v3882_v63, 2 }
 0x529   : > { %6595 = vmatprep.mubr.f32.mxu0 %v3683_v47  ;;  %v3781_v15 = vxor.u32 2147483648, %v7154_v61  ;;  %v3986_v45 = vand.u32 3, %v3985_v53  ;;  %vm3884_vm8 = vcmp.eq.s32.totalorder %v3882_v63, 0  ;;  %vm3883_vm11 = vcmp.lt.s32.totalorder %v3882_v63, 2 }
 0x52a   : > { %v3785_v30 = vsel %vm3783_vm0, %v3784_v7, %v7154_v61  ;;  %vm3880_vm2 = vweird.f32 %v9986_v40  ;;  %vm3984_vm6 = vweird.f32 %v9940_v55  ;;  %v12570_v28 = vmov 2475754826  }
 0x52b   : > { %v7156_v46 = vpop.eup %7155  ;;  %v3782_v2 = vsel %vm3780_vm15, %v7152_v32, %v3781_v15  ;;  %vm3991_vm9 = vcmp.eq.s32.totalorder %v3986_v45, 2  ;;  %vm3988_vm12 = vcmp.eq.s32.totalorder %v3986_v45, 0  ;;  %vm3987_vm4 = vcmp.lt.s32.totalorder %v3986_v45, 2 }
 0x52c   : > { %v7158_v57 = vpop.eup %7157  ;;  %v3888_v43 = vxor.u32 2147483648, %v7156_v46  ;;  %v3786_v27 = vsel %vm3779_vm5, %v3782_v2, %v3785_v30 }
 0x52d   : > { %v3885_v6 = vxor.u32 2147483648, %v7158_v57  ;;  %v3787_v22 = vsel %vm3776_vm3, nan, %v3786_v27 }
 0x52e   : > { %v3889_v20 = vsel %vm3887_vm10, %v3888_v43, %v7158_v57  ;;  %v7160_v49 = vpop.eup %7159  ;;  %6596 = vmatmul.mubr.f32.gmra.mrb[28].mxu0 %v3787_v22 }
 0x52f   : > { %v3886_v42 = vsel %vm3884_vm8, %v7156_v46, %v3885_v6  ;;  %v7162_v13 = vpop.eup %7161  ;;  %v3992_v59 = vxor.u32 2147483648, %v7160_v49 }
 0x530   : > { %v3890_v18 = vsel %vm3883_vm11, %v3886_v42, %v3889_v20  ;;  %v3989_v8 = vxor.u32 2147483648, %v7162_v13 }
 0x531   : > { %v3891_v0 = vsel %vm3880_vm2, nan, %v3890_v18  ;;  %v3993_v52 = vsel %vm3991_vm9, %v3992_v59, %v7162_v13 }
 0x532   : > { %6598 = vmatprep.mubr.f32.mxu0 %v3891_v0  ;;  %v3990_v11 = vsel %vm3988_vm12, %v7160_v49, %v3989_v8 }
 0x533   : > { %v3994_v58 = vsel %vm3987_vm4, %v3990_v11, %v3993_v52 }
 0x534   : > { %v3995_v12 = vsel %vm3984_vm6, nan, %v3994_v58 }
 0x535   : > { %6599 = vmatmul.mubr.f32.gmra.mrb[30].mxu0 %v3995_v12 }
 0x5b7   : > { %v6579_v40 = vpop.f32.mrb[16].mxu0 }
 0x5b8   : > { %v10555_v39 = vadd.f32 %v6579_v40, %v10552_v1  ;;  %v4087_v10 = vpop.f32.mrb[17].mxu0 }
 0x5b9   : > { %v10558_v5 = vadd.f32 %v10552_v1, %v4087_v10 }
 0x5ba   : > { %v4270_v60 = vand.u32 2147483647, %v10555_v39  ;;  %v4273_v55 = vand.u32 2139095040, %v10555_v39 }
 0x5bb   : > { %v12267_v17 = vand.u32 2147483647, %v10558_v5  ;;  %v4169_v33 = vand.u32 2139095040, %v10558_v5 }
 0x5bc   : > { %v4274_v3 = vshrl.u32 %v4273_v55, 23  ;;  %v4277_v4 = vand.u32 8388607, %v4270_v60 }
 0x5bd   : > { %v4170_v41 = vshrl.u32 %v4169_v33, 23  ;;  %v4173_v31 = vand.u32 8388607, %v12267_v17 }
 0x5be   : > { %v6241_v36 = vadd.s32 4294967169, %v4274_v3  ;;  %v4278_v16 = vor.u32 8388608, %v4277_v4 }
 0x5bf   : > { %v6237_v25 = vadd.s32 4294967169, %v4170_v41  ;;  %v4174_v44 = vor.u32 8388608, %v4173_v31 }
 0x5c0   : > { %v4280_v9 = vadd.s32 1, %v6241_v36  ;;  %v10568_v48 = vshll.u32 %v4278_v16, 8 }
 0x5c1   : > { %v4176_v56 = vadd.s32 1, %v6237_v25  ;;  %v10570_v26 = vshll.u32 %v4174_v44, 8 }
 0x5c2   : > { %vm4281_vm1 = vcmp.gt.s32.totalorder %v4280_v9, 0 }
 0x5c3   : > { %v4282_v51 = vsel %vm4281_vm1, %v4280_v9, 0  ;;  %vm4177_vm14 = vcmp.gt.s32.totalorder %v4176_v56, 0 }
 0x5c4   : > { %v4283_v29 = vshrl.u32 %v4282_v51, 5  ;;  %v4284_v50 = vand.u32 31, %v4282_v51  ;;  %v4178_v35 = vsel %vm4177_vm14, %v4176_v56, 0 }
 0x5c5   : > { %v10573_v24 = vshrl.u32 %v4178_v35, 5  ;;  %v4180_v32 = vand.u32 31, %v4178_v35 }
 0x5c6   : > { %v4285_v14 = vsub.s32 32, %v4284_v50  ;;  %v4287_v62 = vshll.u32 %v12334_v19, %v4284_v50  ;;  %v4290_v23 = vshll.u32 %v12570_v28, %v4284_v50  ;;  %v4293_v37 = vshll.u32 %v12336_v21, %v4284_v50 }
 0x5c7   : > { %v4296_v7 = vshll.u32 %v12337_v34, %v4284_v50  ;;  %v4299_v47 = vshll.u32 %v12338_v38, %v4284_v50  ;;  %vm4302_vm13 = vcmp.lt.s32.totalorder %v4283_v29, 1  ;;  %vm4303_vm7 = vcmp.lt.s32.totalorder %v4283_v29, 2 }
 0x5c8   : > { %v4288_v61 = vshrl.u32 %v12570_v28, %v4285_v14  ;;  %v4291_v63 = vshrl.u32 %v12336_v21, %v4285_v14  ;;  %v4294_v53 = vshrl.u32 %v12337_v34, %v4285_v14  ;;  %v4286_v15 = vshrl.u32 %v12334_v19, %v4285_v14 }
 0x5c9   : > { %v4297_v30 = vshrl.u32 %v12338_v38, %v4285_v14  ;;  %v4300_v46 = vshrl.u32 %v12340_v54, %v4285_v14  ;;  %v4181_v6 = vsub.s32 32, %v4180_v32  ;;  %vm4304_vm0 = vcmp.lt.s32.totalorder %v4283_v29, 3 }
 0x5ca   : > { %v4289_v2 = vor.u32 %v4288_v61, %v4287_v62  ;;  %v4292_v43 = vor.u32 %v4291_v63, %v4290_v23  ;;  %v4295_v27 = vor.u32 %v4294_v53, %v4293_v37  ;;  %vm4305_vm15 = vcmp.lt.s32.totalorder %v4283_v29, 4 }
 0x5cb   : > { %v10585_v57 = vpop.f32.mrb[18].mxu0  ;;  %v4298_v22 = vor.u32 %v4297_v30, %v4296_v7  ;;  %v4301_v20 = vor.u32 %v4300_v46, %v4299_v47  ;;  %v4183_v52 = vshll.u32 %v12334_v19, %v4180_v32  ;;  %v4184_v12 = vshrl.u32 %v12570_v28, %v4181_v6 }
 0x5cc   : > { %v10587_v45 = vpop.f32.mrb[19].mxu0  ;;  %v4306_v49 = vsel %vm4302_vm13, %v4286_v15, %v4289_v2  ;;  %v4307_v42 = vsel %vm4305_vm15, %v4295_v27, 2102212464  ;;  %v4310_v13 = vsel %vm4302_vm13, %v4289_v2, %v4292_v43  ;;  %v4314_v18 = vsel %vm4302_vm13, %v4292_v43, %v4295_v27 }
 0x5cd   : > { %v4308_v59 = vsel %vm4304_vm0, %v4292_v43, %v4307_v42  ;;  %v4311_v0 = vsel %vm4305_vm15, %v4298_v22, 920167782  ;;  %v4315_v8 = vsel %vm4305_vm15, %v4301_v20, 1326507024  ;;  %v4186_v40 = vshll.u32 %v12570_v28, %v4180_v32 }
 0x5ce   : > { %v4312_v11 = vsel %vm4304_vm0, %v4295_v27, %v4311_v0  ;;  %v4316_v58 = vsel %vm4304_vm0, %v4298_v22, %v4315_v8  ;;  %v4309_v10 = vsel %vm4303_vm7, %v4306_v49, %v4308_v59  ;;  %v4187_v3 = vshrl.u32 %v12336_v21, %v4181_v6 }
 0x5cf   : > { %v4313_v55 = vsel %vm4303_vm7, %v4310_v13, %v4312_v11  ;;  %v4317_v33 = vsel %vm4303_vm7, %v4314_v18, %v4316_v58  ;;  %v4185_v25 = vor.u32 %v4184_v12, %v4183_v52  ;;  %v4189_v16 = vshll.u32 %v12336_v21, %v4180_v32 }
 0x5d0   : > { %v10600_v4 = vmul.u32.u64.low %v10568_v48, %v4317_v33  ;;  %v10601_v41 = vmul.u32.u64.high %v10568_v48, %v4317_v33, %v10600_v4  ;;  %v10604_v31 = vmul.u32.u64.low %v10568_v48, %v4313_v55  ;;  %v10605_v36 = vmul.u32.u64.high %v10568_v48, %v4313_v55, %v10604_v31 }
 0x5d1   : > { %v4188_v9 = vor.u32 %v4187_v3, %v4186_v40  ;;  %v4190_v44 = vshrl.u32 %v12337_v34, %v4181_v6  ;;  %v4182_v56 = vshrl.u32 %v12334_v19, %v4181_v6  ;;  %v4192_v51 = vshll.u32 %v12337_v34, %v4180_v32 }
 0x5d2   : > { %v4193_v29 = vshrl.u32 %v12338_v38, %v4181_v6  ;;  %v4196_v50 = vshrl.u32 %v12340_v54, %v4181_v6  ;;  %v4325_v14 = vmul.u32 %v10568_v48, %v4309_v10  ;;  %v4195_v23 = vshll.u32 %v12338_v38, %v4180_v32 }
 0x5d3   : > { %v4191_v62 = vor.u32 %v4190_v44, %v4189_v16  ;;  %vm4198_vm3 = vcmp.lt.s32.totalorder %v10573_v24, 1  ;;  %vm4327_vm5 = vc.u32 %v10601_v41, %v10604_v31  ;;  %v4328_v7 = vadd.s32 1, %v10605_v36 }
 0x5d4   : > { %v4194_v47 = vor.u32 %v4193_v29, %v4192_v51  ;;  %vm4199_vm10 = vcmp.lt.s32.totalorder %v10573_v24, 2  ;;  %v4197_v61 = vor.u32 %v4196_v50, %v4195_v23  ;;  %vm4200_vm8 = vcmp.lt.s32.totalorder %v10573_v24, 3 }
 0x5d5   : > { %v6585_v35 = vpop.f32.mrb[20].mxu0  ;;  %vm4201_vm11 = vcmp.lt.s32.totalorder %v10573_v24, 4  ;;  %v4206_v48 = vsel %vm4198_vm3, %v4185_v25, %v4188_v9  ;;  %v4329_v63 = vsel %vm4327_vm5, %v4328_v7, %v10605_v36  ;;  %v4210_v15 = vsel %vm4198_vm3, %v4188_v9, %v4191_v62 }
 0x5d6   : > { %v4107_v37 = vpop.f32.mrb[21].mxu0  ;;  %v4203_v32 = vsel %vm4201_vm11, %v4191_v62, 2102212464  ;;  %v4207_v53 = vsel %vm4201_vm11, %v4194_v47, 920167782  ;;  %v4330_v30 = vadd.s32 %v4329_v63, %v4325_v14  ;;  %v4202_v46 = vsel %vm4198_vm3, %v4182_v56, %v4185_v25 }
 0x5d7   : > { %v4208_v2 = vsel %vm4200_vm8, %v4191_v62, %v4207_v53  ;;  %v4211_v43 = vsel %vm4201_vm11, %v4197_v61, 1326507024  ;;  %v4204_v27 = vsel %vm4200_vm8, %v4188_v9, %v4203_v32  ;;  %v10628_v20 = vadd.f32 %v10585_v57, %v10552_v1 }
 0x5d8   : > { %v4209_v6 = vsel %vm4199_vm10, %v4206_v48, %v4208_v2  ;;  %v4212_v22 = vsel %vm4200_vm8, %v4194_v47, %v4211_v43  ;;  %v4331_v49 = vadd.s32 536870912, %v4330_v30  ;;  %v4205_v52 = vsel %vm4199_vm10, %v4202_v46, %v4204_v27 }
 0x5d9   : > { %12571 = vst [vmem:[#allocation19_spill] sm:$0xff] %v10628_v20  ;;  %v4213_v42 = vsel %vm4199_vm10, %v4210_v15, %v4212_v22  ;;  %v10633_v13 = vmul.u32.u64.low %v10570_v26, %v4209_v6  ;;  %v10634_v18 = vmul.u32.u64.high %v10570_v26, %v4209_v6, %v10633_v13  ;;  %v4481_v57 = vand.u32 2139095040, %v10628_v20 }
 0x5da   : > { %v10638_v59 = vmul.u32.u64.low %v10570_v26, %v4213_v42  ;;  %v10639_v0 = vmul.u32.u64.high %v10570_v26, %v4213_v42, %v10638_v59  ;;  %v10641_v8 = vshrl.u32 %v4331_v49, 30  ;;  %v4221_v40 = vmul.u32 %v10570_v26, %v4205_v52 }
 0x5db   : > { %v4224_v58 = vadd.s32 1, %v10634_v18  ;;  %v4482_v12 = vshrl.u32 %v4481_v57, 23  ;;  %v12264_v33 = vand.u32 2147483647, %v10628_v20  ;;  %v10659_v36 = vadd.f32 %v10552_v1, %v10587_v45 }
 0x5dc   : > { %v4333_v11 = vshll.u32 %v10641_v8, 30  ;;  %vm4223_vm2 = vc.u32 %v10639_v0, %v10633_v13  ;;  %v4326_v62 = vadd.s32 %v10604_v31, %v10601_v41  ;;  %v10674_v7 = vadd.f32 %v6585_v35, %v10552_v1 }
 0x5dd   : > { %v4225_v55 = vsel %vm4223_vm2, %v4224_v58, %v10634_v18  ;;  %v6249_v24 = vadd.s32 4294967169, %v4482_v12  ;;  %v4485_v56 = vand.u32 8388607, %v12264_v33  ;;  %v4377_v50 = vand.u32 2139095040, %v10659_v36 }
 0x5de   : > { %v10651_v10 = vsub.s32 %v4330_v30, %v4333_v11  ;;  %v4226_v4 = vadd.s32 %v4225_v55, %v4221_v40  ;;  %12572 = vst [vmem:[#allocation24_spill] sm:$0xff] %v10674_v7  ;;  %v10677_v47 = vadd.f32 %v10552_v1, %v4107_v37  ;;  %v12265_v32 = vand.u32 2147483647, %v10659_v36 }
 0x5df   : > { %v4488_v9 = vadd.s32 1, %v6249_v24  ;;  %v4486_v48 = vor.u32 8388608, %v4485_v56  ;;  %v4378_v31 = vshrl.u32 %v4377_v50, 23  ;;  %vm4272_vm2 = vcmp.lt.s32.totalorder %v10555_v39, 0 }
 0x5e0   : > { %v4336_v26 = vsub.s32 0, %v10651_v10  ;;  %v4227_v16 = vadd.s32 536870912, %v4226_v4 }
 0x5e1   : > { %vm4489_vm9 = vcmp.gt.s32.totalorder %v4488_v9, 0  ;;  %v10695_v59 = vshll.u32 %v4486_v48, 8 }
 0x5e2   : > { %v6242_v44 = vmin.u32 %v4336_v26, %v10651_v10  ;;  %v10667_v51 = vshrl.u32 %v4227_v16, 30  ;;  %v4490_v29 = vsel %vm4489_vm9, %v4488_v9, 0  ;;  %v6245_v26 = vadd.s32 4294967169, %v4378_v31 }
 0x5e3   : > { %v10655_v3 = vpop.f32.mrb[22].mxu0  ;;  %v4492_v45 = vand.u32 31, %v4490_v29  ;;  %v4491_v42 = vshrl.u32 %v4490_v29, 5  ;;  %v4381_v9 = vand.u32 8388607, %v12265_v32 }
 0x5e4   : > { %v10661_v25 = vpop.f32.mrb[23].mxu0  ;;  %v4338_v14 = vclz %v6242_v44  ;;  %v4229_v23 = vshll.u32 %v10667_v51, 30  ;;  %v12263_v16 = vand.u32 2147483647, %v10674_v7 }
 0x5e5   : > { %v4493_v63 = vsub.s32 32, %v4492_v45  ;;  %v4495_v30 = vshll.u32 %v12334_v19, %v4492_v45  ;;  %v4498_v41 = vshll.u32 %v12570_v28, %v4492_v45  ;;  %v4504_v2 = vshll.u32 %v12337_v34, %v4492_v45 }
 0x5e6   : > { %v6243_v61 = vadd.s32 4294967294, %v4338_v14  ;;  %v10682_v15 = vsub.s32 %v4226_v4, %v4229_v23  ;;  %v4501_v18 = vshll.u32 %v12336_v21, %v4492_v45  ;;  %v4507_v55 = vshll.u32 %v12338_v38, %v4492_v45 }
 0x5e7   : > { %v4496_v35 = vshrl.u32 %v12570_v28, %v4493_v63  ;;  %v4499_v37 = vshrl.u32 %v12336_v21, %v4493_v63  ;;  %v4502_v6 = vshrl.u32 %v12337_v34, %v4493_v63  ;;  %v4505_v22 = vshrl.u32 %v12338_v38, %v4493_v63 }
 0x5e8   : > { %vm6244_vm12 = vcmp.lt.s32.totalorder %v6243_v61, 0  ;;  %v4232_v27 = vsub.s32 0, %v10682_v15  ;;  %v4508_v24 = vshrl.u32 %v12340_v54, %v4493_v63  ;;  %vm4510_vm4 = vcmp.lt.s32.totalorder %v4491_v42, 1 }
 0x5e9   : > { %v4341_v43 = vsel %vm6244_vm12, 0, %v6243_v61  ;;  %v4497_v57 = vor.u32 %v4496_v35, %v4495_v30  ;;  %v4500_v11 = vor.u32 %v4499_v37, %v4498_v41  ;;  %v4506_v58 = vor.u32 %v4505_v22, %v4504_v2 }
 0x5ea   : > { %v4346_v49 = vsub.s32 4294967266, %v4341_v43  ;;  %v6238_v52 = vmin.u32 %v4232_v27, %v10682_v15  ;;  %v4342_v12 = vsub.s32 32, %v4341_v43  ;;  %v4503_v40 = vor.u32 %v4502_v6, %v4501_v18 }
 0x5eb   : > { %v10680_v53 = vpop.f32.mrb[24].mxu0  ;;  %v4509_v56 = vor.u32 %v4508_v24, %v4507_v55  ;;  %vm4513_vm6 = vcmp.lt.s32.totalorder %v4491_v42, 4  ;;  %vm4512_vm1 = vcmp.lt.s32.totalorder %v4491_v42, 3  ;;  %v4518_v29 = vsel %vm4510_vm4, %v4497_v57, %v4500_v11 }
 0x5ec   : > { %v10686_v46 = vpop.f32.mrb[25].mxu0  ;;  %v4234_v4 = vclz %v6238_v52  ;;  %v4347_v44 = vadd.s32 127, %v4346_v49  ;;  %v4519_v50 = vsel %vm4513_vm6, %v4506_v58, 920167782  ;;  %v4689_v14 = vand.u32 2139095040, %v10674_v7 }
 0x5ed   : > { %v4344_v23 = vshrl.u32 %v4326_v62, %v4342_v12  ;;  %v4494_v61 = vshrl.u32 %v12334_v19, %v4493_v63  ;;  %vm4511_vm14 = vcmp.lt.s32.totalorder %v4491_v42, 2  ;;  %v4520_v48 = vsel %vm4512_vm1, %v4503_v40, %v4519_v50 }
 0x5ee   : > { %v6239_v30 = vadd.s32 4294967294, %v4234_v4  ;;  %v4515_v41 = vsel %vm4513_vm6, %v4503_v40, 2102212464  ;;  %v4521_v31 = vsel %vm4511_vm14, %v4518_v29, %v4520_v48  ;;  %v4522_v35 = vsel %vm4510_vm4, %v4500_v11, %v4503_v40 }
 0x5ef   : > { %v4348_v37 = vshll.u32 %v4347_v44, 23  ;;  %v4523_v2 = vsel %vm4513_vm6, %v4509_v56, 1326507024  ;;  %v4382_v27 = vor.u32 8388608, %v4381_v9  ;;  %v4384_v6 = vadd.s32 1, %v6245_v26 }
 0x5f0   : > { %v4343_v22 = vshll.u32 %v10651_v10, %v4341_v43  ;;  %v4514_v49 = vsel %vm4510_vm4, %v4494_v61, %v4497_v57  ;;  %v4524_v62 = vsel %vm4512_vm1, %v4506_v58, %v4523_v2  ;;  %v4690_v63 = vshrl.u32 %v4689_v14, 23 }
 0x5f1   : > { %v4516_v18 = vsel %vm4512_vm1, %v4500_v11, %v4515_v41  ;;  %v4525_v52 = vsel %vm4511_vm14, %v4522_v35, %v4524_v62  ;;  %v10717_v12 = vmul.u32.u64.low %v10695_v59, %v4521_v31  ;;  %v10718_v55 = vmul.u32.u64.high %v10695_v59, %v4521_v31, %v10717_v12 }
 0x5f2   : > { %v4345_v40 = vor.u32 %v4344_v23, %v4343_v22  ;;  %vm6240_vm13 = vcmp.lt.s32.totalorder %v6239_v30, 0  ;;  %v10722_v24 = vmul.u32.u64.low %v10695_v59, %v4525_v52  ;;  %v10723_v4 = vmul.u32.u64.high %v10695_v59, %v4525_v52, %v10722_v24 }
 0x5f3   : > { %v4349_v10 = vor.u32 4788187, %v4348_v37  ;;  %vm4385_vm7 = vcmp.gt.s32.totalorder %v4384_v6, 0  ;;  %v10727_v43 = vadd.s32 %v10633_v13, %v10639_v0  ;;  %v4517_v57 = vsel %vm4511_vm14, %v4514_v49, %v4516_v18 }
 0x5f4   : > { %v4386_v11 = vsel %vm4385_vm7, %v4384_v6, 0  ;;  %v10730_v58 = vsel %vm6240_vm13, 0, %v6239_v30  ;;  %v4536_v26 = vadd.s32 1, %v10718_v55  ;;  %v10735_v44 = vand.u32 8388607, %v12263_v16 }
 0x5f5   : > { %v4388_v9 = vand.u32 31, %v4386_v11  ;;  %v4352_v56 = vcvt.s32.f32 %v4345_v40  ;;  %v10737_v29 = vshll.u32 %v4382_v27, 8  ;;  %v6257_v50 = vadd.s32 4294967169, %v4690_v63 }
 0x5f6   : > { %v10705_v45 = vpop.f32.mrb[26].mxu0  ;;  %v12266_v14 = vand.u32 2147483647, %v10677_v47  ;;  %v4350_v13 = vand.u32 2147483647, %v4349_v10  ;;  %v4533_v0 = vmul.u32 %v10695_v59, %v4517_v57  ;;  %vm4535_vm0 = vc.u32 %v10723_v4, %v10717_v12 }
 0x5f7   : > { %v4389_v42 = vsub.s32 32, %v4388_v9  ;;  %v4238_v23 = vsub.s32 32, %v10730_v58  ;;  %v4242_v61 = vsub.s32 4294967266, %v10730_v58  ;;  %v4537_v48 = vsel %vm4535_vm0, %v4536_v26, %v10718_v55  ;;  %v10750_v59 = vpop.f32.mrb[27].mxu0 }
 0x5f8   : > { %v4391_v30 = vshll.u32 %v12334_v19, %v4388_v9  ;;  %v4538_v41 = vadd.s32 %v4537_v48, %v4533_v0  ;;  %v4394_v35 = vshll.u32 %v12570_v28, %v4388_v9  ;;  %v4387_v2 = vshrl.u32 %v4386_v11, 5 }
 0x5f9   : > { %v4392_v31 = vshrl.u32 %v12570_v28, %v4389_v42  ;;  %v4395_v37 = vshrl.u32 %v12336_v21, %v4389_v42  ;;  %v4397_v27 = vshll.u32 %v12336_v21, %v4388_v9  ;;  %v4398_v6 = vshrl.u32 %v12337_v34, %v4389_v42 }
 0x5fa   : > { %v4400_v22 = vshll.u32 %v12337_v34, %v4388_v9  ;;  %v4539_v49 = vadd.s32 536870912, %v4538_v41  ;;  %v4401_v18 = vshrl.u32 %v12338_v38, %v4389_v42  ;;  %v10756_v52 = vmul.f32 %v4352_v56, %v4350_v13 }
 0x5fb   : > { %v4393_v62 = vor.u32 %v4392_v31, %v4391_v30  ;;  %v4396_v63 = vor.u32 %v4395_v37, %v4394_v35  ;;  %v4399_v55 = vor.u32 %v4398_v6, %v4397_v27  ;;  %v4403_v40 = vshll.u32 %v12338_v38, %v4388_v9 }
 0x5fc   : > { %v4404_v24 = vshrl.u32 %v12340_v54, %v4389_v42  ;;  %v10760_v10 = vshrl.u32 %v4539_v49, 30  ;;  %v4390_v57 = vshrl.u32 %v12334_v19, %v4389_v42  ;;  %v4402_v11 = vor.u32 %v4401_v18, %v4400_v22 }
 0x5fd   : > { %v4696_v26 = vadd.s32 1, %v6257_v50  ;;  %vm4406_vm15 = vcmp.lt.s32.totalorder %v4387_v2, 1  ;;  %vm4408_vm3 = vcmp.lt.s32.totalorder %v4387_v2, 3  ;;  %vm4409_vm5 = vcmp.lt.s32.totalorder %v4387_v2, 4 }
 0x5fe   : > { %12573 = vst [vmem:[#allocation32_spill] sm:$0xff] %v10760_v10  ;;  %v4405_v0 = vor.u32 %v4404_v24, %v4403_v40  ;;  %v4541_v48 = vshll.u32 %v10760_v10, 30  ;;  %v4410_v30 = vsel %vm4406_vm15, %v4390_v57, %v4393_v62  ;;  %v4411_v56 = vsel %vm4409_vm5, %v4399_v55, 2102212464 }
 0x5ff   : > { %v4414_v13 = vsel %vm4406_vm15, %v4393_v62, %v4396_v63  ;;  %v4412_v31 = vsel %vm4408_vm3, %v4396_v63, %v4411_v56  ;;  %v4415_v35 = vsel %vm4409_vm5, %v4402_v11, 920167782  ;;  %v4418_v9 = vsel %vm4406_vm15, %v4396_v63, %v4399_v55 }
 0x600   : > { %v4419_v37 = vsel %vm4409_vm5, %v4405_v0, 1326507024  ;;  %v10764_v27 = vsub.s32 %v4538_v41, %v4541_v48  ;;  %vm4407_vm10 = vcmp.lt.s32.totalorder %v4387_v2, 2  ;;  %v4416_v6 = vsel %vm4408_vm3, %v4399_v55, %v4415_v35 }
 0x601   : > { %v4420_v42 = vsel %vm4408_vm3, %v4402_v11, %v4419_v37  ;;  %v4413_v22 = vsel %vm4407_vm10, %v4410_v30, %v4412_v31  ;;  %v4417_v50 = vsel %vm4407_vm10, %v4414_v13, %v4416_v6  ;;  %vm4697_vm8 = vcmp.gt.s32.totalorder %v4696_v26, 0 }
 0x602   : > { %v4421_v49 = vsel %vm4407_vm10, %v4418_v9, %v4420_v42  ;;  %v4544_v18 = vsub.s32 0, %v10764_v27  ;;  %v4698_v62 = vsel %vm4697_vm8, %v4696_v26, 0  ;;  %v4694_v41 = vor.u32 8388608, %v10735_v44 }
 0x603   : > { %v10768_v40 = vmul.u32.u64.low %v10737_v29, %v4421_v49  ;;  %v10769_v24 = vmul.u32.u64.high %v10737_v29, %v4421_v49, %v10768_v40  ;;  %v10772_v57 = vmul.u32.u64.low %v10737_v29, %v4417_v50  ;;  %v10773_v63 = vmul.u32.u64.high %v10737_v29, %v4417_v50, %v10772_v57 }
 0x604   : > { %v4700_v2 = vand.u32 31, %v4698_v62  ;;  %v4239_v55 = vshll.u32 %v10682_v15, %v10730_v58  ;;  %v4240_v11 = vshrl.u32 %v10727_v43, %v4238_v23  ;;  %v10780_v0 = vadd.s32 127, %v4242_v61 }
 0x605   : > { %v6250_v48 = vmin.u32 %v4544_v18, %v10764_v27  ;;  %v4354_v30 = vxor.u32 2147483648, %v10756_v52  ;;  %v4429_v26 = vmul.u32 %v10737_v29, %v4413_v22  ;;  %v4585_v13 = vand.u32 2139095040, %v10677_v47 }
 0x606   : > { %v4701_v56 = vsub.s32 32, %v4700_v2  ;;  %vm4431_vm11 = vc.u32 %v10769_v24, %v10772_v57  ;;  %v4699_v44 = vshrl.u32 %v4698_v62, 5  ;;  %v4703_v15 = vshll.u32 %v12334_v19, %v4700_v2 }
 0x607   : > { %v4546_v31 = vclz %v6250_v48  ;;  %v4432_v43 = vadd.s32 1, %v10773_v63  ;;  %v4706_v23 = vshll.u32 %v12570_v28, %v4700_v2  ;;  %v4709_v29 = vshll.u32 %v12336_v21, %v4700_v2 }
 0x608   : > { %v4704_v58 = vshrl.u32 %v12570_v28, %v4701_v56  ;;  %v4707_v61 = vshrl.u32 %v12336_v21, %v4701_v56  ;;  %v4710_v9 = vshrl.u32 %v12337_v34, %v4701_v56  ;;  %v4713_v37 = vshrl.u32 %v12338_v38, %v4701_v56 }
 0x609   : > { %v6251_v35 = vadd.s32 4294967294, %v4546_v31  ;;  %v4433_v6 = vsel %vm4431_vm11, %v4432_v43, %v10773_v63  ;;  %v4712_v42 = vshll.u32 %v12337_v34, %v4700_v2  ;;  %v4715_v22 = vshll.u32 %v12338_v38, %v4700_v2 }
 0x60a   : > { %v4716_v50 = vshrl.u32 %v12340_v54, %v4701_v56  ;;  %v4434_v49 = vadd.s32 %v4433_v6, %v4429_v26  ;;  %v4705_v18 = vor.u32 %v4704_v58, %v4703_v15  ;;  %v4708_v40 = vor.u32 %v4707_v61, %v4706_v23 }
 0x60b   : > { %vm6252_vm9 = vcmp.lt.s32.totalorder %v6251_v35, 0  ;;  %v4711_v48 = vor.u32 %v4710_v9, %v4709_v29  ;;  %v4714_v31 = vor.u32 %v4713_v37, %v4712_v42  ;;  %v10801_v33 = vor.u32 %v4240_v11, %v4239_v55 }
 0x60c   : > { %v4549_v62 = vsel %vm6252_vm9, 0, %v6251_v35  ;;  %v4717_v16 = vor.u32 %v4716_v50, %v4715_v22  ;;  %v4244_v63 = vshll.u32 %v10780_v0, 23  ;;  %v4435_v43 = vadd.s32 536870912, %v4434_v49  ;;  %v10822_v22 = vpop.f32.mrb[28].mxu0 }
 0x60d   : > { %v4734_v32 = vshll.u32 %v4694_v41, 8  ;;  %vm10806_vm12 = vcmp.le.f32.partialorder %v4270_v60, 0.7853982  ;;  %v4534_v26 = vadd.s32 %v10717_v12, %v10723_v4  ;;  %v4554_v15 = vsub.s32 4294967266, %v4549_v62 }
 0x60e   : > { %v4702_v58 = vshrl.u32 %v12334_v19, %v4701_v56  ;;  %v4586_v23 = vshrl.u32 %v4585_v13, 23  ;;  %v10813_v61 = vshrl.u32 %v4435_v43, 30  ;;  %vm4718_vm4 = vcmp.lt.s32.totalorder %v4699_v44, 1 }
 0x60f   : > { %vm4719_vm6 = vcmp.lt.s32.totalorder %v4699_v44, 2  ;;  %vm4721_vm1 = vcmp.lt.s32.totalorder %v4699_v44, 4  ;;  %v4726_v41 = vsel %vm4718_vm4, %v4705_v18, %v4708_v40  ;;  %v4550_v0 = vsub.s32 32, %v4549_v62 }
 0x610   : > { %12576 = vst [vmem:[#allocation29_spill] sm:$0xff] %v10813_v61  ;;  %v4723_v55 = vsel %vm4721_vm1, %v4711_v48, 2102212464  ;;  %v4727_v11 = vsel %vm4721_vm1, %v4714_v31, 920167782  ;;  %v4437_v35 = vshll.u32 %v10813_v61, 30  ;;  %v4730_v12 = vsel %vm4718_vm4, %v4708_v40, %v4711_v48 }
 0x611   : > { %v4731_v60 = vsel %vm4721_vm1, %v4717_v16, 1326507024  ;;  %vm4720_vm14 = vcmp.lt.s32.totalorder %v4699_v44, 3  ;;  %v4555_v4 = vadd.s32 127, %v4554_v15  ;;  %v6253_v13 = vadd.s32 4294967169, %v4586_v23 }
 0x612   : > { %v4728_v29 = vsel %vm4720_vm14, %v4711_v48, %v4727_v11  ;;  %v4732_v56 = vsel %vm4720_vm14, %v4714_v31, %v4731_v60  ;;  %v10818_v9 = vsub.s32 %v4434_v49, %v4437_v35  ;;  %v4722_v37 = vsel %vm4718_vm4, %v4702_v58, %v4705_v18 }
 0x613   : > { %v4724_v6 = vsel %vm4720_vm14, %v4708_v40, %v4723_v55  ;;  %v4729_v42 = vsel %vm4719_vm6, %v4726_v41, %v4728_v29  ;;  %v4355_v16 = vsel %vm4272_vm2, %v4354_v30, %v10756_v52  ;;  %v4733_v50 = vsel %vm4719_vm6, %v4730_v12, %v4732_v56 }
 0x614   : > { %v10828_v43 = vmul.u32.u64.low %v4734_v32, %v4729_v42  ;;  %v10829_v15 = vmul.u32.u64.high %v4734_v32, %v4729_v42, %v10828_v43  ;;  %v4552_v48 = vshrl.u32 %v4534_v26, %v4550_v0  ;;  %v4440_v49 = vsub.s32 0, %v10818_v9 }
 0x615   : > { %v10833_v31 = vmul.u32.u64.low %v4734_v32, %v4733_v50  ;;  %v10834_v18 = vmul.u32.u64.high %v4734_v32, %v4733_v50, %v10833_v31  ;;  %v4556_v40 = vshll.u32 %v4555_v4, 23  ;;  %v4725_v58 = vsel %vm4719_vm6, %v4722_v37, %v4724_v6 }
 0x616   : > { %v4589_v23 = vand.u32 8388607, %v12266_v14  ;;  %v4592_v55 = vadd.s32 1, %v6253_v13  ;;  %v4358_v52 = vsel %vm10806_vm12, %v10555_v39, %v4355_v16  ;;  %v4551_v30 = vshll.u32 %v10764_v27, %v4549_v62 }
 0x617   : > { %v6246_v26 = vmin.u32 %v4440_v49, %v10818_v9  ;;  %v10846_v41 = vadd.f32 %v10655_v3, %v10552_v1  ;;  %v10848_v11 = vor.u32 4788187, %v4244_v63  ;;  %v4744_v60 = vadd.s32 1, %v10829_v15 }
 0x618   : > { %vm4593_vm13 = vcmp.gt.s32.totalorder %v4592_v55, 0  ;;  %v10852_v0 = vor.u32 %v4552_v48, %v4551_v30  ;;  %v4741_v12 = vmul.u32 %v4734_v32, %v4725_v58  ;;  %vm4743_vm7 = vc.u32 %v10834_v18, %v10828_v43 }
 0x619   : > { %12577 = vst [vmem:[#allocation28_spill] sm:$0xff] %v10846_v41  ;;  %v4442_v35 = vclz %v6246_v26  ;;  %v10856_v27 = vor.u32 4788187, %v4556_v40  ;;  %v4745_v62 = vsel %vm4743_vm7, %v4744_v60, %v10829_v15  ;;  %v4590_v3 = vor.u32 8388608, %v4589_v23 }
 0x61a   : > { %v4594_v4 = vsel %vm4593_vm13, %v4592_v55, 0  ;;  %7163 = vcosq.f32 %v4358_v52  ;;  %v4746_v29 = vadd.s32 %v4745_v62, %v4741_v12  ;;  %v4897_v56 = vand.u32 2139095040, %v10846_v41 }
 0x61b   : > { %v6247_v63 = vadd.s32 4294967294, %v4442_v35  ;;  %7165 = vsinq.f32 %v4358_v52  ;;  %v4430_v32 = vadd.s32 %v10772_v57, %v10769_v24  ;;  %v4596_v37 = vand.u32 31, %v4594_v4  ;;  %v10887_v35 = vpop.f32.mrb[29].mxu0 }
 0x61c   : > { %v4747_v42 = vadd.s32 536870912, %v4746_v29  ;;  %v12268_v16 = vand.u32 2147483647, %v10846_v41  ;;  %v10866_v48 = vshll.u32 %v4590_v3, 8  ;;  %v10870_v49 = vadd.f32 %v10552_v1, %v10661_v25 }
 0x61d   : > { %vm6248_vm0 = vcmp.lt.s32.totalorder %v6247_v63, 0  ;;  %v4597_v15 = vsub.s32 32, %v4596_v37  ;;  %v4595_v24 = vshrl.u32 %v4594_v4, 5  ;;  %v4898_v57 = vshrl.u32 %v4897_v56, 23 }
 0x61e   : > { %v10872_v31 = vsel %vm6248_vm0, 0, %v6247_v63  ;;  %v10874_v40 = vshrl.u32 %v4747_v42, 30  ;;  %v4599_v58 = vshll.u32 %v12334_v19, %v4596_v37  ;;  %v4602_v55 = vshll.u32 %v12570_v28, %v4596_v37 }
 0x61f   : > { %v4600_v23 = vshrl.u32 %v12570_v28, %v4597_v15  ;;  %v4603_v52 = vshrl.u32 %v12336_v21, %v4597_v15  ;;  %v4605_v26 = vshll.u32 %v12336_v21, %v4596_v37  ;;  %v4606_v25 = vshrl.u32 %v12337_v34, %v4597_v15 }
 0x620   : > { %12578 = vst [vmem:[#allocation35_spill] sm:$0xff] %v10874_v40  ;;  %v4749_v30 = vshll.u32 %v10874_v40, 30  ;;  %v10885_v60 = vand.u32 8388607, %v12268_v16  ;;  %v4608_v3 = vshll.u32 %v12337_v34, %v4596_v37  ;;  %v4609_v4 = vshrl.u32 %v12338_v38, %v4597_v15 }
 0x621   : > { %v4601_v12 = vor.u32 %v4600_v23, %v4599_v58  ;;  %v4604_v62 = vor.u32 %v4603_v52, %v4602_v55  ;;  %v4450_v63 = vsub.s32 4294967266, %v10872_v31  ;;  %v4607_v42 = vor.u32 %v4606_v25, %v4605_v26 }
 0x622   : > { %v10892_v56 = vsub.s32 %v4746_v29, %v4749_v30  ;;  %v6265_v14 = vadd.s32 4294967169, %v4898_v57  ;;  %v4610_v17 = vor.u32 %v4609_v4, %v4608_v3  ;;  %v4611_v6 = vshll.u32 %v12338_v38, %v4596_v37 }
 0x623   : > { %v4612_v16 = vshrl.u32 %v12340_v54, %v4597_v15  ;;  %vm4614_vm15 = vcmp.lt.s32.totalorder %v4595_v24, 1  ;;  %v4446_v58 = vsub.s32 32, %v10872_v31  ;;  %vm4615_vm3 = vcmp.lt.s32.totalorder %v4595_v24, 2 }
 0x624   : > { %v10896_v50 = vpop.eup %7163  ;;  %v4752_v23 = vsub.s32 0, %v10892_v56  ;;  %vm4617_vm5 = vcmp.lt.s32.totalorder %v4595_v24, 4  ;;  %v4598_v29 = vshrl.u32 %v12334_v19, %v4597_v15  ;;  %v4622_v30 = vsel %vm4614_vm15, %v4601_v12, %v4604_v62 }
 0x625   : > { %12579 = vst [vmem:[#allocation33_spill] sm:$0xff] %v10896_v50  ;;  %v10900_v55 = vpop.eup %7165  ;;  %v4613_v52 = vor.u32 %v4612_v16, %v4611_v6  ;;  %v4619_v57 = vsel %vm4617_vm5, %v4607_v42, 2102212464  ;;  %v4451_v37 = vadd.s32 127, %v4450_v63  ;;  %vm4616_vm10 = vcmp.lt.s32.totalorder %v4595_v24, 3 }
 0x626   : > { %12580 = vst [vmem:[#allocation12_spill] sm:$0xff] %v10900_v55  ;;  %v6258_v26 = vmin.u32 %v4752_v23, %v10892_v56  ;;  %v4623_v25 = vsel %vm4617_vm5, %v4610_v17, 920167782  ;;  %v4618_v3 = vsel %vm4614_vm15, %v4598_v29, %v4601_v12  ;;  %v4626_v44 = vsel %vm4614_vm15, %v4604_v62, %v4607_v42 }
 0x627   : > { %v4624_v4 = vsel %vm4616_vm10, %v4607_v42, %v4623_v25  ;;  %v4627_v13 = vsel %vm4617_vm5, %v4613_v52, 1326507024  ;;  %v4620_v10 = vsel %vm4616_vm10, %v4604_v62, %v4619_v57  ;;  %v4448_v6 = vshrl.u32 %v4430_v32, %v4446_v58 }
 0x628   : > { %v4754_v40 = vclz %v6258_v26  ;;  %v4625_v50 = vsel %vm4615_vm3, %v4622_v30, %v4624_v4  ;;  %v4628_v15 = vsel %vm4616_vm10, %v4610_v17, %v4627_v13  ;;  %v4452_v23 = vshll.u32 %v4451_v37, 23 }
 0x629   : > { %v4629_v16 = vsel %vm4615_vm3, %v4626_v44, %v4628_v15  ;;  %v10910_v63 = vmul.u32.u64.low %v10866_v48, %v4625_v50  ;;  %v10911_v61 = vmul.u32.u64.high %v10866_v48, %v4625_v50, %v10910_v63  ;;  %v4621_v42 = vsel %vm4615_vm3, %v4618_v3, %v4620_v10 }
 0x62a   : > { %v6259_v55 = vadd.s32 4294967294, %v4754_v40  ;;  %v10915_v12 = vmul.u32.u64.low %v10866_v48, %v4629_v16  ;;  %v10916_v29 = vmul.u32.u64.high %v10866_v48, %v4629_v16, %v10915_v12  ;;  %v4904_v62 = vadd.s32 1, %v6265_v14 }
 0x62b   : > { %v12277_v52 = vand.u32 2147483647, %v10870_v49  ;;  %v4793_v17 = vand.u32 2139095040, %v10870_v49  ;;  %v12581_v44 = vand.u32 2147483647, %v10848_v11  ;;  %v12582_v13 = vcvt.s32.f32 %v10801_v33 }
 0x62c   : > { %v12583_v50 = vand.u32 2147483647, %v10856_v27  ;;  %v12584_v40 = vcvt.s32.f32 %v10852_v0  ;;  %v4447_v10 = vshll.u32 %v10818_v9, %v10872_v31  ;;  %vm6260_vm8 = vcmp.lt.s32.totalorder %v6259_v55, 0 }
 0x62d   : > { %v10925_v32 = vmul.f32 %v12582_v13, %v12581_v44  ;;  %v10935_v14 = vsel %vm6260_vm8, 0, %v6259_v55  ;;  %v4640_v24 = vadd.s32 1, %v10911_v61  ;;  %vm4905_vm11 = vcmp.gt.s32.totalorder %v4904_v62, 0 }
 0x62e   : > { %v10931_v58 = vmul.f32 %v12584_v40, %v12583_v50  ;;  %v4794_v11 = vshrl.u32 %v4793_v17, 23  ;;  %v10938_v57 = vor.u32 %v4448_v6, %v4447_v10  ;;  %v10940_v33 = vor.u32 4788187, %v4452_v23 }
 0x62f   : > { %v4637_v27 = vmul.u32 %v10866_v48, %v4621_v42  ;;  %v4902_v0 = vor.u32 8388608, %v10885_v60  ;;  %v4762_v30 = vsub.s32 4294967266, %v10935_v14  ;;  %vm4639_vm9 = vc.u32 %v10916_v29, %v10910_v63 }
 0x630   : > { %v4906_v9 = vsel %vm4905_vm11, %v4904_v62, 0  ;;  %v10949_v31 = vand.u32 8388607, %v12277_v52  ;;  %v4641_v37 = vsel %vm4639_vm9, %v4640_v24, %v10911_v61  ;;  %v6261_v26 = vadd.s32 4294967169, %v4794_v11 }
 0x631   : > { %v10955_v48 = vadd.f32 %v10680_v53, %v10552_v1  ;;  %v4742_v25 = vadd.s32 %v10828_v43, %v10834_v18  ;;  %v4642_v3 = vadd.s32 %v4641_v37, %v4637_v27  ;;  %v4908_v4 = vand.u32 31, %v4906_v9 }
 0x632   : > { %v4454_v15 = vand.u32 2147483647, %v10940_v33  ;;  %v4456_v6 = vcvt.s32.f32 %v10938_v57  ;;  %v4758_v16 = vsub.s32 32, %v10935_v14  ;;  %v10963_v23 = vshll.u32 %v4902_v0, 8  ;;  %v10977_v57 = vpop.f32.mrb[30].mxu0 }
 0x633   : > { %v4763_v61 = vadd.s32 127, %v4762_v30  ;;  %v4643_v12 = vadd.s32 536870912, %v4642_v3  ;;  %v4909_v42 = vsub.s32 32, %v4908_v4  ;;  %v4798_v1 = vor.u32 8388608, %v10949_v31 }
 0x634   : > { %v4907_v53 = vshrl.u32 %v4906_v9, 5  ;;  %v4911_v62 = vshll.u32 %v12334_v19, %v4908_v4  ;;  %v4914_v43 = vshll.u32 %v12570_v28, %v4908_v4  ;;  %v4800_v18 = vadd.s32 1, %v6261_v26 }
 0x635   : > { %v10968_v17 = vshrl.u32 %v4643_v12, 30  ;;  %v4912_v44 = vshrl.u32 %v12570_v28, %v4909_v42  ;;  %v4915_v13 = vshrl.u32 %v12336_v21, %v4909_v42  ;;  %v4917_v50 = vshll.u32 %v12336_v21, %v4908_v4 }
 0x636   : > { %v4918_v40 = vshrl.u32 %v12337_v34, %v4909_v42  ;;  %v4920_v10 = vshll.u32 %v12337_v34, %v4908_v4  ;;  %v4921_v24 = vshrl.u32 %v12338_v38, %v4909_v42  ;;  %v4923_v11 = vshll.u32 %v12338_v38, %v4908_v4 }
 0x637   : > { %12585 = vst [vmem:[#allocation14_spill] sm:$0xff] %v10968_v17  ;;  %v4645_v33 = vshll.u32 %v10968_v17, 30  ;;  %v4913_v27 = vor.u32 %v4912_v44, %v4911_v62  ;;  %v4916_v0 = vor.u32 %v4915_v13, %v4914_v43  ;;  %v4924_v30 = vshrl.u32 %v12340_v54, %v4909_v42 }
 0x638   : > { %v4764_v9 = vshll.u32 %v4763_v61, 23  ;;  %v4919_v31 = vor.u32 %v4918_v40, %v4917_v50  ;;  %v4922_v37 = vor.u32 %v4921_v24, %v4920_v10  ;;  %vm4926_vm4 = vcmp.lt.s32.totalorder %v4907_v53, 1 }
 0x639   : > { %v10981_v26 = vsub.s32 %v4642_v3, %v4645_v33  ;;  %v4910_v12 = vshrl.u32 %v12334_v19, %v4909_v42  ;;  %v4925_v52 = vor.u32 %v4924_v30, %v4923_v11  ;;  %vm4929_vm6 = vcmp.lt.s32.totalorder %v4907_v53, 4 }
 0x63a   : > { %vm4928_vm1 = vcmp.lt.s32.totalorder %v4907_v53, 3  ;;  %v4931_v4 = vsel %vm4929_vm6, %v4919_v31, 2102212464  ;;  %v4934_v60 = vsel %vm4926_vm4, %v4913_v27, %v4916_v0  ;;  %v4935_v55 = vsel %vm4929_vm6, %v4922_v37, 920167782 }
 0x63b   : > { %v4648_v17 = vsub.s32 0, %v10981_v26  ;;  %vm4927_vm14 = vcmp.lt.s32.totalorder %v4907_v53, 2  ;;  %v4936_v62 = vsel %vm4928_vm1, %v4919_v31, %v4935_v55  ;;  %v4938_v43 = vsel %vm4926_vm4, %v4916_v0, %v4919_v31 }
 0x63c   : > { %v4930_v44 = vsel %vm4926_vm4, %v4910_v12, %v4913_v27  ;;  %v4932_v61 = vsel %vm4928_vm1, %v4916_v0, %v4931_v4  ;;  %v4937_v13 = vsel %vm4927_vm14, %v4934_v60, %v4936_v62  ;;  %v4939_v50 = vsel %vm4929_vm6, %v4925_v52, 1326507024 }
 0x63d   : > { %v6254_v3 = vmin.u32 %v4648_v17, %v10981_v26  ;;  %v4940_v40 = vsel %vm4928_vm1, %v4922_v37, %v4939_v50  ;;  %v10988_v42 = vmul.u32.u64.low %v10963_v23, %v4937_v13  ;;  %v10989_v10 = vmul.u32.u64.high %v10963_v23, %v4937_v13, %v10988_v42 }
 0x63e   : > { %v4760_v24 = vshrl.u32 %v4742_v25, %v4758_v16  ;;  %v10992_v11 = vor.u32 4788187, %v4764_v9  ;;  %v4941_v33 = vsel %vm4927_vm14, %v4938_v43, %v4940_v40  ;;  %vm4801_vm13 = vcmp.gt.s32.totalorder %v4800_v18, 0 }
 0x63f   : > { %v4650_v55 = vclz %v6254_v3  ;;  %v10996_v27 = vmul.u32.u64.low %v10963_v23, %v4941_v33  ;;  %v10997_v0 = vmul.u32.u64.high %v10963_v23, %v4941_v33, %v10996_v27  ;;  %v4802_v52 = vsel %vm4801_vm13, %v4800_v18, 0 }
 0x640   : > { %v10999_v60 = vmul.f32 %v4456_v6, %v4454_v15  ;;  %v4759_v17 = vshll.u32 %v10892_v56, %v10935_v14  ;;  %v4933_v30 = vsel %vm4927_vm14, %v4930_v44, %v4932_v61  ;;  %v4804_v31 = vand.u32 31, %v4802_v52 }
 0x641   : > { %v4638_v25 = vadd.s32 %v10910_v63, %v10916_v29  ;;  %v6255_v16 = vadd.s32 4294967294, %v4650_v55  ;;  %v4952_v9 = vadd.s32 1, %v10989_v10  ;;  %v12280_v37 = vand.u32 2147483647, %v10955_v48 }
 0x642   : > { %v11008_v12 = vor.u32 %v4760_v24, %v4759_v17  ;;  %v4805_v15 = vsub.s32 32, %v4804_v31  ;;  %v11011_v6 = vshll.u32 %v4798_v1, 8  ;;  %v4949_v56 = vmul.u32 %v10963_v23, %v4933_v30 }
 0x643   : > { %vm6256_vm7 = vcmp.lt.s32.totalorder %v6255_v16, 0  ;;  %vm4951_vm0 = vc.u32 %v10997_v0, %v10988_v42  ;;  %v5105_v63 = vand.u32 2139095040, %v10955_v48  ;;  %v4807_v53 = vshll.u32 %v12334_v19, %v4804_v31 }
 0x644   : > { %v11017_v29 = vsel %vm6256_vm7, 0, %v6255_v16  ;;  %v4953_v14 = vsel %vm4951_vm0, %v4952_v9, %v10989_v10  ;;  %v4808_v4 = vshrl.u32 %v12570_v28, %v4805_v15  ;;  %v4810_v1 = vshll.u32 %v12570_v28, %v4804_v31 }
 0x645   : > { %v4954_v62 = vadd.s32 %v4953_v14, %v4949_v56  ;;  %v4813_v43 = vshll.u32 %v12336_v21, %v4804_v31  ;;  %v4816_v23 = vshll.u32 %v12337_v34, %v4804_v31  ;;  %v4658_v44 = vsub.s32 4294967266, %v11017_v29 }
 0x646   : > { %v4811_v61 = vshrl.u32 %v12336_v21, %v4805_v15  ;;  %v4814_v13 = vshrl.u32 %v12337_v34, %v4805_v15  ;;  %v4817_v50 = vshrl.u32 %v12338_v38, %v4805_v15  ;;  %v4803_v40 = vshrl.u32 %v4802_v52, 5  ;;  %v11039_v52 = vpop.f32.mrb[31].mxu0 }
 0x647   : > { %v4955_v3 = vadd.s32 536870912, %v4954_v62  ;;  %v4809_v10 = vor.u32 %v4808_v4, %v4807_v53  ;;  %v4819_v24 = vshll.u32 %v12338_v38, %v4804_v31  ;;  %v4820_v17 = vshrl.u32 %v12340_v54, %v4805_v15 }
 0x648   : > { %v4812_v33 = vor.u32 %v4811_v61, %v4810_v1  ;;  %v4815_v55 = vor.u32 %v4814_v13, %v4813_v43  ;;  %v4818_v27 = vor.u32 %v4817_v50, %v4816_v23  ;;  %vm4168_vm15 = vcmp.lt.s32.totalorder %v10558_v5, 0 }
 0x649   : > { %v4768_v30 = vcvt.s32.f32 %v11008_v12  ;;  %v11033_v16 = vshrl.u32 %v4955_v3, 30  ;;  %v5106_v9 = vshrl.u32 %v5105_v63, 23  ;;  %v11037_v56 = vand.u32 8388607, %v12280_v37 }
 0x64a   : > { %vm4480_vm3 = vcmp.lt.s32.totalorder %v10628_v20, 0  ;;  %v4654_v31 = vsub.s32 32, %v11017_v29  ;;  %v4659_v14 = vadd.s32 127, %v4658_v44  ;;  %v4806_v53 = vshrl.u32 %v12334_v19, %v4805_v15 }
 0x64b   : > { %12586 = vst [vmem:[#allocation21_spill] sm:$0xff] %v11033_v16  ;;  %v4821_v4 = vor.u32 %v4820_v17, %v4819_v24  ;;  %v4957_v1 = vshll.u32 %v11033_v16, 30  ;;  %vm4822_vm5 = vcmp.lt.s32.totalorder %v4803_v40, 1  ;;  %vm4823_vm10 = vcmp.lt.s32.totalorder %v4803_v40, 2 }
 0x64c   : > { %vm4825_vm8 = vcmp.lt.s32.totalorder %v4803_v40, 4  ;;  %vm4824_vm11 = vcmp.lt.s32.totalorder %v4803_v40, 3  ;;  %v4830_v63 = vsel %vm4822_vm5, %v4809_v10, %v4812_v33  ;;  %vm4376_vm9 = vcmp.lt.s32.totalorder %v10659_v36, 0 }
 0x64d   : > { %v4827_v12 = vsel %vm4825_vm8, %v4815_v55, 2102212464  ;;  %v4831_v43 = vsel %vm4825_vm8, %v4818_v27, 920167782  ;;  %v11046_v23 = vsub.s32 %v4954_v62, %v4957_v1  ;;  %v4826_v61 = vsel %vm4822_vm5, %v4806_v53, %v4809_v10 }
 0x64e   : > { %v4832_v13 = vsel %vm4824_vm11, %v4815_v55, %v4831_v43  ;;  %v4834_v44 = vsel %vm4822_vm5, %v4812_v33, %v4815_v55  ;;  %v4828_v15 = vsel %vm4824_vm11, %v4812_v33, %v4827_v12  ;;  %v4835_v3 = vsel %vm4825_vm8, %v4821_v4, 1326507024 }
 0x64f   : > { %v4833_v50 = vsel %vm4823_vm10, %v4830_v63, %v4832_v13  ;;  %v6273_v24 = vadd.s32 4294967169, %v5106_v9  ;;  %v4655_v17 = vshll.u32 %v10981_v26, %v11017_v29  ;;  %v4656_v37 = vshrl.u32 %v4638_v25, %v4654_v31 }
 0x650   : > { %v4960_v18 = vsub.s32 0, %v11046_v23  ;;  %v4836_v16 = vsel %vm4824_vm11, %v4818_v27, %v4835_v3  ;;  %v4660_v62 = vshll.u32 %v4659_v14, 23  ;;  %v4829_v9 = vsel %vm4823_vm10, %v4826_v61, %v4828_v15 }
 0x651   : > { %v4837_v10 = vsel %vm4823_vm10, %v4834_v44, %v4836_v16  ;;  %v11057_v53 = vmul.u32.u64.low %v11011_v6, %v4833_v50  ;;  %v11058_v55 = vmul.u32.u64.high %v11011_v6, %v4833_v50, %v11057_v53  ;;  %v12587_v25 = vxor.u32 2147483648, %v10925_v32 }
 0x652   : > { %v6266_v33 = vmin.u32 %v4960_v18, %v11046_v23  ;;  %v11064_v4 = vmul.u32.u64.low %v11011_v6, %v4837_v10  ;;  %v11065_v26 = vmul.u32.u64.high %v11011_v6, %v4837_v10, %v11064_v4  ;;  %v4458_v27 = vxor.u32 2147483648, %v10999_v60  ;;  %v11078_v18 = vld [vmem:[%s12139_s4 + $0x1] ss:$0 sm:$0xff] }
 0x653   : > { %v11072_v29 = vsel %vm4168_vm15, %v12587_v25, %v10925_v32  ;;  %v5112_v16 = vadd.s32 1, %v6273_v24  ;;  %v11082_v40 = vadd.f32 %v11078_v18, %v10686_v46  ;;  %v12588_v31 = vxor.u32 2147483648, %v10931_v58 }
 0x654   : > { %v12590_v32 = vand.u32 2147483647, %v10992_v11  ;;  %v11095_v12 = vor.u32 %v4656_v37, %v4655_v17  ;;  %v4962_v63 = vclz %v6266_v33  ;;  %v11097_v43 = vor.u32 4788187, %v4660_v62 }
 0x655   : > { %v11089_v14 = vsel %vm4480_vm3, %v12588_v31, %v10931_v58  ;;  %v4845_v61 = vmul.u32 %v11011_v6, %v4829_v9  ;;  %v4848_v46 = vadd.s32 1, %v11058_v55  ;;  %vm5113_vm4 = vcmp.gt.s32.totalorder %v5112_v16, 0 }
 0x656   : > { %12589 = vst [vmem:[#allocation11_spill] sm:$0xff] %v11089_v14  ;;  %v11093_v1 = vmul.f32 %v4768_v30, %v12590_v32  ;;  %v6267_v13 = vadd.s32 4294967294, %v4962_v63  ;;  %vm4847_vm6 = vc.u32 %v11065_v26, %v11057_v53  ;;  %v5110_v58 = vor.u32 8388608, %v11037_v56 }
 0x657   : > { %v5114_v44 = vsel %vm5113_vm4, %v5112_v16, 0  ;;  %v11107_v11 = vsel %vm4376_vm9, %v4458_v27, %v10999_v60  ;;  %v4849_v37 = vsel %vm4847_vm6, %v4848_v46, %v11058_v55  ;;  %v12283_v6 = vand.u32 2147483647, %v11082_v40 }
 0x658   : > { %12591 = vst [vmem:[#allocation20_spill] sm:$0xff] %v11107_v11  ;;  %v5116_v30 = vand.u32 31, %v5114_v44  ;;  %vm6268_vm1 = vcmp.lt.s32.totalorder %v6267_v13, 0  ;;  %v4850_v50 = vadd.s32 %v4849_v37, %v4845_v61  ;;  %v11114_v3 = vadd.f32 %v11078_v18, %v10705_v45 }
 0x659   : > { %v4664_v24 = vcvt.s32.f32 %v11095_v12  ;;  %v4950_v60 = vadd.s32 %v10988_v42, %v10997_v0  ;;  %v4965_v62 = vsel %vm6268_vm1, 0, %v6267_v13  ;;  %v11120_v55 = vshll.u32 %v5110_v58, 8 }
 0x65a   : > { %v5117_v17 = vsub.s32 32, %v5116_v30  ;;  %v4851_v10 = vadd.s32 536870912, %v4850_v50  ;;  %v5001_v33 = vand.u32 2139095040, %v11082_v40  ;;  %v5115_v9 = vshrl.u32 %v5114_v44, 5 }
 0x65b   : > { %v11127_v25 = vand.u32 8388607, %v12283_v6  ;;  %v5119_v42 = vshll.u32 %v12334_v19, %v5116_v30  ;;  %v5122_v0 = vshll.u32 %v12570_v28, %v5116_v30  ;;  %v4970_v31 = vsub.s32 4294967266, %v4965_v62 }
 0x65c   : > { %v5120_v4 = vshrl.u32 %v12570_v28, %v5117_v17  ;;  %v5123_v45 = vshrl.u32 %v12336_v21, %v5117_v17  ;;  %v11129_v27 = vshrl.u32 %v4851_v10, 30  ;;  %v5126_v16 = vshrl.u32 %v12337_v34, %v5117_v17 }
 0x65d   : > { %v5125_v32 = vshll.u32 %v12336_v21, %v5116_v30  ;;  %v5128_v12 = vshll.u32 %v12337_v34, %v5116_v30  ;;  %v5129_v63 = vshrl.u32 %v12338_v38, %v5117_v17  ;;  %v5002_v58 = vshrl.u32 %v5001_v33, 23 }
 0x65e   : > { %12592 = vst [vmem:[#allocation9_spill] sm:$0xff] %v11129_v27  ;;  %v4853_v61 = vshll.u32 %v11129_v27, 30  ;;  %v5121_v46 = vor.u32 %v5120_v4, %v5119_v42  ;;  %v5124_v13 = vor.u32 %v5123_v45, %v5122_v0  ;;  %vm4688_vm14 = vcmp.lt.s32.totalorder %v10674_v7, 0 }
 0x65f   : > { %v5127_v44 = vor.u32 %v5126_v16, %v5125_v32  ;;  %v5130_v37 = vor.u32 %v5129_v63, %v5128_v12  ;;  %v5131_v10 = vshll.u32 %v12338_v38, %v5116_v30  ;;  %v5132_v6 = vshrl.u32 %v12340_v54, %v5117_v17 }
 0x660   : > { %v4966_v56 = vsub.s32 32, %v4965_v62  ;;  %v4967_v15 = vshll.u32 %v11046_v23, %v4965_v62  ;;  %v11142_v14 = vsub.s32 %v4850_v50, %v4853_v61  ;;  %v5313_v20 = vand.u32 2139095040, %v11114_v3 }
 0x661   : > { %v4971_v11 = vadd.s32 127, %v4970_v31  ;;  %v5118_v4 = vshrl.u32 %v12334_v19, %v5117_v17  ;;  %v5133_v45 = vor.u32 %v5132_v6, %v5131_v10  ;;  %vm5134_vm13 = vcmp.lt.s32.totalorder %v5115_v9, 1 }
 0x662   : > { %v4856_v33 = vsub.s32 0, %v11142_v14  ;;  %vm5136_vm7 = vcmp.lt.s32.totalorder %v5115_v9, 3  ;;  %vm5137_vm0 = vcmp.lt.s32.totalorder %v5115_v9, 4  ;;  %v5142_v30 = vsel %vm5134_vm13, %v5121_v46, %v5124_v13 }
 0x663   : > { %v5139_v42 = vsel %vm5137_vm0, %v5127_v44, 2102212464  ;;  %v5143_v0 = vsel %vm5137_vm0, %v5130_v37, 920167782  ;;  %v5146_v16 = vsel %vm5134_vm13, %v5124_v13, %v5127_v44  ;;  %v5147_v23 = vsel %vm5137_vm0, %v5133_v45, 1326507024 }
 0x664   : > { %v4968_v50 = vshrl.u32 %v4950_v60, %v4966_v56  ;;  %v6262_v62 = vmin.u32 %v4856_v33, %v11142_v14  ;;  %vm5135_vm5 = vcmp.lt.s32.totalorder %v5115_v9, 2  ;;  %v5144_v31 = vsel %vm5136_vm7, %v5127_v44, %v5143_v0 }
 0x665   : > { %v4972_v17 = vshll.u32 %v4971_v11, 23  ;;  %v5145_v6 = vsel %vm5135_vm5, %v5142_v30, %v5144_v31  ;;  %v5148_v32 = vsel %vm5136_vm7, %v5130_v37, %v5147_v23  ;;  %v6269_v12 = vadd.s32 4294967169, %v5002_v58 }
 0x666   : > { %v4858_v63 = vclz %v6262_v62  ;;  %v5138_v61 = vsel %vm5134_vm13, %v5118_v4, %v5121_v46  ;;  %v5140_v10 = vsel %vm5136_vm7, %v5124_v13, %v5139_v42  ;;  %v5149_v27 = vsel %vm5135_vm5, %v5146_v16, %v5148_v32 }
 0x667   : > { %v11157_v56 = vmul.u32.u64.low %v11120_v55, %v5149_v27  ;;  %v11158_v60 = vmul.u32.u64.high %v11120_v55, %v5149_v27, %v11157_v56  ;;  %v11161_v45 = vmul.u32.u64.low %v11120_v55, %v5145_v6  ;;  %v11162_v44 = vmul.u32.u64.high %v11120_v55, %v5145_v6, %v11161_v45 }
 0x668   : > { %v12593_v11 = vxor.u32 2147483648, %v11093_v1  ;;  %v11172_v46 = vor.u32 %v4968_v50, %v4967_v15  ;;  %v6263_v13 = vadd.s32 4294967294, %v4858_v63  ;;  %v5008_v37 = vadd.s32 1, %v6269_v12 }
 0x669   : > { %v12595_v4 = vand.u32 2147483647, %v11097_v43  ;;  %v11178_v33 = vor.u32 4788187, %v4972_v17  ;;  %v5141_v30 = vsel %vm5135_vm5, %v5138_v61, %v5140_v10  ;;  %v5006_v42 = vor.u32 8388608, %v11127_v25 }
 0x66a   : > { %v11170_v58 = vsel %vm4688_vm14, %v12593_v11, %v11093_v1  ;;  %vm6264_vm10 = vcmp.lt.s32.totalorder %v6263_v13, 0  ;;  %vm5009_vm8 = vcmp.gt.s32.totalorder %v5008_v37, 0  ;;  %v12288_v0 = vand.u32 2147483647, %v11114_v3 }
 0x66b   : > { %12594 = vst [vmem:[#allocation15_spill] sm:$0xff] %v11170_v58  ;;  %v11176_v27 = vmul.f32 %v4664_v24, %v12595_v4  ;;  %v5314_v1 = vshrl.u32 %v5313_v20, 23  ;;  %v4846_v15 = vadd.s32 %v11057_v53, %v11065_v26  ;;  %v4861_v16 = vsel %vm6264_vm10, 0, %v6263_v13 }
 0x66c   : > { %vm5159_vm11 = vc.u32 %v11158_v60, %v11161_v45  ;;  %v5160_v43 = vadd.s32 1, %v11162_v44  ;;  %v4866_v9 = vsub.s32 4294967266, %v4861_v16  ;;  %v5157_v23 = vmul.u32 %v11120_v55, %v5141_v30 }
 0x66d   : > { %v5010_v25 = vsel %vm5009_vm8, %v5008_v37, 0  ;;  %v11192_v31 = vshll.u32 %v5006_v42, 8  ;;  %v6281_v26 = vadd.s32 4294967169, %v5314_v1  ;;  %v11196_v17 = vand.u32 8388607, %v12288_v0 }
 0x66e   : > { %v5161_v62 = vsel %vm5159_vm11, %v5160_v43, %v11162_v44  ;;  %v5012_v20 = vand.u32 31, %v5010_v25  ;;  %v11200_v6 = vadd.f32 %v11078_v18, %v10750_v59  ;;  %v4862_v32 = vsub.s32 32, %v4861_v16 }
 0x66f   : > { %v5162_v53 = vadd.s32 %v5161_v62, %v5157_v23  ;;  %v4863_v55 = vshll.u32 %v11142_v14, %v4861_v16  ;;  %v5011_v12 = vshrl.u32 %v5010_v25, 5  ;;  %v4867_v61 = vadd.s32 127, %v4866_v9 }
 0x670   : > { %v5013_v63 = vsub.s32 32, %v5012_v20  ;;  %v5015_v56 = vshll.u32 %v12334_v19, %v5012_v20  ;;  %v5018_v44 = vshll.u32 %v12570_v28, %v5012_v20  ;;  %v5021_v37 = vshll.u32 %v12336_v21, %v5012_v20 }
 0x671   : > { %v5163_v10 = vadd.s32 536870912, %v5162_v53  ;;  %v5024_v14 = vshll.u32 %v12337_v34, %v5012_v20  ;;  %v5318_v42 = vor.u32 8388608, %v11196_v17  ;;  %v4864_v1 = vshrl.u32 %v4846_v15, %v4862_v32 }
 0x672   : > { %v5016_v11 = vshrl.u32 %v12570_v28, %v5013_v63  ;;  %v5019_v13 = vshrl.u32 %v12336_v21, %v5013_v63  ;;  %v5022_v59 = vshrl.u32 %v12337_v34, %v5013_v63  ;;  %v5025_v30 = vshrl.u32 %v12338_v38, %v5013_v63 }
 0x673   : > { %v11209_v4 = vshrl.u32 %v5163_v10, 30  ;;  %v5027_v62 = vshll.u32 %v12338_v38, %v5012_v20  ;;  %v5028_v0 = vshrl.u32 %v12340_v54, %v5013_v63  ;;  %v4868_v24 = vshll.u32 %v4867_v61, 23 }
 0x674   : > { %v5017_v16 = vor.u32 %v5016_v11, %v5015_v56  ;;  %v5020_v43 = vor.u32 %v5019_v13, %v5018_v44  ;;  %v5023_v9 = vor.u32 %v5022_v59, %v5021_v37  ;;  %v5026_v25 = vor.u32 %v5025_v30, %v5024_v14 }
 0x675   : > { %12596 = vst [vmem:[#allocation18_spill] sm:$0xff] %v11209_v4  ;;  %v5165_v23 = vshll.u32 %v11209_v4, 30  ;;  %v5014_v10 = vshrl.u32 %v12334_v19, %v5013_v63  ;;  %vm5030_vm4 = vcmp.lt.s32.totalorder %v5011_v12, 1  ;;  %v5320_v50 = vadd.s32 1, %v6281_v26 }
 0x676   : > { %v5029_v7 = vor.u32 %v5028_v0, %v5027_v62  ;;  %vm5031_vm6 = vcmp.lt.s32.totalorder %v5011_v12, 2  ;;  %vm5033_vm1 = vcmp.lt.s32.totalorder %v5011_v12, 4  ;;  %vm5032_vm13 = vcmp.lt.s32.totalorder %v5011_v12, 3 }
 0x677   : > { %v11218_v58 = vsub.s32 %v5162_v53, %v5165_v23  ;;  %v5035_v15 = vsel %vm5033_vm1, %v5023_v9, 2102212464  ;;  %v5038_v17 = vsel %vm5030_vm4, %v5017_v16, %v5020_v43  ;;  %v5039_v32 = vsel %vm5033_vm1, %v5026_v25, 920167782 }
 0x678   : > { %v5034_v44 = vsel %vm5030_vm4, %v5014_v10, %v5017_v16  ;;  %v5040_v20 = vsel %vm5032_vm13, %v5023_v9, %v5039_v32  ;;  %v5042_v11 = vsel %vm5030_vm4, %v5020_v43, %v5023_v9  ;;  %v5036_v13 = vsel %vm5032_vm13, %v5020_v43, %v5035_v15 }
 0x679   : > { %v5168_v56 = vsub.s32 0, %v11218_v58  ;;  %v5041_v61 = vsel %vm5031_vm6, %v5038_v17, %v5040_v20  ;;  %v5043_v63 = vsel %vm5033_vm1, %v5029_v7, 1326507024  ;;  %vm5321_vm7 = vcmp.gt.s32.totalorder %v5320_v50, 0 }
 0x67a   : > { %v11222_v26 = vor.u32 %v4864_v1, %v4863_v55  ;;  %v11224_v53 = vor.u32 4788187, %v4868_v24  ;;  %v5044_v37 = vsel %vm5032_vm13, %v5026_v25, %v5043_v63  ;;  %v5322_v16 = vsel %vm5321_vm7, %v5320_v50, 0 }
 0x67b   : > { %v6274_v0 = vmin.u32 %v5168_v56, %v11218_v58  ;;  %v5045_v59 = vsel %vm5031_vm6, %v5042_v11, %v5044_v37  ;;  %v11229_v14 = vmul.u32.u64.low %v11192_v31, %v5041_v61  ;;  %v11230_v30 = vmul.u32.u64.high %v11192_v31, %v5041_v61, %v11229_v14 }
 0x67c   : > { %v5037_v9 = vsel %vm5031_vm6, %v5034_v44, %v5036_v13  ;;  %v11235_v7 = vmul.u32.u64.low %v11192_v31, %v5045_v59  ;;  %v11236_v55 = vmul.u32.u64.high %v11192_v31, %v5045_v59, %v11235_v7  ;;  %v4666_v24 = vxor.u32 2147483648, %v11176_v27 }
 0x67d   : > { %v5170_v43 = vclz %v6274_v0  ;;  %v12597_v1 = vand.u32 2147483647, %v11178_v33  ;;  %v12598_v23 = vcvt.s32.f32 %v11172_v46  ;;  %v5324_v62 = vand.u32 31, %v5322_v16 }
 0x67e   : > { %v11247_v10 = vadd.f32 %v11078_v18, %v10822_v22  ;;  %v4870_v50 = vand.u32 2147483647, %v11224_v53  ;;  %v4872_v12 = vcvt.s32.f32 %v11222_v26  ;;  %v5158_v15 = vadd.s32 %v11161_v45, %v11158_v60 }
 0x67f   : > { %v11243_v25 = vmul.f32 %v12598_v23, %v12597_v1  ;;  %v6275_v17 = vadd.s32 4294967294, %v5170_v43  ;;  %v5053_v32 = vmul.u32 %v11192_v31, %v5037_v9  ;;  %v5056_v33 = vadd.s32 1, %v11230_v30 }
 0x680   : > { %v11255_v46 = vshrl.u32 %v5322_v16, 5  ;;  %v5325_v56 = vsub.s32 32, %v5324_v62  ;;  %vm5055_vm5 = vc.u32 %v11236_v55, %v11229_v14  ;;  %v11259_v22 = vshll.u32 %v5318_v42, 8 }
 0x681   : > { %vm6276_vm0 = vcmp.lt.s32.totalorder %v6275_v17, 0  ;;  %v12293_v44 = vand.u32 2147483647, %v11200_v6  ;;  %v5057_v11 = vsel %vm5055_vm5, %v5056_v33, %v11230_v30  ;;  %v5327_v60 = vshll.u32 %v12334_v19, %v5324_v62 }
 0x682   : > { %v5173_v20 = vsel %vm6276_vm0, 0, %v6275_v17  ;;  %v5328_v45 = vshrl.u32 %v12570_v28, %v5325_v56  ;;  %v5058_v61 = vadd.s32 %v5057_v11, %v5053_v32  ;;  %v5330_v63 = vshll.u32 %v12570_v28, %v5324_v62 }
 0x683   : > { %v5174_v31 = vsub.s32 32, %v5173_v20  ;;  %v5178_v13 = vsub.s32 4294967266, %v5173_v20  ;;  %v5331_v37 = vshrl.u32 %v12336_v21, %v5325_v56  ;;  %v5333_v42 = vshll.u32 %v12336_v21, %v5324_v62 }
 0x684   : > { %v5329_v0 = vor.u32 %v5328_v45, %v5327_v60  ;;  %v5334_v59 = vshrl.u32 %v12337_v34, %v5325_v56  ;;  %v5059_v43 = vadd.s32 536870912, %v5058_v61  ;;  %v5336_v30 = vshll.u32 %v12337_v34, %v5324_v62 }
 0x685   : > { %v5179_v16 = vadd.s32 127, %v5178_v13  ;;  %v5337_v9 = vshrl.u32 %v12338_v38, %v5325_v56  ;;  %v5332_v7 = vor.u32 %v5331_v37, %v5330_v63  ;;  %v5339_v23 = vshll.u32 %v12338_v38, %v5324_v62 }
 0x686   : > { %v5335_v1 = vor.u32 %v5334_v59, %v5333_v42  ;;  %v5340_v17 = vshrl.u32 %v12340_v54, %v5325_v56  ;;  %v5176_v32 = vshrl.u32 %v5158_v15, %v5174_v31  ;;  %v11273_v33 = vshrl.u32 %v5059_v43, 30 }
 0x687   : > { %v5338_v11 = vor.u32 %v5337_v9, %v5336_v30  ;;  %vm5342_vm10 = vcmp.lt.s32.totalorder %v11255_v46, 1  ;;  %v5180_v60 = vshll.u32 %v5179_v16, 23  ;;  %vm5343_vm8 = vcmp.lt.s32.totalorder %v11255_v46, 2 }
 0x688   : > { %12599 = vst [vmem:[#allocation34_spill] sm:$0xff] %v11273_v33  ;;  %v5341_v45 = vor.u32 %v5340_v17, %v5339_v23  ;;  %vm5344_vm11 = vcmp.lt.s32.totalorder %v11255_v46, 3  ;;  %v5175_v13 = vshll.u32 %v11218_v58, %v5173_v20  ;;  %v5061_v63 = vshll.u32 %v11273_v33, 30 }
 0x689   : > { %vm5345_vm4 = vcmp.lt.s32.totalorder %v11255_v46, 4  ;;  %v5350_v62 = vsel %vm5342_vm10, %v5329_v0, %v5332_v7  ;;  %v5354_v37 = vsel %vm5342_vm10, %v5332_v7, %v5335_v1  ;;  %vm4584_vm6 = vcmp.lt.s32.totalorder %v10677_v47, 0 }
 0x68a   : > { %v5347_v15 = vsel %vm5345_vm4, %v5335_v1, 2102212464  ;;  %v5351_v31 = vsel %vm5345_vm4, %v5338_v11, 920167782  ;;  %v5355_v42 = vsel %vm5345_vm4, %v5341_v45, 1326507024  ;;  %v5177_v59 = vor.u32 %v5176_v32, %v5175_v13 }
 0x68b   : > { %v11286_v16 = vsub.s32 %v5058_v61, %v5061_v63  ;;  %v5326_v58 = vshrl.u32 %v12334_v19, %v5325_v56  ;;  %v5352_v20 = vsel %vm5344_vm11, %v5335_v1, %v5351_v31  ;;  %v5181_v43 = vor.u32 4788187, %v5180_v60 }
 0x68c   : > { %v5353_v30 = vsel %vm5343_vm8, %v5350_v62, %v5352_v20  ;;  %v5356_v9 = vsel %vm5344_vm11, %v5338_v11, %v5355_v42  ;;  %v5209_v23 = vand.u32 2139095040, %v11200_v6  ;;  %vm12315_vm1 = vcmp.lt.s32.totalorder %v10846_v41, 0 }
 0x68d   : > { %v5064_v17 = vsub.s32 0, %v11286_v16  ;;  %v5346_v61 = vsel %vm5342_vm10, %v5326_v58, %v5329_v0  ;;  %v5348_v56 = vsel %vm5344_vm11, %v5332_v7, %v5347_v15  ;;  %v5357_v1 = vsel %vm5343_vm8, %v5354_v37, %v5356_v9 }
 0x68e   : > { %vm4792_vm13 = vcmp.lt.s32.totalorder %v10870_v49, 0  ;;  %v11306_v32 = vmul.u32.u64.low %v11259_v22, %v5357_v1  ;;  %v11307_v11 = vmul.u32.u64.high %v11259_v22, %v5357_v1, %v11306_v32  ;;  %v4978_v13 = vxor.u32 2147483648, %v11243_v25 }
 0x68f   : > { %v11310_v60 = vmul.u32.u64.low %v11259_v22, %v5353_v30  ;;  %v11311_v45 = vmul.u32.u64.high %v11259_v22, %v5353_v30, %v11310_v60  ;;  %v4873_v0 = vmul.f32 %v4872_v12, %v4870_v50  ;;  %v6270_v7 = vmin.u32 %v5064_v17, %v11286_v16 }
 0x690   : > { %v5210_v63 = vshrl.u32 %v5209_v23, 23  ;;  %v5182_v62 = vand.u32 2147483647, %v5181_v43  ;;  %v5349_v15 = vsel %vm5343_vm8, %v5346_v61, %v5348_v56  ;;  %v5213_v31 = vand.u32 8388607, %v12293_v44 }
 0x691   : > { %v5521_v37 = vand.u32 2139095040, %v11247_v10  ;;  %v5184_v42 = vcvt.s32.f32 %v5177_v59  ;;  %v5066_v58 = vclz %v6270_v7  ;;  %v11326_v53 = vadd.f32 %v11078_v18, %v10887_v35 }
 0x692   : > { %v6277_v20 = vadd.s32 4294967169, %v5210_v63  ;;  %vm5367_vm7 = vc.u32 %v11307_v11, %v11310_v60  ;;  %v5368_v26 = vadd.s32 1, %v11311_v45  ;;  %v12291_v50 = vand.u32 2147483647, %v11247_v10 }
 0x693   : > { %v5522_v12 = vshrl.u32 %v5521_v37, 23  ;;  %v4874_v46 = vxor.u32 2147483648, %v4873_v0  ;;  %v6271_v43 = vadd.s32 4294967294, %v5066_v58  ;;  %v5365_v30 = vmul.u32 %v11259_v22, %v5349_v15 }
 0x694   : > { %v5216_v9 = vadd.s32 1, %v6277_v20  ;;  %v11337_v59 = vsel %vm4584_vm6, %v4666_v24, %v11176_v27  ;;  %v11339_v35 = vmul.f32 %v5184_v42, %v5182_v62  ;;  %v5369_v23 = vsel %vm5367_vm7, %v5368_v26, %v11311_v45 }
 0x695   : > { %v5214_v17 = vor.u32 8388608, %v5213_v31  ;;  %vm6272_vm0 = vcmp.lt.s32.totalorder %v6271_v43, 0  ;;  %v5370_v61 = vadd.s32 %v5369_v23, %v5365_v30  ;;  %v6289_v56 = vadd.s32 4294967169, %v5522_v12 }
 0x696   : > { %vm5217_vm5 = vcmp.gt.s32.totalorder %v5216_v9, 0  ;;  %v11345_v22 = vsel %vm12315_vm1, %v4978_v13, %v11243_v25  ;;  %v11349_v32 = vand.u32 8388607, %v12291_v50  ;;  %v12292_v27 = vand.u32 2147483647, %v11326_v53 }
 0x697   : > { %12600 = vst [vmem:[#allocation13_spill] sm:$0xff] %v11345_v22  ;;  %v5218_v1 = vsel %vm5217_vm5, %v5216_v9, 0  ;;  %v11354_v24 = vsel %vm4792_vm13, %v4874_v46, %v4873_v0  ;;  %v11356_v45 = vsel %vm6272_vm0, 0, %v6271_v43  ;;  %v5371_v7 = vadd.s32 536870912, %v5370_v61 }
 0x698   : > { %v11360_v63 = vadd.f32 %v11078_v18, %v10977_v57  ;;  %v5054_v13 = vadd.s32 %v11229_v14, %v11236_v55  ;;  %v5220_v62 = vand.u32 31, %v5218_v1  ;;  %v11365_v15 = vshll.u32 %v5214_v17, 8 }
 0x699   : > { %v11368_v31 = vadd.s32 %v11310_v60, %v11307_v11  ;;  %v11370_v0 = vshrl.u32 %v5371_v7, 30  ;;  %v5528_v37 = vadd.s32 1, %v6289_v56  ;;  %v5417_v42 = vand.u32 2139095040, %v11326_v53 }
 0x69a   : > { %12601 = vst [vmem:[#allocation8_spill] sm:$0xff] %v11360_v63  ;;  %v5074_v58 = vsub.s32 4294967266, %v11356_v45  ;;  %v5221_v57 = vsub.s32 32, %v5220_v62  ;;  %v5526_v20 = vor.u32 8388608, %v11349_v32  ;;  %v11377_v26 = vand.u32 8388607, %v12292_v27 }
 0x69b   : > { %12602 = vst [vmem:[#allocation25_spill] sm:$0xff] %v11370_v0  ;;  %v5373_v14 = vshll.u32 %v11370_v0, 30  ;;  %v5219_v55 = vshrl.u32 %v5218_v1, 5  ;;  %v5223_v11 = vshll.u32 %v12334_v19, %v5220_v62  ;;  %v5226_v60 = vshll.u32 %v12570_v28, %v5220_v62 }
 0x69c   : > { %v5224_v12 = vshrl.u32 %v12570_v28, %v5221_v57  ;;  %v5227_v46 = vshrl.u32 %v12336_v21, %v5221_v57  ;;  %v5229_v43 = vshll.u32 %v12336_v21, %v5220_v62  ;;  %v5230_v30 = vshrl.u32 %v12337_v34, %v5221_v57 }
 0x69d   : > { %v11386_v9 = vsub.s32 %v5370_v61, %v5373_v14  ;;  %v5232_v23 = vshll.u32 %v12337_v34, %v5220_v62  ;;  %v5233_v17 = vshrl.u32 %v12338_v38, %v5221_v57  ;;  %vm5529_vm10 = vcmp.gt.s32.totalorder %v5528_v37, 0 }
 0x69e   : > { %v5070_v56 = vsub.s32 32, %v11356_v45  ;;  %v5225_v1 = vor.u32 %v5224_v12, %v5223_v11  ;;  %v5228_v32 = vor.u32 %v5227_v46, %v5226_v60  ;;  %v5231_v7 = vor.u32 %v5230_v30, %v5229_v43 }
 0x69f   : > { %v5376_v50 = vsub.s32 0, %v11386_v9  ;;  %v5234_v27 = vor.u32 %v5233_v17, %v5232_v23  ;;  %v5235_v44 = vshll.u32 %v12338_v38, %v5220_v62  ;;  %v5236_v25 = vshrl.u32 %v12340_v54, %v5221_v57 }
 0x6a0   : > { %v5071_v61 = vshll.u32 %v11286_v16, %v11356_v45  ;;  %v5075_v14 = vadd.s32 127, %v5074_v58  ;;  %v5222_v0 = vshrl.u32 %v12334_v19, %v5221_v57  ;;  %v5530_v4 = vsel %vm5529_vm10, %v5528_v37, 0 }
 0x6a1   : > { %v6282_v33 = vmin.u32 %v5376_v50, %v11386_v9  ;;  %v5237_v22 = vor.u32 %v5236_v25, %v5235_v44  ;;  %vm5238_vm8 = vcmp.lt.s32.totalorder %v5219_v55, 1  ;;  %vm5241_vm11 = vcmp.lt.s32.totalorder %v5219_v55, 4 }
 0x6a2   : > { %vm5240_vm4 = vcmp.lt.s32.totalorder %v5219_v55, 3  ;;  %v5243_v11 = vsel %vm5241_vm11, %v5231_v7, 2102212464  ;;  %v5246_v60 = vsel %vm5238_vm8, %v5225_v1, %v5228_v32  ;;  %v5247_v12 = vsel %vm5241_vm11, %v5234_v27, 920167782 }
 0x6a3   : > { %v5378_v46 = vclz %v6282_v33  ;;  %vm5239_vm7 = vcmp.lt.s32.totalorder %v5219_v55, 2  ;;  %v5248_v62 = vsel %vm5240_vm4, %v5231_v7, %v5247_v12  ;;  %v5250_v43 = vsel %vm5238_vm8, %v5228_v32, %v5231_v7 }
 0x6a4   : > { %v5242_v30 = vsel %vm5238_vm8, %v5222_v0, %v5225_v1  ;;  %v5244_v23 = vsel %vm5240_vm4, %v5228_v32, %v5243_v11  ;;  %v5249_v16 = vsel %vm5239_vm7, %v5246_v60, %v5248_v62  ;;  %v5251_v45 = vsel %vm5241_vm11, %v5237_v22, 1326507024 }
 0x6a5   : > { %v5072_v58 = vshrl.u32 %v5054_v13, %v5070_v56  ;;  %v5076_v57 = vshll.u32 %v5075_v14, 23  ;;  %v6283_v37 = vadd.s32 4294967294, %v5378_v46  ;;  %v5252_v17 = vsel %vm5240_vm4, %v5234_v27, %v5251_v45 }
 0x6a6   : > { %v5253_v50 = vsel %vm5239_vm7, %v5250_v43, %v5252_v17  ;;  %v11399_v44 = vmul.u32.u64.low %v11365_v15, %v5249_v16  ;;  %v11400_v25 = vmul.u32.u64.high %v11365_v15, %v5249_v16, %v11399_v44  ;;  %v5532_v41 = vand.u32 31, %v5530_v4 }
 0x6a7   : > { %vm6284_vm0 = vcmp.lt.s32.totalorder %v6283_v37, 0  ;;  %v5245_v33 = vsel %vm5239_vm7, %v5242_v30, %v5244_v23  ;;  %v11404_v55 = vmul.u32.u64.low %v11365_v15, %v5253_v50  ;;  %v11405_v7 = vmul.u32.u64.high %v11365_v15, %v5253_v50, %v11404_v55 }
 0x6a8   : > { %v5381_v0 = vsel %vm6284_vm0, 0, %v6283_v37  ;;  %v5533_v1 = vsub.s32 32, %v5532_v41  ;;  %v11407_v22 = vshll.u32 %v5526_v20, 8  ;;  %v5418_v13 = vshrl.u32 %v5417_v42, 23 }
 0x6a9   : > { %v5073_v56 = vor.u32 %v5072_v58, %v5071_v61  ;;  %v5077_v27 = vor.u32 4788187, %v5076_v57  ;;  %v5386_v32 = vsub.s32 4294967266, %v5381_v0  ;;  %v5531_v14 = vshrl.u32 %v5530_v4, 5 }
 0x6aa   : > { %v5261_v11 = vmul.u32 %v11365_v15, %v5245_v33  ;;  %v5264_v60 = vadd.s32 1, %v11400_v25  ;;  %v5536_v12 = vshrl.u32 %v12570_v28, %v5533_v1  ;;  %v5539_v46 = vshrl.u32 %v12336_v21, %v5533_v1 }
 0x6ab   : > { %v5382_v62 = vsub.s32 32, %v5381_v0  ;;  %vm5263_vm5 = vc.u32 %v11405_v7, %v11399_v44  ;;  %v5535_v20 = vshll.u32 %v12334_v19, %v5532_v41  ;;  %v5538_v42 = vshll.u32 %v12570_v28, %v5532_v41 }
 0x6ac   : > { %v5387_v61 = vadd.s32 127, %v5386_v32  ;;  %v5265_v43 = vsel %vm5263_vm5, %v5264_v60, %v11400_v25  ;;  %v5541_v4 = vshll.u32 %v12336_v21, %v5532_v41  ;;  %v5542_v15 = vshrl.u32 %v12337_v34, %v5533_v1 }
 0x6ad   : > { %v5266_v30 = vadd.s32 %v5265_v43, %v5261_v11  ;;  %v5537_v23 = vor.u32 %v5536_v12, %v5535_v20  ;;  %v5540_v16 = vor.u32 %v5539_v46, %v5538_v42  ;;  %v5544_v45 = vshll.u32 %v12337_v34, %v5532_v41 }
 0x6ae   : > { %v5543_v58 = vor.u32 %v5542_v15, %v5541_v4  ;;  %v5545_v57 = vshrl.u32 %v12338_v38, %v5533_v1  ;;  %v5547_v37 = vshll.u32 %v12338_v38, %v5532_v41  ;;  %v5548_v17 = vshrl.u32 %v12340_v54, %v5533_v1 }
 0x6af   : > { %v5078_v50 = vand.u32 2147483647, %v5077_v27  ;;  %v5080_v33 = vcvt.s32.f32 %v5073_v56  ;;  %v5267_v55 = vadd.s32 536870912, %v5266_v30  ;;  %vm5550_vm10 = vcmp.lt.s32.totalorder %v5531_v14, 1 }
 0x6b0   : > { %v5383_v25 = vshll.u32 %v11386_v9, %v5381_v0  ;;  %v5384_v32 = vshrl.u32 %v11368_v31, %v5382_v62  ;;  %v5546_v11 = vor.u32 %v5545_v57, %v5544_v45  ;;  %v5549_v60 = vor.u32 %v5548_v17, %v5547_v37 }
 0x6b1   : > { %v5388_v12 = vshll.u32 %v5387_v61, 23  ;;  %v11426_v46 = vshrl.u32 %v5267_v55, 30  ;;  %v5534_v20 = vshrl.u32 %v12334_v19, %v5533_v1  ;;  %vm5553_vm8 = vcmp.lt.s32.totalorder %v5531_v14, 4 }
 0x6b2   : > { %vm5552_vm11 = vcmp.lt.s32.totalorder %v5531_v14, 3  ;;  %v5555_v41 = vsel %vm5553_vm8, %v5543_v58, 2102212464  ;;  %v5558_v42 = vsel %vm5550_vm10, %v5537_v23, %v5540_v16  ;;  %v5559_v27 = vsel %vm5553_vm8, %v5546_v11, 920167782 }
 0x6b3   : > { %12603 = vst [vmem:[#allocation17_spill] sm:$0xff] %v11426_v46  ;;  %v5269_v56 = vshll.u32 %v11426_v46, 30  ;;  %vm5551_vm4 = vcmp.lt.s32.totalorder %v5531_v14, 2  ;;  %v5560_v43 = vsel %vm5552_vm11, %v5543_v58, %v5559_v27  ;;  %v5562_v9 = vsel %vm5550_vm10, %v5540_v16, %v5543_v58 }
 0x6b4   : > { %v11432_v31 = vor.u32 %v5384_v32, %v5383_v25  ;;  %v5561_v0 = vsel %vm5551_vm4, %v5558_v42, %v5560_v43  ;;  %v5563_v62 = vsel %vm5553_vm8, %v5549_v60, 1326507024  ;;  %v6285_v61 = vadd.s32 4294967169, %v5418_v13 }
 0x6b5   : > { %v11435_v4 = vsub.s32 %v5266_v30, %v5269_v56  ;;  %v5554_v1 = vsel %vm5550_vm10, %v5534_v20, %v5537_v23  ;;  %v5556_v15 = vsel %vm5552_vm11, %v5540_v16, %v5555_v41  ;;  %v5564_v45 = vsel %vm5552_vm11, %v5546_v11, %v5563_v62 }
 0x6b6   : > { %v5565_v57 = vsel %vm5551_vm4, %v5562_v9, %v5564_v45  ;;  %v11440_v37 = vmul.u32.u64.low %v11407_v22, %v5561_v0  ;;  %v11441_v17 = vmul.u32.u64.high %v11407_v22, %v5561_v0, %v11440_v37  ;;  %v5424_v58 = vadd.s32 1, %v6285_v61 }
 0x6b7   : > { %v11444_v55 = vor.u32 4788187, %v5388_v12  ;;  %v5272_v25 = vsub.s32 0, %v11435_v4  ;;  %v11448_v13 = vmul.u32.u64.low %v11407_v22, %v5565_v57  ;;  %v11449_v30 = vmul.u32.u64.high %v11407_v22, %v5565_v57, %v11448_v13 }
 0x6b8   : > { %v11451_v32 = vmul.f32 %v5080_v33, %v5078_v50  ;;  %v5557_v23 = vsel %vm5551_vm4, %v5554_v1, %v5556_v15  ;;  %v5422_v16 = vor.u32 8388608, %v11377_v26  ;;  %vm5425_vm7 = vcmp.gt.s32.totalorder %v5424_v58, 0 }
 0x6b9   : > { %v6278_v11 = vmin.u32 %v5272_v25, %v11435_v4  ;;  %v5426_v60 = vsel %vm5425_vm7, %v5424_v58, 0  ;;  %v12302_v20 = vand.u32 2147483647, %v11360_v63  ;;  %v5729_v12 = vand.u32 2139095040, %v11360_v63 }
 0x6ba   : > { %v5262_v42 = vadd.s32 %v11399_v44, %v11405_v7  ;;  %v5576_v50 = vadd.s32 1, %v11441_v17  ;;  %v5428_v33 = vand.u32 31, %v5426_v60  ;;  %v5573_v26 = vmul.u32 %v11407_v22, %v5557_v23 }
 0x6bb   : > { %v5274_v27 = vclz %v6278_v11  ;;  %vm5575_vm0 = vc.u32 %v11449_v30, %v11440_v37  ;;  %v11467_v43 = vshrl.u32 %v5426_v60, 5  ;;  %v11469_v0 = vshll.u32 %v5422_v16, 8 }
 0x6bc   : > { %v5577_v56 = vsel %vm5575_vm0, %v5576_v50, %v11441_v17  ;;  %v5429_v9 = vsub.s32 32, %v5428_v33  ;;  %v5730_v7 = vshrl.u32 %v5729_v12, 23  ;;  %v11473_v61 = vand.u32 8388607, %v12302_v20 }
 0x6bd   : > { %v6279_v62 = vadd.s32 4294967294, %v5274_v27  ;;  %v5578_v44 = vadd.s32 %v5577_v56, %v5573_v26  ;;  %v5431_v1 = vshll.u32 %v12334_v19, %v5428_v33  ;;  %v5434_v17 = vshll.u32 %v12570_v28, %v5428_v33 }
 0x6be   : > { %v5432_v22 = vshrl.u32 %v12570_v28, %v5429_v9  ;;  %v5435_v15 = vshrl.u32 %v12336_v21, %v5429_v9  ;;  %v5438_v45 = vshrl.u32 %v12337_v34, %v5429_v9  ;;  %v5441_v58 = vshrl.u32 %v12338_v38, %v5429_v9 }
 0x6bf   : > { %vm6280_vm5 = vcmp.lt.s32.totalorder %v6279_v62, 0  ;;  %v5579_v57 = vadd.s32 536870912, %v5578_v44  ;;  %v5437_v23 = vshll.u32 %v12336_v21, %v5428_v33  ;;  %v5440_v16 = vshll.u32 %v12337_v34, %v5428_v33 }
 0x6c0   : > { %v5277_v25 = vsel %vm6280_vm5, 0, %v6279_v62  ;;  %v5433_v13 = vor.u32 %v5432_v22, %v5431_v1  ;;  %v5436_v50 = vor.u32 %v5435_v15, %v5434_v17  ;;  %vm12314_vm10 = vcmp.lt.s32.totalorder %v10955_v48, 0 }
 0x6c1   : > { %v5278_v11 = vsub.s32 32, %v5277_v25  ;;  %v5282_v60 = vsub.s32 4294967266, %v5277_v25  ;;  %v11483_v12 = vshrl.u32 %v5579_v57, 30  ;;  %v5439_v27 = vor.u32 %v5438_v45, %v5437_v23 }
 0x6c2   : > { %v5442_v26 = vor.u32 %v5441_v58, %v5440_v16  ;;  %v5443_v56 = vshll.u32 %v12338_v38, %v5428_v33  ;;  %v5444_v20 = vshrl.u32 %v12340_v54, %v5429_v9  ;;  %v5430_v22 = vshrl.u32 %v12334_v19, %v5429_v9 }
 0x6c3   : > { %12604 = vst [vmem:[#allocation10_spill] sm:$0xff] %v11483_v12  ;;  %v5280_v41 = vshrl.u32 %v5262_v42, %v5278_v11  ;;  %v5283_v62 = vadd.s32 127, %v5282_v60  ;;  %v5581_v1 = vshll.u32 %v11483_v12, 30  ;;  %v5279_v14 = vshll.u32 %v11435_v4, %v5277_v25 }
 0x6c4   : > { %v5445_v63 = vor.u32 %v5444_v20, %v5443_v56  ;;  %vm5446_vm8 = vcmp.lt.s32.totalorder %v11467_v43, 1  ;;  %vm5447_vm11 = vcmp.lt.s32.totalorder %v11467_v43, 2  ;;  %vm5449_vm4 = vcmp.lt.s32.totalorder %v11467_v43, 4 }
 0x6c5   : > { %v5284_v15 = vshll.u32 %v5283_v62, 23  ;;  %v11493_v45 = vsub.s32 %v5578_v44, %v5581_v1  ;;  %v5454_v33 = vsel %vm5446_vm8, %v5433_v13, %v5436_v50  ;;  %v5451_v57 = vsel %vm5449_vm4, %v5439_v27, 2102212464 }
 0x6c6   : > { %v5455_v42 = vsel %vm5449_vm4, %v5442_v26, 920167782  ;;  %v5458_v17 = vsel %vm5446_vm8, %v5436_v50, %v5439_v27  ;;  %v5459_v58 = vsel %vm5449_vm4, %v5445_v63, 1326507024  ;;  %v5281_v23 = vor.u32 %v5280_v41, %v5279_v14  ;;  %v5830_v63 = vld [vmem:[%s12140_s5] sm:$0xff]  ;;  %v5831_v41 = vld [vmem:[%s12140_s5 + $0x8] sm:$0xff] }
 0x6c7   : > { %v5584_v9 = vsub.s32 0, %v11493_v45  ;;  %vm5448_vm7 = vcmp.lt.s32.totalorder %v11467_v43, 3  ;;  %v5450_v4 = vsel %vm5446_vm8, %v5430_v22, %v5433_v13  ;;  %v5285_v20 = vor.u32 4788187, %v5284_v15 }
 0x6c8   : > { %v5456_v25 = vsel %vm5448_vm7, %v5439_v27, %v5455_v42  ;;  %v5460_v16 = vsel %vm5448_vm7, %v5442_v26, %v5459_v58  ;;  %v6297_v11 = vadd.s32 4294967169, %v5730_v7  ;;  %v5452_v60 = vsel %vm5448_vm7, %v5436_v50, %v5451_v57 }
 0x6c9   : > { %v6290_v44 = vmin.u32 %v5584_v9, %v11493_v45  ;;  %v5457_v56 = vsel %vm5447_vm11, %v5454_v33, %v5456_v25  ;;  %v5461_v62 = vsel %vm5447_vm11, %v5458_v17, %v5460_v16  ;;  %v12605_v27 = vxor.u32 2147483648, %v11339_v35 }
 0x6ca   : > { %v11510_v14 = vmul.u32.u64.low %v11469_v0, %v5461_v62  ;;  %v11511_v7 = vmul.u32.u64.high %v11469_v0, %v5461_v62, %v11510_v14  ;;  %v11514_v13 = vmul.u32.u64.low %v11469_v0, %v5457_v56  ;;  %v11515_v50 = vmul.u32.u64.high %v11469_v0, %v5457_v56, %v11514_v13 }
 0x6cb   : > { %v11523_v26 = vsel %vm12314_vm10, %v12605_v27, %v11339_v35  ;;  %v12606_v1 = vand.u32 2147483647, %v11444_v55  ;;  %v12607_v22 = vcvt.s32.f32 %v11432_v31  ;;  %v5586_v33 = vclz %v6290_v44 }
 0x6cc   : > { %v5736_v57 = vadd.s32 1, %v6297_v11  ;;  %v5286_v17 = vand.u32 2147483647, %v5285_v20  ;;  %v5453_v58 = vsel %vm5447_vm11, %v5450_v4, %v5452_v60  ;;  %v6753_v9 = vpack.c.bf16 %v5831_v41, %v5830_v63 }
 0x6cd   : > { %v11529_v15 = vmul.f32 %v12607_v22, %v12606_v1  ;;  %v5288_v25 = vcvt.s32.f32 %v5281_v23  ;;  %v6291_v16 = vadd.s32 4294967294, %v5586_v33  ;;  %v11536_v35 = vadd.f32 %v11078_v18, %v11039_v52 }
 0x6ce   : > { %vm5737_vm0 = vcmp.gt.s32.totalorder %v5736_v57, 0  ;;  %vm5471_vm5 = vc.u32 %v11511_v7, %v11514_v13  ;;  %v5472_v31 = vadd.s32 1, %v11515_v50  ;;  %v5734_v55 = vor.u32 8388608, %v11473_v61  ;;  %6754 = vmatprep.subr.bf16.mxu1 %v6753_v9 }
 0x6cf   : > { %12608 = vst [vmem:[#allocation31_spill] sm:$0xff] %v11536_v35  ;;  %v5738_v11 = vsel %vm5737_vm0, %v5736_v57, 0  ;;  %vm6292_vm8 = vcmp.lt.s32.totalorder %v6291_v16, 0  ;;  %v5469_v23 = vmul.u32 %v11469_v0, %v5453_v58  ;;  %6756 = vmatpush3.bf16.msra.mxu1 %v6753_v9  ;;  %v11544_v20 = vmul.f32 %v5288_v25, %v5286_v17 }
 0x6d0   : > { %v5740_v4 = vand.u32 31, %v5738_v11  ;;  %v5574_v52 = vadd.s32 %v11440_v37, %v11449_v30  ;;  %v5589_v18 = vsel %vm6292_vm8, 0, %v6291_v16  ;;  %v5473_v44 = vsel %vm5471_vm5, %v5472_v31, %v11515_v50 }
 0x6d1   : > { %v5594_v60 = vsub.s32 4294967266, %v5589_v18  ;;  %v5474_v56 = vadd.s32 %v5473_v44, %v5469_v23  ;;  %v12307_v61 = vand.u32 2147483647, %v11536_v35  ;;  %v5625_v62 = vand.u32 2139095040, %v11536_v35 }
 0x6d2   : > { %v5590_v63 = vsub.s32 32, %v5589_v18  ;;  %v5739_v41 = vshrl.u32 %v5738_v11, 5  ;;  %v5741_v14 = vsub.s32 32, %v5740_v4  ;;  %v11551_v0 = vshll.u32 %v5734_v55, 8 }
 0x6d3   : > { %v5475_v27 = vadd.s32 536870912, %v5474_v56  ;;  %v5743_v1 = vshll.u32 %v12334_v19, %v5740_v4  ;;  %v5746_v22 = vshll.u32 %v12570_v28, %v5740_v4  ;;  %v5749_v37 = vshll.u32 %v12336_v21, %v5740_v4 }
 0x6d4   : > { %v5595_v30 = vadd.s32 127, %v5594_v60  ;;  %v5744_v50 = vshrl.u32 %v12570_v28, %v5741_v14  ;;  %v5747_v33 = vshrl.u32 %v12336_v21, %v5741_v14  ;;  %v5750_v57 = vshrl.u32 %v12337_v34, %v5741_v14 }
 0x6d5   : > { %v11559_v17 = vshrl.u32 %v5475_v27, 30  ;;  %v5752_v58 = vshll.u32 %v12337_v34, %v5740_v4  ;;  %v5753_v9 = vshrl.u32 %v12338_v38, %v5741_v14  ;;  %v5626_v25 = vshrl.u32 %v5625_v62, 23 }
 0x6d6   : > { %v5745_v16 = vor.u32 %v5744_v50, %v5743_v1  ;;  %v5748_v31 = vor.u32 %v5747_v33, %v5746_v22  ;;  %v5751_v55 = vor.u32 %v5750_v57, %v5749_v37  ;;  %v11565_v11 = vand.u32 8388607, %v12307_v61  ;;  %v5832_v33 = vld [vmem:[%s12140_s5 + $0x10] sm:$0xff] }
 0x6d7   : > { %12609 = vst [vmem:[#allocation23_spill] sm:$0xff] %v11559_v17  ;;  %v5591_v23 = vshll.u32 %v11493_v45, %v5589_v18  ;;  %v5592_v44 = vshrl.u32 %v5574_v52, %v5590_v63  ;;  %v5477_v60 = vshll.u32 %v11559_v17, 30  ;;  %v5754_v43 = vor.u32 %v5753_v9, %v5752_v58  ;;  %v5833_v9 = vld [vmem:[%s12140_s5 + $0x18] sm:$0xff] }
 0x6d8   : > { %v5596_v27 = vshll.u32 %v5595_v30, 23  ;;  %v5742_v42 = vshrl.u32 %v12334_v19, %v5741_v14  ;;  %v5755_v12 = vshll.u32 %v12338_v38, %v5740_v4  ;;  %v5756_v62 = vshrl.u32 %v12340_v54, %v5741_v14 }
 0x6d9   : > { %v11572_v1 = vsub.s32 %v5474_v56, %v5477_v60  ;;  %vm5758_vm11 = vcmp.lt.s32.totalorder %v5739_v41, 1  ;;  %vm5760_vm4 = vcmp.lt.s32.totalorder %v5739_v41, 3  ;;  %vm5761_vm7 = vcmp.lt.s32.totalorder %v5739_v41, 4 }
 0x6da   : > { %v5757_v22 = vor.u32 %v5756_v62, %v5755_v12  ;;  %v5763_v37 = vsel %vm5761_vm7, %v5751_v55, 2102212464  ;;  %v5766_v50 = vsel %vm5758_vm11, %v5745_v16, %v5748_v31  ;;  %v5767_v45 = vsel %vm5761_vm7, %v5754_v43, 920167782 }
 0x6db   : > { %v5480_v52 = vsub.s32 0, %v11572_v1  ;;  %vm5759_vm0 = vcmp.lt.s32.totalorder %v5739_v41, 2  ;;  %v5762_v18 = vsel %vm5758_vm11, %v5742_v42, %v5745_v16  ;;  %v5768_v63 = vsel %vm5760_vm4, %v5751_v55, %v5767_v45  ;;  %v5834_v16 = vld [vmem:[%s12140_s5 + $0x20] sm:$0xff] }
 0x6dc   : > { %v5764_v30 = vsel %vm5760_vm4, %v5748_v31, %v5763_v37  ;;  %v5769_v4 = vsel %vm5759_vm0, %v5766_v50, %v5768_v63  ;;  %v5770_v14 = vsel %vm5758_vm11, %v5748_v31, %v5751_v55  ;;  %v5771_v56 = vsel %vm5761_vm7, %v5757_v22, 1326507024  ;;  %v5835_v31 = vld [vmem:[%s12140_s5 + $0x28] sm:$0xff]  ;;  %v5836_v63 = vld [vmem:[%s12140_s5 + $0x30] sm:$0xff] }
 0x6dd   : > { %v11581_v12 = vor.u32 %v5592_v44, %v5591_v23  ;;  %v11583_v57 = vor.u32 4788187, %v5596_v27  ;;  %v6286_v58 = vmin.u32 %v5480_v52, %v11572_v1  ;;  %v5772_v42 = vsel %vm5760_vm4, %v5754_v43, %v5771_v56  ;;  %v5839_v56 = vld [vmem:[%s12140_s5 + $0x48] sm:$0xff] }
 0x6de   : > { %v5773_v55 = vsel %vm5759_vm0, %v5770_v14, %v5772_v42  ;;  %v11598_v23 = vmul.u32.u64.low %v11551_v0, %v5769_v4  ;;  %v11599_v44 = vmul.u32.u64.high %v11551_v0, %v5769_v4, %v11598_v23  ;;  %v6293_v43 = vadd.s32 4294967169, %v5626_v25  ;;  %v5837_v25 = vld [vmem:[%s12140_s5 + $0x38] sm:$0xff]  ;;  %v5838_v14 = vld [vmem:[%s12140_s5 + $0x40] sm:$0xff] }
 0x6df   : > { %v5482_v60 = vclz %v6286_v58  ;;  %v5765_v27 = vsel %vm5759_vm0, %v5762_v18, %v5764_v30  ;;  %v11604_v62 = vmul.u32.u64.low %v11551_v0, %v5773_v55  ;;  %v11605_v22 = vmul.u32.u64.high %v11551_v0, %v5773_v55, %v11604_v62 }
 0x6e0   : > { %v5632_v50 = vadd.s32 1, %v6293_v43  ;;  %v6757_v45 = vpack.c.bf16 %v5833_v9, %v5832_v33  ;;  %v6761_v52 = vpack.c.bf16 %v5835_v31, %v5834_v16  ;;  %v5470_v30 = vadd.s32 %v11514_v13, %v11511_v7  ;;  %v5840_v7 = vld [vmem:[%s12140_s5 + $0x50] sm:$0xff]  ;;  %v5841_v13 = vld [vmem:[%s12140_s5 + $0x58] sm:$0xff] }
 0x6e1   : > { %v6287_v4 = vadd.s32 4294967294, %v5482_v60  ;;  %v5781_v33 = vmul.u32 %v11551_v0, %v5765_v27  ;;  %v5784_v58 = vadd.s32 1, %v11599_v44  ;;  %v5630_v42 = vor.u32 8388608, %v11565_v11 }
 0x6e2   : > { %vm5633_vm5 = vcmp.gt.s32.totalorder %v5632_v50, 0  ;;  %6758 = vmatprep.subr.bf16.mxu1 %v6757_v45  ;;  %vm5783_vm11 = vc.u32 %v11605_v22, %v11598_v23  ;;  %v6765_v0 = vpack.c.bf16 %v5837_v25, %v5836_v63  ;;  %v6769_v55 = vpack.c.bf16 %v5839_v56, %v5838_v14 }
 0x6e3   : > { %vm6288_vm8 = vcmp.lt.s32.totalorder %v6287_v4, 0  ;;  %v5634_v9 = vsel %vm5633_vm5, %v5632_v50, 0  ;;  %6760 = vmatpush3.bf16.msra.mxu1 %v6757_v45  ;;  %v5785_v11 = vsel %vm5783_vm11, %v5784_v58, %v11599_v44  ;;  %v11636_v62 = vpack.c.bf16 %v5841_v13, %v5840_v7  ;;  %v5843_v58 = vld [vmem:[%s12140_s5 + $0x68] sm:$0xff] }
 0x6e4   : > { %v5485_v16 = vsel %vm6288_vm8, 0, %v6287_v4  ;;  %v5636_v31 = vand.u32 31, %v5634_v9  ;;  %6762 = vmatprep.subr.bf16.mxu1 %v6761_v52  ;;  %v5786_v27 = vadd.s32 %v5785_v11, %v5781_v33  ;;  %v11638_v61 = vshrl.u32 %v5634_v9, 5  ;;  %v5842_v33 = vld [vmem:[%s12140_s5 + $0x60] sm:$0xff] }
 0x6e5   : > { %v5486_v43 = vsub.s32 32, %v5485_v16  ;;  %v5490_v60 = vsub.s32 4294967266, %v5485_v16  ;;  %v11641_v41 = vshll.u32 %v5630_v42, 8  ;;  %v6777_v17 = vpack.c.bf16 %v5843_v58, %v5842_v33  ;;  %v5844_v33 = vld [vmem:[%s12140_s5 + $0x70] sm:$0xff]  ;;  %v5845_v58 = vld [vmem:[%s12140_s5 + $0x78] sm:$0xff] }
 0x6e6   : > { %v5637_v37 = vsub.s32 32, %v5636_v31  ;;  %v5639_v18 = vshll.u32 %v12334_v19, %v5636_v31  ;;  %v5787_v45 = vadd.s32 536870912, %v5786_v27  ;;  %v5642_v63 = vshll.u32 %v12570_v28, %v5636_v31 }
 0x6e7   : > { %v5491_v50 = vadd.s32 127, %v5490_v60  ;;  %v5645_v44 = vshll.u32 %v12336_v21, %v5636_v31  ;;  %6764 = vmatpush3.bf16.msra.mxu1 %v6761_v52  ;;  %v5488_v25 = vshrl.u32 %v5470_v30, %v5486_v43  ;;  %v5648_v52 = vshll.u32 %v12337_v34, %v5636_v31 }
 0x6e8   : > { %v5640_v4 = vshrl.u32 %v12570_v28, %v5637_v37  ;;  %v5643_v14 = vshrl.u32 %v12336_v21, %v5637_v37  ;;  %v5646_v56 = vshrl.u32 %v12337_v34, %v5637_v37  ;;  %6766 = vmatprep.subr.bf16.mxu1 %v6765_v0  ;;  %v11654_v7 = vshrl.u32 %v5787_v45, 30 }
 0x6e9   : > { %v5492_v42 = vshll.u32 %v5491_v50, 23  ;;  %v5649_v28 = vshrl.u32 %v12338_v38, %v5637_v37  ;;  %v5487_v21 = vshll.u32 %v11572_v1, %v5485_v16  ;;  %v5638_v43 = vshrl.u32 %v12334_v19, %v5637_v37 }
 0x6ea   : > { %v5641_v30 = vor.u32 %v5640_v4, %v5639_v18  ;;  %v5644_v13 = vor.u32 %v5643_v14, %v5642_v63  ;;  %v5647_v9 = vor.u32 %v5646_v56, %v5645_v44  ;;  %v5789_v11 = vshll.u32 %v11654_v7, 30 }
 0x6eb   : > { %v5650_v60 = vor.u32 %v5649_v28, %v5648_v52  ;;  %6768 = vmatpush3.bf16.msra.mxu1 %v6765_v0  ;;  %v5489_v35 = vor.u32 %v5488_v25, %v5487_v21  ;;  %v5493_v50 = vor.u32 4788187, %v5492_v42  ;;  %v5651_v45 = vshll.u32 %v12338_v38, %v5636_v31 }
 0x6ec   : > { %v5652_v34 = vshrl.u32 %v12340_v54, %v5637_v37  ;;  %6770 = vmatprep.subr.bf16.mxu1 %v6769_v55  ;;  %v11663_v46 = vsub.s32 %v5786_v27, %v5789_v11  ;;  %vm5654_vm4 = vcmp.lt.s32.totalorder %v11638_v61, 1  ;;  %vm5656_vm7 = vcmp.lt.s32.totalorder %v11638_v61, 3 }
 0x6ed   : > { %vm5657_vm0 = vcmp.lt.s32.totalorder %v11638_v61, 4  ;;  %v5662_v18 = vsel %vm5654_vm4, %v5641_v30, %v5644_v13  ;;  %vm5655_vm5 = vcmp.lt.s32.totalorder %v11638_v61, 2  ;;  %v5658_v54 = vsel %vm5654_vm4, %v5638_v43, %v5641_v30 }
 0x6ee   : > { %v5653_v1 = vor.u32 %v5652_v34, %v5651_v45  ;;  %v5659_v19 = vsel %vm5657_vm0, %v5647_v9, 2102212464  ;;  %v5663_v0 = vsel %vm5657_vm0, %v5650_v60, 920167782  ;;  %v5792_v16 = vsub.s32 0, %v11663_v46 }
 0x6ef   : > { %v5664_v38 = vsel %vm5656_vm7, %v5647_v9, %v5663_v0  ;;  %6772 = vmatpush3.bf16.msra.mxu1 %v6769_v55  ;;  %vm5000_vm8 = vcmp.lt.s32.totalorder %v11082_v40, 0  ;;  %vm5312_vm11 = vcmp.lt.s32.totalorder %v11114_v3, 0  ;;  %v5660_v37 = vsel %vm5656_vm7, %v5644_v13, %v5659_v19 }
 0x6f0   : > { %v5665_v31 = vsel %vm5655_vm5, %v5662_v18, %v5664_v38  ;;  %v5666_v27 = vsel %vm5654_vm4, %v5644_v13, %v5647_v9  ;;  %v5667_v63 = vsel %vm5657_vm0, %v5653_v1, 1326507024  ;;  %6774 = vmatprep.subr.bf16.mxu1 %v11636_v62  ;;  %vm5208_vm10 = vcmp.lt.s32.totalorder %v11200_v6, 0 }
 0x6f1   : > { %vm12316_vm1 = vcmp.lt.s32.totalorder %v11247_v10, 0  ;;  %v12610_v55 = vand.u32 2147483647, %v11583_v57  ;;  %v12611_v44 = vcvt.s32.f32 %v11581_v12  ;;  %v5494_v4 = vand.u32 2147483647, %v5493_v50 }
 0x6f2   : > { %v6298_v14 = vmin.u32 %v5792_v16, %v11663_v46  ;;  %v5668_v56 = vsel %vm5656_vm7, %v5650_v60, %v5667_v63  ;;  %v5496_v42 = vcvt.s32.f32 %v5489_v35  ;;  %v5661_v21 = vsel %vm5655_vm5, %v5658_v54, %v5660_v37 }
 0x6f3   : > { %v5601_v25 = vmul.f32 %v12611_v44, %v12610_v55  ;;  %v5669_v57 = vsel %vm5655_vm5, %v5666_v27, %v5668_v56  ;;  %v11703_v12 = vmul.u32.u64.low %v11641_v41, %v5665_v31  ;;  %v11704_v52 = vmul.u32.u64.high %v11641_v41, %v5665_v31, %v11703_v12  ;;  %6776 = vmatpush3.bf16.msra.mxu1 %v11636_v62 }
 0x6f4   : > { %v5794_v28 = vclz %v6298_v14  ;;  %v11710_v30 = vmul.u32.u64.low %v11641_v41, %v5669_v57  ;;  %v11711_v13 = vmul.u32.u64.high %v11641_v41, %v5669_v57, %v11710_v30  ;;  %6778 = vmatprep.subr.bf16.mxu1 %v6777_v17  ;;  %v6781_v35 = vpack.c.bf16 %v5845_v58, %v5844_v33 }
 0x6f5   : > { %v12612_v9 = vand.u32 2147483647, %v10558_v5  ;;  %v4252_v43 = vsub.s32 4, %v10667_v51  ;;  %v4356_v60 = vsub.s32 4, %v10641_v8  ;;  %v5602_v61 = vxor.u32 2147483648, %v5601_v25 }
 0x6f6   : > { %v11722_v50 = vmul.f32 %v5496_v42, %v5494_v4  ;;  %v6299_v45 = vadd.s32 4294967294, %v5794_v28  ;;  %v5677_v34 = vmul.u32 %v11641_v41, %v5661_v21  ;;  %v5680_v1 = vadd.s32 1, %v11704_v52  ;;  %v12619_v42 = vld [vmem:[#allocation29_spill] sm:$0xff] }
 0x6f7   : > { %vm11716_vm4 = vcmp.le.f32.partialorder %v12612_v9, 0.7853982  ;;  %v4253_v19 = vsel %vm4168_vm15, %v4252_v43, %v10667_v51  ;;  %vm5679_vm0 = vc.u32 %v11711_v13, %v11703_v12  ;;  %6780 = vmatpush3.bf16.msra.mxu1 %v6777_v17  ;;  %v12615_v51 = vxor.u32 2147483648, %v11451_v32  ;;  %v12624_v9 = vld [vmem:[#allocation20_spill] sm:$0xff] }
 0x6f8   : > { %v4254_v62 = vsel %vm11716_vm4, %v10558_v5, %v11072_v29  ;;  %vm6300_vm7 = vcmp.lt.s32.totalorder %v6299_v45, 0  ;;  %v4255_v18 = vsel %vm11716_vm4, 0, %v4253_v19  ;;  %v4357_v29 = vsel %vm4272_vm2, %v4356_v60, %v10641_v8  ;;  %6782 = vmatprep.subr.bf16.mxu1 %v6781_v35 }
 0x6f9   : > { %7167 = vcosq.f32 %v4254_v62  ;;  %v5797_v41 = vsel %vm6300_vm7, 0, %v6299_v45  ;;  %v5681_v0 = vsel %vm5679_vm0, %v5680_v1, %v11704_v52  ;;  %v4259_v16 = vadd.s32 3, %v4255_v18 }
 0x6fa   : > { %7169 = vsinq.f32 %v4254_v62  ;;  %v11746_v54 = vsel %vm5000_vm8, %v12615_v51, %v11451_v32  ;;  %v12616_v17 = vxor.u32 2147483648, %v11529_v15  ;;  %v5802_v8 = vsub.s32 4294967266, %v5797_v41 }
 0x6fb   : > { %v5682_v37 = vadd.s32 %v5681_v0, %v5677_v34  ;;  %v12617_v31 = vxor.u32 2147483648, %v11544_v20  ;;  %v11764_v32 = vsel %vm12316_vm1, %v5602_v61, %v5601_v25  ;;  %v5798_v63 = vsub.s32 32, %v5797_v41  ;;  %6784 = vmatpush3.bf16.msra.mxu1 %v6781_v35  ;;  %v12623_v35 = vld [vmem:[#allocation33_spill] sm:$0xff] }
 0x6fc   : > { %v11753_v38 = vsel %vm5312_vm11, %v12616_v17, %v11529_v15  ;;  %v4359_v55 = vsel %vm10806_vm12, 0, %v4357_v29  ;;  %v5803_v44 = vadd.s32 127, %v5802_v8  ;;  %v4260_v4 = vand.u32 3, %v4259_v16  ;;  %v12625_v29 = vld [vmem:[#allocation32_spill] sm:$0xff] }
 0x6fd   : > { %v11760_v27 = vsel %vm5208_vm10, %v12617_v31, %v11544_v20  ;;  %v5683_v15 = vadd.s32 536870912, %v5682_v37  ;;  %v4363_v14 = vadd.s32 3, %v4359_v55  ;;  %v5498_v56 = vxor.u32 2147483648, %v11722_v50  ;;  %v12618_v20 = vld [vmem:[#allocation12_spill] sm:$0xff] }
 0x6fe   : > { %v5782_v33 = vadd.s32 %v11598_v23, %v11605_v22  ;;  %v4367_v58 = vxor.u32 2147483648, %v12618_v20  ;;  %v4460_v57 = vsub.s32 4, %v12619_v42  ;;  %v5804_v25 = vshll.u32 %v5803_v44, 23 }
 0x6ff   : > { %v11773_v52 = vshrl.u32 %v5683_v15, 30  ;;  %v4364_v28 = vand.u32 3, %v4363_v14  ;;  %v12620_v2 = vand.u32 2147483647, %v10659_v36  ;;  %v5799_v30 = vshll.u32 %v11663_v46, %v5797_v41 }
 0x700   : > { %vm4258_vm12 = vweird.f32 %v10558_v5  ;;  %v4370_v23 = vxor.u32 2147483648, %v12623_v35  ;;  %v4461_v22 = vsel %vm4376_vm9, %v4460_v57, %v12619_v42  ;;  %v5800_v43 = vshrl.u32 %v5782_v33, %v5798_v63  ;;  %v12630_v33 = vld [vmem:[#allocation11_spill] sm:$0xff] }
 0x701   : > { %vm11777_vm2 = vcmp.le.f32.partialorder %v12620_v2, 0.7853982  ;;  %v5685_v60 = vshll.u32 %v11773_v52, 30  ;;  %vm4261_vm15 = vcmp.lt.s32.totalorder %v4260_v4, 2  ;;  %vm4262_vm5 = vcmp.eq.s32.totalorder %v4260_v4, 0 }
 0x702   : > { %v4462_v11 = vsel %vm11777_vm2, %v10659_v36, %v12624_v9  ;;  %v5805_v46 = vor.u32 4788187, %v5804_v25  ;;  %vm4265_vm4 = vcmp.eq.s32.totalorder %v4260_v4, 2  ;;  %vm4366_vm7 = vcmp.eq.s32.totalorder %v4364_v28, 0 }
 0x703   : > { %v7168_v61 = vpop.eup %7167  ;;  %7171 = vcosq.f32 %v4462_v11  ;;  %v11792_v45 = vsub.s32 %v5682_v37, %v5685_v60  ;;  %vm4369_vm0 = vcmp.eq.s32.totalorder %v4364_v28, 2  ;;  %v4463_v34 = vsel %vm11777_vm2, 0, %v4461_v22  ;;  %v12626_v37 = vld [vmem:[#allocation19_spill] sm:$0xff] }
 0x704   : > { %v4266_v62 = vxor.u32 2147483648, %v7168_v61  ;;  %v7170_v1 = vpop.eup %7169  ;;  %v4368_v19 = vsel %vm4366_vm7, %v12623_v35, %v4367_v58  ;;  %v4371_v18 = vsel %vm4369_vm0, %v4370_v23, %v12618_v20  ;;  %7173 = vsinq.f32 %v4462_v11 }
 0x705   : > { %v4564_v41 = vsub.s32 4, %v12625_v29  ;;  %v5801_v0 = vor.u32 %v5800_v43, %v5799_v30  ;;  %v5688_v16 = vsub.s32 0, %v11792_v45  ;;  %v4263_v51 = vxor.u32 2147483648, %v7170_v1 }
 0x706   : > { %v4267_v17 = vsel %vm4265_vm4, %v4266_v62, %v7170_v1  ;;  %vm4365_vm9 = vcmp.lt.s32.totalorder %v4364_v28, 2  ;;  %v4467_v8 = vadd.s32 3, %v4463_v34  ;;  %v12627_v31 = vand.u32 2147483647, %v12626_v37  ;;  %v12635_v1 = vld [vmem:[#allocation24_spill] sm:$0xff] }
 0x707   : > { %v4565_v55 = vsel %vm4480_vm3, %v4564_v41, %v12625_v29  ;;  %v6294_v44 = vmin.u32 %v5688_v16, %v11792_v45  ;;  %v4264_v15 = vsel %vm4262_vm5, %v7168_v61, %v4263_v51  ;;  %v4372_v14 = vsel %vm4365_vm9, %v4368_v19, %v4371_v18  ;;  %v12640_v51 = vld [vmem:[#allocation15_spill] sm:$0xff] }
 0x708   : > { %vm11802_vm1 = vcmp.le.f32.partialorder %v12627_v31, 0.7853982  ;;  %v5806_v58 = vand.u32 2147483647, %v5805_v46  ;;  %v5678_v42 = vadd.s32 %v11703_v12, %v11711_v13  ;;  %v4268_v57 = vsel %vm4261_vm15, %v4264_v15, %v4267_v17 }
 0x709   : > { %v4566_v20 = vsel %vm11802_vm1, %v12626_v37, %v12630_v33  ;;  %vm4362_vm2 = vweird.f32 %v10555_v39  ;;  %v5808_v25 = vcvt.s32.f32 %v5801_v0  ;;  %v5690_v28 = vclz %v6294_v44  ;;  %v12634_v39 = vld [vmem:[#allocation14_spill] sm:$0xff]  ;;  %v12639_v0 = vld [vmem:[#allocation35_spill] sm:$0xff] }
 0x70a   : > { %v4269_v2 = vsel %vm4258_vm12, nan, %v4268_v57  ;;  %v4567_v21 = vsel %vm11802_vm1, 0, %v4565_v55  ;;  %v4373_v30 = vsel %vm4362_vm2, nan, %v4372_v14  ;;  %v4468_v35 = vand.u32 3, %v4467_v8 }
 0x70b   : > { %6633 = vmatprep.mubr.f32.mxu1 %v4269_v2  ;;  %7175 = vcosq.f32 %v4566_v20  ;;  %v12631_v23 = vand.u32 2147483647, %v10677_v47  ;;  %v6295_v13 = vadd.s32 4294967294, %v5690_v28  ;;  %v4668_v4 = vsub.s32 4, %v12634_v39  ;;  %v12641_v28 = vld [vmem:[#allocation9_spill] sm:$0xff] }
 0x70c   : > { %6634 = vmatmul.mubr.f32.vlgmr.msra.gmra.mrb[16].mxu1 %v4373_v30  ;;  %7177 = vsinq.f32 %v4566_v20  ;;  %v11834_v9 = vmul.f32 %v5808_v25, %v5806_v58  ;;  %vm4466_vm1 = vweird.f32 %v10659_v36  ;;  %v4571_v11 = vadd.s32 3, %v4567_v21 }
 0x70d   : > { %vm11825_vm3 = vcmp.le.f32.partialorder %v12631_v23, 0.7853982  ;;  %v7172_v22 = vpop.eup %7171  ;;  %vm6296_vm12 = vcmp.lt.s32.totalorder %v6295_v13, 0  ;;  %v4669_v60 = vsel %vm4584_vm6, %v4668_v4, %v12634_v39  ;;  %vm4469_vm15 = vcmp.lt.s32.totalorder %v4468_v35, 2 }
 0x70e   : > { %v4670_v5 = vsel %vm11825_vm3, %v10677_v47, %v11337_v59  ;;  %v4474_v43 = vxor.u32 2147483648, %v7172_v22  ;;  %v7174_v61 = vpop.eup %7173  ;;  %v5693_v46 = vsel %vm6296_vm12, 0, %v6295_v13  ;;  %vm4470_vm5 = vcmp.eq.s32.totalorder %v4468_v35, 0 }
 0x70f   : > { %7179 = vcosq.f32 %v4670_v5  ;;  %vm4473_vm4 = vcmp.eq.s32.totalorder %v4468_v35, 2  ;;  %v5694_v59 = vsub.s32 32, %v5693_v46  ;;  %v5698_v62 = vsub.s32 4294967266, %v5693_v46 }
 0x710   : > { %7181 = vsinq.f32 %v4670_v5  ;;  %v4471_v34 = vxor.u32 2147483648, %v7174_v61  ;;  %v12636_v19 = vand.u32 2147483647, %v12635_v1  ;;  %v4475_v29 = vsel %vm4473_vm4, %v4474_v43, %v7174_v61 }
 0x711   : > { %v4671_v41 = vsel %vm11825_vm3, 0, %v4669_v60  ;;  %v4772_v16 = vsub.s32 4, %v12639_v0  ;;  %v5699_v8 = vadd.s32 127, %v5698_v62  ;;  %v4572_v63 = vand.u32 3, %v4571_v11 }
 0x712   : > { %vm11842_vm7 = vcmp.le.f32.partialorder %v12636_v19, 0.7853982  ;;  %v4472_v31 = vsel %vm4470_vm5, %v7172_v22, %v4471_v34  ;;  %v4675_v55 = vadd.s32 3, %v4671_v41  ;;  %v5696_v44 = vshrl.u32 %v5678_v42, %v5694_v59 }
 0x713   : > { %v4774_v17 = vsel %vm11842_vm7, %v12635_v1, %v12640_v51  ;;  %v4476_v15 = vsel %vm4469_vm15, %v4472_v31, %v4475_v29  ;;  %v4773_v14 = vsel %vm4688_vm14, %v4772_v16, %v12639_v0  ;;  %vm5416_vm6 = vcmp.lt.s32.totalorder %v11326_v53, 0 }
 0x714   : > { %7183 = vcosq.f32 %v4774_v17  ;;  %v5700_v33 = vshll.u32 %v5699_v8, 23  ;;  %v4477_v20 = vsel %vm4466_vm1, nan, %v4476_v15  ;;  %vm4570_vm0 = vweird.f32 %v12626_v37 }
 0x715   : > { %v4676_v58 = vand.u32 3, %v4675_v55  ;;  %v7176_v57 = vpop.eup %7175  ;;  %v5695_v25 = vshll.u32 %v11792_v45, %v5693_v46  ;;  %6636 = vmatprep.mubr.f32.mxu1 %v4477_v20  ;;  %v4775_v42 = vsel %vm11842_vm7, 0, %v4773_v14  ;;  %7185 = vsinq.f32 %v4774_v17  ;;  %v12645_v17 = vld [vmem:[#allocation28_spill] sm:$0xff] }
 0x716   : > { %v4876_v2 = vsub.s32 4, %v12641_v28  ;;  %v7178_v21 = vpop.eup %7177  ;;  %vm4573_vm14 = vcmp.lt.s32.totalorder %v4572_v63, 2  ;;  %vm4574_vm9 = vcmp.eq.s32.totalorder %v4572_v63, 0  ;;  %vm4577_vm2 = vcmp.eq.s32.totalorder %v4572_v63, 2  ;;  %v12649_v63 = vld [vmem:[#allocation21_spill] sm:$0xff] }
 0x717   : > { %v4578_v30 = vxor.u32 2147483648, %v7176_v57  ;;  %v5697_v35 = vor.u32 %v5696_v44, %v5695_v25  ;;  %v5701_v23 = vor.u32 4788187, %v5700_v33  ;;  %v4575_v12 = vxor.u32 2147483648, %v7178_v21 }
 0x718   : > { %v4779_v13 = vadd.s32 3, %v4775_v42  ;;  %vm4681_vm3 = vcmp.eq.s32.totalorder %v4676_v58, 2  ;;  %v12642_v5 = vand.u32 2147483647, %v10870_v49  ;;  %v4877_v60 = vsel %vm4792_vm13, %v4876_v2, %v12641_v28 }
 0x719   : > { %v7180_v36 = vpop.eup %7179  ;;  %v4579_v4 = vsel %vm4577_vm2, %v4578_v30, %v7178_v21  ;;  %v4576_v11 = vsel %vm4574_vm9, %v7176_v57, %v4575_v12  ;;  %vm4677_vm12 = vcmp.lt.s32.totalorder %v4676_v58, 2  ;;  %vm4678_vm15 = vcmp.eq.s32.totalorder %v4676_v58, 0  ;;  %v12655_v21 = vld [vmem:[#allocation34_spill] sm:$0xff] }
 0x71a   : > { %v7182_v39 = vpop.eup %7181  ;;  %v4682_v45 = vxor.u32 2147483648, %v7180_v36  ;;  %vm11867_vm1 = vcmp.le.f32.partialorder %v12642_v5, 0.7853982  ;;  %v4580_v46 = vsel %vm4573_vm14, %v4576_v11, %v4579_v4  ;;  %v5702_v62 = vand.u32 2147483647, %v5701_v23 }
 0x71b   : > { %v4679_v43 = vxor.u32 2147483648, %v7182_v39  ;;  %v4878_v61 = vsel %vm11867_vm1, %v10870_v49, %v11354_v24  ;;  %v4581_v34 = vsel %vm4570_vm0, nan, %v4580_v46  ;;  %v4780_v18 = vand.u32 3, %v4779_v13 }
 0x71c   : > { %v4683_v59 = vsel %vm4681_vm3, %v4682_v45, %v7182_v39  ;;  %6637 = vmatmul.mubr.f32.gmra.mrb[18].mxu1 %v4581_v34  ;;  %vm4674_vm5 = vweird.f32 %v10677_v47  ;;  %v4879_v41 = vsel %vm11867_vm1, 0, %v4877_v60  ;;  %7187 = vcosq.f32 %v4878_v61  ;;  %v12659_v45 = vld [vmem:[#allocation18_spill] sm:$0xff] }
 0x71d   : > { %v4680_v19 = vsel %vm4678_vm15, %v7180_v36, %v4679_v43  ;;  %v11889_v0 = vsel %vm5416_vm6, %v5498_v56, %v11722_v50  ;;  %v5704_v37 = vcvt.s32.f32 %v5697_v35  ;;  %7189 = vsinq.f32 %v4878_v61  ;;  %v12650_v56 = vld [vmem:[#allocation13_spill] sm:$0xff] }
 0x71e   : > { %v4684_v29 = vsel %vm4677_vm12, %v4680_v19, %v4683_v59  ;;  %v7184_v24 = vpop.eup %7183  ;;  %v5810_v51 = vxor.u32 2147483648, %v11834_v9  ;;  %v12646_v8 = vand.u32 2147483647, %v12645_v17  ;;  %v4980_v55 = vsub.s32 4, %v12649_v63 }
 0x71f   : > { %v4685_v16 = vsel %vm4674_vm5, nan, %v4684_v29  ;;  %v4786_v47 = vxor.u32 2147483648, %v7184_v24  ;;  %v7186_v44 = vpop.eup %7185  ;;  %v11899_v15 = vmul.f32 %v5704_v37, %v5702_v62  ;;  %vm4785_vm4 = vcmp.eq.s32.totalorder %v4780_v18, 2 }
 0x720   : > { %6639 = vmatprep.mubr.f32.mxu1 %v4685_v16  ;;  %vm11894_vm13 = vcmp.le.f32.partialorder %v12646_v8, 0.7853982  ;;  %v4883_v50 = vadd.s32 3, %v4879_v41  ;;  %v4783_v33 = vxor.u32 2147483648, %v7186_v44  ;;  %vm12651_vm7 = vcmp.lt.s32.totalorder %v12645_v17, 0 }
 0x721   : > { %v4982_v14 = vsel %vm11894_vm13, %v12645_v17, %v12650_v56  ;;  %v4787_v20 = vsel %vm4785_vm4, %v4786_v47, %v7186_v44  ;;  %v4981_v58 = vsel %vm12651_vm7, %v4980_v55, %v12649_v63  ;;  %vm4781_vm0 = vcmp.lt.s32.totalorder %v4780_v18, 2  ;;  %v12665_v56 = vld [vmem:[#allocation8_spill] sm:$0xff] }
 0x722   : > { %7191 = vcosq.f32 %v4982_v14  ;;  %vm4782_vm14 = vcmp.eq.s32.totalorder %v4780_v18, 0  ;;  %v4983_v57 = vsel %vm11894_vm13, 0, %v4981_v58  ;;  %v12652_v25 = vand.u32 2147483647, %v11082_v40  ;;  %v12661_v18 = vld [vmem:[#allocation17_spill] sm:$0xff] }
 0x723   : > { %v4784_v28 = vsel %vm4782_vm14, %v7184_v24, %v4783_v33  ;;  %7193 = vsinq.f32 %v4982_v14  ;;  %v4987_v2 = vadd.s32 3, %v4983_v57  ;;  %v5084_v30 = vsub.s32 4, %v12655_v21 }
 0x724   : > { %vm11912_vm9 = vcmp.le.f32.partialorder %v12652_v25, 0.7853982  ;;  %vm4778_vm2 = vweird.f32 %v12635_v1  ;;  %v4788_v36 = vsel %vm4781_vm0, %v4784_v28, %v4787_v20  ;;  %v4884_v35 = vand.u32 3, %v4883_v50 }
 0x725   : > { %v5086_v23 = vsel %vm11912_vm9, %v11082_v40, %v11746_v54  ;;  %v4789_v12 = vsel %vm4778_vm2, nan, %v4788_v36  ;;  %v5085_v13 = vsel %vm5000_vm8, %v5084_v30, %v12655_v21  ;;  %v12656_v39 = vand.u32 2147483647, %v10955_v48  ;;  %v12670_v30 = vld [vmem:[#allocation31_spill] sm:$0xff] }
 0x726   : > { %7195 = vcosq.f32 %v5086_v23  ;;  %6640 = vmatmul.mubr.f32.gmra.mrb[20].mxu1 %v4789_v12  ;;  %v5087_v1 = vsel %vm11912_vm9, 0, %v5085_v13  ;;  %v5188_v5 = vsub.s32 4, %v12659_v45  ;;  %v7188_v22 = vpop.eup %7187  ;;  %v5706_v11 = vxor.u32 2147483648, %v11899_v15 }
 0x727   : > { %vm11927_vm3 = vcmp.le.f32.partialorder %v12656_v39, 0.7853982  ;;  %7197 = vsinq.f32 %v5086_v23  ;;  %vm4882_vm8 = vweird.f32 %v10870_v49  ;;  %v4988_v43 = vand.u32 3, %v4987_v2  ;;  %v7190_v61 = vpop.eup %7189  ;;  %v12669_v2 = vld [vmem:[#allocation25_spill] sm:$0xff] }
 0x728   : > { %v5190_v54 = vsel %vm11927_vm3, %v10955_v48, %v11523_v26  ;;  %v5091_v60 = vadd.s32 3, %v5087_v1  ;;  %vm4889_vm1 = vcmp.eq.s32.totalorder %v4884_v35, 2  ;;  %v4890_v46 = vxor.u32 2147483648, %v7188_v22 }
 0x729   : > { %vm12660_vm12 = vcmp.lt.s32.totalorder %v10955_v48, 0  ;;  %7199 = vcosq.f32 %v5190_v54  ;;  %v4887_v62 = vxor.u32 2147483648, %v7190_v61  ;;  %vm4986_vm15 = vweird.f32 %v12645_v17 }
 0x72a   : > { %v5189_v59 = vsel %vm12660_vm12, %v5188_v5, %v12659_v45  ;;  %v5092_v34 = vand.u32 3, %v5091_v60  ;;  %7201 = vsinq.f32 %v5190_v54  ;;  %vm4885_vm5 = vcmp.lt.s32.totalorder %v4884_v35, 2 }
 0x72b   : > { %v5191_v26 = vsel %vm11927_vm3, 0, %v5189_v59  ;;  %vm4886_vm13 = vcmp.eq.s32.totalorder %v4884_v35, 0  ;;  %v4891_v19 = vsel %vm4889_vm1, %v4890_v46, %v7190_v61  ;;  %v5292_v29 = vsub.s32 4, %v12661_v18 }
 0x72c   : > { %v7192_v41 = vpop.eup %7191  ;;  %v4888_v24 = vsel %vm4886_vm13, %v7188_v22, %v4887_v62  ;;  %vm4989_vm4 = vcmp.lt.s32.totalorder %v4988_v43, 2  ;;  %vm4990_vm7 = vcmp.eq.s32.totalorder %v4988_v43, 0  ;;  %v5195_v37 = vadd.s32 3, %v5191_v26 }
 0x72d   : > { %v4892_v16 = vsel %vm4885_vm5, %v4888_v24, %v4891_v19  ;;  %v4994_v47 = vxor.u32 2147483648, %v7192_v41  ;;  %vm5090_vm0 = vweird.f32 %v11082_v40  ;;  %v12662_v8 = vand.u32 2147483647, %v11200_v6  ;;  %v7194_v55 = vpop.eup %7193 }
 0x72e   : > { %v5293_v63 = vsel %vm5208_vm10, %v5292_v29, %v12661_v18  ;;  %v4893_v44 = vsel %vm4882_vm8, nan, %v4892_v16  ;;  %vm4993_vm9 = vcmp.eq.s32.totalorder %v4988_v43, 2  ;;  %vm5093_vm2 = vcmp.lt.s32.totalorder %v5092_v34, 2  ;;  %v12678_v16 = vld [vmem:[#allocation10_spill] sm:$0xff] }
 0x72f   : > { %vm11950_vm14 = vcmp.le.f32.partialorder %v12662_v8, 0.7853982  ;;  %vm5728_vm3 = vcmp.lt.s32.totalorder %v12665_v56, 0  ;;  %6642 = vmatprep.mubr.f32.mxu1 %v4893_v44  ;;  %v4991_v14 = vxor.u32 2147483648, %v7194_v55  ;;  %v4995_v33 = vsel %vm4993_vm9, %v4994_v47, %v7194_v55 }
 0x730   : > { %v5294_v50 = vsel %vm11950_vm14, %v11200_v6, %v11760_v27  ;;  %vm5094_vm1 = vcmp.eq.s32.totalorder %v5092_v34, 0  ;;  %v5295_v20 = vsel %vm11950_vm14, 0, %v5293_v63  ;;  %v7196_v58 = vpop.eup %7195  ;;  %vm5097_vm10 = vcmp.eq.s32.totalorder %v5092_v34, 2  ;;  %v12674_v34 = vld [vmem:[#allocation23_spill] sm:$0xff] }
 0x731   : > { %v5196_v49 = vand.u32 3, %v5195_v37  ;;  %7203 = vcosq.f32 %v5294_v50  ;;  %v12666_v57 = vand.u32 2147483647, %v11114_v3  ;;  %v7198_v27 = vpop.eup %7197  ;;  %v4992_v42 = vsel %vm4990_vm7, %v7192_v41, %v4991_v14 }
 0x732   : > { %v5098_v28 = vxor.u32 2147483648, %v7196_v58  ;;  %7205 = vsinq.f32 %v5294_v50  ;;  %v5396_v21 = vsub.s32 4, %v12669_v2  ;;  %vm5624_vm12 = vcmp.lt.s32.totalorder %v12670_v30, 0 }
 0x733   : > { %vm11968_vm8 = vcmp.le.f32.partialorder %v12666_v57, 0.7853982  ;;  %v4996_v36 = vsel %vm4989_vm4, %v4992_v42, %v4995_v33  ;;  %v5095_v35 = vxor.u32 2147483648, %v7198_v27  ;;  %v5299_v23 = vadd.s32 3, %v5295_v20  ;;  %v7200_v13 = vpop.eup %7199 }
 0x734   : > { %v5398_v12 = vsel %vm11968_vm8, %v11114_v3, %v11753_v38  ;;  %v4997_v39 = vsel %vm4986_vm15, nan, %v4996_v36  ;;  %v5099_v4 = vsel %vm5097_vm10, %v5098_v28, %v7198_v27  ;;  %v5397_v1 = vsel %vm5312_vm11, %v5396_v21, %v12669_v2  ;;  %v7202_v45 = vpop.eup %7201 }
 0x735   : > { %7207 = vcosq.f32 %v5398_v12  ;;  %6643 = vmatmul.mubr.f32.gmra.mrb[22].mxu1 %v4997_v39  ;;  %v5096_v5 = vsel %vm5094_vm1, %v7196_v58, %v5095_v35  ;;  %vm5197_vm5 = vcmp.lt.s32.totalorder %v5196_v49, 2  ;;  %vm5198_vm13 = vcmp.eq.s32.totalorder %v5196_v49, 0 }
 0x736   : > { %v5202_v54 = vxor.u32 2147483648, %v7200_v13  ;;  %v5100_v38 = vsel %vm5093_vm2, %v5096_v5, %v5099_v4  ;;  %v5199_v22 = vxor.u32 2147483648, %v7202_v45  ;;  %vm5201_vm4 = vcmp.eq.s32.totalorder %v5196_v49, 2 }
 0x737   : > { %v5399_v17 = vsel %vm11968_vm8, 0, %v5397_v1  ;;  %v5101_v43 = vsel %vm5090_vm0, nan, %v5100_v38  ;;  %v5300_v61 = vand.u32 3, %v5299_v23  ;;  %7209 = vsinq.f32 %v5398_v12 }
 0x738   : > { %v5203_v60 = vsel %vm5201_vm4, %v5202_v54, %v7202_v45  ;;  %6645 = vmatprep.mubr.f32.mxu1 %v5101_v43  ;;  %v5200_v46 = vsel %vm5198_vm13, %v7200_v13, %v5199_v22  ;;  %v5403_v59 = vadd.s32 3, %v5399_v17  ;;  %v12671_v62 = vand.u32 2147483647, %v11326_v53 }
 0x739   : > { %v5500_v19 = vsub.s32 4, %v12674_v34  ;;  %v12004_v40 = vsel %vm5728_vm3, %v5810_v51, %v11834_v9  ;;  %vm5194_vm15 = vweird.f32 %v10955_v48  ;;  %v5204_v18 = vsel %vm5197_vm5, %v5200_v46, %v5203_v60 }
 0x73a   : > { %vm11994_vm11 = vcmp.le.f32.partialorder %v12671_v62, 0.7853982  ;;  %v5205_v41 = vsel %vm5194_vm15, nan, %v5204_v18  ;;  %v12675_v37 = vand.u32 2147483647, %v11247_v10  ;;  %v5707_v31 = vsel %vm5624_vm12, %v5706_v11, %v11899_v15 }
 0x73b   : > { %v5502_v29 = vsel %vm11994_vm11, %v11326_v53, %v11889_v0  ;;  %v5501_v24 = vsel %vm5416_vm6, %v5500_v19, %v12674_v34  ;;  %v7204_v48 = vpop.eup %7203  ;;  %6646 = vmatmul.mubr.f32.gmra.mrb[24].mxu1 %v5205_v41  ;;  %v5604_v0 = vsub.s32 4, %v12678_v16  ;;  %vm5305_vm6 = vcmp.eq.s32.totalorder %v5300_v61, 2 }
 0x73c   : > { %7211 = vcosq.f32 %v5502_v29  ;;  %vm12017_vm7 = vcmp.le.f32.partialorder %v12675_v37, 0.7853982  ;;  %v5503_v51 = vsel %vm11994_vm11, 0, %v5501_v24  ;;  %v7206_v8 = vpop.eup %7205  ;;  %v5306_v63 = vxor.u32 2147483648, %v7204_v48 }
 0x73d   : > { %7213 = vsinq.f32 %v5502_v29  ;;  %v5606_v47 = vsel %vm12017_vm7, %v11247_v10, %v11764_v32  ;;  %v5404_v55 = vand.u32 3, %v5403_v59  ;;  %v5303_v44 = vxor.u32 2147483648, %v7206_v8 }
 0x73e   : > { %v5507_v50 = vadd.s32 3, %v5503_v51  ;;  %vm12679_vm0 = vcmp.lt.s32.totalorder %v11247_v10, 0  ;;  %7215 = vcosq.f32 %v5606_v47  ;;  %vm5302_vm14 = vcmp.eq.s32.totalorder %v5300_v61, 0 }
 0x73f   : > { %v5605_v14 = vsel %vm12679_vm0, %v5604_v0, %v12678_v16  ;;  %v7208_v33 = vpop.eup %7207  ;;  %v5307_v32 = vsel %vm5305_vm6, %v5306_v63, %v7206_v8  ;;  %7217 = vsinq.f32 %v5606_v47  ;;  %vm5298_vm9 = vweird.f32 %v11200_v6 }
 0x740   : > { %v5607_v20 = vsel %vm12017_vm7, 0, %v5605_v14  ;;  %vm5301_vm2 = vcmp.lt.s32.totalorder %v5300_v61, 2  ;;  %v5304_v15 = vsel %vm5302_vm14, %v7204_v48, %v5303_v44  ;;  %v5410_v11 = vxor.u32 2147483648, %v7208_v33 }
 0x741   : > { %v5308_v58 = vsel %vm5301_vm2, %v5304_v15, %v5307_v32  ;;  %v5508_v49 = vand.u32 3, %v5507_v50  ;;  %v5611_v57 = vadd.s32 3, %v5607_v20  ;;  %v5708_v25 = vsub.s32 4, %v11773_v52  ;;  %v7210_v27 = vpop.eup %7209 }
 0x742   : > { %v5309_v42 = vsel %vm5298_vm9, nan, %v5308_v58  ;;  %vm5402_vm1 = vweird.f32 %v11114_v3  ;;  %vm5409_vm10 = vcmp.eq.s32.totalorder %v5404_v55, 2  ;;  %vm5506_vm8 = vweird.f32 %v11326_v53 }
 0x743   : > { %6648 = vmatprep.mubr.f32.mxu1 %v5309_v42  ;;  %v5407_v28 = vxor.u32 2147483648, %v7210_v27  ;;  %v5411_v2 = vsel %vm5409_vm10, %v5410_v11, %v7210_v27  ;;  %v12680_v6 = vand.u32 2147483647, %v12670_v30  ;;  %v5709_v36 = vsel %vm5624_vm12, %v5708_v25, %v11773_v52 }
 0x744   : > { %vm5405_vm13 = vcmp.lt.s32.totalorder %v5404_v55, 2  ;;  %vm5406_vm4 = vcmp.eq.s32.totalorder %v5404_v55, 0  ;;  %v5812_v23 = vsub.s32 4, %v11654_v7  ;;  %vm5513_vm11 = vcmp.eq.s32.totalorder %v5508_v49, 2 }
 0x745   : > { %vm12044_vm5 = vcmp.le.f32.partialorder %v12680_v6, 0.7853982  ;;  %v5408_v13 = vsel %vm5406_vm4, %v7208_v33, %v5407_v28  ;;  %v5612_v39 = vand.u32 3, %v5611_v57  ;;  %v12683_v52 = vand.u32 2147483647, %v12665_v56 }
 0x746   : > { %v5710_v35 = vsel %vm12044_vm5, %v12670_v30, %v5707_v31  ;;  %v7212_v12 = vpop.eup %7211  ;;  %v5711_v4 = vsel %vm12044_vm5, 0, %v5709_v36  ;;  %v5412_v45 = vsel %vm5405_vm13, %v5408_v13, %v5411_v2  ;;  %v5813_v17 = vsel %vm5728_vm3, %v5812_v23, %v11654_v7 }
 0x747   : > { %v7214_v1 = vpop.eup %7213  ;;  %v5514_v5 = vxor.u32 2147483648, %v7212_v12  ;;  %7219 = vcosq.f32 %v5710_v35  ;;  %vm12059_vm12 = vcmp.le.f32.partialorder %v12683_v52, 0.7853982  ;;  %v5413_v38 = vsel %vm5402_vm1, nan, %v5412_v45 }
 0x748   : > { %v5511_v22 = vxor.u32 2147483648, %v7214_v1  ;;  %7221 = vsinq.f32 %v5710_v35  ;;  %v7216_v43 = vpop.eup %7215  ;;  %6649 = vmatmul.mubr.f32.gmra.mrb[26].mxu1 %v5413_v38  ;;  %vm5509_vm15 = vcmp.lt.s32.totalorder %v5508_v49, 2  ;;  %vm5510_vm7 = vcmp.eq.s32.totalorder %v5508_v49, 0 }
 0x749   : > { %v5515_v60 = vsel %vm5513_vm11, %v5514_v5, %v7214_v1  ;;  %v5814_v61 = vsel %vm12059_vm12, %v12665_v56, %v12004_v40  ;;  %v7218_v46 = vpop.eup %7217  ;;  %vm5617_vm6 = vcmp.eq.s32.totalorder %v5612_v39, 2  ;;  %v5618_v59 = vxor.u32 2147483648, %v7216_v43 }
 0x74a   : > { %v5512_v3 = vsel %vm5510_vm7, %v7212_v12, %v5511_v22  ;;  %7223 = vcosq.f32 %v5814_v61  ;;  %v5615_v26 = vxor.u32 2147483648, %v7218_v46  ;;  %v5715_v34 = vadd.s32 3, %v5711_v4 }
 0x74b   : > { %v5516_v62 = vsel %vm5509_vm15, %v5512_v3, %v5515_v60  ;;  %v5815_v7 = vsel %vm12059_vm12, 0, %v5813_v17  ;;  %vm5614_vm3 = vcmp.eq.s32.totalorder %v5612_v39, 0  ;;  %v5619_v18 = vsel %vm5617_vm6, %v5618_v59, %v7218_v46 }
 0x74c   : > { %v5517_v19 = vsel %vm5506_vm8, nan, %v5516_v62  ;;  %7225 = vsinq.f32 %v5814_v61  ;;  %vm5613_vm0 = vcmp.lt.s32.totalorder %v5612_v39, 2  ;;  %v5616_v40 = vsel %vm5614_vm3, %v7216_v43, %v5615_v26 }
 0x74d   : > { %6651 = vmatprep.mubr.f32.mxu1 %v5517_v19  ;;  %vm5610_vm14 = vweird.f32 %v11247_v10  ;;  %v5620_v29 = vsel %vm5613_vm0, %v5616_v40, %v5619_v18  ;;  %v5819_v41 = vadd.s32 3, %v5815_v7  ;;  %v5716_v37 = vand.u32 3, %v5715_v34 }
 0x74e   : > { %v5621_v24 = vsel %vm5610_vm14, nan, %v5620_v29  ;;  %vm5714_vm10 = vweird.f32 %v12670_v30  ;;  %vm5818_vm4 = vweird.f32 %v12665_v56  ;;  %v6301_v30 = vld [vmem:[%s12141_s6] ss:$0 sm:$0xff]  ;;  %vm5998_vm11 = vcmask 97280  }
 0x74f   : > { %6652 = vmatmul.mubr.f32.gmra.mrb[28].mxu1 %v5621_v24  ;;  %v5820_v16 = vand.u32 3, %v5819_v41  ;;  %vm5721_vm9 = vcmp.eq.s32.totalorder %v5716_v37, 2  ;;  %vm5718_vm2 = vcmp.eq.s32.totalorder %v5716_v37, 0  ;;  %vm5717_vm1 = vcmp.lt.s32.totalorder %v5716_v37, 2 }
 0x751   : > { %v7220_v9 = vpop.eup %7219  ;;  %vm5825_vm8 = vcmp.eq.s32.totalorder %v5820_v16, 2  ;;  %vm5822_vm5 = vcmp.eq.s32.totalorder %v5820_v16, 0  ;;  %vm5821_vm13 = vcmp.lt.s32.totalorder %v5820_v16, 2 }
 0x752   : > { %v7222_v48 = vpop.eup %7221  ;;  %v5722_v51 = vxor.u32 2147483648, %v7220_v9 }
 0x753   : > { %v5719_v0 = vxor.u32 2147483648, %v7222_v48 }
 0x754   : > { %v7224_v53 = vpop.eup %7223  ;;  %v5723_v47 = vsel %vm5721_vm9, %v5722_v51, %v7222_v48 }
 0x755   : > { %v5720_v8 = vsel %vm5718_vm2, %v7220_v9, %v5719_v0  ;;  %v5826_v31 = vxor.u32 2147483648, %v7224_v53 }
 0x756   : > { %v7226_v63 = vpop.eup %7225  ;;  %v5724_v10 = vsel %vm5717_vm1, %v5720_v8, %v5723_v47 }
 0x757   : > { %v5725_v55 = vsel %vm5714_vm10, nan, %v5724_v10  ;;  %v5823_v44 = vxor.u32 2147483648, %v7226_v63  ;;  %v5827_v50 = vsel %vm5825_vm8, %v5826_v31, %v7226_v63 }
 0x758   : > { %6654 = vmatprep.mubr.f32.mxu1 %v5725_v55 }
 0x759   : > { %v5824_v14 = vsel %vm5822_vm5, %v7224_v53, %v5823_v44 }
 0x75a   : > { %v5828_v33 = vsel %vm5821_vm13, %v5824_v14, %v5827_v50 }
 0x75b   : > { %v5829_v32 = vsel %vm5818_vm4, nan, %v5828_v33 }
 0x75c   : > { %6655 = vmatmul.mubr.f32.gmra.mrb[30].mxu1 %v5829_v32 }
 0x7df   : > { %v6635_v56 = vpop.f32.mrb[16].mxu1 }
 0x7e0   : > { %v5925_v20 = vadd.f32 %v6635_v56, %v6301_v30  ;;  %v5919_v15 = vpop.f32.mrb[17].mxu1 }
 0x7e1   : > { %v5920_v11 = vadd.f32 %v6301_v30, %v5919_v15 }
 0x7e2   : > { %6000 = vst.msk [vmem:[%s12088_s20 + $0x8] sm:$0xff] %vm5998_vm11, %v5925_v20 }
 0x7e3   : > { %5999 = vst.msk [vmem:[%s12088_s20] sm:$0xff] %vm5998_vm11, %v5920_v11 }
 0x7ef   : > { %v6638_v58 = vpop.f32.mrb[18].mxu1 }
 0x7f0   : > { %v5935_v49 = vadd.f32 %v6638_v58, %v6301_v30  ;;  %v5929_v57 = vpop.f32.mrb[19].mxu1 }
 0x7f1   : > { %v5930_v25 = vadd.f32 %v6301_v30, %v5929_v57 }
 0x7f2   : > { %6002 = vst.msk [vmem:[%s12088_s20 + $0x18] sm:$0xff] %vm5998_vm11, %v5935_v49 }
 0x7f3   : > { %6001 = vst.msk [vmem:[%s12088_s20 + $0x10] sm:$0xff] %vm5998_vm11, %v5930_v25 }
 0x7f9   : > { %v6641_v27 = vpop.f32.mrb[20].mxu1 }
 0x7fa   : > { %v5945_v42 = vadd.f32 %v6641_v27, %v6301_v30  ;;  %v5939_v28 = vpop.f32.mrb[21].mxu1 }
 0x7fb   : > { %v5940_v2 = vadd.f32 %v6301_v30, %v5939_v28 }
 0x7fc   : > { %6004 = vst.msk [vmem:[%s12088_s20 + $0x28] sm:$0xff] %vm5998_vm11, %v5945_v42 }
 0x7fd   : > { %6003 = vst.msk [vmem:[%s12088_s20 + $0x20] sm:$0xff] %vm5998_vm11, %v5940_v2 }
 0x808   : > { %v6644_v6 = vpop.f32.mrb[22].mxu1 }
 0x809   : > { %v5955_v21 = vadd.f32 %v6644_v6, %v6301_v30  ;;  %v5949_v36 = vpop.f32.mrb[23].mxu1 }
 0x80a   : > { %v5950_v35 = vadd.f32 %v6301_v30, %v5949_v36 }
 0x80b   : > { %6006 = vst.msk [vmem:[%s12088_s20 + $0x38] sm:$0xff] %vm5998_vm11, %v5955_v21 }
 0x80c   : > { %6005 = vst.msk [vmem:[%s12088_s20 + $0x30] sm:$0xff] %vm5998_vm11, %v5950_v35 }
 0x80e   : > { %v6647_v23 = vpop.f32.mrb[24].mxu1 }
 0x80f   : > { %v5965_v12 = vadd.f32 %v6647_v23, %v6301_v30  ;;  %v5959_v13 = vpop.f32.mrb[25].mxu1 }
 0x810   : > { %v5960_v39 = vadd.f32 %v6301_v30, %v5959_v13 }
 0x811   : > { %6008 = vst.msk [vmem:[%s12088_s20 + $0x48] sm:$0xff] %vm5998_vm11, %v5965_v12 }
 0x812   : > { %6007 = vst.msk [vmem:[%s12088_s20 + $0x40] sm:$0xff] %vm5998_vm11, %v5960_v39 }
 0x81b   : > { %v6650_v4 = vpop.f32.mrb[26].mxu1 }
 0x81c   : > { %v5975_v1 = vadd.f32 %v6650_v4, %v6301_v30  ;;  %v5969_v45 = vpop.f32.mrb[27].mxu1 }
 0x81d   : > { %v5970_v5 = vadd.f32 %v6301_v30, %v5969_v45 }
 0x81e   : > { %6010 = vst.msk [vmem:[%s12088_s20 + $0x58] sm:$0xff] %vm5998_vm11, %v5975_v1 }
 0x81f   : > { %6009 = vst.msk [vmem:[%s12088_s20 + $0x50] sm:$0xff] %vm5998_vm11, %v5970_v5 }
 0x822   : > { %v6653_v52 = vpop.f32.mrb[28].mxu1 }
 0x823   : > { %v5985_v54 = vadd.f32 %v6653_v52, %v6301_v30  ;;  %v5979_v38 = vpop.f32.mrb[29].mxu1 }
 0x824   : > { %v5980_v22 = vadd.f32 %v6301_v30, %v5979_v38 }
 0x825   : > { %6012 = vst.msk [vmem:[%s12088_s20 + $0x68] sm:$0xff] %vm5998_vm11, %v5985_v54 }
 0x826   : > { %6011 = vst.msk [vmem:[%s12088_s20 + $0x60] sm:$0xff] %vm5998_vm11, %v5980_v22 }
 0x82f   : > { %v6656_v17 = vpop.f32.mrb[30].mxu1 }
 0x830   : > { %v5995_v43 = vadd.f32 %v6656_v17, %v6301_v30  ;;  %v5989_v60 = vpop.f32.mrb[31].mxu1 }
 0x831   : > { %v5990_v61 = vadd.f32 %v6301_v30, %v5989_v60 }
 0x832   : > { %6014 = vst.msk [vmem:[%s12088_s20 + $0x78] sm:$0xff] %vm5998_vm11, %v5995_v43 }
 0x833   : > { %6013 = vst.msk [vmem:[%s12088_s20 + $0x70] sm:$0xff] %vm5998_vm11, %v5990_v61 }
 0x834 PF: > { %p18_p6 = scmp.ge.s32.totalorder %s7425_s12, 4   ;;  %s12686_s24 = smov %s7318_s25 }
 0x835   : > { %s12687_s25 = smov %s7322_s26  ;;  %s12688_s26 = smov %s7454_s16 }
 0x836   : > { %s12689_s27 = smov %s7425_s12  ;;  %20 = sbr.rel (!%p18_p6) target bundleno = 4 (0x4), region = 94 }
 0x83d   :  { %6037 = vsyncpa [#allocation3], 1 }
 0x83e   :  { %6039 = vsyncpa [#allocation3 + $0x1], 1 }
 0x83f   :  { %6040 = vsyncpa [#allocation5], 1 }

</bundles_post_ra>
